<compile_context>
chip_gen: v6e
topology: v6e:2x2x1
jax: 0.10.0
libtpu: 0.0.40
codegen_flags: <defaults>
</compile_context>

<pallas_src>
import jax
import jax.numpy as jnp
from jax.experimental import pallas as pl
from jax.experimental.pallas import tpu as pltpu

COMPUTE_DTYPE = jnp.bfloat16       # MXU operand dtype (f32 accumulate everywhere)
N_CONV_LAYERS = 4
VMEM_LIMIT_BYTES = 32 * 1024 * 1024  # explicit; safe on v5e/v6e (128 MiB) and v7x (64 MiB)


# -----------------------------------------------------------------------------
# Fused kernel: conv stack + layout + 2-layer LSTM, last-step hidden state out.
# Generic over the batch dim B of x_ref (B=2 single-invocation, B=1 per grid
# step on the v7x batch-parallel path).
# -----------------------------------------------------------------------------
def _fused_kernel(x_ref,                                   # (B, T, C)        f32
                  w1_ref, b1_ref,                          # (K*C, CF) bf16, (1, CF) f32
                  w2_ref, b2_ref,                          # (K*CF, CF) bf16, (1, CF) f32
                  w3_ref, b3_ref,
                  w4_ref, b4_ref,
                  wih0_ref, whh0_ref, bl0_ref,             # (CF,4H)/(H,4H) bf16, (1,4H) f32
                  wl1_ref, bl1_ref,                        # (2H,4H) bf16,   (1,4H) f32
                  o_ref,                                   # (B, H) or (1,1,H) f32
                  g0_scr):                                 # VMEM (T', B, 4H) f32
    B, T, C = x_ref.shape
    K = w1_ref.shape[0] // C
    H = whh0_ref.shape[0]
    cdt = w1_ref.dtype

    # ---- conv layer 1: per-batch im2col (K*C contraction), batch-stacked,
    #      ONE matmul for all batch elements ------------------------------
    T1 = T - K + 1
    xb = x_ref[...].astype(cdt)                                    # (B, T, C)
    win1 = jnp.concatenate(
        [jnp.concatenate([xb[b, k:k + T1, :] for k in range(K)], axis=1)
         for b in range(B)], axis=0)                               # (B*T1, K*C)
    a = jnp.dot(win1, w1_ref[...], preferred_element_type=jnp.float32)
    a = jnp.maximum(a + b1_ref[...], 0.0).astype(cdt)              # (B*T1, CF) bf16

    # ---- conv layers 2..4: lane-concat of K shifted windows, batch-stacked,
    #      ONE matmul per layer; activations kept bf16 right after the ReLU --
    def conv_layer(a, t_in, w_ref, b_ref):
        t_out = t_in - K + 1
        win = jnp.concatenate(
            [jnp.concatenate([a[b * t_in + k: b * t_in + k + t_out, :]
                              for k in range(K)], axis=1)
             for b in range(B)], axis=0)                           # (B*t_out, K*CF) bf16
        y = jnp.dot(win, w_ref[...], preferred_element_type=jnp.float32)
        return jnp.maximum(y + b_ref[...], 0.0).astype(cdt), t_out

    a, t_len = conv_layer(a, T1, w2_ref, b2_ref)
    a, t_len = conv_layer(a, t_len, w3_ref, b3_ref)
    a, t_len = conv_layer(a, t_len, w4_ref, b4_ref)                # (B*T', CF) bf16
    T4 = t_len

    # NOTE: nn.Dropout(0.5) is identity in the eval-mode forward.
    # TODO(synk): add stochastic dropout (pltpu.prng_*) if a training-mode
    #             forward is ever required.

    # ---- hoisted LSTM layer-0 input projection for ALL timesteps (1 matmul),
    #      staged time-major in VMEM scratch for static per-step reads -------
    g0 = jnp.dot(a, wih0_ref[...], preferred_element_type=jnp.float32) \
        + bl0_ref[...]                                             # (B*T', 4H) batch-major
    g0_scr[...] = jnp.swapaxes(g0.reshape(B, T4, 4 * H), 0, 1)     # (T', B, 4H)

    # ---- loop-invariant loads / broadcasts hoisted out of the recurrence ----
    whh0 = whh0_ref[...]                                           # (H, 4H)  bf16
    wl1 = wl1_ref[...]                                             # (2H, 4H) bf16
    bl1 = jnp.broadcast_to(bl1_ref[...], (B, 4 * H))               # (B, 4H)  f32

    def lstm_gates(g, c_prev):          # gate columns pre-permuted to (i, f, o, g)
        sig = jax.nn.sigmoid(g[:, :3 * H])                         # one EUP chain
        i, f, o = sig[:, :H], sig[:, H:2 * H], sig[:, 2 * H:3 * H]
        gg = jnp.tanh(g[:, 3 * H:])
        c_new = f * c_prev + i * gg
        return o * jnp.tanh(c_new), c_new

    h0 = jnp.zeros((B, H), jnp.float32)
    c0 = jnp.zeros((B, H), jnp.float32)
    h1 = jnp.zeros((B, H), jnp.float32)
    c1 = jnp.zeros((B, H), jnp.float32)

    for t in range(T4):                                            # T' = 8, static unroll
        # layer 0: recurrent matmul only (input projection pre-computed)
        g0_t = g0_scr[t] + jnp.dot(h0.astype(cdt), whh0,
                                   preferred_element_type=jnp.float32)
        h0, c0 = lstm_gates(g0_t, c0)
        # layer 1: single fused (B,2H) x (2H,4H) recurrent matmul
        hcat = jnp.concatenate([h0, h1], axis=1).astype(cdt)       # (B, 2H)
        g1 = jnp.dot(hcat, wl1, preferred_element_type=jnp.float32) + bl1
        h1, c1 = lstm_gates(g1, c1)

    o_ref[...] = h1.reshape(o_ref.shape)                           # last-step h of layer 1


# -----------------------------------------------------------------------------
# One-time weight preparation: lane-packed conv expansion, gate-column permute
# (i,f,g,o) -> (i,f,o,g), layer-1 weight fusion, bf16 cast of matmul weights.
# -----------------------------------------------------------------------------
def prepare_params(params, compute_dtype=COMPUTE_DTYPE):
    (w1, b1), (w2, b2), (w3, b3), (w4, b4) = params["convs"]
    wih0, whh0, bl0, wih1, whh1, bl1 = params["lstm"]
    K, _, F = w1.shape
    C = wih0.shape[0] // F
    H = whh0.shape[0]
    eye = jnp.eye(C, dtype=jnp.float32)

    def expand_first(w):   # (K, 1, F) -> (K*C, C*F) im2col selection weight
        return jnp.einsum("ko,cd->kcdo", w[:, 0, :], eye).reshape(K * C, C * F)

    def expand_mid(w):     # (K, F, F) -> (K*C*F, C*F) block-diagonal weight
        return jnp.einsum("kio,cd->kcido", w, eye).reshape(K * C * F, C * F)

    def expand_bias(b):    # (1, F) -> (1, C*F)
        return jnp.tile(b, (1, C))

    def perm_gates(w):     # reorder 4H columns (i,f,g,o) -> (i,f,o,g)
        return jnp.concatenate([w[:, :2 * H], w[:, 3 * H:], w[:, 2 * H:3 * H]], axis=1)

    wl1 = jnp.concatenate([perm_gates(wih1), perm_gates(whh1)], axis=0)  # (2H, 4H)

    return {
        "w1": expand_first(w1).astype(compute_dtype), "b1": expand_bias(b1),
        "w2": expand_mid(w2).astype(compute_dtype),   "b2": expand_bias(b2),
        "w3": expand_mid(w3).astype(compute_dtype),   "b3": expand_bias(b3),
        "w4": expand_mid(w4).astype(compute_dtype),   "b4": expand_bias(b4),
        "wih0": perm_gates(wih0).astype(compute_dtype),
        "whh0": perm_gates(whh0).astype(compute_dtype),
        "bl0": perm_gates(bl0),
        "wl1": wl1.astype(compute_dtype),
        "bl1": perm_gates(bl1),
    }


# -----------------------------------------------------------------------------
# Full forward (backbone=True -> returns (None, features)).
# -----------------------------------------------------------------------------
def _is_v7x():
    try:
        kind = jax.devices()[0].device_kind.lower()
    except Exception:
        return False
    return ("v7" in kind) or ("tpu7" in kind)


def deep_conv_lstm_forward(x, prep):
    # x: (B, T, C) == the PyTorch input before .unsqueeze(1)
    B, T, C = x.shape
    H = prep["whh0"].shape[0]
    K = prep["w1"].shape[0] // C
    T4 = T - N_CONV_LAYERS * (K - 1)

    weights = (prep["w1"], prep["b1"], prep["w2"], prep["b2"],
               prep["w3"], prep["b3"], prep["w4"], prep["b4"],
               prep["wih0"], prep["whh0"], prep["bl0"],
               prep["wl1"], prep["bl1"])

    if _is_v7x() and B > 1:
        # v7x: 2 TensorCores per chip -> one batch element per core.
        feats = pl.pallas_call(
            _fused_kernel,
            grid=(B,),
            in_specs=[pl.BlockSpec((1, T, C), lambda b: (b, 0, 0))]
                     + [pl.BlockSpec(w.shape, lambda b: (0, 0)) for w in weights],
            out_specs=pl.BlockSpec((1, 1, H), lambda b: (b, 0, 0)),
            out_shape=jax.ShapeDtypeStruct((B, 1, H), jnp.float32),
            scratch_shapes=[pltpu.VMEM((T4, 1, 4 * H), jnp.float32)],
            compiler_params=pltpu.CompilerParams(
                dimension_semantics=("parallel",),
                vmem_limit_bytes=VMEM_LIMIT_BYTES),
        )(x, *weights)
        feats = feats.reshape(B, H)
    else:
        # v5e/v6e (single TC): one batched invocation, so the serial LSTM
        # recurrence runs once with B rows; everything (~3 MB) lives in VMEM.
        feats = pl.pallas_call(
            _fused_kernel,
            out_shape=jax.ShapeDtypeStruct((B, H), jnp.float32),
            scratch_shapes=[pltpu.VMEM((T4, B, 4 * H), jnp.float32)],
            compiler_params=pltpu.CompilerParams(
                vmem_limit_bytes=VMEM_LIMIT_BYTES),
        )(x, *weights)
    return None, feats                                             # backbone == True


# -----------------------------------------------------------------------------
# Pure-JAX f32 reference (original, un-expanded / un-permuted weights).
# -----------------------------------------------------------------------------
def ref_forward(x, params):
    h = jnp.transpose(x, (0, 2, 1))[..., None]                     # (B, C, T, 1)
    for w, b in params["convs"]:
        K = w.shape[0]
        T_out = h.shape[2] - K + 1
        acc = jnp.zeros(h.shape[:2] + (T_out, w.shape[2]), jnp.float32)
        for k in range(K):
            acc = acc + jnp.einsum("bcti,io->bcto", h[:, :, k:k + T_out, :], w[k])
        h = jax.nn.relu(acc + b[0])
    Bn, Cn, T4, F = h.shape
    seq = jnp.transpose(h, (2, 0, 1, 3)).reshape(T4, Bn, Cn * F)

    wih0, whh0, b0, wih1, whh1, b1 = params["lstm"]
    H = whh0.shape[0]

    def cell(x_t, h_, c_, wih, whh, b):
        g = x_t @ wih + h_ @ whh + b
        i = jax.nn.sigmoid(g[:, :H])
        f = jax.nn.sigmoid(g[:, H:2 * H])
        gg = jnp.tanh(g[:, 2 * H:3 * H])
        o = jax.nn.sigmoid(g[:, 3 * H:])
        c_new = f * c_ + i * gg
        return o * jnp.tanh(c_new), c_new

    h0 = c0 = h1 = c1 = jnp.zeros((Bn, H), jnp.float32)
    for t in range(T4):
        h0, c0 = cell(seq[t], h0, c0, wih0, whh0, b0)
        h1, c1 = cell(h0, h1, c1, wih1, whh1, b1)
    return h1


# -----------------------------------------------------------------------------
if __name__ == "__main__":
    # Shapes consistent with the module: n_channels C=4, conv_kernels F=64,
    # kernel_size K=5, LSTM_units H=128, window length T=24 -> T' = 8.
    B, T, C = 2, 24, 4
    F, K, H = 64, 5, 128
    D = C * F

    key = jax.random.PRNGKey(0)
    ks = jax.random.split(key, 16)

    def u(k, shape, bound):
        return jax.random.uniform(k, shape, jnp.float32, -bound, bound)

    # Conv weights (K, Cin, Cout); biases (1, Cout).
    convs = []
    bnd1 = 1.0 / (1 * K) ** 0.5
    convs.append((u(ks[0], (K, 1, F), bnd1), u(ks[1], (1, F), bnd1)))
    bnd = 1.0 / (F * K) ** 0.5
    for i in range(3):
        convs.append((u(ks[2 + 2 * i], (K, F, F), bnd),
                      u(ks[3 + 2 * i], (1, F), bnd)))

    # LSTM weights transposed: W_ih^T (in,4H), W_hh^T (H,4H); combined biases.
    bl = 1.0 / H ** 0.5
    lstm = (u(ks[8], (D, 4 * H), bl), u(ks[9], (H, 4 * H), bl), u(ks[10], (1, 4 * H), bl),
            u(ks[11], (H, 4 * H), bl), u(ks[12], (H, 4 * H), bl), u(ks[13], (1, 4 * H), bl))

    params = {"convs": convs, "lstm": lstm}
    prep = prepare_params(params)                                  # one-time weight prep

    x = jax.random.normal(ks[15], (B, T, C), jnp.float32)

    fwd = jax.jit(deep_conv_lstm_forward)
    out, feats = fwd(x, prep)
    feats = jax.block_until_ready(feats)
    assert out is None and feats.shape == (B, H)

    ref = jax.jit(ref_forward)(x, params)
    # bf16 MXU operands vs. f32 reference -> relaxed tolerance (intentional).
    assert bool(jnp.allclose(feats, ref, atol=3e-2, rtol=3e-2)), "mismatch vs reference"

    print("KERNEL_OK")
</pallas_src>

<mosaic_0001>
module attributes {stable_mosaic.version = 11 : i64} {
  func.func @_fused_kernel(%arg0: memref<2x24x4xf32, #tpu.memory_space<vmem>>, %arg1: memref<20x256xbf16, #tpu.memory_space<vmem>>, %arg2: memref<1x256xf32, #tpu.memory_space<vmem>>, %arg3: memref<1280x256xbf16, #tpu.memory_space<vmem>>, %arg4: memref<1x256xf32, #tpu.memory_space<vmem>>, %arg5: memref<1280x256xbf16, #tpu.memory_space<vmem>>, %arg6: memref<1x256xf32, #tpu.memory_space<vmem>>, %arg7: memref<1280x256xbf16, #tpu.memory_space<vmem>>, %arg8: memref<1x256xf32, #tpu.memory_space<vmem>>, %arg9: memref<256x512xbf16, #tpu.memory_space<vmem>>, %arg10: memref<128x512xbf16, #tpu.memory_space<vmem>>, %arg11: memref<1x512xf32, #tpu.memory_space<vmem>>, %arg12: memref<256x512xbf16, #tpu.memory_space<vmem>>, %arg13: memref<1x512xf32, #tpu.memory_space<vmem>>, %arg14: memref<2x128xf32, #tpu.memory_space<vmem>>, %arg15: memref<8x2x512xf32, #tpu.memory_space<vmem>>) attributes {dimension_semantics = [], scalar_prefetch = 0 : i64, scratch_operands = 1 : i64, tpu.core_type = #tpu.core_type<tc>} {
    %c0 = arith.constant 0 : index
    %c0_0 = arith.constant 0 : index
    %c0_1 = arith.constant 0 : index
    %0 = vector.load %arg0[%c0, %c0_0, %c0_1] : memref<2x24x4xf32, #tpu.memory_space<vmem>>, vector<2x24x4xf32>
    %1 = arith.truncf %0 : vector<2x24x4xf32> to vector<2x24x4xbf16>
    %2 = vector.extract_strided_slice %1 {offsets = [0, 0, 0], sizes = [1, 20, 4], strides = [1, 1, 1]} : vector<2x24x4xbf16> to vector<1x20x4xbf16>
    %3 = vector.shape_cast %2 : vector<1x20x4xbf16> to vector<20x4xbf16>
    %4 = vector.extract_strided_slice %1 {offsets = [0, 1, 0], sizes = [1, 20, 4], strides = [1, 1, 1]} : vector<2x24x4xbf16> to vector<1x20x4xbf16>
    %5 = vector.shape_cast %4 : vector<1x20x4xbf16> to vector<20x4xbf16>
    %6 = vector.extract_strided_slice %1 {offsets = [0, 2, 0], sizes = [1, 20, 4], strides = [1, 1, 1]} : vector<2x24x4xbf16> to vector<1x20x4xbf16>
    %7 = vector.shape_cast %6 : vector<1x20x4xbf16> to vector<20x4xbf16>
    %8 = vector.extract_strided_slice %1 {offsets = [0, 3, 0], sizes = [1, 20, 4], strides = [1, 1, 1]} : vector<2x24x4xbf16> to vector<1x20x4xbf16>
    %9 = vector.shape_cast %8 : vector<1x20x4xbf16> to vector<20x4xbf16>
    %10 = vector.extract_strided_slice %1 {offsets = [0, 4, 0], sizes = [1, 20, 4], strides = [1, 1, 1]} : vector<2x24x4xbf16> to vector<1x20x4xbf16>
    %11 = vector.shape_cast %10 : vector<1x20x4xbf16> to vector<20x4xbf16>
    %12 = tpu.concatenate %3, %5, %7, %9, %11 in 1 : vector<20x4xbf16>, vector<20x4xbf16>, vector<20x4xbf16>, vector<20x4xbf16>, vector<20x4xbf16> -> vector<20x20xbf16>
    %13 = vector.extract_strided_slice %1 {offsets = [1, 0, 0], sizes = [1, 20, 4], strides = [1, 1, 1]} : vector<2x24x4xbf16> to vector<1x20x4xbf16>
    %14 = vector.shape_cast %13 : vector<1x20x4xbf16> to vector<20x4xbf16>
    %15 = vector.extract_strided_slice %1 {offsets = [1, 1, 0], sizes = [1, 20, 4], strides = [1, 1, 1]} : vector<2x24x4xbf16> to vector<1x20x4xbf16>
    %16 = vector.shape_cast %15 : vector<1x20x4xbf16> to vector<20x4xbf16>
    %17 = vector.extract_strided_slice %1 {offsets = [1, 2, 0], sizes = [1, 20, 4], strides = [1, 1, 1]} : vector<2x24x4xbf16> to vector<1x20x4xbf16>
    %18 = vector.shape_cast %17 : vector<1x20x4xbf16> to vector<20x4xbf16>
    %19 = vector.extract_strided_slice %1 {offsets = [1, 3, 0], sizes = [1, 20, 4], strides = [1, 1, 1]} : vector<2x24x4xbf16> to vector<1x20x4xbf16>
    %20 = vector.shape_cast %19 : vector<1x20x4xbf16> to vector<20x4xbf16>
    %21 = vector.extract_strided_slice %1 {offsets = [1, 4, 0], sizes = [1, 20, 4], strides = [1, 1, 1]} : vector<2x24x4xbf16> to vector<1x20x4xbf16>
    %22 = vector.shape_cast %21 : vector<1x20x4xbf16> to vector<20x4xbf16>
    %23 = tpu.concatenate %14, %16, %18, %20, %22 in 1 : vector<20x4xbf16>, vector<20x4xbf16>, vector<20x4xbf16>, vector<20x4xbf16>, vector<20x4xbf16> -> vector<20x20xbf16>
    %24 = tpu.concatenate %12, %23 in 0 : vector<20x20xbf16>, vector<20x20xbf16> -> vector<40x20xbf16>
    %c0_2 = arith.constant 0 : index
    %c0_3 = arith.constant 0 : index
    %25 = vector.load %arg1[%c0_2, %c0_3] : memref<20x256xbf16, #tpu.memory_space<vmem>>, vector<20x256xbf16>
    %cst = arith.constant dense<0.000000e+00> : vector<40x256xf32>
    %26 = tpu.matmul %24, %25, %cst {dimension_numbers = #tpu.dot_dimension_numbers<[1], [0], [0], [1], [0, 0, 1, 1], [], []>} : vector<40x20xbf16>, vector<20x256xbf16>, vector<40x256xf32> -> vector<40x256xf32>
    %c0_4 = arith.constant 0 : index
    %c0_5 = arith.constant 0 : index
    %27 = vector.load %arg2[%c0_4, %c0_5] : memref<1x256xf32, #tpu.memory_space<vmem>>, vector<1x256xf32>
    %28 = vector.broadcast %27 : vector<1x256xf32> to vector<40x256xf32>
    %29 = arith.addf %26, %28 : vector<40x256xf32>
    %cst_6 = arith.constant 0.000000e+00 : f32
    %30 = vector.broadcast %cst_6 : f32 to vector<40x256xf32>
    %31 = arith.maximumf %29, %30 : vector<40x256xf32>
    %32 = arith.truncf %31 : vector<40x256xf32> to vector<40x256xbf16>
    %33 = vector.extract_strided_slice %32 {offsets = [0, 0], sizes = [16, 256], strides = [1, 1]} : vector<40x256xbf16> to vector<16x256xbf16>
    %34 = vector.extract_strided_slice %32 {offsets = [1, 0], sizes = [16, 256], strides = [1, 1]} : vector<40x256xbf16> to vector<16x256xbf16>
    %35 = vector.extract_strided_slice %32 {offsets = [2, 0], sizes = [16, 256], strides = [1, 1]} : vector<40x256xbf16> to vector<16x256xbf16>
    %36 = vector.extract_strided_slice %32 {offsets = [3, 0], sizes = [16, 256], strides = [1, 1]} : vector<40x256xbf16> to vector<16x256xbf16>
    %37 = vector.extract_strided_slice %32 {offsets = [4, 0], sizes = [16, 256], strides = [1, 1]} : vector<40x256xbf16> to vector<16x256xbf16>
    %38 = tpu.concatenate %33, %34, %35, %36, %37 in 1 : vector<16x256xbf16>, vector<16x256xbf16>, vector<16x256xbf16>, vector<16x256xbf16>, vector<16x256xbf16> -> vector<16x1280xbf16>
    %39 = vector.extract_strided_slice %32 {offsets = [20, 0], sizes = [16, 256], strides = [1, 1]} : vector<40x256xbf16> to vector<16x256xbf16>
    %40 = vector.extract_strided_slice %32 {offsets = [21, 0], sizes = [16, 256], strides = [1, 1]} : vector<40x256xbf16> to vector<16x256xbf16>
    %41 = vector.extract_strided_slice %32 {offsets = [22, 0], sizes = [16, 256], strides = [1, 1]} : vector<40x256xbf16> to vector<16x256xbf16>
    %42 = vector.extract_strided_slice %32 {offsets = [23, 0], sizes = [16, 256], strides = [1, 1]} : vector<40x256xbf16> to vector<16x256xbf16>
    %43 = vector.extract_strided_slice %32 {offsets = [24, 0], sizes = [16, 256], strides = [1, 1]} : vector<40x256xbf16> to vector<16x256xbf16>
    %44 = tpu.concatenate %39, %40, %41, %42, %43 in 1 : vector<16x256xbf16>, vector<16x256xbf16>, vector<16x256xbf16>, vector<16x256xbf16>, vector<16x256xbf16> -> vector<16x1280xbf16>
    %45 = tpu.concatenate %38, %44 in 0 : vector<16x1280xbf16>, vector<16x1280xbf16> -> vector<32x1280xbf16>
    %c0_7 = arith.constant 0 : index
    %c0_8 = arith.constant 0 : index
    %46 = vector.load %arg3[%c0_7, %c0_8] : memref<1280x256xbf16, #tpu.memory_space<vmem>>, vector<1280x256xbf16>
    %cst_9 = arith.constant dense<0.000000e+00> : vector<32x256xf32>
    %47 = tpu.matmul %45, %46, %cst_9 {dimension_numbers = #tpu.dot_dimension_numbers<[1], [0], [0], [1], [0, 0, 1, 1], [], []>} : vector<32x1280xbf16>, vector<1280x256xbf16>, vector<32x256xf32> -> vector<32x256xf32>
    %c0_10 = arith.constant 0 : index
    %c0_11 = arith.constant 0 : index
    %48 = vector.load %arg4[%c0_10, %c0_11] : memref<1x256xf32, #tpu.memory_space<vmem>>, vector<1x256xf32>
    %49 = vector.broadcast %48 : vector<1x256xf32> to vector<32x256xf32>
    %50 = arith.addf %47, %49 : vector<32x256xf32>
    %cst_12 = arith.constant 0.000000e+00 : f32
    %51 = vector.broadcast %cst_12 : f32 to vector<32x256xf32>
    %52 = arith.maximumf %50, %51 : vector<32x256xf32>
    %53 = arith.truncf %52 : vector<32x256xf32> to vector<32x256xbf16>
    %54 = vector.extract_strided_slice %53 {offsets = [0, 0], sizes = [12, 256], strides = [1, 1]} : vector<32x256xbf16> to vector<12x256xbf16>
    %55 = vector.extract_strided_slice %53 {offsets = [1, 0], sizes = [12, 256], strides = [1, 1]} : vector<32x256xbf16> to vector<12x256xbf16>
    %56 = vector.extract_strided_slice %53 {offsets = [2, 0], sizes = [12, 256], strides = [1, 1]} : vector<32x256xbf16> to vector<12x256xbf16>
    %57 = vector.extract_strided_slice %53 {offsets = [3, 0], sizes = [12, 256], strides = [1, 1]} : vector<32x256xbf16> to vector<12x256xbf16>
    %58 = vector.extract_strided_slice %53 {offsets = [4, 0], sizes = [12, 256], strides = [1, 1]} : vector<32x256xbf16> to vector<12x256xbf16>
    %59 = tpu.concatenate %54, %55, %56, %57, %58 in 1 : vector<12x256xbf16>, vector<12x256xbf16>, vector<12x256xbf16>, vector<12x256xbf16>, vector<12x256xbf16> -> vector<12x1280xbf16>
    %60 = vector.extract_strided_slice %53 {offsets = [16, 0], sizes = [12, 256], strides = [1, 1]} : vector<32x256xbf16> to vector<12x256xbf16>
    %61 = vector.extract_strided_slice %53 {offsets = [17, 0], sizes = [12, 256], strides = [1, 1]} : vector<32x256xbf16> to vector<12x256xbf16>
    %62 = vector.extract_strided_slice %53 {offsets = [18, 0], sizes = [12, 256], strides = [1, 1]} : vector<32x256xbf16> to vector<12x256xbf16>
    %63 = vector.extract_strided_slice %53 {offsets = [19, 0], sizes = [12, 256], strides = [1, 1]} : vector<32x256xbf16> to vector<12x256xbf16>
    %64 = vector.extract_strided_slice %53 {offsets = [20, 0], sizes = [12, 256], strides = [1, 1]} : vector<32x256xbf16> to vector<12x256xbf16>
    %65 = tpu.concatenate %60, %61, %62, %63, %64 in 1 : vector<12x256xbf16>, vector<12x256xbf16>, vector<12x256xbf16>, vector<12x256xbf16>, vector<12x256xbf16> -> vector<12x1280xbf16>
    %66 = tpu.concatenate %59, %65 in 0 : vector<12x1280xbf16>, vector<12x1280xbf16> -> vector<24x1280xbf16>
    %c0_13 = arith.constant 0 : index
    %c0_14 = arith.constant 0 : index
    %67 = vector.load %arg5[%c0_13, %c0_14] : memref<1280x256xbf16, #tpu.memory_space<vmem>>, vector<1280x256xbf16>
    %cst_15 = arith.constant dense<0.000000e+00> : vector<24x256xf32>
    %68 = tpu.matmul %66, %67, %cst_15 {dimension_numbers = #tpu.dot_dimension_numbers<[1], [0], [0], [1], [0, 0, 1, 1], [], []>} : vector<24x1280xbf16>, vector<1280x256xbf16>, vector<24x256xf32> -> vector<24x256xf32>
    %c0_16 = arith.constant 0 : index
    %c0_17 = arith.constant 0 : index
    %69 = vector.load %arg6[%c0_16, %c0_17] : memref<1x256xf32, #tpu.memory_space<vmem>>, vector<1x256xf32>
    %70 = vector.broadcast %69 : vector<1x256xf32> to vector<24x256xf32>
    %71 = arith.addf %68, %70 : vector<24x256xf32>
    %cst_18 = arith.constant 0.000000e+00 : f32
    %72 = vector.broadcast %cst_18 : f32 to vector<24x256xf32>
    %73 = arith.maximumf %71, %72 : vector<24x256xf32>
    %74 = arith.truncf %73 : vector<24x256xf32> to vector<24x256xbf16>
    %75 = vector.extract_strided_slice %74 {offsets = [0, 0], sizes = [8, 256], strides = [1, 1]} : vector<24x256xbf16> to vector<8x256xbf16>
    %76 = vector.extract_strided_slice %74 {offsets = [1, 0], sizes = [8, 256], strides = [1, 1]} : vector<24x256xbf16> to vector<8x256xbf16>
    %77 = vector.extract_strided_slice %74 {offsets = [2, 0], sizes = [8, 256], strides = [1, 1]} : vector<24x256xbf16> to vector<8x256xbf16>
    %78 = vector.extract_strided_slice %74 {offsets = [3, 0], sizes = [8, 256], strides = [1, 1]} : vector<24x256xbf16> to vector<8x256xbf16>
    %79 = vector.extract_strided_slice %74 {offsets = [4, 0], sizes = [8, 256], strides = [1, 1]} : vector<24x256xbf16> to vector<8x256xbf16>
    %80 = tpu.concatenate %75, %76, %77, %78, %79 in 1 : vector<8x256xbf16>, vector<8x256xbf16>, vector<8x256xbf16>, vector<8x256xbf16>, vector<8x256xbf16> -> vector<8x1280xbf16>
    %81 = vector.extract_strided_slice %74 {offsets = [12, 0], sizes = [8, 256], strides = [1, 1]} : vector<24x256xbf16> to vector<8x256xbf16>
    %82 = vector.extract_strided_slice %74 {offsets = [13, 0], sizes = [8, 256], strides = [1, 1]} : vector<24x256xbf16> to vector<8x256xbf16>
    %83 = vector.extract_strided_slice %74 {offsets = [14, 0], sizes = [8, 256], strides = [1, 1]} : vector<24x256xbf16> to vector<8x256xbf16>
    %84 = vector.extract_strided_slice %74 {offsets = [15, 0], sizes = [8, 256], strides = [1, 1]} : vector<24x256xbf16> to vector<8x256xbf16>
    %85 = vector.extract_strided_slice %74 {offsets = [16, 0], sizes = [8, 256], strides = [1, 1]} : vector<24x256xbf16> to vector<8x256xbf16>
    %86 = tpu.concatenate %81, %82, %83, %84, %85 in 1 : vector<8x256xbf16>, vector<8x256xbf16>, vector<8x256xbf16>, vector<8x256xbf16>, vector<8x256xbf16> -> vector<8x1280xbf16>
    %87 = tpu.concatenate %80, %86 in 0 : vector<8x1280xbf16>, vector<8x1280xbf16> -> vector<16x1280xbf16>
    %c0_19 = arith.constant 0 : index
    %c0_20 = arith.constant 0 : index
    %88 = vector.load %arg7[%c0_19, %c0_20] : memref<1280x256xbf16, #tpu.memory_space<vmem>>, vector<1280x256xbf16>
    %cst_21 = arith.constant dense<0.000000e+00> : vector<16x256xf32>
    %89 = tpu.matmul %87, %88, %cst_21 {dimension_numbers = #tpu.dot_dimension_numbers<[1], [0], [0], [1], [0, 0, 1, 1], [], []>} : vector<16x1280xbf16>, vector<1280x256xbf16>, vector<16x256xf32> -> vector<16x256xf32>
    %c0_22 = arith.constant 0 : index
    %c0_23 = arith.constant 0 : index
    %90 = vector.load %arg8[%c0_22, %c0_23] : memref<1x256xf32, #tpu.memory_space<vmem>>, vector<1x256xf32>
    %91 = vector.broadcast %90 : vector<1x256xf32> to vector<16x256xf32>
    %92 = arith.addf %89, %91 : vector<16x256xf32>
    %cst_24 = arith.constant 0.000000e+00 : f32
    %93 = vector.broadcast %cst_24 : f32 to vector<16x256xf32>
    %94 = arith.maximumf %92, %93 : vector<16x256xf32>
    %95 = arith.truncf %94 : vector<16x256xf32> to vector<16x256xbf16>
    %c0_25 = arith.constant 0 : index
    %c0_26 = arith.constant 0 : index
    %96 = vector.load %arg9[%c0_25, %c0_26] : memref<256x512xbf16, #tpu.memory_space<vmem>>, vector<256x512xbf16>
    %cst_27 = arith.constant dense<0.000000e+00> : vector<16x512xf32>
    %97 = tpu.matmul %95, %96, %cst_27 {dimension_numbers = #tpu.dot_dimension_numbers<[1], [0], [0], [1], [0, 0, 1, 1], [], []>} : vector<16x256xbf16>, vector<256x512xbf16>, vector<16x512xf32> -> vector<16x512xf32>
    %c0_28 = arith.constant 0 : index
    %c0_29 = arith.constant 0 : index
    %98 = vector.load %arg11[%c0_28, %c0_29] : memref<1x512xf32, #tpu.memory_space<vmem>>, vector<1x512xf32>
    %99 = vector.broadcast %98 : vector<1x512xf32> to vector<16x512xf32>
    %100 = arith.addf %97, %99 : vector<16x512xf32>
    %101 = vector.shape_cast %100 : vector<16x512xf32> to vector<2x8x512xf32>
    %102 = tpu.transpose %101, [1, 0, 2] : vector<2x8x512xf32> -> vector<8x2x512xf32>
    %c0_30 = arith.constant 0 : index
    %c0_31 = arith.constant 0 : index
    %c0_32 = arith.constant 0 : index
    %103 = vector.load %arg15[%c0_30, %c0_31, %c0_32] : memref<8x2x512xf32, #tpu.memory_space<vmem>>, vector<8x2x512xf32>
    tpu.vector_store %arg15[%c0_30, %c0_31, %c0_32], %102 {strides = array<i32>} : memref<8x2x512xf32, #tpu.memory_space<vmem>>, vector<8x2x512xf32>,
    %c0_33 = arith.constant 0 : index
    %c0_34 = arith.constant 0 : index
    %104 = vector.load %arg10[%c0_33, %c0_34] : memref<128x512xbf16, #tpu.memory_space<vmem>>, vector<128x512xbf16>
    %c0_35 = arith.constant 0 : index
    %c0_36 = arith.constant 0 : index
    %105 = vector.load %arg12[%c0_35, %c0_36] : memref<256x512xbf16, #tpu.memory_space<vmem>>, vector<256x512xbf16>
    %c0_37 = arith.constant 0 : index
    %c0_38 = arith.constant 0 : index
    %106 = vector.load %arg13[%c0_37, %c0_38] : memref<1x512xf32, #tpu.memory_space<vmem>>, vector<1x512xf32>
    %107 = vector.shape_cast %106 : vector<1x512xf32> to vector<1x512xf32>
    %108 = vector.broadcast %107 : vector<1x512xf32> to vector<2x512xf32>
    %cst_39 = arith.constant 0.000000e+00 : f32
    %109 = vector.broadcast %cst_39 : f32 to vector<2x128xf32>
    %cst_40 = arith.constant 0.000000e+00 : f32
    %110 = vector.broadcast %cst_40 : f32 to vector<2x128xf32>
    %cst_41 = arith.constant 0.000000e+00 : f32
    %111 = vector.broadcast %cst_41 : f32 to vector<2x128xf32>
    %cst_42 = arith.constant 0.000000e+00 : f32
    %112 = vector.broadcast %cst_42 : f32 to vector<2x128xf32>
    %c0_43 = arith.constant 0 : index
    %c0_44 = arith.constant 0 : index
    %c0_45 = arith.constant 0 : index
    %113 = vector.load %arg15[%c0_43, %c0_44, %c0_45] : memref<8x2x512xf32, #tpu.memory_space<vmem>>, vector<1x2x512xf32>
    %114 = vector.shape_cast %113 : vector<1x2x512xf32> to vector<2x512xf32>
    %115 = arith.truncf %109 : vector<2x128xf32> to vector<2x128xbf16>
    %cst_46 = arith.constant dense<0.000000e+00> : vector<2x512xf32>
    %116 = tpu.matmul %115, %104, %cst_46 {dimension_numbers = #tpu.dot_dimension_numbers<[1], [0], [0], [1], [0, 0, 1, 1], [], []>} : vector<2x128xbf16>, vector<128x512xbf16>, vector<2x512xf32> -> vector<2x512xf32>
    %117 = arith.addf %114, %116 : vector<2x512xf32>
    %118 = vector.extract_strided_slice %117 {offsets = [0, 0], sizes = [2, 384], strides = [1, 1]} : vector<2x512xf32> to vector<2x384xf32>
    %119 = arith.negf %118 : vector<2x384xf32>
    %120 = math.exp %119 : vector<2x384xf32>
    %cst_47 = arith.constant 1.000000e+00 : f32
    %121 = vector.broadcast %cst_47 : f32 to vector<2x384xf32>
    %122 = arith.addf %121, %120 : vector<2x384xf32>
    %123 = arith.divf %121, %122 : vector<2x384xf32>
    %124 = vector.extract_strided_slice %123 {offsets = [0, 0], sizes = [2, 128], strides = [1, 1]} : vector<2x384xf32> to vector<2x128xf32>
    %125 = vector.extract_strided_slice %123 {offsets = [0, 128], sizes = [2, 128], strides = [1, 1]} : vector<2x384xf32> to vector<2x128xf32>
    %126 = vector.extract_strided_slice %123 {offsets = [0, 256], sizes = [2, 128], strides = [1, 1]} : vector<2x384xf32> to vector<2x128xf32>
    %127 = vector.extract_strided_slice %117 {offsets = [0, 384], sizes = [2, 128], strides = [1, 1]} : vector<2x512xf32> to vector<2x128xf32>
    %128 = math.tanh %127 : vector<2x128xf32>
    %129 = arith.mulf %125, %110 : vector<2x128xf32>
    %130 = arith.mulf %124, %128 : vector<2x128xf32>
    %131 = arith.addf %129, %130 : vector<2x128xf32>
    %132 = math.tanh %131 : vector<2x128xf32>
    %133 = arith.mulf %126, %132 : vector<2x128xf32>
    %134 = tpu.concatenate %133, %111 in 1 : vector<2x128xf32>, vector<2x128xf32> -> vector<2x256xf32>
    %135 = arith.truncf %134 : vector<2x256xf32> to vector<2x256xbf16>
    %cst_48 = arith.constant dense<0.000000e+00> : vector<2x512xf32>
    %136 = tpu.matmul %135, %105, %cst_48 {dimension_numbers = #tpu.dot_dimension_numbers<[1], [0], [0], [1], [0, 0, 1, 1], [], []>} : vector<2x256xbf16>, vector<256x512xbf16>, vector<2x512xf32> -> vector<2x512xf32>
    %137 = arith.addf %136, %108 : vector<2x512xf32>
    %138 = vector.extract_strided_slice %137 {offsets = [0, 0], sizes = [2, 384], strides = [1, 1]} : vector<2x512xf32> to vector<2x384xf32>
    %139 = arith.negf %138 : vector<2x384xf32>
    %140 = math.exp %139 : vector<2x384xf32>
    %cst_49 = arith.constant 1.000000e+00 : f32
    %141 = vector.broadcast %cst_49 : f32 to vector<2x384xf32>
    %142 = arith.addf %141, %140 : vector<2x384xf32>
    %143 = arith.divf %141, %142 : vector<2x384xf32>
    %144 = vector.extract_strided_slice %143 {offsets = [0, 0], sizes = [2, 128], strides = [1, 1]} : vector<2x384xf32> to vector<2x128xf32>
    %145 = vector.extract_strided_slice %143 {offsets = [0, 128], sizes = [2, 128], strides = [1, 1]} : vector<2x384xf32> to vector<2x128xf32>
    %146 = vector.extract_strided_slice %143 {offsets = [0, 256], sizes = [2, 128], strides = [1, 1]} : vector<2x384xf32> to vector<2x128xf32>
    %147 = vector.extract_strided_slice %137 {offsets = [0, 384], sizes = [2, 128], strides = [1, 1]} : vector<2x512xf32> to vector<2x128xf32>
    %148 = math.tanh %147 : vector<2x128xf32>
    %149 = arith.mulf %145, %112 : vector<2x128xf32>
    %150 = arith.mulf %144, %148 : vector<2x128xf32>
    %151 = arith.addf %149, %150 : vector<2x128xf32>
    %152 = math.tanh %151 : vector<2x128xf32>
    %153 = arith.mulf %146, %152 : vector<2x128xf32>
    %c1 = arith.constant 1 : index
    %c0_50 = arith.constant 0 : index
    %c0_51 = arith.constant 0 : index
    %154 = vector.load %arg15[%c1, %c0_50, %c0_51] : memref<8x2x512xf32, #tpu.memory_space<vmem>>, vector<1x2x512xf32>
    %155 = vector.shape_cast %154 : vector<1x2x512xf32> to vector<2x512xf32>
    %156 = arith.truncf %133 : vector<2x128xf32> to vector<2x128xbf16>
    %cst_52 = arith.constant dense<0.000000e+00> : vector<2x512xf32>
    %157 = tpu.matmul %156, %104, %cst_52 {dimension_numbers = #tpu.dot_dimension_numbers<[1], [0], [0], [1], [0, 0, 1, 1], [], []>} : vector<2x128xbf16>, vector<128x512xbf16>, vector<2x512xf32> -> vector<2x512xf32>
    %158 = arith.addf %155, %157 : vector<2x512xf32>
    %159 = vector.extract_strided_slice %158 {offsets = [0, 0], sizes = [2, 384], strides = [1, 1]} : vector<2x512xf32> to vector<2x384xf32>
    %160 = arith.negf %159 : vector<2x384xf32>
    %161 = math.exp %160 : vector<2x384xf32>
    %cst_53 = arith.constant 1.000000e+00 : f32
    %162 = vector.broadcast %cst_53 : f32 to vector<2x384xf32>
    %163 = arith.addf %162, %161 : vector<2x384xf32>
    %164 = arith.divf %162, %163 : vector<2x384xf32>
    %165 = vector.extract_strided_slice %164 {offsets = [0, 0], sizes = [2, 128], strides = [1, 1]} : vector<2x384xf32> to vector<2x128xf32>
    %166 = vector.extract_strided_slice %164 {offsets = [0, 128], sizes = [2, 128], strides = [1, 1]} : vector<2x384xf32> to vector<2x128xf32>
    %167 = vector.extract_strided_slice %164 {offsets = [0, 256], sizes = [2, 128], strides = [1, 1]} : vector<2x384xf32> to vector<2x128xf32>
    %168 = vector.extract_strided_slice %158 {offsets = [0, 384], sizes = [2, 128], strides = [1, 1]} : vector<2x512xf32> to vector<2x128xf32>
    %169 = math.tanh %168 : vector<2x128xf32>
    %170 = arith.mulf %166, %131 : vector<2x128xf32>
    %171 = arith.mulf %165, %169 : vector<2x128xf32>
    %172 = arith.addf %170, %171 : vector<2x128xf32>
    %173 = math.tanh %172 : vector<2x128xf32>
    %174 = arith.mulf %167, %173 : vector<2x128xf32>
    %175 = tpu.concatenate %174, %153 in 1 : vector<2x128xf32>, vector<2x128xf32> -> vector<2x256xf32>
    %176 = arith.truncf %175 : vector<2x256xf32> to vector<2x256xbf16>
    %cst_54 = arith.constant dense<0.000000e+00> : vector<2x512xf32>
    %177 = tpu.matmul %176, %105, %cst_54 {dimension_numbers = #tpu.dot_dimension_numbers<[1], [0], [0], [1], [0, 0, 1, 1], [], []>} : vector<2x256xbf16>, vector<256x512xbf16>, vector<2x512xf32> -> vector<2x512xf32>
    %178 = arith.addf %177, %108 : vector<2x512xf32>
    %179 = vector.extract_strided_slice %178 {offsets = [0, 0], sizes = [2, 384], strides = [1, 1]} : vector<2x512xf32> to vector<2x384xf32>
    %180 = arith.negf %179 : vector<2x384xf32>
    %181 = math.exp %180 : vector<2x384xf32>
    %cst_55 = arith.constant 1.000000e+00 : f32
    %182 = vector.broadcast %cst_55 : f32 to vector<2x384xf32>
    %183 = arith.addf %182, %181 : vector<2x384xf32>
    %184 = arith.divf %182, %183 : vector<2x384xf32>
    %185 = vector.extract_strided_slice %184 {offsets = [0, 0], sizes = [2, 128], strides = [1, 1]} : vector<2x384xf32> to vector<2x128xf32>
    %186 = vector.extract_strided_slice %184 {offsets = [0, 128], sizes = [2, 128], strides = [1, 1]} : vector<2x384xf32> to vector<2x128xf32>
    %187 = vector.extract_strided_slice %184 {offsets = [0, 256], sizes = [2, 128], strides = [1, 1]} : vector<2x384xf32> to vector<2x128xf32>
    %188 = vector.extract_strided_slice %178 {offsets = [0, 384], sizes = [2, 128], strides = [1, 1]} : vector<2x512xf32> to vector<2x128xf32>
    %189 = math.tanh %188 : vector<2x128xf32>
    %190 = arith.mulf %186, %151 : vector<2x128xf32>
    %191 = arith.mulf %185, %189 : vector<2x128xf32>
    %192 = arith.addf %190, %191 : vector<2x128xf32>
    %193 = math.tanh %192 : vector<2x128xf32>
    %194 = arith.mulf %187, %193 : vector<2x128xf32>
    %c2 = arith.constant 2 : index
    %c0_56 = arith.constant 0 : index
    %c0_57 = arith.constant 0 : index
    %195 = vector.load %arg15[%c2, %c0_56, %c0_57] : memref<8x2x512xf32, #tpu.memory_space<vmem>>, vector<1x2x512xf32>
    %196 = vector.shape_cast %195 : vector<1x2x512xf32> to vector<2x512xf32>
    %197 = arith.truncf %174 : vector<2x128xf32> to vector<2x128xbf16>
    %cst_58 = arith.constant dense<0.000000e+00> : vector<2x512xf32>
    %198 = tpu.matmul %197, %104, %cst_58 {dimension_numbers = #tpu.dot_dimension_numbers<[1], [0], [0], [1], [0, 0, 1, 1], [], []>} : vector<2x128xbf16>, vector<128x512xbf16>, vector<2x512xf32> -> vector<2x512xf32>
    %199 = arith.addf %196, %198 : vector<2x512xf32>
    %200 = vector.extract_strided_slice %199 {offsets = [0, 0], sizes = [2, 384], strides = [1, 1]} : vector<2x512xf32> to vector<2x384xf32>
    %201 = arith.negf %200 : vector<2x384xf32>
    %202 = math.exp %201 : vector<2x384xf32>
    %cst_59 = arith.constant 1.000000e+00 : f32
    %203 = vector.broadcast %cst_59 : f32 to vector<2x384xf32>
    %204 = arith.addf %203, %202 : vector<2x384xf32>
    %205 = arith.divf %203, %204 : vector<2x384xf32>
    %206 = vector.extract_strided_slice %205 {offsets = [0, 0], sizes = [2, 128], strides = [1, 1]} : vector<2x384xf32> to vector<2x128xf32>
    %207 = vector.extract_strided_slice %205 {offsets = [0, 128], sizes = [2, 128], strides = [1, 1]} : vector<2x384xf32> to vector<2x128xf32>
    %208 = vector.extract_strided_slice %205 {offsets = [0, 256], sizes = [2, 128], strides = [1, 1]} : vector<2x384xf32> to vector<2x128xf32>
    %209 = vector.extract_strided_slice %199 {offsets = [0, 384], sizes = [2, 128], strides = [1, 1]} : vector<2x512xf32> to vector<2x128xf32>
    %210 = math.tanh %209 : vector<2x128xf32>
    %211 = arith.mulf %207, %172 : vector<2x128xf32>
    %212 = arith.mulf %206, %210 : vector<2x128xf32>
    %213 = arith.addf %211, %212 : vector<2x128xf32>
    %214 = math.tanh %213 : vector<2x128xf32>
    %215 = arith.mulf %208, %214 : vector<2x128xf32>
    %216 = tpu.concatenate %215, %194 in 1 : vector<2x128xf32>, vector<2x128xf32> -> vector<2x256xf32>
    %217 = arith.truncf %216 : vector<2x256xf32> to vector<2x256xbf16>
    %cst_60 = arith.constant dense<0.000000e+00> : vector<2x512xf32>
    %218 = tpu.matmul %217, %105, %cst_60 {dimension_numbers = #tpu.dot_dimension_numbers<[1], [0], [0], [1], [0, 0, 1, 1], [], []>} : vector<2x256xbf16>, vector<256x512xbf16>, vector<2x512xf32> -> vector<2x512xf32>
    %219 = arith.addf %218, %108 : vector<2x512xf32>
    %220 = vector.extract_strided_slice %219 {offsets = [0, 0], sizes = [2, 384], strides = [1, 1]} : vector<2x512xf32> to vector<2x384xf32>
    %221 = arith.negf %220 : vector<2x384xf32>
    %222 = math.exp %221 : vector<2x384xf32>
    %cst_61 = arith.constant 1.000000e+00 : f32
    %223 = vector.broadcast %cst_61 : f32 to vector<2x384xf32>
    %224 = arith.addf %223, %222 : vector<2x384xf32>
    %225 = arith.divf %223, %224 : vector<2x384xf32>
    %226 = vector.extract_strided_slice %225 {offsets = [0, 0], sizes = [2, 128], strides = [1, 1]} : vector<2x384xf32> to vector<2x128xf32>
    %227 = vector.extract_strided_slice %225 {offsets = [0, 128], sizes = [2, 128], strides = [1, 1]} : vector<2x384xf32> to vector<2x128xf32>
    %228 = vector.extract_strided_slice %225 {offsets = [0, 256], sizes = [2, 128], strides = [1, 1]} : vector<2x384xf32> to vector<2x128xf32>
    %229 = vector.extract_strided_slice %219 {offsets = [0, 384], sizes = [2, 128], strides = [1, 1]} : vector<2x512xf32> to vector<2x128xf32>
    %230 = math.tanh %229 : vector<2x128xf32>
    %231 = arith.mulf %227, %192 : vector<2x128xf32>
    %232 = arith.mulf %226, %230 : vector<2x128xf32>
    %233 = arith.addf %231, %232 : vector<2x128xf32>
    %234 = math.tanh %233 : vector<2x128xf32>
    %235 = arith.mulf %228, %234 : vector<2x128xf32>
    %c3 = arith.constant 3 : index
    %c0_62 = arith.constant 0 : index
    %c0_63 = arith.constant 0 : index
    %236 = vector.load %arg15[%c3, %c0_62, %c0_63] : memref<8x2x512xf32, #tpu.memory_space<vmem>>, vector<1x2x512xf32>
    %237 = vector.shape_cast %236 : vector<1x2x512xf32> to vector<2x512xf32>
    %238 = arith.truncf %215 : vector<2x128xf32> to vector<2x128xbf16>
    %cst_64 = arith.constant dense<0.000000e+00> : vector<2x512xf32>
    %239 = tpu.matmul %238, %104, %cst_64 {dimension_numbers = #tpu.dot_dimension_numbers<[1], [0], [0], [1], [0, 0, 1, 1], [], []>} : vector<2x128xbf16>, vector<128x512xbf16>, vector<2x512xf32> -> vector<2x512xf32>
    %240 = arith.addf %237, %239 : vector<2x512xf32>
    %241 = vector.extract_strided_slice %240 {offsets = [0, 0], sizes = [2, 384], strides = [1, 1]} : vector<2x512xf32> to vector<2x384xf32>
    %242 = arith.negf %241 : vector<2x384xf32>
    %243 = math.exp %242 : vector<2x384xf32>
    %cst_65 = arith.constant 1.000000e+00 : f32
    %244 = vector.broadcast %cst_65 : f32 to vector<2x384xf32>
    %245 = arith.addf %244, %243 : vector<2x384xf32>
    %246 = arith.divf %244, %245 : vector<2x384xf32>
    %247 = vector.extract_strided_slice %246 {offsets = [0, 0], sizes = [2, 128], strides = [1, 1]} : vector<2x384xf32> to vector<2x128xf32>
    %248 = vector.extract_strided_slice %246 {offsets = [0, 128], sizes = [2, 128], strides = [1, 1]} : vector<2x384xf32> to vector<2x128xf32>
    %249 = vector.extract_strided_slice %246 {offsets = [0, 256], sizes = [2, 128], strides = [1, 1]} : vector<2x384xf32> to vector<2x128xf32>
    %250 = vector.extract_strided_slice %240 {offsets = [0, 384], sizes = [2, 128], strides = [1, 1]} : vector<2x512xf32> to vector<2x128xf32>
    %251 = math.tanh %250 : vector<2x128xf32>
    %252 = arith.mulf %248, %213 : vector<2x128xf32>
    %253 = arith.mulf %247, %251 : vector<2x128xf32>
    %254 = arith.addf %252, %253 : vector<2x128xf32>
    %255 = math.tanh %254 : vector<2x128xf32>
    %256 = arith.mulf %249, %255 : vector<2x128xf32>
    %257 = tpu.concatenate %256, %235 in 1 : vector<2x128xf32>, vector<2x128xf32> -> vector<2x256xf32>
    %258 = arith.truncf %257 : vector<2x256xf32> to vector<2x256xbf16>
    %cst_66 = arith.constant dense<0.000000e+00> : vector<2x512xf32>
    %259 = tpu.matmul %258, %105, %cst_66 {dimension_numbers = #tpu.dot_dimension_numbers<[1], [0], [0], [1], [0, 0, 1, 1], [], []>} : vector<2x256xbf16>, vector<256x512xbf16>, vector<2x512xf32> -> vector<2x512xf32>
    %260 = arith.addf %259, %108 : vector<2x512xf32>
    %261 = vector.extract_strided_slice %260 {offsets = [0, 0], sizes = [2, 384], strides = [1, 1]} : vector<2x512xf32> to vector<2x384xf32>
    %262 = arith.negf %261 : vector<2x384xf32>
    %263 = math.exp %262 : vector<2x384xf32>
    %cst_67 = arith.constant 1.000000e+00 : f32
    %264 = vector.broadcast %cst_67 : f32 to vector<2x384xf32>
    %265 = arith.addf %264, %263 : vector<2x384xf32>
    %266 = arith.divf %264, %265 : vector<2x384xf32>
    %267 = vector.extract_strided_slice %266 {offsets = [0, 0], sizes = [2, 128], strides = [1, 1]} : vector<2x384xf32> to vector<2x128xf32>
    %268 = vector.extract_strided_slice %266 {offsets = [0, 128], sizes = [2, 128], strides = [1, 1]} : vector<2x384xf32> to vector<2x128xf32>
    %269 = vector.extract_strided_slice %266 {offsets = [0, 256], sizes = [2, 128], strides = [1, 1]} : vector<2x384xf32> to vector<2x128xf32>
    %270 = vector.extract_strided_slice %260 {offsets = [0, 384], sizes = [2, 128], strides = [1, 1]} : vector<2x512xf32> to vector<2x128xf32>
    %271 = math.tanh %270 : vector<2x128xf32>
    %272 = arith.mulf %268, %233 : vector<2x128xf32>
    %273 = arith.mulf %267, %271 : vector<2x128xf32>
    %274 = arith.addf %272, %273 : vector<2x128xf32>
    %275 = math.tanh %274 : vector<2x128xf32>
    %276 = arith.mulf %269, %275 : vector<2x128xf32>
    %c4 = arith.constant 4 : index
    %c0_68 = arith.constant 0 : index
    %c0_69 = arith.constant 0 : index
    %277 = vector.load %arg15[%c4, %c0_68, %c0_69] : memref<8x2x512xf32, #tpu.memory_space<vmem>>, vector<1x2x512xf32>
    %278 = vector.shape_cast %277 : vector<1x2x512xf32> to vector<2x512xf32>
    %279 = arith.truncf %256 : vector<2x128xf32> to vector<2x128xbf16>
    %cst_70 = arith.constant dense<0.000000e+00> : vector<2x512xf32>
    %280 = tpu.matmul %279, %104, %cst_70 {dimension_numbers = #tpu.dot_dimension_numbers<[1], [0], [0], [1], [0, 0, 1, 1], [], []>} : vector<2x128xbf16>, vector<128x512xbf16>, vector<2x512xf32> -> vector<2x512xf32>
    %281 = arith.addf %278, %280 : vector<2x512xf32>
    %282 = vector.extract_strided_slice %281 {offsets = [0, 0], sizes = [2, 384], strides = [1, 1]} : vector<2x512xf32> to vector<2x384xf32>
    %283 = arith.negf %282 : vector<2x384xf32>
    %284 = math.exp %283 : vector<2x384xf32>
    %cst_71 = arith.constant 1.000000e+00 : f32
    %285 = vector.broadcast %cst_71 : f32 to vector<2x384xf32>
    %286 = arith.addf %285, %284 : vector<2x384xf32>
    %287 = arith.divf %285, %286 : vector<2x384xf32>
    %288 = vector.extract_strided_slice %287 {offsets = [0, 0], sizes = [2, 128], strides = [1, 1]} : vector<2x384xf32> to vector<2x128xf32>
    %289 = vector.extract_strided_slice %287 {offsets = [0, 128], sizes = [2, 128], strides = [1, 1]} : vector<2x384xf32> to vector<2x128xf32>
    %290 = vector.extract_strided_slice %287 {offsets = [0, 256], sizes = [2, 128], strides = [1, 1]} : vector<2x384xf32> to vector<2x128xf32>
    %291 = vector.extract_strided_slice %281 {offsets = [0, 384], sizes = [2, 128], strides = [1, 1]} : vector<2x512xf32> to vector<2x128xf32>
    %292 = math.tanh %291 : vector<2x128xf32>
    %293 = arith.mulf %289, %254 : vector<2x128xf32>
    %294 = arith.mulf %288, %292 : vector<2x128xf32>
    %295 = arith.addf %293, %294 : vector<2x128xf32>
    %296 = math.tanh %295 : vector<2x128xf32>
    %297 = arith.mulf %290, %296 : vector<2x128xf32>
    %298 = tpu.concatenate %297, %276 in 1 : vector<2x128xf32>, vector<2x128xf32> -> vector<2x256xf32>
    %299 = arith.truncf %298 : vector<2x256xf32> to vector<2x256xbf16>
    %cst_72 = arith.constant dense<0.000000e+00> : vector<2x512xf32>
    %300 = tpu.matmul %299, %105, %cst_72 {dimension_numbers = #tpu.dot_dimension_numbers<[1], [0], [0], [1], [0, 0, 1, 1], [], []>} : vector<2x256xbf16>, vector<256x512xbf16>, vector<2x512xf32> -> vector<2x512xf32>
    %301 = arith.addf %300, %108 : vector<2x512xf32>
    %302 = vector.extract_strided_slice %301 {offsets = [0, 0], sizes = [2, 384], strides = [1, 1]} : vector<2x512xf32> to vector<2x384xf32>
    %303 = arith.negf %302 : vector<2x384xf32>
    %304 = math.exp %303 : vector<2x384xf32>
    %cst_73 = arith.constant 1.000000e+00 : f32
    %305 = vector.broadcast %cst_73 : f32 to vector<2x384xf32>
    %306 = arith.addf %305, %304 : vector<2x384xf32>
    %307 = arith.divf %305, %306 : vector<2x384xf32>
    %308 = vector.extract_strided_slice %307 {offsets = [0, 0], sizes = [2, 128], strides = [1, 1]} : vector<2x384xf32> to vector<2x128xf32>
    %309 = vector.extract_strided_slice %307 {offsets = [0, 128], sizes = [2, 128], strides = [1, 1]} : vector<2x384xf32> to vector<2x128xf32>
    %310 = vector.extract_strided_slice %307 {offsets = [0, 256], sizes = [2, 128], strides = [1, 1]} : vector<2x384xf32> to vector<2x128xf32>
    %311 = vector.extract_strided_slice %301 {offsets = [0, 384], sizes = [2, 128], strides = [1, 1]} : vector<2x512xf32> to vector<2x128xf32>
    %312 = math.tanh %311 : vector<2x128xf32>
    %313 = arith.mulf %309, %274 : vector<2x128xf32>
    %314 = arith.mulf %308, %312 : vector<2x128xf32>
    %315 = arith.addf %313, %314 : vector<2x128xf32>
    %316 = math.tanh %315 : vector<2x128xf32>
    %317 = arith.mulf %310, %316 : vector<2x128xf32>
    %c5 = arith.constant 5 : index
    %c0_74 = arith.constant 0 : index
    %c0_75 = arith.constant 0 : index
    %318 = vector.load %arg15[%c5, %c0_74, %c0_75] : memref<8x2x512xf32, #tpu.memory_space<vmem>>, vector<1x2x512xf32>
    %319 = vector.shape_cast %318 : vector<1x2x512xf32> to vector<2x512xf32>
    %320 = arith.truncf %297 : vector<2x128xf32> to vector<2x128xbf16>
    %cst_76 = arith.constant dense<0.000000e+00> : vector<2x512xf32>
    %321 = tpu.matmul %320, %104, %cst_76 {dimension_numbers = #tpu.dot_dimension_numbers<[1], [0], [0], [1], [0, 0, 1, 1], [], []>} : vector<2x128xbf16>, vector<128x512xbf16>, vector<2x512xf32> -> vector<2x512xf32>
    %322 = arith.addf %319, %321 : vector<2x512xf32>
    %323 = vector.extract_strided_slice %322 {offsets = [0, 0], sizes = [2, 384], strides = [1, 1]} : vector<2x512xf32> to vector<2x384xf32>
    %324 = arith.negf %323 : vector<2x384xf32>
    %325 = math.exp %324 : vector<2x384xf32>
    %cst_77 = arith.constant 1.000000e+00 : f32
    %326 = vector.broadcast %cst_77 : f32 to vector<2x384xf32>
    %327 = arith.addf %326, %325 : vector<2x384xf32>
    %328 = arith.divf %326, %327 : vector<2x384xf32>
    %329 = vector.extract_strided_slice %328 {offsets = [0, 0], sizes = [2, 128], strides = [1, 1]} : vector<2x384xf32> to vector<2x128xf32>
    %330 = vector.extract_strided_slice %328 {offsets = [0, 128], sizes = [2, 128], strides = [1, 1]} : vector<2x384xf32> to vector<2x128xf32>
    %331 = vector.extract_strided_slice %328 {offsets = [0, 256], sizes = [2, 128], strides = [1, 1]} : vector<2x384xf32> to vector<2x128xf32>
    %332 = vector.extract_strided_slice %322 {offsets = [0, 384], sizes = [2, 128], strides = [1, 1]} : vector<2x512xf32> to vector<2x128xf32>
    %333 = math.tanh %332 : vector<2x128xf32>
    %334 = arith.mulf %330, %295 : vector<2x128xf32>
    %335 = arith.mulf %329, %333 : vector<2x128xf32>
    %336 = arith.addf %334, %335 : vector<2x128xf32>
    %337 = math.tanh %336 : vector<2x128xf32>
    %338 = arith.mulf %331, %337 : vector<2x128xf32>
    %339 = tpu.concatenate %338, %317 in 1 : vector<2x128xf32>, vector<2x128xf32> -> vector<2x256xf32>
    %340 = arith.truncf %339 : vector<2x256xf32> to vector<2x256xbf16>
    %cst_78 = arith.constant dense<0.000000e+00> : vector<2x512xf32>
    %341 = tpu.matmul %340, %105, %cst_78 {dimension_numbers = #tpu.dot_dimension_numbers<[1], [0], [0], [1], [0, 0, 1, 1], [], []>} : vector<2x256xbf16>, vector<256x512xbf16>, vector<2x512xf32> -> vector<2x512xf32>
    %342 = arith.addf %341, %108 : vector<2x512xf32>
    %343 = vector.extract_strided_slice %342 {offsets = [0, 0], sizes = [2, 384], strides = [1, 1]} : vector<2x512xf32> to vector<2x384xf32>
    %344 = arith.negf %343 : vector<2x384xf32>
    %345 = math.exp %344 : vector<2x384xf32>
    %cst_79 = arith.constant 1.000000e+00 : f32
    %346 = vector.broadcast %cst_79 : f32 to vector<2x384xf32>
    %347 = arith.addf %346, %345 : vector<2x384xf32>
    %348 = arith.divf %346, %347 : vector<2x384xf32>
    %349 = vector.extract_strided_slice %348 {offsets = [0, 0], sizes = [2, 128], strides = [1, 1]} : vector<2x384xf32> to vector<2x128xf32>
    %350 = vector.extract_strided_slice %348 {offsets = [0, 128], sizes = [2, 128], strides = [1, 1]} : vector<2x384xf32> to vector<2x128xf32>
    %351 = vector.extract_strided_slice %348 {offsets = [0, 256], sizes = [2, 128], strides = [1, 1]} : vector<2x384xf32> to vector<2x128xf32>
    %352 = vector.extract_strided_slice %342 {offsets = [0, 384], sizes = [2, 128], strides = [1, 1]} : vector<2x512xf32> to vector<2x128xf32>
    %353 = math.tanh %352 : vector<2x128xf32>
    %354 = arith.mulf %350, %315 : vector<2x128xf32>
    %355 = arith.mulf %349, %353 : vector<2x128xf32>
    %356 = arith.addf %354, %355 : vector<2x128xf32>
    %357 = math.tanh %356 : vector<2x128xf32>
    %358 = arith.mulf %351, %357 : vector<2x128xf32>
    %c6 = arith.constant 6 : index
    %c0_80 = arith.constant 0 : index
    %c0_81 = arith.constant 0 : index
    %359 = vector.load %arg15[%c6, %c0_80, %c0_81] : memref<8x2x512xf32, #tpu.memory_space<vmem>>, vector<1x2x512xf32>
    %360 = vector.shape_cast %359 : vector<1x2x512xf32> to vector<2x512xf32>
    %361 = arith.truncf %338 : vector<2x128xf32> to vector<2x128xbf16>
    %cst_82 = arith.constant dense<0.000000e+00> : vector<2x512xf32>
    %362 = tpu.matmul %361, %104, %cst_82 {dimension_numbers = #tpu.dot_dimension_numbers<[1], [0], [0], [1], [0, 0, 1, 1], [], []>} : vector<2x128xbf16>, vector<128x512xbf16>, vector<2x512xf32> -> vector<2x512xf32>
    %363 = arith.addf %360, %362 : vector<2x512xf32>
    %364 = vector.extract_strided_slice %363 {offsets = [0, 0], sizes = [2, 384], strides = [1, 1]} : vector<2x512xf32> to vector<2x384xf32>
    %365 = arith.negf %364 : vector<2x384xf32>
    %366 = math.exp %365 : vector<2x384xf32>
    %cst_83 = arith.constant 1.000000e+00 : f32
    %367 = vector.broadcast %cst_83 : f32 to vector<2x384xf32>
    %368 = arith.addf %367, %366 : vector<2x384xf32>
    %369 = arith.divf %367, %368 : vector<2x384xf32>
    %370 = vector.extract_strided_slice %369 {offsets = [0, 0], sizes = [2, 128], strides = [1, 1]} : vector<2x384xf32> to vector<2x128xf32>
    %371 = vector.extract_strided_slice %369 {offsets = [0, 128], sizes = [2, 128], strides = [1, 1]} : vector<2x384xf32> to vector<2x128xf32>
    %372 = vector.extract_strided_slice %369 {offsets = [0, 256], sizes = [2, 128], strides = [1, 1]} : vector<2x384xf32> to vector<2x128xf32>
    %373 = vector.extract_strided_slice %363 {offsets = [0, 384], sizes = [2, 128], strides = [1, 1]} : vector<2x512xf32> to vector<2x128xf32>
    %374 = math.tanh %373 : vector<2x128xf32>
    %375 = arith.mulf %371, %336 : vector<2x128xf32>
    %376 = arith.mulf %370, %374 : vector<2x128xf32>
    %377 = arith.addf %375, %376 : vector<2x128xf32>
    %378 = math.tanh %377 : vector<2x128xf32>
    %379 = arith.mulf %372, %378 : vector<2x128xf32>
    %380 = tpu.concatenate %379, %358 in 1 : vector<2x128xf32>, vector<2x128xf32> -> vector<2x256xf32>
    %381 = arith.truncf %380 : vector<2x256xf32> to vector<2x256xbf16>
    %cst_84 = arith.constant dense<0.000000e+00> : vector<2x512xf32>
    %382 = tpu.matmul %381, %105, %cst_84 {dimension_numbers = #tpu.dot_dimension_numbers<[1], [0], [0], [1], [0, 0, 1, 1], [], []>} : vector<2x256xbf16>, vector<256x512xbf16>, vector<2x512xf32> -> vector<2x512xf32>
    %383 = arith.addf %382, %108 : vector<2x512xf32>
    %384 = vector.extract_strided_slice %383 {offsets = [0, 0], sizes = [2, 384], strides = [1, 1]} : vector<2x512xf32> to vector<2x384xf32>
    %385 = arith.negf %384 : vector<2x384xf32>
    %386 = math.exp %385 : vector<2x384xf32>
    %cst_85 = arith.constant 1.000000e+00 : f32
    %387 = vector.broadcast %cst_85 : f32 to vector<2x384xf32>
    %388 = arith.addf %387, %386 : vector<2x384xf32>
    %389 = arith.divf %387, %388 : vector<2x384xf32>
    %390 = vector.extract_strided_slice %389 {offsets = [0, 0], sizes = [2, 128], strides = [1, 1]} : vector<2x384xf32> to vector<2x128xf32>
    %391 = vector.extract_strided_slice %389 {offsets = [0, 128], sizes = [2, 128], strides = [1, 1]} : vector<2x384xf32> to vector<2x128xf32>
    %392 = vector.extract_strided_slice %389 {offsets = [0, 256], sizes = [2, 128], strides = [1, 1]} : vector<2x384xf32> to vector<2x128xf32>
    %393 = vector.extract_strided_slice %383 {offsets = [0, 384], sizes = [2, 128], strides = [1, 1]} : vector<2x512xf32> to vector<2x128xf32>
    %394 = math.tanh %393 : vector<2x128xf32>
    %395 = arith.mulf %391, %356 : vector<2x128xf32>
    %396 = arith.mulf %390, %394 : vector<2x128xf32>
    %397 = arith.addf %395, %396 : vector<2x128xf32>
    %398 = math.tanh %397 : vector<2x128xf32>
    %399 = arith.mulf %392, %398 : vector<2x128xf32>
    %c7 = arith.constant 7 : index
    %c0_86 = arith.constant 0 : index
    %c0_87 = arith.constant 0 : index
    %400 = vector.load %arg15[%c7, %c0_86, %c0_87] : memref<8x2x512xf32, #tpu.memory_space<vmem>>, vector<1x2x512xf32>
    %401 = vector.shape_cast %400 : vector<1x2x512xf32> to vector<2x512xf32>
    %402 = arith.truncf %379 : vector<2x128xf32> to vector<2x128xbf16>
    %cst_88 = arith.constant dense<0.000000e+00> : vector<2x512xf32>
    %403 = tpu.matmul %402, %104, %cst_88 {dimension_numbers = #tpu.dot_dimension_numbers<[1], [0], [0], [1], [0, 0, 1, 1], [], []>} : vector<2x128xbf16>, vector<128x512xbf16>, vector<2x512xf32> -> vector<2x512xf32>
    %404 = arith.addf %401, %403 : vector<2x512xf32>
    %405 = vector.extract_strided_slice %404 {offsets = [0, 0], sizes = [2, 384], strides = [1, 1]} : vector<2x512xf32> to vector<2x384xf32>
    %406 = arith.negf %405 : vector<2x384xf32>
    %407 = math.exp %406 : vector<2x384xf32>
    %cst_89 = arith.constant 1.000000e+00 : f32
    %408 = vector.broadcast %cst_89 : f32 to vector<2x384xf32>
    %409 = arith.addf %408, %407 : vector<2x384xf32>
    %410 = arith.divf %408, %409 : vector<2x384xf32>
    %411 = vector.extract_strided_slice %410 {offsets = [0, 0], sizes = [2, 128], strides = [1, 1]} : vector<2x384xf32> to vector<2x128xf32>
    %412 = vector.extract_strided_slice %410 {offsets = [0, 128], sizes = [2, 128], strides = [1, 1]} : vector<2x384xf32> to vector<2x128xf32>
    %413 = vector.extract_strided_slice %410 {offsets = [0, 256], sizes = [2, 128], strides = [1, 1]} : vector<2x384xf32> to vector<2x128xf32>
    %414 = vector.extract_strided_slice %404 {offsets = [0, 384], sizes = [2, 128], strides = [1, 1]} : vector<2x512xf32> to vector<2x128xf32>
    %415 = math.tanh %414 : vector<2x128xf32>
    %416 = arith.mulf %412, %377 : vector<2x128xf32>
    %417 = arith.mulf %411, %415 : vector<2x128xf32>
    %418 = arith.addf %416, %417 : vector<2x128xf32>
    %419 = math.tanh %418 : vector<2x128xf32>
    %420 = arith.mulf %413, %419 : vector<2x128xf32>
    %421 = tpu.concatenate %420, %399 in 1 : vector<2x128xf32>, vector<2x128xf32> -> vector<2x256xf32>
    %422 = arith.truncf %421 : vector<2x256xf32> to vector<2x256xbf16>
    %cst_90 = arith.constant dense<0.000000e+00> : vector<2x512xf32>
    %423 = tpu.matmul %422, %105, %cst_90 {dimension_numbers = #tpu.dot_dimension_numbers<[1], [0], [0], [1], [0, 0, 1, 1], [], []>} : vector<2x256xbf16>, vector<256x512xbf16>, vector<2x512xf32> -> vector<2x512xf32>
    %424 = arith.addf %423, %108 : vector<2x512xf32>
    %425 = vector.extract_strided_slice %424 {offsets = [0, 0], sizes = [2, 384], strides = [1, 1]} : vector<2x512xf32> to vector<2x384xf32>
    %426 = arith.negf %425 : vector<2x384xf32>
    %427 = math.exp %426 : vector<2x384xf32>
    %cst_91 = arith.constant 1.000000e+00 : f32
    %428 = vector.broadcast %cst_91 : f32 to vector<2x384xf32>
    %429 = arith.addf %428, %427 : vector<2x384xf32>
    %430 = arith.divf %428, %429 : vector<2x384xf32>
    %431 = vector.extract_strided_slice %430 {offsets = [0, 0], sizes = [2, 128], strides = [1, 1]} : vector<2x384xf32> to vector<2x128xf32>
    %432 = vector.extract_strided_slice %430 {offsets = [0, 128], sizes = [2, 128], strides = [1, 1]} : vector<2x384xf32> to vector<2x128xf32>
    %433 = vector.extract_strided_slice %430 {offsets = [0, 256], sizes = [2, 128], strides = [1, 1]} : vector<2x384xf32> to vector<2x128xf32>
    %434 = vector.extract_strided_slice %424 {offsets = [0, 384], sizes = [2, 128], strides = [1, 1]} : vector<2x512xf32> to vector<2x128xf32>
    %435 = math.tanh %434 : vector<2x128xf32>
    %436 = arith.mulf %432, %397 : vector<2x128xf32>
    %437 = arith.mulf %431, %435 : vector<2x128xf32>
    %438 = arith.addf %436, %437 : vector<2x128xf32>
    %439 = math.tanh %438 : vector<2x128xf32>
    %440 = arith.mulf %433, %439 : vector<2x128xf32>
    %c0_92 = arith.constant 0 : index
    %c0_93 = arith.constant 0 : index
    %441 = vector.load %arg14[%c0_92, %c0_93] : memref<2x128xf32, #tpu.memory_space<vmem>>, vector<2x128xf32>
    tpu.vector_store %arg14[%c0_92, %c0_93], %440 {strides = array<i32>} : memref<2x128xf32, #tpu.memory_space<vmem>>, vector<2x128xf32>,
    return
  }
}

</mosaic_0001>

<bundles_post_ra>
// kernel: deep_conv_lstm_forward.1
= control target key start
LH: loop header
LB: loop body
LE: loop exit
PB: predicated region body
PF: predicated region fallthrough
CT: control target
= control target key end

     0   :  { %19 = vsyncpa [#allocation4], 0  ;;  %s11921_s0 = inlined_call_operand.vmem [shape: f32[2,24,4], index: 0, kind: input, shape index: {}]   ;;  %s11922_s1 = inlined_call_operand.vmem [shape: bf16[20,256], index: 1, kind: input, shape index: {}]   ;;  %s11923_s2 = inlined_call_operand.vmem [shape: f32[1,256], index: 2, kind: input, shape index: {}]   ;;  %s11924_s3 = inlined_call_operand.hbm [shape: bf16[1280,256], index: 3, kind: input, shape index: {}]   ;;  %s11925_s4 = inlined_call_operand.vmem [shape: f32[1,256], index: 4, kind: input, shape index: {}]   ;;  %s11926_s5 = inlined_call_operand.hbm [shape: bf16[1280,256], index: 5, kind: input, shape index: {}]   ;;  %s11927_s6 = inlined_call_operand.vmem [shape: f32[1,256], index: 6, kind: input, shape index: {}]   ;;  %s11928_s7 = inlined_call_operand.hbm [shape: bf16[1280,256], index: 7, kind: input, shape index: {}]   ;;  %s11929_s8 = inlined_call_operand.vmem [shape: f32[1,256], index: 8, kind: input, shape index: {}]   ;;  %s11930_s9 = inlined_call_operand.hbm [shape: bf16[256,512], index: 9, kind: input, shape index: {}]   ;;  %s11931_s10 = inlined_call_operand.hbm [shape: bf16[128,512], index: 10, kind: input, shape index: {}]   ;;  %s11932_s11 = inlined_call_operand.vmem [shape: f32[1,512], index: 11, kind: input, shape index: {}]   ;;  %s11933_s12 = inlined_call_operand.hbm [shape: bf16[256,512], index: 12, kind: input, shape index: {}]   ;;  %s11934_s13 = inlined_call_operand.vmem [shape: f32[1,512], index: 13, kind: input, shape index: {}]   ;;  %s11935_s14 = inlined_call_operand.hbm [shape: f32[2,128], index: 14, kind: output, shape index: {}]  }
   0x1   :  { %20 = vsyncpa [#allocation7], 0 }
   0x2   :  { %21 = vsyncpa [#allocation10], 0 }
   0x3   :  { %22 = vsyncpa [#allocation13], 0 }
   0x4   :  { %23 = vsyncpa [#allocation5], 0  ;;  %s9808_s29 = smov [#allocation6]   ;;  %s9809_s15 = smov [#allocation9]  }
   0x5   :  { %s49_s30 = sshll.u32 %s9808_s29, 4  ;;  %s77_s16 = sshll.u32 %s9809_s15, 4  ;;  %s50_s30 = int_to_ptr.vmem [resolvable:$true] %s49_s30  ;;  %s78_s16 = int_to_ptr.vmem [resolvable:$true] %s77_s16 }
   0x6   :  { %s9666_s17 = scalar_lea.vmem %s50_s30, 20480  ;;  %p9671_p1 = scmp.lt.s32.totalorder %s50_s30, %s50_s30 }
   0x7   :  { %p9667_p0 = scmp.ne.s32.totalorder %s50_s30, %s9666_s17  ;;  %p9672_p2 = scmp.lt.s32.totalorder %s9666_s17, %s9666_s17 }
   0x9   :  { %p9673_p3 = por %p9672_p2, %p9671_p1 }
   0xb   :  { %p9674_p4 = pnand %p9673_p3, %p9667_p0 }
   0xd   :  { %9677 = shalt.err (!%p9674_p4)
}
   0xe   :  { %s9810_s18 = smov 128   ;;  %s9811_s19 = smov 8  }
   0xf   :  { %55 = dma.hbm_to_vmem [thread:$0]  %s11926_s5, 20480, %s50_s30, [#allocation7], %s9810_s18, %s9810_s18, %s9811_s19  }
  0x10   :  { %s9686_s22 = scalar_lea.vmem %s78_s16, 8192  ;;  %p9691_p6 = scmp.lt.s32.totalorder %s78_s16, %s78_s16 }
  0x11   :  { %p9687_p5 = scmp.ne.s32.totalorder %s78_s16, %s9686_s22  ;;  %p9692_p7 = scmp.lt.s32.totalorder %s9686_s22, %s9686_s22 }
  0x13   :  { %p9693_p8 = por %p9692_p7, %p9691_p6 }
  0x15   :  { %p9694_p9 = pnand %p9693_p8, %p9687_p5 }
  0x17   :  { %9697 = shalt.err (!%p9694_p9)
}
  0x18   :  { %s9812_s23 = smov 256   ;;  %s9813_s24 = smov 16  }
  0x19   :  { %83 = dma.hbm_to_vmem [thread:$0]  %s11930_s9, 8192, %s78_s16, [#allocation10], %s9812_s23, %s9812_s23, %s9813_s24  }
  0x1a   :  { %s9814_s27 = smov [#allocation3]   ;;  %s9815_s29 = smov [#allocation8]  }
  0x1b   :  { %s35_s28 = sshll.u32 %s9814_s27, 4  ;;  %s63_s5 = sshll.u32 %s9815_s29, 4  ;;  %s36_s28 = int_to_ptr.vmem [resolvable:$true] %s35_s28  ;;  %s64_s5 = int_to_ptr.vmem [resolvable:$true] %s63_s5 }
  0x1c   :  { %s9706_s30 = scalar_lea.vmem %s36_s28, 20480  ;;  %p9711_p11 = scmp.lt.s32.totalorder %s36_s28, %s36_s28 }
  0x1d   :  { %p9707_p10 = scmp.ne.s32.totalorder %s36_s28, %s9706_s30  ;;  %p9712_p12 = scmp.lt.s32.totalorder %s9706_s30, %s9706_s30 }
  0x1f   :  { %p9713_p13 = por %p9712_p12, %p9711_p11 }
  0x21   :  { %p9714_p0 = pnand %p9713_p13, %p9707_p10 }
  0x23   :  { %9717 = shalt.err (!%p9714_p0)
}
  0x24   :  { %41 = dma.hbm_to_vmem [thread:$0]  %s11924_s3, 20480, %s36_s28, [#allocation4], %s9810_s18, %s9810_s18, %s9811_s19  }
  0x25   :  { %s9726_s9 = scalar_lea.vmem %s64_s5, 20480  ;;  %p9731_p2 = scmp.lt.s32.totalorder %s64_s5, %s64_s5 }
  0x26   :  { %p9727_p1 = scmp.ne.s32.totalorder %s64_s5, %s9726_s9  ;;  %p9732_p3 = scmp.lt.s32.totalorder %s9726_s9, %s9726_s9 }
  0x28   :  { %p9733_p4 = por %p9732_p3, %p9731_p2 }
  0x2a   :  { %p9734_p5 = pnand %p9733_p4, %p9727_p1 }
  0x2c   :  { %9737 = shalt.err (!%p9734_p5)
}
  0x2d   :  { %69 = dma.hbm_to_vmem [thread:$0]  %s11928_s7, 20480, %s64_s5, [#allocation7], %s9810_s18, %s9810_s18, %s9811_s19  }
  0x2e   :  { %s9816_s21 = smov [#allocation11]   ;;  %s9817_s25 = smov [#allocation12]  }
  0x2f   :  { %s89_s22 = sshll.u32 %s9816_s21, 4  ;;  %s103_s26 = sshll.u32 %s9817_s25, 4  ;;  %s90_s22 = int_to_ptr.vmem [resolvable:$true] %s89_s22  ;;  %s104_s26 = int_to_ptr.vmem [resolvable:$true] %s103_s26 }
  0x30   :  { %s9746_s3 = scalar_lea.vmem %s90_s22, 4096  ;;  %p9751_p7 = scmp.lt.s32.totalorder %s90_s22, %s90_s22 }
  0x31   :  { %p9747_p6 = scmp.ne.s32.totalorder %s90_s22, %s9746_s3  ;;  %p9752_p8 = scmp.lt.s32.totalorder %s9746_s3, %s9746_s3 }
  0x33   :  { %p9753_p9 = por %p9752_p8, %p9751_p7 }
  0x35   :  { %p9754_p10 = pnand %p9753_p9, %p9747_p6 }
  0x37   :  { %9757 = shalt.err (!%p9754_p10)
}
  0x38   :  { %95 = dma.hbm_to_vmem [thread:$0]  %s11931_s10, 4096, %s90_s22, [#allocation10], %s9812_s23, %s9812_s23, %s9813_s24  }
  0x39   :  { %s9766_s7 = scalar_lea.vmem %s104_s26, 8192  ;;  %p9771_p12 = scmp.lt.s32.totalorder %s104_s26, %s104_s26 }
  0x3a   :  { %p9767_p11 = scmp.ne.s32.totalorder %s104_s26, %s9766_s7  ;;  %p9772_p13 = scmp.lt.s32.totalorder %s9766_s7, %s9766_s7 }
  0x3c   :  { %p9773_p0 = por %p9772_p13, %p9771_p12 }
  0x3e   :  { %p9774_p1 = pnand %p9773_p0, %p9767_p11 }
  0x40   :  { %9777 = shalt.err (!%p9774_p1)
}
  0x41   :  { %109 = dma.hbm_to_vmem [thread:$0]  %s11933_s12, 8192, %s104_s26, [#allocation13], %s9812_s23, %s9812_s23, %s9813_s24  }
  0x42   :  { %9798 = dma.done.wait [#allocation4], 20480  }
  0x43   :  { %9799 = vsyncadd [#allocation4], 4294946816 }
  0x44   :  { %9800 = dma.done.wait [#allocation7], 40960  }
  0x45   :  { %9801 = vsyncadd [#allocation7], 4294926336 }
  0x46   :  { %9802 = dma.done.wait [#allocation10], 12288  }
  0x47   :  { %9803 = vsyncadd [#allocation10], 4294955008 }
  0x48   :  { %9804 = dma.done.wait [#allocation13], 8192  }
  0x49   :  { %9805 = vsyncadd [#allocation13], 4294959104  ;;  %v131_v0 = vld [vmem:[%s11921_s0] sm:$0xff]  ;;  %v132_v1 = vld [vmem:[%s11921_s0 + $0x8] sm:$0xff]  ;;  %vm141_vm0 = vsmask.f32 7424 }
  0x4a   :  { %v133_v2 = vld [vmem:[%s11921_s0 + $0x10] sm:$0xff]  ;;  %v9945_v3 = vpack.c.bf16 %v132_v1, %v131_v0  ;;  %vm171_vm1 = vsmask.f32 6400  ;;  %vm163_vm2 = vcmask 1046528   ;;  %vm183_vm3 = vcmask 1045504   ;;  %v134_v13 = vld [vmem:[%s11921_s0 + $0x18] sm:$0xff] }
  0x4b   :  { %v9947_v4 = vpack.c.bf16 %v133_v2, %v133_v2  ;;  %v11936_v9 = vmov 0   ;;  %v135_v14 = vld [vmem:[%s11921_s0 + $0x20] sm:$0xff]  ;;  %v136_v15 = vld [vmem:[%s11921_s0 + $0x28] sm:$0xff]  ;;  %v284_v27 = vld [vmem:[%s11922_s1 + $0x10] sm:$0x33]  ;;  %s9819_s0 = smov 4  }
  0x4c   :  { %v143_v5 = vshrl.u32 %v9945_v3, 16  ;;  %v145_v6 = vshll.u32 %v9945_v3, 16  ;;  %358 = vmatprep.mubr.bf16.mxu0 %v11936_v9  ;;  %v164_v10 = vrot.slane %v9945_v3, 1  ;;  %v184_v12 = vrot.slane %v9945_v3, 2  ;;  %v8311_v33 = vld [vmem:[%s11922_s1 + $0x4] ss:$8 sps:$4 sm:$0xff]  }
  0x4d   :  { %v150_v7 = vshll.u32 %v9947_v4, 16  ;;  %v154_v8 = vshrl.u32 %v9947_v4, 16  ;;  %v165_v11 = vrot.slane %v9947_v4, 1  ;;  %v185_v22 = vrot.slane %v9947_v4, 2  ;;  %s9820_s28 = smov 12  }
  0x4e   :  { %v147_v16 = vrot.slane %v145_v6, 1  ;;  %v172_v18 = vrot.slane %v143_v5, 1  ;;  %v173_v19 = vrot.slane %v145_v6, 2  ;;  %v9967_v25 = vpack.c.bf16 %v135_v14, %v134_v13  ;;  %v8313_v42 = vld [vmem:[%s11922_s1] ss:$8 sps:$4 sm:$0xff]  }
  0x4f   :  { %v152_v17 = vrot.slane %v150_v7, 1  ;;  %v175_v20 = vrot.slane %v154_v8, 1  ;;  %v176_v21 = vrot.slane %v150_v7, 2  ;;  %v9969_v26 = vpack.c.bf16 %v136_v15, %v136_v15  ;;  %v8314_v61 = vld [vmem:[#allocation3 + $0x74] ss:$8 sps:$4 sm:$0xff]  }
  0x50   :  { %v148_v23 = vor.u32 %v147_v16, %v143_v5  ;;  %v174_v24 = vor.u32 %v173_v19, %v172_v18  ;;  %v166_v31 = vsel %vm163_vm2, %v164_v10, %v165_v11  ;;  %v186_v32 = vsel %vm183_vm3, %v184_v12, %v185_v22  ;;  %v8316_v62 = vld [vmem:[#allocation3 + $0x70] ss:$8 sps:$4 sm:$0xff]   ;;  %v8317_v63 = vld [vmem:[#allocation3 + $0x64] ss:$8 sps:$4 sm:$0xff]   ;;  %1511 = vmatprep.subr.bf16.mxu1 %v8314_v61  ;;  %v8319_v0 = vld [vmem:[#allocation3 + $0x60] ss:$8 sps:$4 sm:$0xff]  }
  0x51   :  { %v177_v28 = vor.u32 %v176_v21, %v175_v20  ;;  %vm275_vm4 = vcmask 1041408   ;;  %v232_v34 = vrot.slane %v9967_v25, 1  ;;  %v233_v35 = vrot.slane %v9969_v26, 1  ;;  %1512 = vmatpush1.bf16.msra.mxu1 %v8316_v62  ;;  %v8320_v1 = vld [vmem:[#allocation3 + $0x54] ss:$8 sps:$4 sm:$0xff]  }
  0x52   :  { %v153_v29 = vsel %vm141_vm0, %v148_v23, %v152_v17  ;;  %v212_v36 = vshrl.u32 %v9967_v25, 16  ;;  %v214_v37 = vshll.u32 %v9967_v25, 16  ;;  %v219_v38 = vshll.u32 %v9969_v26, 16  ;;  %1513 = vmatprep.subr.bf16.mxu1 %v8317_v63  ;;  %v8334_v2 = vld [vmem:[#allocation3 + $0x174] ss:$8 sps:$4 sm:$0xff]  }
  0x53   :  { %157 = vrot.lane.b32.xlu0 %v153_v29, %s9819_s0  ;;  %v178_v30 = vsel %vm171_vm1, %v174_v24, %v177_v28  ;;  %v223_v39 = vshrl.u32 %v9969_v26, 16  ;;  %v7607_v40 = vcombine.high %v284_v27, %v284_v27  ;;  %v7606_v41 = vcombine.low %v284_v27, %v284_v27  ;;  %v8322_v5 = vld [vmem:[#allocation3 + $0x50] ss:$8 sps:$4 sm:$0xff]   ;;  %v8323_v6 = vld [vmem:[#allocation3 + $0x44] ss:$8 sps:$4 sm:$0xff]  }
  0x54   :  { %179 = vrot.lane.b32.xlu1 %v178_v30, %s9820_s28  ;;  %v156_v43 = vor.u32 %v154_v8, %v152_v17  ;;  %v250_v44 = vrot.slane %v9967_v25, 2  ;;  %v251_v46 = vrot.slane %v9969_v26, 2  ;;  %v216_v47 = vrot.slane %v214_v37, 1  ;;  %v8325_v7 = vld [vmem:[#allocation3 + $0x40] ss:$8 sps:$4 sm:$0xff]  }
  0x55   :  { %7608 = vmatprep.subr.msk.bf16.mxu0 %vm275_vm4, %v7607_v40  ;;  %v321_v45 = vsel %vm275_vm4, %v7606_v41, 0  ;;  %v239_v48 = vrot.slane %v212_v36, 1  ;;  %v234_v49 = vsel %vm163_vm2, %v232_v34, %v233_v35  ;;  %v240_v50 = vrot.slane %v214_v37, 2  ;;  %1514 = vmatpush1.bf16.msra.mxu1 %v8319_v0  ;;  %v8326_v8 = vld [vmem:[#allocation3 + $0x34] ss:$8 sps:$4 sm:$0xff]  }
  0x56   :  { %339 = vmatpush1.bf16.msra.mxu0 %v321_v45  ;;  %v242_v51 = vrot.slane %v223_v39, 1  ;;  %v243_v52 = vrot.slane %v219_v38, 2  ;;  %v217_v53 = vor.u32 %v216_v47, %v212_v36  ;;  %v221_v54 = vrot.slane %v219_v38, 1  ;;  %1515 = vmatprep.subr.bf16.mxu1 %v8320_v1  ;;  %v8328_v10 = vld [vmem:[#allocation3 + $0x30] ss:$8 sps:$4 sm:$0xff]  }
  0x57   :  { %167 = vrot.lane.b32.xlu0 %v166_v31, %s9811_s19  ;;  %340 = vmatprep.subr.bf16.mxu0 %v8311_v33  ;;  %v252_v55 = vsel %vm183_vm3, %v250_v44, %v251_v46  ;;  %v241_v56 = vor.u32 %v240_v50, %v239_v48  ;;  %v8331_v12 = vld [vmem:[#allocation3 + $0x20] ss:$8 sps:$4 sm:$0xff]   ;;  %v8335_v13 = vld [vmem:[#allocation3 + $0x14] ss:$8 sps:$4 sm:$0xff]   ;;  %v8337_v14 = vld [vmem:[#allocation3 + $0x10] ss:$8 sps:$4 sm:$0xff]  }
  0x58   :  { %187 = vrot.lane.b32.xlu1 %v186_v32, %s9813_s24  ;;  %v244_v57 = vor.u32 %v243_v52, %v242_v51  ;;  %v222_v58 = vsel %vm141_vm0, %v217_v53, %v221_v54  ;;  %v225_v60 = vor.u32 %v223_v39, %v221_v54  ;;  %v8341_v15 = vld [vmem:[#allocation3 + $0x4] ss:$8 sps:$4 sm:$0xff]   ;;  %v8343_v16 = vld [vmem:[#allocation3] ss:$8 sps:$4 sm:$0xff]   ;;  %v8347_v17 = vld [vmem:[#allocation3 + $0xf4] ss:$8 sps:$4 sm:$0xff]  }
  0x59   :  { %1516 = vmatpush1.bf16.msra.mxu1 %v8322_v5  ;;  %v8349_v18 = vld [vmem:[#allocation3 + $0xf0] ss:$8 sps:$4 sm:$0xff]   ;;  %v8353_v19 = vld [vmem:[#allocation3 + $0xe4] ss:$8 sps:$4 sm:$0xff]   ;;  %v8355_v20 = vld [vmem:[#allocation3 + $0xe0] ss:$8 sps:$4 sm:$0xff]  }
  0x5a   :  { %341 = vmatpush1.bf16.msra.mxu0 %v8313_v42  ;;  %v245_v59 = vsel %vm171_vm1, %v241_v56, %v244_v57  ;;  %1517 = vmatprep.subr.bf16.mxu1 %v8323_v6  ;;  %v8359_v21 = vld [vmem:[#allocation3 + $0xd4] ss:$8 sps:$4 sm:$0xff]   ;;  %v8365_v23 = vld [vmem:[#allocation3 + $0xc4] ss:$8 sps:$4 sm:$0xff]   ;;  %v8367_v24 = vld [vmem:[#allocation3 + $0xc0] ss:$8 sps:$4 sm:$0xff]  }
  0x5b   :  { %159 = vrot.lane.b32.xlu0 %v156_v43, %s9819_s0  ;;  %1564 = vmatprep.subr.bf16.mxu0 %v8334_v2  ;;  %v8371_v27 = vld [vmem:[#allocation3 + $0xb4] ss:$8 sps:$4 sm:$0xff]   ;;  %vm191_vm5 = vcmask 31744   ;;  %vm196_vm6 = vcmask 64512   ;;  %vm201_vm7 = vcmask 97280   ;;  %vm206_vm8 = vcmask 130048  }
  0x5c   :  { %235 = vrot.lane.b32.xlu1 %v234_v49, %s9811_s19  ;;  %v8332_v31 = vld [vmem:[#allocation3 + $0x170] ss:$8 sps:$4 sm:$0xff]   ;;  %v8340_v34 = vld [vmem:[#allocation3 + $0x164] ss:$8 sps:$4 sm:$0xff]   ;;  %vm312_vm9 = vcmask 162816   ;;  %vm3216_vm10 = vcmask 1043456  }
  0x5d   :  { %1518 = vmatpush1.bf16.msra.mxu1 %v8325_v7  ;;  %v8338_v39 = vld [vmem:[#allocation3 + $0x160] ss:$8 sps:$4 sm:$0xff]   ;;  %v8346_v41 = vld [vmem:[#allocation3 + $0x154] ss:$8 sps:$4 sm:$0xff]   ;;  %v8352_v44 = vld [vmem:[#allocation3 + $0x144] ss:$8 sps:$4 sm:$0xff]  }
  0x5e   :  { %1519 = vmatprep.subr.bf16.mxu1 %v8326_v8  ;;  %v8350_v47 = vld [vmem:[#allocation3 + $0x140] ss:$8 sps:$4 sm:$0xff]   ;;  %v8358_v49 = vld [vmem:[#allocation3 + $0x134] ss:$8 sps:$4 sm:$0xff]   ;;  %v8368_v6 = vld [vmem:[#allocation3 + $0x110] ss:$8 sps:$4 sm:$0xff]  }
  0x5f   :  { %169 = vrot.lane.b32.xlu0 %v165_v11, %s9811_s19  ;;  %v8329_v11 = vld [vmem:[#allocation3 + $0x24] ss:$8 sps:$4 sm:$0xff]   ;;  %v8362_v62 = vld [vmem:[#allocation3 + $0x120] ss:$8 sps:$4 sm:$0xff]   ;;  %v8370_v0 = vld [vmem:[#allocation3 + $0x114] ss:$8 sps:$4 sm:$0xff]  }
  0x60   :  { %253 = vrot.lane.b32.xlu1 %v252_v55, %s9813_s24  ;;  %v8356_v55 = vld [vmem:[#allocation3 + $0x130] ss:$8 sps:$4 sm:$0xff]   ;;  %v8376_v8 = vld [vmem:[#allocation3 + $0x104] ss:$8 sps:$4 sm:$0xff]  }
  0x61   :  { %1520 = vmatpush1.bf16.msra.mxu1 %v8328_v10 }
  0x62   :  { %1521 = vmatprep.subr.bf16.mxu1 %v8329_v11 }
  0x63   :  { %226 = vrot.lane.b32.xlu0 %v222_v58, %s9819_s0 }
  0x64   :  { %246 = vrot.lane.b32.xlu1 %v245_v59, %s9820_s28 }
  0x65   :  { %1522 = vmatpush1.bf16.msra.mxu1 %v8331_v12 }
  0x66   :  { %1523 = vmatprep.subr.bf16.mxu1 %v8335_v13 }
  0x67   :  { %181 = vrot.lane.b32.xlu0 %v177_v28, %s9820_s28  ;;  %v8373_v28 = vld [vmem:[#allocation3 + $0xb0] ss:$8 sps:$4 sm:$0xff]  }
  0x68   :  { %189 = vrot.lane.b32.xlu1 %v185_v22, %s9813_s24  ;;  %v8361_v22 = vld [vmem:[#allocation3 + $0xd0] ss:$8 sps:$4 sm:$0xff]  }
  0x69   :  { %1524 = vmatpush1.bf16.msra.mxu1 %v8337_v14  ;;  %v8374_v14 = vld [vmem:[#allocation3 + $0x100] ss:$8 sps:$4 sm:$0xff]  }
  0x6a   :  { %1525 = vmatprep.subr.bf16.mxu1 %v8341_v15  ;;  %v8377_v15 = vld [vmem:[#allocation3 + $0xa4] ss:$8 sps:$4 sm:$0xff]  }
  0x6b   :  { %228 = vrot.lane.b32.xlu0 %v225_v60, %s9819_s0 }
  0x6c   :  { %237 = vrot.lane.b32.xlu1 %v233_v35, %s9811_s19 }
  0x6d   :  { %1526 = vmatpush1.bf16.msra.mxu1 %v8343_v16  ;;  %v8379_v16 = vld [vmem:[#allocation3 + $0xa0] ss:$8 sps:$4 sm:$0xff]  }
  0x6e   :  { %1527 = vmatprep.subr.bf16.mxu1 %v8347_v17  ;;  %v8382_v17 = vld [vmem:[#allocation3 + $0x1f4] ss:$8 sps:$4 sm:$0xff]  }
  0x6f   :  { %248 = vrot.lane.b32.xlu0 %v244_v57, %s9820_s28 }
  0x70   :  { %255 = vrot.lane.b32.xlu1 %v251_v46, %s9813_s24 }
  0x71   :  { %1528 = vmatpush2.bf16.msra.mxu1 %v8349_v18  ;;  %v8380_v18 = vld [vmem:[#allocation3 + $0x1f0] ss:$8 sps:$4 sm:$0xff]  }
  0x72   :  { %1529 = vmatprep.subr.bf16.mxu1 %v8353_v19  ;;  %v8383_v19 = vld [vmem:[#allocation3 + $0x94] ss:$8 sps:$4 sm:$0xff]  }
  0x75   :  { %1530 = vmatpush2.bf16.msra.mxu1 %v8355_v20  ;;  %v8385_v20 = vld [vmem:[#allocation3 + $0x90] ss:$8 sps:$4 sm:$0xff]  }
  0x76   :  { %1531 = vmatprep.subr.bf16.mxu1 %v8359_v21  ;;  %v8388_v21 = vld [vmem:[#allocation3 + $0x1e4] ss:$8 sps:$4 sm:$0xff]  }
  0x79   :  { %1532 = vmatpush2.bf16.msra.mxu1 %v8361_v22  ;;  %v8386_v22 = vld [vmem:[#allocation3 + $0x1e0] ss:$8 sps:$4 sm:$0xff]  }
  0x7a   :  { %1533 = vmatprep.subr.bf16.mxu1 %v8365_v23  ;;  %v8389_v23 = vld [vmem:[#allocation3 + $0x84] ss:$8 sps:$4 sm:$0xff]  }
  0x7d   :  { %1534 = vmatpush2.bf16.msra.mxu1 %v8367_v24  ;;  %v8391_v24 = vld [vmem:[#allocation3 + $0x80] ss:$8 sps:$4 sm:$0xff]  }
  0x7e   :  { %1535 = vmatprep.subr.bf16.mxu1 %v8371_v27  ;;  %v8394_v27 = vld [vmem:[#allocation3 + $0x1d4] ss:$8 sps:$4 sm:$0xff]  }
  0x81   :  { %1536 = vmatpush2.bf16.msra.mxu1 %v8373_v28  ;;  %v8392_v28 = vld [vmem:[#allocation3 + $0x1d0] ss:$8 sps:$4 sm:$0xff]  }
  0x82   :  { %1537 = vmatprep.subr.bf16.mxu1 %v8377_v15  ;;  %v8413_v15 = vld [vmem:[#allocation3 + $0x240] ss:$8 sps:$4 sm:$0xff]  }
  0x85   :  { %1538 = vmatpush2.bf16.msra.mxu1 %v8379_v16  ;;  %v8421_v16 = vld [vmem:[#allocation3 + $0x234] ss:$8 sps:$4 sm:$0xff]  }
  0x86   :  { %1539 = vmatprep.subr.bf16.mxu1 %v8383_v19 }
  0x89   :  { %1540 = vmatpush2.bf16.msra.mxu1 %v8385_v20 }
  0x8a   :  { %1541 = vmatprep.subr.bf16.mxu1 %v8389_v23 }
  0x8d   :  { %1542 = vmatpush2.bf16.msra.mxu1 %v8391_v24 }
  0xc5   :  { %v158_v29 = vpop.permute.xlu0 %157 }
  0xc6   :  { %v180_v30 = vpop.permute.xlu1 %179  ;;  %v193_v32 = vsel %vm191_vm5, %v9945_v3, %v158_v29  ;;  %v8344_v3 = vld [vmem:[#allocation3 + $0x150] ss:$8 sps:$4 sm:$0xff]   ;;  %v8397_v29 = vld [vmem:[#allocation3 + $0x274] ss:$8 sps:$4 sm:$0xff]  }
  0xc7   :  { %1617 = vmatprep.subr.bf16.mxu1 %v8397_v29  ;;  %v8427_v29 = vld [vmem:[#allocation3 + $0x224] ss:$8 sps:$4 sm:$0xff]  }
  0xc9   :  { %v168_v33 = vpop.permute.xlu0 %167 }
  0xca   :  { %v198_v35 = vsel %vm196_vm6, %v193_v32, %v168_v33  ;;  %v188_v36 = vpop.permute.xlu1 %187  ;;  %v8406_v32 = vld [vmem:[#allocation3 + $0x1b4] ss:$8 sps:$4 sm:$0xff]   ;;  %v8404_v33 = vld [vmem:[#allocation3 + $0x1b0] ss:$8 sps:$4 sm:$0xff]  }
  0xcb   :  { %v203_v37 = vsel %vm201_vm7, %v198_v35, %v180_v30  ;;  %v8400_v30 = vld [vmem:[#allocation3 + $0x1c4] ss:$8 sps:$4 sm:$0xff]   ;;  %v8410_v35 = vld [vmem:[#allocation3 + $0x1a0] ss:$8 sps:$4 sm:$0xff]  }
  0xcc   :  { %v208_v38 = vsel %vm206_vm8, %v203_v37, %v188_v36  ;;  %v8418_v36 = vld [vmem:[#allocation3 + $0x194] ss:$8 sps:$4 sm:$0xff]   ;;  %v8416_v37 = vld [vmem:[#allocation3 + $0x190] ss:$8 sps:$4 sm:$0xff]  }
  0xcd   :  { %7609 = vmatmul.mubr.msk.bf16.vlgmr.msra.gmra.mxu0 %vm312_vm9, %v208_v38  ;;  %v160_v40 = vpop.permute.xlu0 %159  ;;  %v8424_v38 = vld [vmem:[#allocation3 + $0x184] ss:$8 sps:$4 sm:$0xff]  }
  0xce   :  { %v236_v42 = vpop.permute.xlu1 %235  ;;  %368 = vmatprep.mubr.bf16.mxu0 %v11936_v9  ;;  %1565 = vmatpush1.bf16.msra.mxu0 %v8332_v31  ;;  %v195_v46 = vsel %vm191_vm5, %v9947_v4, %v160_v40  ;;  %v8364_v4 = vld [vmem:[#allocation3 + $0x124] ss:$8 sps:$4 sm:$0xff]   ;;  %v8398_v31 = vld [vmem:[#allocation3 + $0x1c0] ss:$8 sps:$4 sm:$0xff]   ;;  %v8430_v40 = vld [vmem:[#allocation3 + $0x374] ss:$8 sps:$4 sm:$0xff]  }
  0xcf   :  { %1566 = vmatprep.subr.bf16.mxu0 %v8340_v34  ;;  %v8412_v34 = vld [vmem:[#allocation3 + $0x1a4] ss:$8 sps:$4 sm:$0xff]  }
  0xd1   :  { %v170_v43 = vpop.permute.xlu0 %169 }
  0xd2   :  { %v254_v45 = vpop.permute.xlu1 %253  ;;  %1567 = vmatpush1.bf16.msra.mxu0 %v8338_v39  ;;  %v200_v52 = vsel %vm196_vm6, %v195_v46, %v170_v43  ;;  %v8422_v39 = vld [vmem:[#allocation3 + $0x180] ss:$8 sps:$4 sm:$0xff]  }
  0xd3   :  { %1568 = vmatprep.subr.bf16.mxu0 %v8346_v41  ;;  %v287_v41 = vlaneseq }
  0xd5   :  { %v227_v48 = vpop.permute.xlu0 %226 }
  0xd6   :  { %v258_v50 = vsel %vm191_vm5, %v9967_v25, %v227_v48  ;;  %v247_v51 = vpop.permute.xlu1 %246  ;;  %1569 = vmatpush1.bf16.msra.mxu0 %v8344_v3 }
  0xd7   :  { %v262_v53 = vsel %vm196_vm6, %v258_v50, %v236_v42  ;;  %1570 = vmatprep.subr.bf16.mxu0 %v8352_v44  ;;  %v10041_v42 = vshrl.u32 %v287_v41, 7  ;;  %v285_v44 = vld [vmem:[%s11923_s2] sm:$0x3] }
  0xd8   :  { %v266_v54 = vsel %vm201_vm7, %v262_v53, %v247_v51 }
  0xd9   :  { %v270_v56 = vsel %vm206_vm8, %v266_v54, %v254_v45  ;;  %v182_v57 = vpop.permute.xlu0 %181  ;;  %v10044_v3 = vsub.s32 1, %v10041_v42  ;;  %v10047_v43 = vsub.s32 0, %v10041_v42 }
  0xda   :  { %v276_v58 = vrot.slane %v270_v56, 6  ;;  %v205_v59 = vsel %vm201_vm7, %v200_v52, %v182_v57  ;;  %v190_v60 = vpop.permute.xlu1 %189  ;;  %1571 = vmatpush1.bf16.msra.mxu0 %v8350_v47 }
  0xdb   :  { %v210_v25 = vsel %vm206_vm8, %v205_v59, %v190_v60  ;;  %1572 = vmatprep.subr.bf16.mxu0 %v8358_v49  ;;  %12265 = vst [vmem:[#allocation20_spill] sm:$0xff] %v10044_v3  ;;  %12266 = vst [vmem:[#allocation21_spill] sm:$0xff] %v10047_v43  ;;  %v294_v46 = vrot.slane %v285_v44, %v10044_v3  ;;  %v290_v47 = vrot.slane %v285_v44, %v10047_v43  ;;  %v8395_v59 = vld [vmem:[#allocation3 + $0x270] ss:$8 sps:$4 sm:$0xff]  }
  0xdc   :  { %v281_v61 = vsel %vm275_vm4, %v210_v25, %v276_v58  ;;  %v8403_v25 = vld [vmem:[#allocation3 + $0x264] ss:$8 sps:$4 sm:$0xff]  }
  0xdd   :  { %7610 = vmatmul.mubr.msk.bf16.gmra.mxu0 %vm312_vm9, %v281_v61  ;;  %v229_v63 = vpop.permute.xlu0 %228  ;;  %v8401_v61 = vld [vmem:[#allocation3 + $0x260] ss:$8 sps:$4 sm:$0xff]  }
  0xde   :  { %v260_v1 = vsel %vm191_vm5, %v9969_v26, %v229_v63  ;;  %v238_v2 = vpop.permute.xlu1 %237  ;;  %378 = vmatprep.mubr.bf16.mxu0 %v11936_v9  ;;  %1573 = vmatpush1.bf16.msra.mxu0 %v8356_v55  ;;  %v8409_v63 = vld [vmem:[#allocation3 + $0x254] ss:$8 sps:$4 sm:$0xff]  }
  0xdf   :  { %v264_v5 = vsel %vm196_vm6, %v260_v1, %v238_v2  ;;  %1574 = vmatprep.subr.bf16.mxu0 %v8364_v4 }
  0xe1   :  { %v249_v7 = vpop.permute.xlu0 %248 }
  0xe2   :  { %v268_v10 = vsel %vm201_vm7, %v264_v5, %v249_v7  ;;  %v256_v11 = vpop.permute.xlu1 %255  ;;  %1575 = vmatpush1.bf16.msra.mxu0 %v8362_v62  ;;  %v8407_v5 = vld [vmem:[#allocation3 + $0x250] ss:$8 sps:$4 sm:$0xff]   ;;  %v8415_v7 = vld [vmem:[#allocation3 + $0x244] ss:$8 sps:$4 sm:$0xff]  }
  0xe3   :  { %v272_v12 = vsel %vm206_vm8, %v268_v10, %v256_v11  ;;  %1576 = vmatprep.subr.bf16.mxu0 %v8370_v0 }
  0xe4   :  { %v277_v13 = vrot.slane %v272_v12, 6 }
  0xe6   :  { %v278_v26 = vsel %vm275_vm4, %v276_v58, %v277_v13  ;;  %1577 = vmatpush1.bf16.msra.mxu0 %v8368_v6 }
  0xe7   :  { %7611 = vmatmul.mubr.msk.bf16.gmra.mxu0 %vm312_vm9, %v278_v26  ;;  %1578 = vmatprep.subr.bf16.mxu0 %v8376_v8 }
  0xea   :  { %1579 = vmatpush1.bf16.msra.mxu0 %v8374_v14 }
  0xeb   :  { %1580 = vmatprep.subr.bf16.mxu0 %v8382_v17 }
  0xee   :  { %1581 = vmatpush2.bf16.msra.mxu0 %v8380_v18 }
  0xef   :  { %1582 = vmatprep.subr.bf16.mxu0 %v8388_v21 }
  0xf2   :  { %1583 = vmatpush2.bf16.msra.mxu0 %v8386_v22 }
  0xf3   :  { %1584 = vmatprep.subr.bf16.mxu0 %v8394_v27  ;;  %v8419_v27 = vld [vmem:[#allocation3 + $0x230] ss:$8 sps:$4 sm:$0xff]  }
  0xf6   :  { %1585 = vmatpush2.bf16.msra.mxu0 %v8392_v28 }
  0xf7   :  { %1586 = vmatprep.subr.bf16.mxu0 %v8400_v30 }
  0xfa   :  { %1587 = vmatpush2.bf16.msra.mxu0 %v8398_v31 }
  0xfb   :  { %1588 = vmatprep.subr.bf16.mxu0 %v8406_v32 }
  0xfe   :  { %1589 = vmatpush2.bf16.msra.mxu0 %v8404_v33 }
  0xff   :  { %1590 = vmatprep.subr.bf16.mxu0 %v8412_v34 }
 0x102   :  { %1591 = vmatpush2.bf16.msra.mxu0 %v8410_v35  ;;  %v8425_v35 = vld [vmem:[#allocation3 + $0x220] ss:$8 sps:$4 sm:$0xff]  }
 0x103   :  { %1592 = vmatprep.subr.bf16.mxu0 %v8418_v36 }
 0x106   :  { %1593 = vmatpush2.bf16.msra.mxu0 %v8416_v37 }
 0x107   :  { %1594 = vmatprep.subr.bf16.mxu0 %v8424_v38 }
 0x10a   :  { %1595 = vmatpush2.bf16.msra.mxu0 %v8422_v39 }
 0x10b   :  { %1670 = vmatprep.subr.bf16.mxu0 %v8430_v40 }
 0x18d   :  { %v360_v45 = vpop.f32.mrf.mxu0 }
 0x18e   :  { %v361_v52 = vadd.f32 %v360_v45, %v290_v47 }
 0x18f   :  { %v362_v48 = vpop.f32.mrf.mxu0 }
 0x190   :  { %v363_v50 = vadd.f32 %v362_v48, %v294_v46  ;;  %v387_v4 = vmax.f32 %v361_v52, 0.0 }
 0x191   :  { %v364_v49 = vpop.f32.mrf.mxu0 }
 0x192   :  { %v365_v51 = vadd.f32 %v364_v49, %v290_v47  ;;  %v388_v56 = vmax.f32 %v363_v50, 0.0  ;;  %v8433_v49 = vld [vmem:[#allocation3 + $0x214] ss:$8 sps:$4 sm:$0xff]  }
 0x193   :  { %v366_v53 = vpop.f32.mrf.mxu0 }
 0x194   :  { %v367_v54 = vadd.f32 %v366_v53, %v294_v46  ;;  %v389_v55 = vmax.f32 %v365_v51, 0.0 }
 0x196   :  { %v390_v57 = vmax.f32 %v367_v54, 0.0  ;;  %v10056_v60 = vpack.c.bf16 %v389_v55, %v387_v4 }
 0x198   :  { %v10054_v58 = vpack.c.bf16 %v390_v57, %v388_v56  ;;  %v406_v17 = vshll.u32 %v10056_v60, 16  ;;  %v404_v37 = vshrl.u32 %v10056_v60, 16  ;;  %v8436_v56 = vld [vmem:[#allocation3 + $0x364] ss:$8 sps:$4 sm:$0xff]  }
 0x19a   :  { %1543 = vmatprep.mubr.bf16.mxu1 %v10054_v58  ;;  %v418_v12 = vshll.u32 %v10054_v58, 16  ;;  %v416_v30 = vshrl.u32 %v10054_v58, 16  ;;  %v408_v31 = vrot.slane %v406_v17, 1 }
 0x19b   :  { %1544 = vmatmul.mubr.bf16.vlgmr.msra.gmra.mxu1 %v10056_v60 }
 0x19c   :  { %1618 = vmatpush1.bf16.msra.mxu1 %v8395_v59  ;;  %v420_v21 = vrot.slane %v418_v12, 1  ;;  %v409_v48 = vor.u32 %v408_v31, %v404_v37 }
 0x19d   :  { %v370_v62 = vpop.f32.mrf.mxu0  ;;  %1619 = vmatprep.subr.bf16.mxu1 %v8403_v25 }
 0x19e   :  { %v371_v0 = vadd.f32 %v370_v62, %v290_v47  ;;  %v421_v36 = vor.u32 %v420_v21, %v416_v30  ;;  %v8437_v21 = vld [vmem:[#allocation3 + $0x200] ss:$8 sps:$4 sm:$0xff]  }
 0x19f   :  { %v372_v1 = vpop.f32.mrf.mxu0 }
 0x1a0   :  { %v373_v2 = vadd.f32 %v372_v1, %v294_v46  ;;  %1620 = vmatpush1.bf16.msra.mxu1 %v8401_v61  ;;  %v391_v8 = vmax.f32 %v371_v0, 0.0 }
 0x1a1   :  { %v374_v6 = vpop.f32.mrf.mxu0  ;;  %1621 = vmatprep.subr.bf16.mxu1 %v8409_v63  ;;  %v8431_v63 = vld [vmem:[#allocation3 + $0x210] ss:$8 sps:$4 sm:$0xff]  }
 0x1a2   :  { %v375_v10 = vadd.f32 %v374_v6, %v290_v47  ;;  %v392_v13 = vmax.f32 %v373_v2, 0.0 }
 0x1a3   :  { %v376_v11 = vpop.f32.mrf.mxu0 }
 0x1a4   :  { %v393_v14 = vmax.f32 %v375_v10, 0.0  ;;  %v377_v26 = vadd.f32 %v376_v11, %v294_v46  ;;  %1622 = vmatpush1.bf16.msra.mxu1 %v8407_v5  ;;  %v8434_v5 = vld [vmem:[#allocation3 + $0x360] ss:$8 sps:$4 sm:$0xff]  }
 0x1a5   :  { %1623 = vmatprep.subr.bf16.mxu1 %v8415_v7 }
 0x1a6   :  { %v10062_v18 = vpack.c.bf16 %v393_v14, %v391_v8  ;;  %v394_v19 = vmax.f32 %v377_v26, 0.0 }
 0x1a7   :  { %v380_v20 = vpop.f32.mrf.mxu0 }
 0x1a8   :  { %v411_v22 = vshll.u32 %v10062_v18, 16  ;;  %v10067_v23 = vpack.c.bf16 %v394_v19, %v392_v13  ;;  %v381_v24 = vadd.f32 %v380_v20, %v290_v47  ;;  %1624 = vmatpush1.bf16.msra.mxu1 %v8413_v15  ;;  %v444_v40 = vshrl.u32 %v10062_v18, 16  ;;  %v8428_v47 = vld [vmem:[#allocation3 + $0x370] ss:$8 sps:$4 sm:$0xff]   ;;  %v8439_v13 = vld [vmem:[#allocation3 + $0x204] ss:$8 sps:$4 sm:$0xff]  }
 0x1a9   :  { %v382_v28 = vpop.f32.mrf.mxu0  ;;  %1625 = vmatprep.subr.bf16.mxu1 %v8421_v16  ;;  %v462_v52 = vrot.slane %v10062_v18, 2  ;;  %v436_v15 = vrot.slane %v10054_v58, 1  ;;  %v8442_v16 = vld [vmem:[#allocation3 + $0x354] ss:$8 sps:$4 sm:$0xff]  }
 0x1aa   :  { %v395_v32 = vmax.f32 %v381_v24, 0.0  ;;  %v383_v33 = vadd.f32 %v382_v28, %v294_v46  ;;  %v423_v34 = vshll.u32 %v10067_v23, 16  ;;  %v413_v38 = vrot.slane %v411_v22, 1 }
 0x1ab   :  { %v384_v39 = vpop.f32.mrf.mxu0  ;;  %v453_v46 = vshrl.u32 %v10067_v23, 16  ;;  %v465_v50 = vrot.slane %v10067_v23, 2  ;;  %v437_v6 = vrot.slane %v10067_v23, 1  ;;  %v450_v28 = vrot.slane %v416_v30, 1  ;;  %v8515_v23 = vld [vmem:[#allocation3 + $0x430] ss:$8 sps:$4 sm:$0xff]  }
 0x1ac   :  { %v10077_v41 = vpack.c.bf16 %v395_v32, %v395_v32  ;;  %v396_v44 = vmax.f32 %v383_v33, 0.0  ;;  %1626 = vmatpush1.bf16.msra.mxu1 %v8419_v27  ;;  %v425_v45 = vrot.slane %v423_v34, 1  ;;  %v469_v57 = vor.u32 %v444_v40, %v413_v38  ;;  %v8440_v32 = vld [vmem:[#allocation3 + $0x350] ss:$8 sps:$4 sm:$0xff]  }
 0x1ad   :  { %1627 = vmatprep.subr.bf16.mxu1 %v8427_v29  ;;  %v385_v51 = vpop.f32.mrf.mxu0  ;;  %v414_v59 = vsel %vm141_vm0, %v409_v48, %v413_v38  ;;  %v455_v7 = vrot.slane %v453_v46, 1  ;;  %v456_v8 = vrot.slane %v423_v34, 2  ;;  %v451_v29 = vrot.slane %v418_v12, 2 }
 0x1ae   :  { %v471_v53 = vshll.u32 %v10077_v41, 16  ;;  %v10085_v54 = vpack.c.bf16 %v396_v44, %v396_v44  ;;  %v426_v55 = vsel %vm141_vm0, %v421_v36, %v425_v45  ;;  %v475_v4 = vor.u32 %v453_v46, %v425_v45  ;;  %v8445_v36 = vld [vmem:[#allocation3 + $0x2f4] ss:$8 sps:$4 sm:$0xff]   ;;  %v8448_v44 = vld [vmem:[#allocation3 + $0x344] ss:$8 sps:$4 sm:$0xff]  }
 0x1af   :  { %1596 = vmatprep.mubr.bf16.mxu0 %v426_v55  ;;  %v501_v25 = vrot.slane %v10077_v41, 2  ;;  %v481_v61 = vshrl.u32 %v10077_v41, 16  ;;  %v438_v31 = vsel %vm163_vm2, %v436_v15, %v437_v6  ;;  %v10119_v38 = vor.u32 %v456_v8, %v455_v7  ;;  %v8443_v46 = vld [vmem:[#allocation3 + $0x2f0] ss:$8 sps:$4 sm:$0xff]   ;;  %v8451_v51 = vld [vmem:[#allocation3 + $0x2e4] ss:$8 sps:$4 sm:$0xff]  }
 0x1b0   :  { %v477_v62 = vshll.u32 %v10085_v54, 16  ;;  %1628 = vmatpush1.bf16.msra.mxu1 %v8425_v35  ;;  %1597 = vmatmul.mubr.bf16.vlgmr.msra.gmra.mxu0 %v414_v59  ;;  %v503_v0 = vrot.slane %v10085_v54, 2  ;;  %v484_v1 = vshrl.u32 %v10085_v54, 16  ;;  %v473_v2 = vrot.slane %v471_v53, 1  ;;  %v8454_v59 = vld [vmem:[#allocation3 + $0x334] ss:$8 sps:$4 sm:$0xff]  }
 0x1b1   :  { %1671 = vmatpush1.bf16.msra.mxu0 %v8428_v47  ;;  %1629 = vmatprep.subr.bf16.mxu1 %v8433_v49  ;;  %v502_v11 = vsel %vm183_vm3, %v462_v52, %v501_v25  ;;  %v461_v45 = vrot.slane %v10056_v60, 2  ;;  %v452_v48 = vor.u32 %v451_v29, %v450_v28  ;;  %v8446_v49 = vld [vmem:[#allocation3 + $0x340] ss:$8 sps:$4 sm:$0xff]   ;;  %v8455_v7 = vld [vmem:[#allocation3 + $0x2d0] ss:$8 sps:$4 sm:$0xff]  }
 0x1b2   :  { %v504_v10 = vsel %vm183_vm3, %v465_v50, %v503_v0  ;;  %1672 = vmatprep.subr.bf16.mxu0 %v8436_v56  ;;  %v479_v14 = vrot.slane %v477_v62, 1  ;;  %v474_v26 = vsel %vm141_vm0, %v469_v57, %v473_v2  ;;  %v483_v19 = vor.u32 %v481_v61, %v473_v2  ;;  %v8458_v8 = vld [vmem:[#allocation3 + $0x320] ss:$8 sps:$4 sm:$0xff]   ;;  %v8472_v15 = vld [vmem:[#allocation3 + $0x304] ss:$8 sps:$4 sm:$0xff]  }
 0x1b3   :  { %1553 = vmatprep.mubr.bf16.mxu1 %v504_v10  ;;  %v505_v20 = vrot.slane %v474_v26, 2  ;;  %v526_v39 = vrot.slane %v504_v10, 2  ;;  %v523_v30 = vrot.slane %v502_v11, 2  ;;  %v10127_v55 = vsel %vm183_vm3, %v461_v45, %v462_v52  ;;  %v8452_v52 = vld [vmem:[#allocation3 + $0x330] ss:$8 sps:$4 sm:$0xff]  }
 0x1b4   :  { %1630 = vmatpush1.bf16.msra.mxu1 %v8431_v63  ;;  %v480_v24 = vsel %vm141_vm0, %v475_v4, %v479_v14  ;;  %v486_v27 = vor.u32 %v484_v1, %v479_v14  ;;  %v506_v34 = vrot.slane %v483_v19, 2  ;;  %v527_v56 = vrot.slane %v503_v0, 2  ;;  %v8460_v0 = vld [vmem:[#allocation3 + $0x324] ss:$8 sps:$4 sm:$0xff]   ;;  %v8464_v14 = vld [vmem:[#allocation3 + $0x310] ss:$8 sps:$4 sm:$0xff]  }
 0x1b5   :  { %1554 = vmatmul.mubr.bf16.gmra.mxu1 %v502_v11  ;;  %1673 = vmatpush1.bf16.msra.mxu0 %v8434_v5  ;;  %v508_v33 = vrot.slane %v480_v24, 2  ;;  %v524_v57 = vrot.slane %v501_v25, 2  ;;  %v458_v4 = vsel %vm171_vm1, %v452_v48, %v10119_v38  ;;  %v8449_v5 = vld [vmem:[#allocation3 + $0x2e0] ss:$8 sps:$4 sm:$0xff]   ;;  %v8457_v25 = vld [vmem:[#allocation3 + $0x2d4] ss:$8 sps:$4 sm:$0xff]  }
 0x1b6   :  { %1649 = vmatprep.mubr.bf16.mxu1 %v438_v31  ;;  %1631 = vmatprep.subr.bf16.mxu1 %v8439_v13  ;;  %v509_v35 = vrot.slane %v486_v27, 2  ;;  %v507_v12 = vsel %vm183_vm3, %v505_v20, %v506_v34  ;;  %v10132_v63 = vsel %vm183_vm3, %v526_v39, %v527_v56  ;;  %v8463_v10 = vld [vmem:[#allocation3 + $0x2c4] ss:$8 sps:$4 sm:$0xff]   ;;  %v8466_v11 = vld [vmem:[#allocation3 + $0x314] ss:$8 sps:$4 sm:$0xff]   ;;  %v489_v48 = vrot.slane %v10077_v41, 1 }
 0x1b7   :  { %1674 = vmatprep.subr.bf16.mxu0 %v8442_v16  ;;  %v10135_v2 = vsel %vm183_vm3, %v523_v30, %v524_v57  ;;  %v8461_v13 = vld [vmem:[#allocation3 + $0x2c0] ss:$8 sps:$4 sm:$0xff]   ;;  %v8469_v26 = vld [vmem:[#allocation3 + $0x2b4] ss:$8 sps:$4 sm:$0xff]   ;;  %v8467_v16 = vld [vmem:[#allocation3 + $0x2b0] ss:$8 sps:$4 sm:$0xff]  }
 0x1b8   :  { %1632 = vmatpush1.bf16.msra.mxu1 %v8437_v21  ;;  %v510_v47 = vsel %vm183_vm3, %v508_v33, %v509_v35  ;;  %v8470_v19 = vld [vmem:[#allocation3 + $0x300] ss:$8 sps:$4 sm:$0xff]   ;;  %v8475_v20 = vld [vmem:[#allocation3 + $0x2a4] ss:$8 sps:$4 sm:$0xff]   ;;  %v8478_v21 = vld [vmem:[#allocation3 + $0x3f4] ss:$8 sps:$4 sm:$0xff]  }
 0x1b9   :  { %1675 = vmatpush1.bf16.msra.mxu0 %v8440_v32  ;;  %1606 = vmatprep.mubr.bf16.mxu0 %v510_v47  ;;  %v8473_v24 = vld [vmem:[#allocation3 + $0x2a0] ss:$8 sps:$4 sm:$0xff]   ;;  %v8476_v27 = vld [vmem:[#allocation3 + $0x3f0] ss:$8 sps:$4 sm:$0xff]   ;;  %v8481_v28 = vld [vmem:[#allocation3 + $0x294] ss:$8 sps:$4 sm:$0xff]  }
 0x1ba   :  { %1607 = vmatmul.mubr.bf16.gmra.mxu0 %v507_v12  ;;  %1633 = vmatprep.subr.bf16.mxu1 %v8445_v36  ;;  %v8484_v29 = vld [vmem:[#allocation3 + $0x3e4] ss:$8 sps:$4 sm:$0xff]   ;;  %v8479_v31 = vld [vmem:[#allocation3 + $0x290] ss:$8 sps:$4 sm:$0xff]   ;;  %v491_v32 = vrot.slane %v10085_v54, 1 }
 0x1bb   :  { %1676 = vmatprep.subr.bf16.mxu0 %v8448_v44  ;;  %1702 = vmatprep.mubr.bf16.mxu0 %v458_v4  ;;  %v8482_v33 = vld [vmem:[#allocation3 + $0x3e0] ss:$8 sps:$4 sm:$0xff]   ;;  %v8487_v34 = vld [vmem:[#allocation3 + $0x284] ss:$8 sps:$4 sm:$0xff]   ;;  %v8490_v35 = vld [vmem:[#allocation3 + $0x3d4] ss:$8 sps:$4 sm:$0xff]  }
 0x1bc   :  { %1634 = vmatpush2.bf16.msra.mxu1 %v8443_v46  ;;  %v8485_v36 = vld [vmem:[#allocation3 + $0x280] ss:$8 sps:$4 sm:$0xff]   ;;  %v492_v39 = vsel %vm163_vm2, %v437_v6, %v491_v32  ;;  %v8488_v30 = vld [vmem:[#allocation3 + $0x3d0] ss:$8 sps:$4 sm:$0xff]   ;;  %v8493_v12 = vld [vmem:[#allocation3 + $0x474] ss:$8 sps:$4 sm:$0xff]  }
 0x1bd   :  { %1677 = vmatpush1.bf16.msra.mxu0 %v8446_v49  ;;  %1635 = vmatprep.subr.bf16.mxu1 %v8451_v51  ;;  %v434_v44 = vrot.slane %v10062_v18, 1  ;;  %v8496_v45 = vld [vmem:[#allocation3 + $0x3c4] ss:$8 sps:$4 sm:$0xff]   ;;  %v514_v47 = vrot.slane %v492_v39, 2  ;;  %v515_v46 = vrot.slane %v491_v32, 2  ;;  %v433_v49 = vrot.slane %v10056_v60, 1 }
 0x1be   :  { %1678 = vmatprep.subr.bf16.mxu0 %v8454_v59  ;;  %v8491_v51 = vld [vmem:[#allocation3 + $0x470] ss:$8 sps:$4 sm:$0xff]   ;;  %v8494_v56 = vld [vmem:[#allocation3 + $0x3c0] ss:$8 sps:$4 sm:$0xff]   ;;  %v8499_v6 = vld [vmem:[#allocation3 + $0x464] ss:$8 sps:$4 sm:$0xff]  }
 0x1bf   :  { %v435_v57 = vsel %vm163_vm2, %v433_v49, %v434_v44  ;;  %v8502_v4 = vld [vmem:[#allocation3 + $0x3b4] ss:$8 sps:$4 sm:$0xff]   ;;  %v516_v59 = vsel %vm183_vm3, %v514_v47, %v515_v46  ;;  %v8520_v54 = vld [vmem:[#allocation3 + $0x384] ss:$8 sps:$4 sm:$0xff]   ;;  %v8530_v46 = vld [vmem:[#allocation3 + $0x4f0] ss:$8 sps:$4 sm:$0xff]  }
 0x1c0   :  { %1636 = vmatpush2.bf16.msra.mxu1 %v8449_v5  ;;  %v490_v5 = vsel %vm163_vm2, %v434_v44, %v489_v48  ;;  %v8523_v32 = vld [vmem:[#allocation3 + $0x424] ss:$8 sps:$4 sm:$0xff]   ;;  %v8527_v44 = vld [vmem:[#allocation3 + $0x400] ss:$8 sps:$4 sm:$0xff]  }
 0x1c1   :  { %1679 = vmatpush1.bf16.msra.mxu0 %v8452_v52  ;;  %1637 = vmatprep.subr.bf16.mxu1 %v8457_v25  ;;  %v8497_v52 = vld [vmem:[#allocation3 + $0x460] ss:$8 sps:$4 sm:$0xff]   ;;  %v8500_v25 = vld [vmem:[#allocation3 + $0x3b0] ss:$8 sps:$4 sm:$0xff]  }
 0x1c2   :  { %1680 = vmatprep.subr.bf16.mxu0 %v8460_v0  ;;  %v8505_v0 = vld [vmem:[#allocation3 + $0x454] ss:$8 sps:$4 sm:$0xff]   ;;  %v8533_v49 = vld [vmem:[#allocation3 + $0x4e0] ss:$8 sps:$4 sm:$0xff]  }
 0x1c4   :  { %1638 = vmatpush2.bf16.msra.mxu1 %v8455_v7  ;;  %v511_v7 = vrot.slane %v490_v5, 2  ;;  %v8547_v5 = vld [vmem:[#allocation3 + $0x4a4] ss:$8 sps:$4 sm:$0xff]  }
 0x1c5   :  { %1681 = vmatpush1.bf16.msra.mxu0 %v8458_v8  ;;  %1639 = vmatprep.subr.bf16.mxu1 %v8463_v10  ;;  %v512_v8 = vrot.slane %v489_v48, 2  ;;  %v8508_v10 = vld [vmem:[#allocation3 + $0x3a4] ss:$8 sps:$4 sm:$0xff]  }
 0x1c6   :  { %1682 = vmatprep.subr.bf16.mxu0 %v8466_v11  ;;  %v8503_v11 = vld [vmem:[#allocation3 + $0x450] ss:$8 sps:$4 sm:$0xff]   ;;  %v8535_v48 = vld [vmem:[#allocation3 + $0x4e4] ss:$8 sps:$4 sm:$0xff]  }
 0x1c8   :  { %1640 = vmatpush2.bf16.msra.mxu1 %v8461_v13  ;;  %v8506_v13 = vld [vmem:[#allocation3 + $0x3a0] ss:$8 sps:$4 sm:$0xff]  }
 0x1c9   :  { %1683 = vmatpush1.bf16.msra.mxu0 %v8464_v14  ;;  %1641 = vmatprep.subr.bf16.mxu1 %v8469_v26  ;;  %v464_v14 = vrot.slane %v10054_v58, 2  ;;  %v8511_v26 = vld [vmem:[#allocation3 + $0x444] ss:$8 sps:$4 sm:$0xff]   ;;  %v8512_v58 = vld [vmem:[#allocation3 + $0x390] ss:$8 sps:$4 sm:$0xff]  }
 0x1ca   :  { %1684 = vmatprep.subr.bf16.mxu0 %v8472_v15  ;;  %v497_v15 = vrot.slane %v484_v1, 1 }
 0x1cc   :  { %1642 = vmatpush2.bf16.msra.mxu1 %v8467_v16  ;;  %v498_v16 = vrot.slane %v477_v62, 2  ;;  %v446_v62 = vrot.slane %v444_v40, 1  ;;  %v442_v40 = vrot.slane %v406_v17, 2  ;;  %v8524_v17 = vld [vmem:[#allocation3 + $0x410] ss:$8 sps:$4 sm:$0xff]  }
 0x1cd   :  { %1685 = vmatpush1.bf16.msra.mxu0 %v8470_v19  ;;  %1643 = vmatprep.subr.bf16.mxu1 %v8475_v20  ;;  %v513_v19 = vsel %vm183_vm3, %v511_v7, %v512_v8  ;;  %v8514_v20 = vld [vmem:[#allocation3 + $0x394] ss:$8 sps:$4 sm:$0xff]   ;;  %v8553_v7 = vld [vmem:[#allocation3 + $0x484] ss:$8 sps:$4 sm:$0xff]   ;;  %v8551_v8 = vld [vmem:[#allocation3 + $0x480] ss:$8 sps:$4 sm:$0xff]  }
 0x1ce   :  { %1686 = vmatprep.subr.bf16.mxu0 %v8478_v21  ;;  %v466_v21 = vsel %vm183_vm3, %v464_v14, %v465_v50  ;;  %v499_v1 = vor.u32 %v498_v16, %v497_v15  ;;  %v493_v50 = vrot.slane %v481_v61, 1  ;;  %v8521_v61 = vld [vmem:[#allocation3 + $0x420] ss:$8 sps:$4 sm:$0xff]   ;;  %v8559_v14 = vld [vmem:[#allocation6 + $0x64] ss:$8 sps:$4 sm:$0xff]  }
 0x1cf   :  { %v8562_v15 = vld [vmem:[#allocation6 + $0x174] ss:$8 sps:$4 sm:$0xff]   ;;  %v8563_v16 = vld [vmem:[#allocation6 + $0x50] ss:$8 sps:$4 sm:$0xff]  }
 0x1d0   :  { %1644 = vmatpush2.bf16.msra.mxu1 %v8473_v24  ;;  %v8509_v24 = vld [vmem:[#allocation3 + $0x440] ss:$8 sps:$4 sm:$0xff]   ;;  %v500_v18 = vsel %vm171_vm1, %v10119_v38, %v499_v1  ;;  %v521_v41 = vrot.slane %v499_v1, 2  ;;  %v8529_v38 = vld [vmem:[#allocation3 + $0x404] ss:$8 sps:$4 sm:$0xff]  }
 0x1d1   :  { %1687 = vmatpush2.bf16.msra.mxu0 %v8476_v27  ;;  %1645 = vmatprep.subr.bf16.mxu1 %v8481_v28  ;;  %v8517_v27 = vld [vmem:[#allocation3 + $0x434] ss:$8 sps:$4 sm:$0xff]   ;;  %v447_v28 = vrot.slane %v411_v22, 2  ;;  %v8575_v1 = vld [vmem:[#allocation6 + $0x30] ss:$8 sps:$4 sm:$0xff]  }
 0x1d2   :  { %1688 = vmatprep.subr.bf16.mxu0 %v8484_v29  ;;  %v494_v29 = vrot.slane %v471_v53, 2 }
 0x1d3   :  { %v448_v22 = vor.u32 %v447_v28, %v446_v62  ;;  %v8578_v62 = vld [vmem:[#allocation6 + $0x140] ss:$8 sps:$4 sm:$0xff]   ;;  %v8586_v28 = vld [vmem:[#allocation6 + $0x134] ss:$8 sps:$4 sm:$0xff]  }
 0x1d4   :  { %1646 = vmatpush2.bf16.msra.mxu1 %v8479_v31  ;;  %v8518_v31 = vld [vmem:[#allocation3 + $0x380] ss:$8 sps:$4 sm:$0xff]   ;;  %v495_v53 = vor.u32 %v494_v29, %v493_v50  ;;  %v8589_v50 = vld [vmem:[#allocation6 + $0x14] ss:$8 sps:$4 sm:$0xff]   ;;  %v8584_v29 = vld [vmem:[#allocation6 + $0x130] ss:$8 sps:$4 sm:$0xff]  }
 0x1d5   :  { %1689 = vmatpush2.bf16.msra.mxu0 %v8482_v33  ;;  %1647 = vmatprep.subr.bf16.mxu1 %v8487_v34  ;;  %v441_v33 = vrot.slane %v404_v37, 1  ;;  %v520_v34 = vrot.slane %v500_v18, 2  ;;  %v8598_v18 = vld [vmem:[#allocation6 + $0x114] ss:$8 sps:$4 sm:$0xff]  }
 0x1d6   :  { %1690 = vmatprep.subr.bf16.mxu0 %v8490_v35  ;;  %v496_v37 = vsel %vm171_vm1, %v448_v22, %v495_v53 }
 0x1d7   :  { %v443_v35 = vor.u32 %v442_v40, %v441_v33  ;;  %v522_v60 = vsel %vm183_vm3, %v520_v34, %v521_v41  ;;  %v8595_v33 = vld [vmem:[#allocation6 + $0x4] ss:$8 sps:$4 sm:$0xff]   ;;  %v8590_v40 = vld [vmem:[#allocation6 + $0x120] ss:$8 sps:$4 sm:$0xff]   ;;  %v8596_v34 = vld [vmem:[#allocation6 + $0x110] ss:$8 sps:$4 sm:$0xff]  }
 0x1d8   :  { %1648 = vmatpush2.bf16.msra.mxu1 %v8485_v36  ;;  %v8526_v36 = vld [vmem:[#allocation3 + $0x414] ss:$8 sps:$4 sm:$0xff]   ;;  %v8604_v41 = vld [vmem:[#allocation6 + $0x104] ss:$8 sps:$4 sm:$0xff]  }
 0x1d9   :  { %1691 = vmatpush2.bf16.msra.mxu0 %v8488_v30  ;;  %1723 = vmatprep.subr.bf16.mxu1 %v8493_v12  ;;  %v449_v39 = vsel %vm171_vm1, %v443_v35, %v448_v22  ;;  %v517_v30 = vrot.slane %v496_v37, 2  ;;  %v518_v12 = vrot.slane %v495_v53, 2  ;;  %v8593_v22 = vld [vmem:[#allocation6] ss:$8 sps:$4 sm:$0xff]   ;;  %v8599_v53 = vld [vmem:[#allocation6 + $0xf0] ss:$8 sps:$4 sm:$0xff]  }
 0x1da   :  { %1692 = vmatprep.subr.bf16.mxu0 %v8496_v45  ;;  %v8532_v45 = vld [vmem:[#allocation3 + $0x4f4] ss:$8 sps:$4 sm:$0xff]   ;;  %v8607_v35 = vld [vmem:[#allocation6 + $0xe4] ss:$8 sps:$4 sm:$0xff]   ;;  %v8611_v37 = vld [vmem:[#allocation6 + $0xd0] ss:$8 sps:$4 sm:$0xff]  }
 0x1db   :  { %1650 = vmatmul.mubr.bf16.vlgmr.msra.gmra.mxu1 %v435_v57  ;;  %v519_v47 = vsel %vm183_vm3, %v517_v30, %v518_v12  ;;  %v8539_v57 = vld [vmem:[#allocation3 + $0x4c0] ss:$8 sps:$4 sm:$0xff]   ;;  %v8616_v12 = vld [vmem:[#allocation6 + $0x1e4] ss:$8 sps:$4 sm:$0xff]  }
 0x1dc   :  { %1659 = vmatprep.mubr.bf16.mxu1 %v516_v59  ;;  %1724 = vmatpush1.bf16.msra.mxu1 %v8491_v51  ;;  %v8538_v51 = vld [vmem:[#allocation3 + $0x4d4] ss:$8 sps:$4 sm:$0xff]   ;;  %v8542_v59 = vld [vmem:[#allocation3 + $0x4b0] ss:$8 sps:$4 sm:$0xff]   ;;  %v8614_v30 = vld [vmem:[#allocation6 + $0x1e0] ss:$8 sps:$4 sm:$0xff]  }
 0x1dd   :  { %1693 = vmatpush2.bf16.msra.mxu0 %v8494_v56  ;;  %1725 = vmatprep.subr.bf16.mxu1 %v8499_v6  ;;  %v8536_v56 = vld [vmem:[#allocation3 + $0x4d0] ss:$8 sps:$4 sm:$0xff]   ;;  %v8541_v6 = vld [vmem:[#allocation3 + $0x4c4] ss:$8 sps:$4 sm:$0xff]  }
 0x1de   :  { %1694 = vmatprep.subr.bf16.mxu0 %v8502_v4  ;;  %v8544_v4 = vld [vmem:[#allocation3 + $0x4b4] ss:$8 sps:$4 sm:$0xff]  }
 0x1e0   :  { %1726 = vmatpush1.bf16.msra.mxu1 %v8497_v52  ;;  %v8545_v52 = vld [vmem:[#allocation3 + $0x4a0] ss:$8 sps:$4 sm:$0xff]  }
 0x1e1   :  { %1695 = vmatpush2.bf16.msra.mxu0 %v8500_v25  ;;  %1727 = vmatprep.subr.bf16.mxu1 %v8505_v0  ;;  %v8550_v25 = vld [vmem:[#allocation3 + $0x494] ss:$8 sps:$4 sm:$0xff]   ;;  %v8548_v0 = vld [vmem:[#allocation3 + $0x490] ss:$8 sps:$4 sm:$0xff]  }
 0x1e2   :  { %1696 = vmatprep.subr.bf16.mxu0 %v8508_v10  ;;  %v8554_v10 = vld [vmem:[#allocation6 + $0x70] ss:$8 sps:$4 sm:$0xff]  }
 0x1e3   :  { %1660 = vmatmul.mubr.bf16.gmra.mxu1 %v513_v19  ;;  %v8565_v19 = vld [vmem:[#allocation6 + $0x54] ss:$8 sps:$4 sm:$0xff]  }
 0x1e4   :  { %1728 = vmatpush1.bf16.msra.mxu1 %v8503_v11  ;;  %1755 = vmatprep.mubr.bf16.mxu1 %v466_v21  ;;  %v8556_v11 = vld [vmem:[#allocation6 + $0x74] ss:$8 sps:$4 sm:$0xff]   ;;  %v8572_v21 = vld [vmem:[#allocation6 + $0x150] ss:$8 sps:$4 sm:$0xff]  }
 0x1e5   :  { %1697 = vmatpush2.bf16.msra.mxu0 %v8506_v13  ;;  %1729 = vmatprep.subr.bf16.mxu1 %v8511_v26  ;;  %v8557_v13 = vld [vmem:[#allocation6 + $0x60] ss:$8 sps:$4 sm:$0xff]   ;;  %v8560_v26 = vld [vmem:[#allocation6 + $0x170] ss:$8 sps:$4 sm:$0xff]  }
 0x1e6   :  { %1698 = vmatprep.subr.bf16.mxu0 %v8514_v20  ;;  %v8568_v20 = vld [vmem:[#allocation6 + $0x164] ss:$8 sps:$4 sm:$0xff]  }
 0x1e8   :  { %1730 = vmatpush1.bf16.msra.mxu1 %v8509_v24  ;;  %v8574_v24 = vld [vmem:[#allocation6 + $0x154] ss:$8 sps:$4 sm:$0xff]  }
 0x1e9   :  { %1699 = vmatpush2.bf16.msra.mxu0 %v8512_v58  ;;  %1731 = vmatprep.subr.bf16.mxu1 %v8517_v27  ;;  %v8577_v58 = vld [vmem:[#allocation6 + $0x34] ss:$8 sps:$4 sm:$0xff]   ;;  %v8580_v27 = vld [vmem:[#allocation6 + $0x144] ss:$8 sps:$4 sm:$0xff]  }
 0x1ea   :  { %1700 = vmatprep.subr.bf16.mxu0 %v8520_v54  ;;  %v8583_v54 = vld [vmem:[#allocation6 + $0x24] ss:$8 sps:$4 sm:$0xff]  }
 0x1ec   :  { %1732 = vmatpush1.bf16.msra.mxu1 %v8515_v23  ;;  %v8581_v23 = vld [vmem:[#allocation6 + $0x20] ss:$8 sps:$4 sm:$0xff]  }
 0x1ed   :  { %1701 = vmatpush2.bf16.msra.mxu0 %v8518_v31  ;;  %1733 = vmatprep.subr.bf16.mxu1 %v8523_v32  ;;  %v8592_v31 = vld [vmem:[#allocation6 + $0x124] ss:$8 sps:$4 sm:$0xff]   ;;  %v8587_v32 = vld [vmem:[#allocation6 + $0x10] ss:$8 sps:$4 sm:$0xff]  }
 0x1ee   :  { %2869 = vmatprep.subr.bf16.mxu0 %v8556_v11  ;;  %v8644_v11 = vld [vmem:[#allocation6 + $0x190] ss:$8 sps:$4 sm:$0xff]  }
 0x1f0   :  { %1703 = vmatmul.mubr.bf16.vlgmr.msra.gmra.mxu0 %v449_v39  ;;  %1734 = vmatpush1.bf16.msra.mxu1 %v8521_v61  ;;  %v8601_v61 = vld [vmem:[#allocation6 + $0xf4] ss:$8 sps:$4 sm:$0xff]  }
 0x1f1   :  { %1712 = vmatprep.mubr.bf16.mxu0 %v522_v60  ;;  %1735 = vmatprep.subr.bf16.mxu1 %v8526_v36  ;;  %v8602_v36 = vld [vmem:[#allocation6 + $0x100] ss:$8 sps:$4 sm:$0xff]   ;;  %v8610_v39 = vld [vmem:[#allocation6 + $0x1f4] ss:$8 sps:$4 sm:$0xff]  }
 0x1f2   :  { %2870 = vmatpush1.bf16.msra.mxu0 %v8554_v10  ;;  %v8605_v60 = vld [vmem:[#allocation6 + $0xe0] ss:$8 sps:$4 sm:$0xff]  }
 0x1f3   :  { %2871 = vmatprep.subr.bf16.mxu0 %v8559_v14  ;;  %v8641_v10 = vld [vmem:[#allocation6 + $0x80] ss:$8 sps:$4 sm:$0xff]   ;;  %v8652_v14 = vld [vmem:[#allocation6 + $0x184] ss:$8 sps:$4 sm:$0xff]  }
 0x1f4   :  { %1736 = vmatpush1.bf16.msra.mxu1 %v8524_v17  ;;  %v8608_v17 = vld [vmem:[#allocation6 + $0x1f0] ss:$8 sps:$4 sm:$0xff]  }
 0x1f5   :  { %1737 = vmatprep.subr.bf16.mxu1 %v8529_v38  ;;  %v8613_v38 = vld [vmem:[#allocation6 + $0xd4] ss:$8 sps:$4 sm:$0xff]  }
 0x1f6   :  { %2872 = vmatpush1.bf16.msra.mxu0 %v8557_v13  ;;  %v8649_v13 = vld [vmem:[#allocation6 + $0x274] ss:$8 sps:$4 sm:$0xff]  }
 0x1f7   :  { %2873 = vmatprep.subr.bf16.mxu0 %v8565_v19 }
 0x1f8   :  { %1713 = vmatmul.mubr.bf16.gmra.mxu0 %v519_v47  ;;  %1738 = vmatpush1.bf16.msra.mxu1 %v8527_v44  ;;  %v8617_v44 = vld [vmem:[#allocation6 + $0xc0] ss:$8 sps:$4 sm:$0xff]   ;;  %v8620_v47 = vld [vmem:[#allocation6 + $0x1d0] ss:$8 sps:$4 sm:$0xff]  }
 0x1f9   :  { %1739 = vmatprep.subr.bf16.mxu1 %v8532_v45  ;;  %v8619_v45 = vld [vmem:[#allocation6 + $0xc4] ss:$8 sps:$4 sm:$0xff]  }
 0x1fa   :  { %2874 = vmatpush1.bf16.msra.mxu0 %v8563_v16 }
 0x1fc   :  { %1740 = vmatpush2.bf16.msra.mxu1 %v8530_v46  ;;  %v8622_v46 = vld [vmem:[#allocation6 + $0x1d4] ss:$8 sps:$4 sm:$0xff]  }
 0x1fd   :  { %1741 = vmatprep.subr.bf16.mxu1 %v8535_v48  ;;  %v8623_v48 = vld [vmem:[#allocation6 + $0xb0] ss:$8 sps:$4 sm:$0xff]  }
 0x200   :  { %1742 = vmatpush2.bf16.msra.mxu1 %v8533_v49  ;;  %v8625_v49 = vld [vmem:[#allocation6 + $0xb4] ss:$8 sps:$4 sm:$0xff]  }
 0x201   :  { %1743 = vmatprep.subr.bf16.mxu1 %v8538_v51  ;;  %v8628_v51 = vld [vmem:[#allocation6 + $0x1c4] ss:$8 sps:$4 sm:$0xff]  }
 0x204   :  { %1744 = vmatpush2.bf16.msra.mxu1 %v8536_v56  ;;  %v8626_v56 = vld [vmem:[#allocation6 + $0x1c0] ss:$8 sps:$4 sm:$0xff]  }
 0x205   :  { %1745 = vmatprep.subr.bf16.mxu1 %v8541_v6  ;;  %v8629_v6 = vld [vmem:[#allocation6 + $0xa0] ss:$8 sps:$4 sm:$0xff]  }
 0x208   :  { %1746 = vmatpush2.bf16.msra.mxu1 %v8539_v57  ;;  %v8631_v57 = vld [vmem:[#allocation6 + $0xa4] ss:$8 sps:$4 sm:$0xff]  }
 0x209   :  { %1747 = vmatprep.subr.bf16.mxu1 %v8544_v4  ;;  %v8632_v4 = vld [vmem:[#allocation6 + $0x1b0] ss:$8 sps:$4 sm:$0xff]  }
 0x20c   :  { %1748 = vmatpush2.bf16.msra.mxu1 %v8542_v59  ;;  %v8634_v59 = vld [vmem:[#allocation6 + $0x1b4] ss:$8 sps:$4 sm:$0xff]  }
 0x20d   :  { %1749 = vmatprep.subr.bf16.mxu1 %v8547_v5  ;;  %v8637_v5 = vld [vmem:[#allocation6 + $0x94] ss:$8 sps:$4 sm:$0xff]  }
 0x210   :  { %1750 = vmatpush2.bf16.msra.mxu1 %v8545_v52  ;;  %v8640_v52 = vld [vmem:[#allocation6 + $0x1a4] ss:$8 sps:$4 sm:$0xff]  }
 0x211   :  { %1751 = vmatprep.subr.bf16.mxu1 %v8550_v25  ;;  %v8635_v25 = vld [vmem:[#allocation6 + $0x90] ss:$8 sps:$4 sm:$0xff]  }
 0x214   :  { %1752 = vmatpush2.bf16.msra.mxu1 %v8548_v0  ;;  %v8638_v0 = vld [vmem:[#allocation6 + $0x1a0] ss:$8 sps:$4 sm:$0xff]  }
 0x215   :  { %1753 = vmatprep.subr.bf16.mxu1 %v8553_v7  ;;  %v8643_v7 = vld [vmem:[#allocation6 + $0x84] ss:$8 sps:$4 sm:$0xff]  }
 0x218   :  { %1754 = vmatpush2.bf16.msra.mxu1 %v8551_v8  ;;  %v8646_v8 = vld [vmem:[#allocation6 + $0x194] ss:$8 sps:$4 sm:$0xff]  }
 0x219   :  { %2920 = vmatprep.subr.bf16.mxu1 %v8562_v15  ;;  %v8658_v15 = vld [vmem:[#allocation6 + $0x374] ss:$8 sps:$4 sm:$0xff]  }
 0x21b   :  { %1756 = vmatmul.mubr.bf16.vlgmr.msra.gmra.mxu1 %v10127_v55  ;;  %v8566_v55 = vld [vmem:[#allocation6 + $0x160] ss:$8 sps:$4 sm:$0xff]  }
 0x21c   :  { %1765 = vmatprep.mubr.bf16.mxu1 %v10132_v63  ;;  %2921 = vmatpush1.bf16.msra.mxu1 %v8560_v26  ;;  %v8569_v63 = vld [vmem:[#allocation6 + $0x40] ss:$8 sps:$4 sm:$0xff]  }
 0x21d   :  { %2922 = vmatprep.subr.bf16.mxu1 %v8568_v20  ;;  %v8650_v26 = vld [vmem:[#allocation6 + $0x180] ss:$8 sps:$4 sm:$0xff]  }
 0x220   :  { %2923 = vmatpush1.bf16.msra.mxu1 %v8566_v55 }
 0x221   :  { %2924 = vmatprep.subr.bf16.mxu1 %v8574_v24 }
 0x223   :  { %1766 = vmatmul.mubr.bf16.gmra.mxu1 %v10135_v2  ;;  %v8571_v2 = vld [vmem:[#allocation6 + $0x44] ss:$8 sps:$4 sm:$0xff]  }
 0x224   :  { %2875 = vmatprep.subr.bf16.mxu0 %v8571_v2  ;;  %2925 = vmatpush1.bf16.msra.mxu1 %v8572_v21 }
 0x225   :  { %2876 = vmatpush1.bf16.msra.mxu0 %v8569_v63  ;;  %2926 = vmatprep.subr.bf16.mxu1 %v8580_v27 }
 0x226   :  { %2877 = vmatprep.subr.bf16.mxu0 %v8577_v58 }
 0x228   :  { %2927 = vmatpush1.bf16.msra.mxu1 %v8578_v62 }
 0x229   :  { %2878 = vmatpush1.bf16.msra.mxu0 %v8575_v1  ;;  %2928 = vmatprep.subr.bf16.mxu1 %v8586_v28 }
 0x22a   :  { %2879 = vmatprep.subr.bf16.mxu0 %v8583_v54 }
 0x22c   :  { %2929 = vmatpush1.bf16.msra.mxu1 %v8584_v29 }
 0x22d   :  { %2880 = vmatpush1.bf16.msra.mxu0 %v8581_v23  ;;  %2930 = vmatprep.subr.bf16.mxu1 %v8592_v31 }
 0x22e   :  { %2881 = vmatprep.subr.bf16.mxu0 %v8589_v50 }
 0x230   :  { %2931 = vmatpush1.bf16.msra.mxu1 %v8590_v40 }
 0x231   :  { %2882 = vmatpush1.bf16.msra.mxu0 %v8587_v32  ;;  %2932 = vmatprep.subr.bf16.mxu1 %v8598_v18 }
 0x232   :  { %2883 = vmatprep.subr.bf16.mxu0 %v8595_v33 }
 0x234   :  { %2933 = vmatpush1.bf16.msra.mxu1 %v8596_v34 }
 0x235   :  { %2884 = vmatpush1.bf16.msra.mxu0 %v8593_v22  ;;  %2934 = vmatprep.subr.bf16.mxu1 %v8604_v41  ;;  %v699_v41 = vld [vmem:[%s11925_s4] sm:$0x3] }
 0x236   :  { %2885 = vmatprep.subr.bf16.mxu0 %v8601_v61 }
 0x238   :  { %2935 = vmatpush1.bf16.msra.mxu1 %v8602_v36  ;;  %v704_v36 = vrot.slane %v699_v41, %v10047_v43 }
 0x239   :  { %2886 = vmatpush2.bf16.msra.mxu0 %v8599_v53  ;;  %2936 = vmatprep.subr.bf16.mxu1 %v8610_v39  ;;  %v708_v39 = vrot.slane %v699_v41, %v10044_v3 }
 0x23a   :  { %2887 = vmatprep.subr.bf16.mxu0 %v8607_v35 }
 0x23c   :  { %2937 = vmatpush2.bf16.msra.mxu1 %v8608_v17 }
 0x23d   :  { %2888 = vmatpush2.bf16.msra.mxu0 %v8605_v60  ;;  %2938 = vmatprep.subr.bf16.mxu1 %v8616_v12 }
 0x23e   :  { %2889 = vmatprep.subr.bf16.mxu0 %v8613_v38 }
 0x240   :  { %2939 = vmatpush2.bf16.msra.mxu1 %v8614_v30 }
 0x241   :  { %2890 = vmatpush2.bf16.msra.mxu0 %v8611_v37  ;;  %2940 = vmatprep.subr.bf16.mxu1 %v8622_v46 }
 0x242   :  { %2891 = vmatprep.subr.bf16.mxu0 %v8619_v45 }
 0x244   :  { %2941 = vmatpush2.bf16.msra.mxu1 %v8620_v47 }
 0x245   :  { %2892 = vmatpush2.bf16.msra.mxu0 %v8617_v44  ;;  %2942 = vmatprep.subr.bf16.mxu1 %v8628_v51 }
 0x246   :  { %2893 = vmatprep.subr.bf16.mxu0 %v8625_v49 }
 0x248   :  { %2943 = vmatpush2.bf16.msra.mxu1 %v8626_v56 }
 0x249   :  { %2894 = vmatpush2.bf16.msra.mxu0 %v8623_v48  ;;  %2944 = vmatprep.subr.bf16.mxu1 %v8634_v59 }
 0x24a   :  { %2895 = vmatprep.subr.bf16.mxu0 %v8631_v57 }
 0x24c   :  { %2945 = vmatpush2.bf16.msra.mxu1 %v8632_v4 }
 0x24d   :  { %2896 = vmatpush2.bf16.msra.mxu0 %v8629_v6  ;;  %2946 = vmatprep.subr.bf16.mxu1 %v8640_v52 }
 0x24e   :  { %2897 = vmatprep.subr.bf16.mxu0 %v8637_v5 }
 0x250   :  { %2947 = vmatpush2.bf16.msra.mxu1 %v8638_v0 }
 0x251   :  { %2898 = vmatpush2.bf16.msra.mxu0 %v8635_v25  ;;  %2948 = vmatprep.subr.bf16.mxu1 %v8646_v8 }
 0x252   :  { %2899 = vmatprep.subr.bf16.mxu0 %v8643_v7 }
 0x254   :  { %2949 = vmatpush2.bf16.msra.mxu1 %v8644_v11 }
 0x255   :  { %2900 = vmatpush2.bf16.msra.mxu0 %v8641_v10  ;;  %2950 = vmatprep.subr.bf16.mxu1 %v8652_v14 }
 0x256   :  { %2971 = vmatprep.subr.bf16.mxu0 %v8649_v13 }
 0x258   :  { %2951 = vmatpush2.bf16.msra.mxu1 %v8650_v26 }
 0x259   :  { %3022 = vmatprep.subr.bf16.mxu1 %v8658_v15 }
 0x25b   :  { %v1545_v16 = vpop.f32.mrf.mxu1 }
 0x25c   :  { %v1546_v38 = vadd.f32 %v1545_v16, %v704_v36 }
 0x25d   :  { %v1547_v19 = vpop.f32.mrf.mxu1 }
 0x25e   :  { %v1548_v44 = vadd.f32 %v1547_v19, %v708_v39 }
 0x25f   :  { %v1549_v55 = vpop.f32.mrf.mxu1 }
 0x260   :  { %v1550_v60 = vadd.f32 %v1549_v55, %v704_v36 }
 0x261   :  { %v1551_v20 = vpop.f32.mrf.mxu1 }
 0x262   :  { %v1552_v30 = vadd.f32 %v1551_v20, %v708_v39 }
 0x270   :  { %v1598_v63 = vpop.f32.mrf.mxu0 }
 0x271   :  { %v1599_v47 = vadd.f32 %v1598_v63, %v1546_v38 }
 0x272   :  { %v1600_v21 = vpop.f32.mrf.mxu0 }
 0x273   :  { %v1601_v51 = vadd.f32 %v1600_v21, %v1548_v44 }
 0x274   :  { %v1602_v58 = vpop.f32.mrf.mxu0 }
 0x275   :  { %v1555_v2 = vpop.f32.mrf.mxu1  ;;  %v1603_v12 = vadd.f32 %v1602_v58, %v1550_v60 }
 0x276   :  { %v1604_v1 = vpop.f32.mrf.mxu0  ;;  %v1556_v46 = vadd.f32 %v1555_v2, %v704_v36 }
 0x277   :  { %v1557_v24 = vpop.f32.mrf.mxu1  ;;  %v1605_v48 = vadd.f32 %v1604_v1, %v1552_v30 }
 0x278   :  { %v1558_v56 = vadd.f32 %v1557_v24, %v708_v39 }
 0x279   :  { %v1559_v27 = vpop.f32.mrf.mxu1 }
 0x27a   :  { %v1608_v54 = vpop.f32.mrf.mxu0  ;;  %v1560_v4 = vadd.f32 %v1559_v27, %v704_v36 }
 0x27b   :  { %v1561_v62 = vpop.f32.mrf.mxu1  ;;  %v1609_v7 = vadd.f32 %v1608_v54, %v1556_v46 }
 0x27c   :  { %v1610_v23 = vpop.f32.mrf.mxu0  ;;  %v1562_v13 = vadd.f32 %v1561_v62, %v708_v39 }
 0x27d   :  { %v1611_v14 = vadd.f32 %v1610_v23, %v1558_v56 }
 0x27e   :  { %v1612_v29 = vpop.f32.mrf.mxu0 }
 0x27f   :  { %v1613_v19 = vadd.f32 %v1612_v29, %v1560_v4  ;;  %v8647_v4 = vld [vmem:[#allocation6 + $0x270] ss:$8 sps:$4 sm:$0xff]  }
 0x280   :  { %v1614_v32 = vpop.f32.mrf.mxu0 }
 0x281   :  { %v1615_v2 = vadd.f32 %v1614_v32, %v1562_v13 }
 0x29b   :  { %v1651_v28 = vpop.f32.mrf.mxu1 }
 0x29c   :  { %v1652_v59 = vadd.f32 %v1651_v28, %v1599_v47 }
 0x29d   :  { %v1653_v50 = vpop.f32.mrf.mxu1 }
 0x29e   :  { %v1654_v25 = vadd.f32 %v1653_v50, %v1601_v51 }
 0x29f   :  { %v1655_v31 = vpop.f32.mrf.mxu1 }
 0x2a0   :  { %v1656_v49 = vadd.f32 %v1655_v31, %v1603_v12 }
 0x2a1   :  { %v1657_v33 = vpop.f32.mrf.mxu1 }
 0x2a2   :  { %v1658_v5 = vadd.f32 %v1657_v33, %v1605_v48 }
 0x2a3   :  { %v1661_v18 = vpop.f32.mrf.mxu1 }
 0x2a4   :  { %v1662_v55 = vadd.f32 %v1661_v18, %v1609_v7  ;;  %v8655_v7 = vld [vmem:[#allocation6 + $0x264] ss:$8 sps:$4 sm:$0xff]  }
 0x2a5   :  { %v1663_v61 = vpop.f32.mrf.mxu1 }
 0x2a6   :  { %v1664_v58 = vadd.f32 %v1663_v61, %v1611_v14 }
 0x2a7   :  { %v1665_v53 = vpop.f32.mrf.mxu1 }
 0x2a8   :  { %v1666_v27 = vadd.f32 %v1665_v53, %v1613_v19 }
 0x2a9   :  { %v1667_v17 = vpop.f32.mrf.mxu1 }
 0x2aa   :  { %v1668_v54 = vadd.f32 %v1667_v17, %v1615_v2 }
 0x2b0   :  { %v1704_v40 = vpop.f32.mrf.mxu0 }
 0x2b1   :  { %v1705_v8 = vadd.f32 %v1704_v40, %v1652_v59 }
 0x2b2   :  { %v1706_v22 = vpop.f32.mrf.mxu0 }
 0x2b3   :  { %v1707_v26 = vadd.f32 %v1706_v22, %v1654_v25 }
 0x2b4   :  { %v1708_v34 = vpop.f32.mrf.mxu0 }
 0x2b5   :  { %v1709_v52 = vadd.f32 %v1708_v34, %v1656_v49 }
 0x2b6   :  { %v1710_v35 = vpop.f32.mrf.mxu0 }
 0x2b7   :  { %v1711_v10 = vadd.f32 %v1710_v35, %v1658_v5 }
 0x2b8   :  { %v1714_v37 = vpop.f32.mrf.mxu0 }
 0x2b9   :  { %v1715_v1 = vadd.f32 %v1714_v37, %v1662_v55 }
 0x2ba   :  { %v1716_v6 = vpop.f32.mrf.mxu0 }
 0x2bb   :  { %v1717_v62 = vadd.f32 %v1716_v6, %v1664_v58 }
 0x2bc   :  { %v1718_v15 = vpop.f32.mrf.mxu0 }
 0x2bd   :  { %v1719_v23 = vadd.f32 %v1718_v15, %v1666_v27 }
 0x2be   :  { %v1720_v50 = vpop.f32.mrf.mxu0 }
 0x2bf   :  { %v1721_v18 = vadd.f32 %v1720_v50, %v1668_v54 }
 0x2db   :  { %v1757_v45 = vpop.f32.mrf.mxu1 }
 0x2dc   :  { %v1758_v20 = vadd.f32 %v1757_v45, %v1705_v8 }
 0x2dd   :  { %v1759_v57 = vpop.f32.mrf.mxu1 }
 0x2de   :  { %v1760_v21 = vadd.f32 %v1759_v57, %v1707_v26  ;;  %v1776_v40 = vmax.f32 %v1758_v20, 0.0 }
 0x2df   :  { %v1761_v0 = vpop.f32.mrf.mxu1 }
 0x2e0   :  { %v1762_v11 = vadd.f32 %v1761_v0, %v1709_v52  ;;  %v1777_v34 = vmax.f32 %v1760_v21, 0.0 }
 0x2e1   :  { %v1763_v16 = vpop.f32.mrf.mxu1 }
 0x2e2   :  { %v1764_v63 = vadd.f32 %v1763_v16, %v1711_v10  ;;  %v1778_v28 = vmax.f32 %v1762_v11, 0.0 }
 0x2e3   :  { %v1767_v24 = vpop.f32.mrf.mxu1 }
 0x2e4   :  { %v1779_v31 = vmax.f32 %v1764_v63, 0.0  ;;  %v1768_v22 = vadd.f32 %v1767_v24, %v1715_v1  ;;  %v10182_v41 = vpack.c.bf16 %v1778_v28, %v1776_v40  ;;  %v8653_v63 = vld [vmem:[#allocation6 + $0x260] ss:$8 sps:$4 sm:$0xff]   ;;  %v8661_v1 = vld [vmem:[#allocation6 + $0x254] ss:$8 sps:$4 sm:$0xff]  }
 0x2e5   :  { %v1769_v33 = vpop.f32.mrf.mxu1 }
 0x2e6   :  { %v1770_v32 = vadd.f32 %v1769_v33, %v1717_v62  ;;  %v10184_v36 = vpack.c.bf16 %v1779_v31, %v1777_v34  ;;  %v1780_v53 = vmax.f32 %v1768_v22, 0.0  ;;  %v1791_v30 = vshll.u32 %v10182_v41, 16  ;;  %v8656_v31 = vld [vmem:[#allocation6 + $0x370] ss:$8 sps:$4 sm:$0xff]   ;;  %v8664_v34 = vld [vmem:[#allocation6 + $0x364] ss:$8 sps:$4 sm:$0xff]  }
 0x2e7   :  { %v1771_v29 = vpop.f32.mrf.mxu1  ;;  %v1789_v46 = vshrl.u32 %v10182_v41, 16  ;;  %v1812_v49 = vrot.slane %v10182_v41, 2 }
 0x2e8   :  { %v1772_v35 = vadd.f32 %v1771_v29, %v1719_v23  ;;  %v1781_v17 = vmax.f32 %v1770_v32, 0.0  ;;  %v1798_v12 = vshll.u32 %v10184_v36, 16  ;;  %v1796_v56 = vshrl.u32 %v10184_v36, 16 }
 0x2e9   :  { %v1773_v61 = vpop.f32.mrf.mxu1  ;;  %v1793_v57 = vrot.slane %v1791_v30, 1  ;;  %v1806_v10 = vrot.slane %v1789_v46, 1  ;;  %v1807_v11 = vrot.slane %v1791_v30, 2  ;;  %v1813_v15 = vrot.slane %v10184_v36, 2 }
 0x2ea   :  { %v1782_v39 = vmax.f32 %v1772_v35, 0.0  ;;  %v1774_v60 = vadd.f32 %v1773_v61, %v1721_v18  ;;  %v1800_v59 = vrot.slane %v1798_v12, 1  ;;  %v8659_v18 = vld [vmem:[#allocation6 + $0x250] ss:$8 sps:$4 sm:$0xff]   ;;  %v1805_v35 = vrot.slane %v10184_v36, 1 }
 0x2eb   :  { %v1794_v33 = vor.u32 %v1793_v57, %v1789_v46  ;;  %v1808_v62 = vor.u32 %v1807_v11, %v1806_v10  ;;  %v8667_v61 = vld [vmem:[#allocation6 + $0x244] ss:$8 sps:$4 sm:$0xff]   ;;  %v1810_v30 = vrot.slane %v1798_v12, 2  ;;  %v8668_v46 = vld [vmem:[#allocation6 + $0x350] ss:$8 sps:$4 sm:$0xff]  }
 0x2ec   :  { %v10186_v37 = vpack.c.bf16 %v1782_v39, %v1780_v53  ;;  %v1783_v38 = vmax.f32 %v1774_v60, 0.0  ;;  %v1801_v2 = vor.u32 %v1800_v59, %v1796_v56  ;;  %v8662_v39 = vld [vmem:[#allocation6 + $0x360] ss:$8 sps:$4 sm:$0xff]   ;;  %v8671_v57 = vld [vmem:[#allocation6 + $0x230] ss:$8 sps:$4 sm:$0xff]  }
 0x2ed   :  { %v8679_v12 = vld [vmem:[#allocation6 + $0x224] ss:$8 sps:$4 sm:$0xff]   ;;  %v8677_v59 = vld [vmem:[#allocation6 + $0x220] ss:$8 sps:$4 sm:$0xff]   ;;  %v8694_v10 = vld [vmem:[#allocation6 + $0x314] ss:$8 sps:$4 sm:$0xff]  }
 0x2ee   :  { %v1815_v44 = vshrl.u32 %v10186_v37, 16  ;;  %v1817_v45 = vshll.u32 %v10186_v37, 16  ;;  %v1787_v47 = vpack.c.bf16 %v1783_v38, %v1781_v17  ;;  %v10194_v48 = vrot.slane %v10186_v37, 2  ;;  %v8670_v17 = vld [vmem:[#allocation6 + $0x354] ss:$8 sps:$4 sm:$0xff]  }
 0x2ef   :  { %v1809_v38 = vrot.slane %v1796_v56, 1  ;;  %v8674_v56 = vld [vmem:[#allocation6 + $0x340] ss:$8 sps:$4 sm:$0xff]  }
 0x2f0   :  { %v10197_v51 = vrot.slane %v1787_v47, 2  ;;  %v1824_v6 = vshll.u32 %v1787_v47, 16  ;;  %v1822_v5 = vshrl.u32 %v1787_v47, 16  ;;  %v1819_v52 = vrot.slane %v1817_v45, 1  ;;  %v8689_v11 = vld [vmem:[#allocation6 + $0x200] ss:$8 sps:$4 sm:$0xff]  }
 0x2f1   :  { %v1832_v25 = vrot.slane %v1815_v44, 1  ;;  %v1860_v13 = vsel %vm183_vm3, %v10182_v41, %v10194_v48  ;;  %v1833_v26 = vrot.slane %v1817_v45, 2  ;;  %v1831_v19 = vrot.slane %v1787_v47, 1  ;;  %v8673_v45 = vld [vmem:[#allocation6 + $0x234] ss:$8 sps:$4 sm:$0xff]  }
 0x2f2   :  { %v1863_v0 = vsel %vm183_vm3, %v10184_v36, %v10197_v51  ;;  %v1826_v8 = vrot.slane %v1824_v6, 1  ;;  %v1820_v14 = vor.u32 %v1819_v52, %v1815_v44  ;;  %v1847_v55 = vrot.slane %v10197_v51, 2  ;;  %v8665_v44 = vld [vmem:[#allocation6 + $0x240] ss:$8 sps:$4 sm:$0xff]   ;;  %v8680_v52 = vld [vmem:[#allocation6 + $0x330] ss:$8 sps:$4 sm:$0xff]  }
 0x2f3   :  { %2901 = vmatprep.mubr.bf16.mxu0 %v1863_v0  ;;  %v1846_v20 = vrot.slane %v10194_v48, 2  ;;  %v1835_v24 = vrot.slane %v1822_v5, 1  ;;  %v1834_v58 = vor.u32 %v1833_v26, %v1832_v25  ;;  %v1836_v28 = vrot.slane %v1824_v6, 2  ;;  %v8676_v6 = vld [vmem:[#allocation6 + $0x344] ss:$8 sps:$4 sm:$0xff]  }
 0x2f4   :  { %2902 = vmatmul.mubr.bf16.vlgmr.msra.gmra.mxu0 %v1860_v13  ;;  %v1827_v16 = vor.u32 %v1826_v8, %v1822_v5  ;;  %v1840_v21 = vrot.slane %v1820_v14, 2  ;;  %v10215_v54 = vsel %vm183_vm3, %v1813_v15, %v1847_v55  ;;  %v10225_v22 = vrot.slane %v1831_v19, 2  ;;  %v8685_v5 = vld [vmem:[#allocation6 + $0x214] ss:$8 sps:$4 sm:$0xff]   ;;  %v8688_v25 = vld [vmem:[#allocation6 + $0x324] ss:$8 sps:$4 sm:$0xff]  }
 0x2f5   :  { %2972 = vmatpush1.bf16.msra.mxu0 %v8647_v4  ;;  %2911 = vmatprep.mubr.bf16.mxu0 %v10197_v51  ;;  %v10220_v50 = vsel %vm183_vm3, %v1812_v49, %v1846_v20  ;;  %v10222_v23 = vrot.slane %v1834_v58, 2  ;;  %v1837_v53 = vor.u32 %v1836_v28, %v1835_v24  ;;  %v1811_v49 = vor.u32 %v1810_v30, %v1809_v38  ;;  %v8682_v4 = vld [vmem:[#allocation6 + $0x334] ss:$8 sps:$4 sm:$0xff]   ;;  %v8683_v0 = vld [vmem:[#allocation6 + $0x210] ss:$8 sps:$4 sm:$0xff]  }
 0x2f6   :  { %2973 = vmatprep.subr.bf16.mxu0 %v8655_v7  ;;  %v1841_v27 = vrot.slane %v1827_v16, 2  ;;  %v1867_v29 = vsel %vm183_vm3, %v1794_v33, %v1840_v21  ;;  %v1879_v60 = vsel %vm183_vm3, %v1805_v35, %v10225_v22  ;;  %v8691_v7 = vld [vmem:[#allocation6 + $0x204] ss:$8 sps:$4 sm:$0xff]   ;;  %v8686_v8 = vld [vmem:[#allocation6 + $0x320] ss:$8 sps:$4 sm:$0xff]  }
 0x2f7   :  { %v10230_v32 = vsel %vm183_vm3, %v1808_v62, %v10222_v23  ;;  %v10238_v47 = vrot.slane %v1837_v53, 2  ;;  %v8697_v13 = vld [vmem:[#allocation6 + $0x2f4] ss:$8 sps:$4 sm:$0xff]   ;;  %v8692_v14 = vld [vmem:[#allocation6 + $0x310] ss:$8 sps:$4 sm:$0xff]  }
 0x2f8   :  { %v1871_v40 = vsel %vm183_vm3, %v1801_v2, %v1841_v27  ;;  %v8700_v26 = vld [vmem:[#allocation6 + $0x304] ss:$8 sps:$4 sm:$0xff]   ;;  %v8695_v15 = vld [vmem:[#allocation6 + $0x2f0] ss:$8 sps:$4 sm:$0xff]   ;;  %v8698_v19 = vld [vmem:[#allocation6 + $0x300] ss:$8 sps:$4 sm:$0xff]  }
 0x2f9   :  { %2974 = vmatpush1.bf16.msra.mxu0 %v8653_v63  ;;  %2952 = vmatprep.mubr.bf16.mxu1 %v1871_v40  ;;  %v1887_v36 = vsel %vm183_vm3, %v1811_v49, %v10238_v47  ;;  %v8703_v16 = vld [vmem:[#allocation6 + $0x2e4] ss:$8 sps:$4 sm:$0xff]   ;;  %v8706_v63 = vld [vmem:[#allocation6 + $0x3f4] ss:$8 sps:$4 sm:$0xff]   ;;  %v8701_v2 = vld [vmem:[#allocation6 + $0x2e0] ss:$8 sps:$4 sm:$0xff]  }
 0x2fa   :  { %2953 = vmatmul.mubr.bf16.vlgmr.msra.gmra.mxu1 %v1867_v29  ;;  %2975 = vmatprep.subr.bf16.mxu0 %v8661_v1  ;;  %v8704_v24 = vld [vmem:[#allocation6 + $0x3f0] ss:$8 sps:$4 sm:$0xff]   ;;  %v8712_v58 = vld [vmem:[#allocation6 + $0x3e4] ss:$8 sps:$4 sm:$0xff]   ;;  %v8710_v28 = vld [vmem:[#allocation6 + $0x3e0] ss:$8 sps:$4 sm:$0xff]  }
 0x2fb   :  { %3023 = vmatpush1.bf16.msra.mxu1 %v8656_v31  ;;  %2962 = vmatprep.mubr.bf16.mxu1 %v1841_v27  ;;  %v8707_v27 = vld [vmem:[#allocation6 + $0x2d0] ss:$8 sps:$4 sm:$0xff]   ;;  %v8715_v1 = vld [vmem:[#allocation6 + $0x2c4] ss:$8 sps:$4 sm:$0xff]   ;;  %v8718_v31 = vld [vmem:[#allocation6 + $0x3d4] ss:$8 sps:$4 sm:$0xff]  }
 0x2fc   :  { %2912 = vmatmul.mubr.bf16.gmra.mxu0 %v10194_v48  ;;  %3024 = vmatprep.subr.bf16.mxu1 %v8664_v34  ;;  %v8713_v33 = vld [vmem:[#allocation6 + $0x2c0] ss:$8 sps:$4 sm:$0xff]   ;;  %v8721_v62 = vld [vmem:[#allocation6 + $0x2b4] ss:$8 sps:$4 sm:$0xff]   ;;  %v8716_v40 = vld [vmem:[#allocation6 + $0x3d0] ss:$8 sps:$4 sm:$0xff]  }
 0x2fd   :  { %2976 = vmatpush1.bf16.msra.mxu0 %v8659_v18  ;;  %3003 = vmatprep.mubr.bf16.mxu0 %v1879_v60  ;;  %v8724_v34 = vld [vmem:[#allocation6 + $0x3c4] ss:$8 sps:$4 sm:$0xff]   ;;  %v8719_v29 = vld [vmem:[#allocation6 + $0x2b0] ss:$8 sps:$4 sm:$0xff]   ;;  %v8722_v35 = vld [vmem:[#allocation6 + $0x3c0] ss:$8 sps:$4 sm:$0xff]  }
 0x2fe   :  { %2977 = vmatprep.subr.bf16.mxu0 %v8667_v61  ;;  %v8727_v18 = vld [vmem:[#allocation6 + $0x2a4] ss:$8 sps:$4 sm:$0xff]   ;;  %v8730_v61 = vld [vmem:[#allocation6 + $0x3b4] ss:$8 sps:$4 sm:$0xff]   ;;  %v8725_v53 = vld [vmem:[#allocation6 + $0x2a0] ss:$8 sps:$4 sm:$0xff]  }
 0x2ff   :  { %3025 = vmatpush1.bf16.msra.mxu1 %v8662_v39  ;;  %v8733_v39 = vld [vmem:[#allocation6 + $0x294] ss:$8 sps:$4 sm:$0xff]   ;;  %v8728_v60 = vld [vmem:[#allocation6 + $0x3b0] ss:$8 sps:$4 sm:$0xff]   ;;  %v8739_v30 = vld [vmem:[#allocation6 + $0x284] ss:$8 sps:$4 sm:$0xff]  }
 0x300   :  { %3026 = vmatprep.subr.bf16.mxu1 %v8670_v17  ;;  %v8736_v17 = vld [vmem:[#allocation6 + $0x3a4] ss:$8 sps:$4 sm:$0xff]   ;;  %v8731_v38 = vld [vmem:[#allocation6 + $0x290] ss:$8 sps:$4 sm:$0xff]   ;;  %v8737_v49 = vld [vmem:[#allocation6 + $0x280] ss:$8 sps:$4 sm:$0xff]  }
 0x301   :  { %2978 = vmatpush1.bf16.msra.mxu0 %v8665_v44  ;;  %v8734_v44 = vld [vmem:[#allocation6 + $0x3a0] ss:$8 sps:$4 sm:$0xff]   ;;  %v8814_v51 = vld [vmem:[#allocation8 + $0x154] ss:$8 sps:$4 sm:$0xff]   ;;  %v8811_v48 = vld [vmem:[#allocation8 + $0x44] ss:$8 sps:$4 sm:$0xff]  }
 0x302   :  { %2963 = vmatmul.mubr.bf16.gmra.mxu1 %v1840_v21  ;;  %2979 = vmatprep.subr.bf16.mxu0 %v8673_v45  ;;  %v8709_v21 = vld [vmem:[#allocation6 + $0x2d4] ss:$8 sps:$4 sm:$0xff]   ;;  %v1830_v45 = vrot.slane %v10186_v37, 1 }
 0x303   :  { %3027 = vmatpush1.bf16.msra.mxu1 %v8668_v46  ;;  %3054 = vmatprep.mubr.bf16.mxu1 %v1887_v36  ;;  %v8742_v46 = vld [vmem:[#allocation6 + $0x394] ss:$8 sps:$4 sm:$0xff]  }
 0x304   :  { %3028 = vmatprep.subr.bf16.mxu1 %v8676_v6  ;;  %v8745_v6 = vld [vmem:[#allocation6 + $0x474] ss:$8 sps:$4 sm:$0xff]   ;;  %v1842_v36 = vrot.slane %v1830_v45, 2  ;;  %v8823_v45 = vld [vmem:[#allocation8 + $0x24] ss:$8 sps:$4 sm:$0xff]  }
 0x305   :  { %2980 = vmatpush1.bf16.msra.mxu0 %v8671_v57  ;;  %v8740_v57 = vld [vmem:[#allocation6 + $0x390] ss:$8 sps:$4 sm:$0xff]  }
 0x306   :  { %2981 = vmatprep.subr.bf16.mxu0 %v8679_v12  ;;  %v8748_v12 = vld [vmem:[#allocation6 + $0x384] ss:$8 sps:$4 sm:$0xff]  }
 0x307   :  { %3029 = vmatpush1.bf16.msra.mxu1 %v8674_v56  ;;  %v1804_v56 = vrot.slane %v10182_v41, 1  ;;  %v8757_v41 = vld [vmem:[#allocation6 + $0x444] ss:$8 sps:$4 sm:$0xff]  }
 0x308   :  { %3030 = vmatprep.subr.bf16.mxu1 %v8682_v4  ;;  %v8743_v4 = vld [vmem:[#allocation6 + $0x470] ss:$8 sps:$4 sm:$0xff]  }
 0x309   :  { %2982 = vmatpush1.bf16.msra.mxu0 %v8677_v59  ;;  %v8751_v59 = vld [vmem:[#allocation6 + $0x464] ss:$8 sps:$4 sm:$0xff]   ;;  %v1875_v37 = vsel %vm183_vm3, %v1804_v56, %v1842_v36  ;;  %v8827_v56 = vld [vmem:[#allocation8 + $0x10] ss:$8 sps:$4 sm:$0xff]  }
 0x30a   :  { %2983 = vmatprep.subr.bf16.mxu0 %v8685_v5  ;;  %v8746_v5 = vld [vmem:[#allocation6 + $0x380] ss:$8 sps:$4 sm:$0xff]  }
 0x30b   :  { %3031 = vmatpush1.bf16.msra.mxu1 %v8680_v52  ;;  %v8749_v52 = vld [vmem:[#allocation6 + $0x460] ss:$8 sps:$4 sm:$0xff]  }
 0x30c   :  { %3032 = vmatprep.subr.bf16.mxu1 %v8688_v25  ;;  %v8754_v25 = vld [vmem:[#allocation6 + $0x454] ss:$8 sps:$4 sm:$0xff]  }
 0x30d   :  { %2984 = vmatpush1.bf16.msra.mxu0 %v8683_v0  ;;  %v8752_v0 = vld [vmem:[#allocation6 + $0x450] ss:$8 sps:$4 sm:$0xff]  }
 0x30e   :  { %2985 = vmatprep.subr.bf16.mxu0 %v8691_v7  ;;  %v8755_v7 = vld [vmem:[#allocation6 + $0x440] ss:$8 sps:$4 sm:$0xff]  }
 0x30f   :  { %3033 = vmatpush1.bf16.msra.mxu1 %v8686_v8  ;;  %v8758_v8 = vld [vmem:[#allocation6 + $0x430] ss:$8 sps:$4 sm:$0xff]  }
 0x310   :  { %3034 = vmatprep.subr.bf16.mxu1 %v8694_v10  ;;  %v8763_v10 = vld [vmem:[#allocation6 + $0x424] ss:$8 sps:$4 sm:$0xff]  }
 0x311   :  { %2986 = vmatpush1.bf16.msra.mxu0 %v8689_v11  ;;  %v8761_v11 = vld [vmem:[#allocation6 + $0x420] ss:$8 sps:$4 sm:$0xff]  }
 0x312   :  { %2987 = vmatprep.subr.bf16.mxu0 %v8697_v13  ;;  %v8764_v13 = vld [vmem:[#allocation6 + $0x410] ss:$8 sps:$4 sm:$0xff]  }
 0x313   :  { %3035 = vmatpush1.bf16.msra.mxu1 %v8692_v14  ;;  %v8767_v14 = vld [vmem:[#allocation6 + $0x400] ss:$8 sps:$4 sm:$0xff]  }
 0x314   :  { %3036 = vmatprep.subr.bf16.mxu1 %v8700_v26  ;;  %v8770_v26 = vld [vmem:[#allocation6 + $0x4f0] ss:$8 sps:$4 sm:$0xff]  }
 0x315   :  { %2988 = vmatpush2.bf16.msra.mxu0 %v8695_v15  ;;  %v8775_v15 = vld [vmem:[#allocation6 + $0x4e4] ss:$8 sps:$4 sm:$0xff]  }
 0x316   :  { %2989 = vmatprep.subr.bf16.mxu0 %v8703_v16  ;;  %v8778_v16 = vld [vmem:[#allocation6 + $0x4d4] ss:$8 sps:$4 sm:$0xff]  }
 0x317   :  { %3037 = vmatpush1.bf16.msra.mxu1 %v8698_v19  ;;  %v8776_v19 = vld [vmem:[#allocation6 + $0x4d0] ss:$8 sps:$4 sm:$0xff]  }
 0x318   :  { %3038 = vmatprep.subr.bf16.mxu1 %v8706_v63  ;;  %v8781_v63 = vld [vmem:[#allocation6 + $0x4c4] ss:$8 sps:$4 sm:$0xff]  }
 0x319   :  { %2990 = vmatpush2.bf16.msra.mxu0 %v8701_v2  ;;  %v8779_v2 = vld [vmem:[#allocation6 + $0x4c0] ss:$8 sps:$4 sm:$0xff]  }
 0x31a   :  { %2991 = vmatprep.subr.bf16.mxu0 %v8709_v21  ;;  %v8784_v21 = vld [vmem:[#allocation6 + $0x4b4] ss:$8 sps:$4 sm:$0xff]  }
 0x31b   :  { %3039 = vmatpush2.bf16.msra.mxu1 %v8704_v24  ;;  %v8782_v24 = vld [vmem:[#allocation6 + $0x4b0] ss:$8 sps:$4 sm:$0xff]  }
 0x31c   :  { %3040 = vmatprep.subr.bf16.mxu1 %v8712_v58  ;;  %v8787_v58 = vld [vmem:[#allocation6 + $0x4a4] ss:$8 sps:$4 sm:$0xff]  }
 0x31d   :  { %2992 = vmatpush2.bf16.msra.mxu0 %v8707_v27  ;;  %v8785_v27 = vld [vmem:[#allocation6 + $0x4a0] ss:$8 sps:$4 sm:$0xff]  }
 0x31e   :  { %2993 = vmatprep.subr.bf16.mxu0 %v8715_v1  ;;  %v8790_v1 = vld [vmem:[#allocation6 + $0x494] ss:$8 sps:$4 sm:$0xff]  }
 0x31f   :  { %3041 = vmatpush2.bf16.msra.mxu1 %v8710_v28  ;;  %v8788_v28 = vld [vmem:[#allocation6 + $0x490] ss:$8 sps:$4 sm:$0xff]  }
 0x320   :  { %3042 = vmatprep.subr.bf16.mxu1 %v8718_v31  ;;  %v8793_v31 = vld [vmem:[#allocation6 + $0x484] ss:$8 sps:$4 sm:$0xff]  }
 0x321   :  { %2994 = vmatpush2.bf16.msra.mxu0 %v8713_v33  ;;  %v8791_v33 = vld [vmem:[#allocation6 + $0x480] ss:$8 sps:$4 sm:$0xff]  }
 0x322   :  { %2995 = vmatprep.subr.bf16.mxu0 %v8721_v62  ;;  %v8794_v62 = vld [vmem:[#allocation8 + $0x70] ss:$8 sps:$4 sm:$0xff]  }
 0x323   :  { %3043 = vmatpush2.bf16.msra.mxu1 %v8716_v40  ;;  %v8796_v40 = vld [vmem:[#allocation8 + $0x74] ss:$8 sps:$4 sm:$0xff]  }
 0x324   :  { %3044 = vmatprep.subr.bf16.mxu1 %v8724_v34  ;;  %v8799_v34 = vld [vmem:[#allocation8 + $0x64] ss:$8 sps:$4 sm:$0xff]  }
 0x325   :  { %2996 = vmatpush2.bf16.msra.mxu0 %v8719_v29  ;;  %v8800_v29 = vld [vmem:[#allocation8 + $0x170] ss:$8 sps:$4 sm:$0xff]  }
 0x326   :  { %2997 = vmatprep.subr.bf16.mxu0 %v8727_v18  ;;  %v8802_v18 = vld [vmem:[#allocation8 + $0x174] ss:$8 sps:$4 sm:$0xff]  }
 0x327   :  { %3045 = vmatpush2.bf16.msra.mxu1 %v8722_v35  ;;  %v8797_v35 = vld [vmem:[#allocation8 + $0x60] ss:$8 sps:$4 sm:$0xff]  }
 0x328   :  { %3046 = vmatprep.subr.bf16.mxu1 %v8730_v61  ;;  %v8808_v61 = vld [vmem:[#allocation8 + $0x164] ss:$8 sps:$4 sm:$0xff]  }
 0x329   :  { %2998 = vmatpush2.bf16.msra.mxu0 %v8725_v53  ;;  %v8805_v53 = vld [vmem:[#allocation8 + $0x54] ss:$8 sps:$4 sm:$0xff]  }
 0x32a   :  { %2999 = vmatprep.subr.bf16.mxu0 %v8733_v39  ;;  %v8820_v39 = vld [vmem:[#allocation8 + $0x144] ss:$8 sps:$4 sm:$0xff]  }
 0x32b   :  { %3047 = vmatpush2.bf16.msra.mxu1 %v8728_v60  ;;  %v8809_v60 = vld [vmem:[#allocation8 + $0x40] ss:$8 sps:$4 sm:$0xff]  }
 0x32c   :  { %3048 = vmatprep.subr.bf16.mxu1 %v8736_v17  ;;  %v8817_v17 = vld [vmem:[#allocation8 + $0x34] ss:$8 sps:$4 sm:$0xff]  }
 0x32d   :  { %3000 = vmatpush2.bf16.msra.mxu0 %v8731_v38  ;;  %v8818_v38 = vld [vmem:[#allocation8 + $0x140] ss:$8 sps:$4 sm:$0xff]  }
 0x32e   :  { %3001 = vmatprep.subr.bf16.mxu0 %v8739_v30  ;;  %v8826_v30 = vld [vmem:[#allocation8 + $0x134] ss:$8 sps:$4 sm:$0xff]  }
 0x32f   :  { %3049 = vmatpush2.bf16.msra.mxu1 %v8734_v44  ;;  %v8815_v44 = vld [vmem:[#allocation8 + $0x30] ss:$8 sps:$4 sm:$0xff]  }
 0x330   :  { %3050 = vmatprep.subr.bf16.mxu1 %v8742_v46  ;;  %v8824_v46 = vld [vmem:[#allocation8 + $0x130] ss:$8 sps:$4 sm:$0xff]  }
 0x331   :  { %3002 = vmatpush2.bf16.msra.mxu0 %v8737_v49  ;;  %v8832_v49 = vld [vmem:[#allocation8 + $0x124] ss:$8 sps:$4 sm:$0xff]  }
 0x332   :  { %3073 = vmatprep.subr.bf16.mxu0 %v8745_v6  ;;  %v8821_v6 = vld [vmem:[#allocation8 + $0x20] ss:$8 sps:$4 sm:$0xff]  }
 0x333   :  { %3051 = vmatpush2.bf16.msra.mxu1 %v8740_v57  ;;  %v8829_v57 = vld [vmem:[#allocation8 + $0x14] ss:$8 sps:$4 sm:$0xff]  }
 0x334   :  { %3004 = vmatmul.mubr.bf16.vlgmr.msra.gmra.mxu0 %v1875_v37  ;;  %3052 = vmatprep.subr.bf16.mxu1 %v8748_v12  ;;  %v8838_v12 = vld [vmem:[#allocation8 + $0x114] ss:$8 sps:$4 sm:$0xff]   ;;  %v8844_v37 = vld [vmem:[#allocation8 + $0x104] ss:$8 sps:$4 sm:$0xff]  }
 0x335   :  { %3013 = vmatprep.mubr.bf16.mxu0 %v10225_v22  ;;  %3074 = vmatpush1.bf16.msra.mxu0 %v8743_v4  ;;  %v8760_v22 = vld [vmem:[#allocation6 + $0x434] ss:$8 sps:$4 sm:$0xff]   ;;  %v8835_v4 = vld [vmem:[#allocation8 + $0x4] ss:$8 sps:$4 sm:$0xff]  }
 0x336   :  { %3075 = vmatprep.subr.bf16.mxu0 %v8751_v59  ;;  %v8836_v59 = vld [vmem:[#allocation8 + $0x110] ss:$8 sps:$4 sm:$0xff]  }
 0x337   :  { %3053 = vmatpush2.bf16.msra.mxu1 %v8746_v5  ;;  %v8833_v5 = vld [vmem:[#allocation8] ss:$8 sps:$4 sm:$0xff]  }
 0x338   :  { %4227 = vmatprep.subr.bf16.mxu1 %v8796_v40  ;;  %v8863_v40 = vld [vmem:[#allocation8 + $0xb0] ss:$8 sps:$4 sm:$0xff]  }
 0x339   :  { %3076 = vmatpush1.bf16.msra.mxu0 %v8749_v52  ;;  %v8841_v52 = vld [vmem:[#allocation8 + $0xf4] ss:$8 sps:$4 sm:$0xff]  }
 0x33a   :  { %3055 = vmatmul.mubr.bf16.vlgmr.msra.gmra.mxu1 %v10230_v32  ;;  %3077 = vmatprep.subr.bf16.mxu0 %v8754_v25  ;;  %v8766_v32 = vld [vmem:[#allocation6 + $0x414] ss:$8 sps:$4 sm:$0xff]   ;;  %v8842_v25 = vld [vmem:[#allocation8 + $0x100] ss:$8 sps:$4 sm:$0xff]  }
 0x33b   :  { %3064 = vmatprep.mubr.bf16.mxu1 %v10238_v47  ;;  %v8769_v47 = vld [vmem:[#allocation6 + $0x404] ss:$8 sps:$4 sm:$0xff]   ;;  %4228 = vmatpush1.bf16.msra.mxu1 %v8794_v62 }
 0x33c   :  { %3014 = vmatmul.mubr.bf16.gmra.mxu0 %v1842_v36  ;;  %4229 = vmatprep.subr.bf16.mxu1 %v8799_v34  ;;  %v8830_v36 = vld [vmem:[#allocation8 + $0x120] ss:$8 sps:$4 sm:$0xff]   ;;  %v8865_v34 = vld [vmem:[#allocation8 + $0xb4] ss:$8 sps:$4 sm:$0xff]  }
 0x33d   :  { %3078 = vmatpush1.bf16.msra.mxu0 %v8752_v0  ;;  %3105 = vmatprep.mubr.bf16.mxu0 %v10215_v54  ;;  %v8772_v54 = vld [vmem:[#allocation6 + $0x4f4] ss:$8 sps:$4 sm:$0xff]  }
 0x33e   :  { %3079 = vmatprep.subr.bf16.mxu0 %v8757_v41  ;;  %v8850_v0 = vld [vmem:[#allocation8 + $0x1f4] ss:$8 sps:$4 sm:$0xff]   ;;  %v8839_v41 = vld [vmem:[#allocation8 + $0xf0] ss:$8 sps:$4 sm:$0xff]  }
 0x33f   :  { %4230 = vmatpush1.bf16.msra.mxu1 %v8797_v35 }
 0x340   :  { %4231 = vmatprep.subr.bf16.mxu1 %v8805_v53  ;;  %v8866_v53 = vld [vmem:[#allocation8 + $0x1c0] ss:$8 sps:$4 sm:$0xff]  }
 0x341   :  { %3080 = vmatpush1.bf16.msra.mxu0 %v8755_v7  ;;  %v8847_v7 = vld [vmem:[#allocation8 + $0xe4] ss:$8 sps:$4 sm:$0xff]  }
 0x342   :  { %3065 = vmatmul.mubr.bf16.gmra.mxu1 %v10222_v23  ;;  %3081 = vmatprep.subr.bf16.mxu0 %v8760_v22  ;;  %v8773_v23 = vld [vmem:[#allocation6 + $0x4e0] ss:$8 sps:$4 sm:$0xff]   ;;  %v8848_v22 = vld [vmem:[#allocation8 + $0x1f0] ss:$8 sps:$4 sm:$0xff]  }
 0x345   :  { %3082 = vmatpush1.bf16.msra.mxu0 %v8758_v8  ;;  %v8856_v8 = vld [vmem:[#allocation8 + $0x1e4] ss:$8 sps:$4 sm:$0xff]  }
 0x346   :  { %3083 = vmatprep.subr.bf16.mxu0 %v8763_v10  ;;  %v8845_v10 = vld [vmem:[#allocation8 + $0xe0] ss:$8 sps:$4 sm:$0xff]  }
 0x349   :  { %3084 = vmatpush1.bf16.msra.mxu0 %v8761_v11  ;;  %v8853_v11 = vld [vmem:[#allocation8 + $0xd4] ss:$8 sps:$4 sm:$0xff]  }
 0x34a   :  { %3085 = vmatprep.subr.bf16.mxu0 %v8766_v32  ;;  %v8854_v32 = vld [vmem:[#allocation8 + $0x1e0] ss:$8 sps:$4 sm:$0xff]  }
 0x34d   :  { %3086 = vmatpush1.bf16.msra.mxu0 %v8764_v13  ;;  %v8851_v13 = vld [vmem:[#allocation8 + $0xd0] ss:$8 sps:$4 sm:$0xff]  }
 0x34e   :  { %3087 = vmatprep.subr.bf16.mxu0 %v8769_v47  ;;  %v2057_v47 = vld [vmem:[%s11927_s6] sm:$0x3] }
 0x351   :  { %3088 = vmatpush1.bf16.msra.mxu0 %v8767_v14 }
 0x352   :  { %3089 = vmatprep.subr.bf16.mxu0 %v8772_v54  ;;  %v2062_v54 = vrot.slane %v2057_v47, %v10047_v43 }
 0x355   :  { %3090 = vmatpush2.bf16.msra.mxu0 %v8770_v26 }
 0x356   :  { %3091 = vmatprep.subr.bf16.mxu0 %v8775_v15  ;;  %v2066_v15 = vrot.slane %v2057_v47, %v10044_v3 }
 0x359   :  { %3092 = vmatpush2.bf16.msra.mxu0 %v8773_v23  ;;  %v8857_v23 = vld [vmem:[#allocation8 + $0xc0] ss:$8 sps:$4 sm:$0xff]  }
 0x35a   :  { %3093 = vmatprep.subr.bf16.mxu0 %v8778_v16  ;;  %v8859_v16 = vld [vmem:[#allocation8 + $0xc4] ss:$8 sps:$4 sm:$0xff]  }
 0x35d   :  { %3094 = vmatpush2.bf16.msra.mxu0 %v8776_v19 }
 0x35e   :  { %3095 = vmatprep.subr.bf16.mxu0 %v8781_v63 }
 0x361   :  { %3096 = vmatpush2.bf16.msra.mxu0 %v8779_v2  ;;  %v8860_v2 = vld [vmem:[#allocation8 + $0x1d0] ss:$8 sps:$4 sm:$0xff]  }
 0x362   :  { %3097 = vmatprep.subr.bf16.mxu0 %v8784_v21  ;;  %v8862_v21 = vld [vmem:[#allocation8 + $0x1d4] ss:$8 sps:$4 sm:$0xff]  }
 0x365   :  { %3098 = vmatpush2.bf16.msra.mxu0 %v8782_v24 }
 0x366   :  { %3099 = vmatprep.subr.bf16.mxu0 %v8787_v58 }
 0x369   :  { %3100 = vmatpush2.bf16.msra.mxu0 %v8785_v27 }
 0x36a   :  { %3101 = vmatprep.subr.bf16.mxu0 %v8790_v1 }
 0x36d   :  { %3102 = vmatpush2.bf16.msra.mxu0 %v8788_v28 }
 0x36e   :  { %3103 = vmatprep.subr.bf16.mxu0 %v8793_v31 }
 0x371   :  { %3104 = vmatpush2.bf16.msra.mxu0 %v8791_v33 }
 0x372   :  { %4270 = vmatprep.subr.bf16.mxu0 %v8802_v18 }
 0x374   :  { %3106 = vmatmul.mubr.bf16.vlgmr.msra.gmra.mxu0 %v10220_v50  ;;  %v8806_v50 = vld [vmem:[#allocation8 + $0x160] ss:$8 sps:$4 sm:$0xff]  }
 0x375   :  { %3115 = vmatprep.mubr.bf16.mxu0 %v1847_v55  ;;  %4271 = vmatpush1.bf16.msra.mxu0 %v8800_v29  ;;  %v8803_v55 = vld [vmem:[#allocation8 + $0x50] ss:$8 sps:$4 sm:$0xff]  }
 0x376   :  { %4272 = vmatprep.subr.bf16.mxu0 %v8808_v61  ;;  %4232 = vmatpush1.bf16.msra.mxu1 %v8803_v55 }
 0x377   :  { %4233 = vmatprep.subr.bf16.mxu1 %v8811_v48 }
 0x379   :  { %4273 = vmatpush1.bf16.msra.mxu0 %v8806_v50  ;;  %v8868_v50 = vld [vmem:[#allocation8 + $0x1c4] ss:$8 sps:$4 sm:$0xff]  }
 0x37a   :  { %4274 = vmatprep.subr.bf16.mxu0 %v8814_v51  ;;  %4234 = vmatpush1.bf16.msra.mxu1 %v8809_v60 }
 0x37b   :  { %4235 = vmatprep.subr.bf16.mxu1 %v8817_v17 }
 0x37c   :  { %3116 = vmatmul.mubr.bf16.gmra.mxu0 %v1846_v20  ;;  %v8812_v20 = vld [vmem:[#allocation8 + $0x150] ss:$8 sps:$4 sm:$0xff]  }
 0x37d   :  { %4275 = vmatpush1.bf16.msra.mxu0 %v8812_v20 }
 0x37e   :  { %4276 = vmatprep.subr.bf16.mxu0 %v8820_v39  ;;  %4236 = vmatpush1.bf16.msra.mxu1 %v8815_v44 }
 0x37f   :  { %4237 = vmatprep.subr.bf16.mxu1 %v8823_v45 }
 0x381   :  { %4277 = vmatpush1.bf16.msra.mxu0 %v8818_v38 }
 0x382   :  { %4278 = vmatprep.subr.bf16.mxu0 %v8826_v30  ;;  %4238 = vmatpush1.bf16.msra.mxu1 %v8821_v6  ;;  %v8869_v6 = vld [vmem:[#allocation8 + $0xa0] ss:$8 sps:$4 sm:$0xff]  }
 0x383   :  { %4239 = vmatprep.subr.bf16.mxu1 %v8829_v57  ;;  %v8872_v57 = vld [vmem:[#allocation8 + $0x1b0] ss:$8 sps:$4 sm:$0xff]  }
 0x385   :  { %4279 = vmatpush1.bf16.msra.mxu0 %v8824_v46 }
 0x386   :  { %4280 = vmatprep.subr.bf16.mxu0 %v8832_v49  ;;  %4240 = vmatpush1.bf16.msra.mxu1 %v8827_v56  ;;  %v8871_v49 = vld [vmem:[#allocation8 + $0xa4] ss:$8 sps:$4 sm:$0xff]   ;;  %v8875_v56 = vld [vmem:[#allocation8 + $0x90] ss:$8 sps:$4 sm:$0xff]  }
 0x387   :  { %4241 = vmatprep.subr.bf16.mxu1 %v8835_v4  ;;  %v8880_v4 = vld [vmem:[#allocation8 + $0x1a4] ss:$8 sps:$4 sm:$0xff]  }
 0x389   :  { %4281 = vmatpush1.bf16.msra.mxu0 %v8830_v36  ;;  %v8874_v36 = vld [vmem:[#allocation8 + $0x1b4] ss:$8 sps:$4 sm:$0xff]  }
 0x38a   :  { %4282 = vmatprep.subr.bf16.mxu0 %v8838_v12  ;;  %4242 = vmatpush1.bf16.msra.mxu1 %v8833_v5  ;;  %v8877_v12 = vld [vmem:[#allocation8 + $0x94] ss:$8 sps:$4 sm:$0xff]  }
 0x38b   :  { %4243 = vmatprep.subr.bf16.mxu1 %v8841_v52  ;;  %v8886_v5 = vld [vmem:[#allocation8 + $0x194] ss:$8 sps:$4 sm:$0xff]   ;;  %v8881_v52 = vld [vmem:[#allocation8 + $0x80] ss:$8 sps:$4 sm:$0xff]  }
 0x38d   :  { %4283 = vmatpush1.bf16.msra.mxu0 %v8836_v59  ;;  %v8878_v59 = vld [vmem:[#allocation8 + $0x1a0] ss:$8 sps:$4 sm:$0xff]  }
 0x38e   :  { %4284 = vmatprep.subr.bf16.mxu0 %v8844_v37  ;;  %4244 = vmatpush2.bf16.msra.mxu1 %v8839_v41  ;;  %v8883_v37 = vld [vmem:[#allocation8 + $0x84] ss:$8 sps:$4 sm:$0xff]  }
 0x38f   :  { %4245 = vmatprep.subr.bf16.mxu1 %v8847_v7  ;;  %v8892_v41 = vld [vmem:[#allocation8 + $0x184] ss:$8 sps:$4 sm:$0xff]   ;;  %v8890_v7 = vld [vmem:[#allocation8 + $0x180] ss:$8 sps:$4 sm:$0xff]  }
 0x391   :  { %4285 = vmatpush1.bf16.msra.mxu0 %v8842_v25  ;;  %v8884_v25 = vld [vmem:[#allocation8 + $0x190] ss:$8 sps:$4 sm:$0xff]  }
 0x392   :  { %4286 = vmatprep.subr.bf16.mxu0 %v8850_v0  ;;  %4246 = vmatpush2.bf16.msra.mxu1 %v8845_v10  ;;  %v8889_v0 = vld [vmem:[#allocation8 + $0x274] ss:$8 sps:$4 sm:$0xff]  }
 0x393   :  { %4247 = vmatprep.subr.bf16.mxu1 %v8853_v11 }
 0x395   :  { %4287 = vmatpush2.bf16.msra.mxu0 %v8848_v22  ;;  %v8898_v22 = vld [vmem:[#allocation8 + $0x374] ss:$8 sps:$4 sm:$0xff]  }
 0x396   :  { %4288 = vmatprep.subr.bf16.mxu0 %v8856_v8  ;;  %4248 = vmatpush2.bf16.msra.mxu1 %v8851_v13 }
 0x397   :  { %4249 = vmatprep.subr.bf16.mxu1 %v8859_v16 }
 0x399   :  { %4289 = vmatpush2.bf16.msra.mxu0 %v8854_v32 }
 0x39a   :  { %4250 = vmatpush2.bf16.msra.mxu1 %v8857_v23  ;;  %4290 = vmatprep.subr.bf16.mxu0 %v8862_v21 }
 0x39b   :  { %4251 = vmatprep.subr.bf16.mxu1 %v8865_v34 }
 0x39d   :  { %4291 = vmatpush2.bf16.msra.mxu0 %v8860_v2 }
 0x39e   :  { %4252 = vmatpush2.bf16.msra.mxu1 %v8863_v40  ;;  %4292 = vmatprep.subr.bf16.mxu0 %v8868_v50 }
 0x39f   :  { %4253 = vmatprep.subr.bf16.mxu1 %v8871_v49 }
 0x3a1   :  { %4293 = vmatpush2.bf16.msra.mxu0 %v8866_v53 }
 0x3a2   :  { %4254 = vmatpush2.bf16.msra.mxu1 %v8869_v6  ;;  %4294 = vmatprep.subr.bf16.mxu0 %v8874_v36 }
 0x3a3   :  { %4255 = vmatprep.subr.bf16.mxu1 %v8877_v12 }
 0x3a5   :  { %4295 = vmatpush2.bf16.msra.mxu0 %v8872_v57 }
 0x3a6   :  { %4296 = vmatprep.subr.bf16.mxu0 %v8880_v4  ;;  %4256 = vmatpush2.bf16.msra.mxu1 %v8875_v56 }
 0x3a7   :  { %4257 = vmatprep.subr.bf16.mxu1 %v8883_v37 }
 0x3a9   :  { %4297 = vmatpush2.bf16.msra.mxu0 %v8878_v59 }
 0x3aa   :  { %4298 = vmatprep.subr.bf16.mxu0 %v8886_v5  ;;  %4258 = vmatpush2.bf16.msra.mxu1 %v8881_v52 }
 0x3ab   :  { %4313 = vmatprep.subr.bf16.mxu1 %v8889_v0 }
 0x3ad   :  { %4299 = vmatpush2.bf16.msra.mxu0 %v8884_v25 }
 0x3ae   :  { %4300 = vmatprep.subr.bf16.mxu0 %v8892_v41 }
 0x3b1   :  { %4301 = vmatpush2.bf16.msra.mxu0 %v8890_v7 }
 0x3b2   :  { %4356 = vmatprep.subr.bf16.mxu0 %v8898_v22 }
 0x3b4   :  { %v2903_v14 = vpop.f32.mrf.mxu0 }
 0x3b5   :  { %v2904_v63 = vadd.f32 %v2903_v14, %v2062_v54 }
 0x3b6   :  { %v2905_v26 = vpop.f32.mrf.mxu0 }
 0x3b7   :  { %v2906_v27 = vadd.f32 %v2905_v26, %v2066_v15 }
 0x3b8   :  { %v2907_v19 = vpop.f32.mrf.mxu0 }
 0x3b9   :  { %v2908_v33 = vadd.f32 %v2907_v19, %v2062_v54 }
 0x3ba   :  { %v2909_v24 = vpop.f32.mrf.mxu0  ;;  %v2954_v58 = vpop.f32.mrf.mxu1 }
 0x3bb   :  { %v10260_v1 = vadd.f32 %v2954_v58, %v2904_v63  ;;  %v2910_v35 = vadd.f32 %v2909_v24, %v2066_v15 }
 0x3bc   :  { %v2913_v28 = vpop.f32.mrf.mxu0  ;;  %v2956_v31 = vpop.f32.mrf.mxu1 }
 0x3bd   :  { %v2957_v62 = vadd.f32 %v2956_v31, %v2906_v27  ;;  %v2914_v48 = vadd.f32 %v2913_v28, %v2062_v54 }
 0x3be   :  { %v2915_v29 = vpop.f32.mrf.mxu0  ;;  %v2958_v18 = vpop.f32.mrf.mxu1 }
 0x3bf   :  { %v2959_v61 = vadd.f32 %v2958_v18, %v2908_v33  ;;  %v2916_v17 = vadd.f32 %v2915_v29, %v2066_v15 }
 0x3c0   :  { %v2917_v51 = vpop.f32.mrf.mxu0  ;;  %v2960_v55 = vpop.f32.mrf.mxu1 }
 0x3c1   :  { %v2961_v20 = vadd.f32 %v2960_v55, %v2910_v35 }
 0x3c2   :  { %v2918_v39 = vpop.f32.mrf.mxu0  ;;  %v2964_v60 = vpop.f32.mrf.mxu1 }
 0x3c3   :  { %v2965_v38 = vadd.f32 %v2964_v60, %v2914_v48 }
 0x3c4   :  { %v2966_v30 = vpop.f32.mrf.mxu1 }
 0x3c5   :  { %v10262_v44 = vadd.f32 %v2966_v30, %v2916_v17 }
 0x3c6   :  { %v2968_v45 = vpop.f32.mrf.mxu1 }
 0x3c8   :  { %v2969_v46 = vpop.f32.mrf.mxu1 }
 0x3f4   :  { %v3005_v8 = vpop.f32.mrf.mxu0 }
 0x3f5   :  { %v3006_v10 = vadd.f32 %v3005_v8, %v10260_v1 }
 0x3f6   :  { %v3007_v11 = vpop.f32.mrf.mxu0 }
 0x3f7   :  { %v3008_v32 = vadd.f32 %v3007_v11, %v2957_v62 }
 0x3f8   :  { %v3009_v13 = vpop.f32.mrf.mxu0 }
 0x3f9   :  { %v3010_v47 = vadd.f32 %v3009_v13, %v2959_v61 }
 0x3fa   :  { %v3011_v14 = vpop.f32.mrf.mxu0  ;;  %v3056_v54 = vpop.f32.mrf.mxu1 }
 0x3fb   :  { %v3012_v26 = vadd.f32 %v3011_v14, %v2961_v20  ;;  %v3057_v15 = vadd.f32 %v3056_v54, %v3006_v10 }
 0x3fc   :  { %v3015_v23 = vpop.f32.mrf.mxu0  ;;  %v3058_v16 = vpop.f32.mrf.mxu1 }
 0x3fd   :  { %v3016_v19 = vadd.f32 %v3015_v23, %v2965_v38  ;;  %v3059_v63 = vadd.f32 %v3058_v16, %v3008_v32 }
 0x3fe   :  { %v3017_v2 = vpop.f32.mrf.mxu0  ;;  %v3060_v21 = vpop.f32.mrf.mxu1 }
 0x3ff   :  { %v3061_v24 = vadd.f32 %v3060_v21, %v3010_v47  ;;  %v3018_v50 = vadd.f32 %v3017_v2, %v10262_v44 }
 0x400   :  { %v3019_v58 = vpop.f32.mrf.mxu0  ;;  %v3062_v27 = vpop.f32.mrf.mxu1 }
 0x401   :  { %v3063_v35 = vadd.f32 %v3062_v27, %v3012_v26 }
 0x402   :  { %v3020_v28 = vpop.f32.mrf.mxu0  ;;  %v3066_v31 = vpop.f32.mrf.mxu1 }
 0x403   :  { %v3067_v55 = vadd.f32 %v3066_v31, %v3016_v19 }
 0x404   :  { %v3068_v1 = vpop.f32.mrf.mxu1 }
 0x405   :  { %v3069_v60 = vadd.f32 %v3068_v1, %v3018_v50 }
 0x406   :  { %v3070_v33 = vpop.f32.mrf.mxu1 }
 0x408   :  { %v3071_v62 = vpop.f32.mrf.mxu1 }
 0x434   :  { %v3107_v40 = vpop.f32.mrf.mxu0 }
 0x435   :  { %v3108_v29 = vadd.f32 %v3107_v40, %v3057_v15  ;;  %v8887_v40 = vld [vmem:[#allocation8 + $0x270] ss:$8 sps:$4 sm:$0xff]  }
 0x436   :  { %v3109_v34 = vpop.f32.mrf.mxu0 }
 0x437   :  { %v3110_v61 = vadd.f32 %v3109_v34, %v3059_v63  ;;  %v3124_v48 = vmax.f32 %v3108_v29, 0.0 }
 0x438   :  { %v3111_v18 = vpop.f32.mrf.mxu0 }
 0x439   :  { %v3112_v53 = vadd.f32 %v3111_v18, %v3061_v24  ;;  %v3125_v38 = vmax.f32 %v3110_v61, 0.0 }
 0x43a   :  { %v3113_v51 = vpop.f32.mrf.mxu0 }
 0x43b   :  { %v3126_v20 = vmax.f32 %v3112_v53, 0.0  ;;  %v3114_v39 = vadd.f32 %v3113_v51, %v3063_v35  ;;  %v8895_v53 = vld [vmem:[#allocation8 + $0x264] ss:$8 sps:$4 sm:$0xff]  }
 0x43c   :  { %v3117_v17 = vpop.f32.mrf.mxu0 }
 0x43d   :  { %v10266_v30 = vpack.c.bf16 %v3126_v20, %v3124_v48  ;;  %v3127_v45 = vmax.f32 %v3114_v39, 0.0  ;;  %v3118_v46 = vadd.f32 %v3117_v17, %v3067_v55 }
 0x43e   :  { %v3119_v49 = vpop.f32.mrf.mxu0 }
 0x43f   :  { %v10268_v6 = vpack.c.bf16 %v3127_v45, %v3125_v38  ;;  %v3128_v57 = vmax.f32 %v3118_v46, 0.0  ;;  %v3120_v36 = vadd.f32 %v3119_v49, %v3069_v60  ;;  %v3158_v44 = vrot.slane %v10266_v30, 2  ;;  %v8893_v45 = vld [vmem:[#allocation8 + $0x260] ss:$8 sps:$4 sm:$0xff]  }
 0x440   :  { %v3121_v12 = vpop.f32.mrf.mxu0  ;;  %v3135_v56 = vshrl.u32 %v10266_v30, 16  ;;  %v3137_v4 = vshll.u32 %v10266_v30, 16  ;;  %v3150_v59 = vrot.slane %v10266_v30, 1 }
 0x441   :  { %v10274_v37 = vpack.c.bf16 %v3128_v57, %v3128_v57  ;;  %v3129_v5 = vmax.f32 %v3120_v36, 0.0  ;;  %v3159_v52 = vrot.slane %v10268_v6, 2  ;;  %v3151_v25 = vrot.slane %v10268_v6, 1 }
 0x442   :  { %v3122_v0 = vpop.f32.mrf.mxu0  ;;  %v3142_v41 = vshrl.u32 %v10268_v6, 16  ;;  %v3144_v7 = vshll.u32 %v10268_v6, 16  ;;  %v3139_v22 = vrot.slane %v3137_v4, 1  ;;  %v10282_v8 = vrot.slane %v3135_v56, 1 }
 0x443   :  { %v3161_v10 = vshll.u32 %v10274_v37, 16  ;;  %v3170_v11 = vshrl.u32 %v10274_v37, 16  ;;  %v3178_v32 = vrot.slane %v10274_v37, 1  ;;  %v3190_v13 = vrot.slane %v10274_v37, 2 }
 0x444   :  { %v3133_v47 = vpack.c.bf16 %v3129_v5, %v3129_v5  ;;  %v3146_v14 = vrot.slane %v3144_v7, 1  ;;  %v3140_v54 = vor.u32 %v3139_v22, %v3135_v56  ;;  %v10288_v26 = vrot.slane %v3142_v41, 1  ;;  %v8901_v56 = vld [vmem:[#allocation8 + $0x254] ss:$8 sps:$4 sm:$0xff]  }
 0x445   :  { %v3163_v15 = vrot.slane %v3161_v10, 1  ;;  %v3182_v23 = vrot.slane %v3170_v11, 1  ;;  %v3183_v16 = vrot.slane %v3161_v10, 2  ;;  %v3192_v19 = vsel %vm183_vm3, %v3158_v44, %v3190_v13 }
 0x446   :  { %v3166_v63 = vshll.u32 %v3133_v47, 16  ;;  %v3173_v2 = vshrl.u32 %v3133_v47, 16  ;;  %v3180_v21 = vrot.slane %v3133_v47, 1  ;;  %v3191_v24 = vrot.slane %v3133_v47, 2 }
 0x447   :  { %v3172_v58 = vor.u32 %v3170_v11, %v3163_v15  ;;  %v3218_v27 = vsel %vm3216_vm10, %v10266_v30, %v3192_v19  ;;  %v3147_v28 = vor.u32 %v3146_v14, %v3142_v41  ;;  %v3164_v31 = vsel %vm141_vm0, %v3140_v54, %v3163_v15  ;;  %v8896_v14 = vld [vmem:[#allocation8 + $0x370] ss:$8 sps:$4 sm:$0xff]  }
 0x448   :  { %v3186_v1 = vrot.slane %v3173_v2, 1  ;;  %v3187_v33 = vrot.slane %v3166_v63, 2  ;;  %v3193_v62 = vsel %vm183_vm3, %v3159_v52, %v3191_v24  ;;  %v3181_v34 = vsel %vm163_vm2, %v3151_v25, %v3180_v21  ;;  %v8899_v19 = vld [vmem:[#allocation8 + $0x250] ss:$8 sps:$4 sm:$0xff]  }
 0x449   :  { %v3195_v29 = vrot.slane %v3172_v58, 2  ;;  %v3221_v18 = vsel %vm3216_vm10, %v10268_v6, %v3193_v62  ;;  %v3203_v35 = vrot.slane %v3181_v34, 2  ;;  %v3204_v61 = vrot.slane %v3180_v21, 2  ;;  %v8910_v58 = vld [vmem:[#allocation8 + $0x354] ss:$8 sps:$4 sm:$0xff]  }
 0x44a   :  { %4259 = vmatprep.mubr.bf16.mxu1 %v3221_v18  ;;  %v3168_v50 = vrot.slane %v3166_v63, 1  ;;  %v3194_v51 = vrot.slane %v3164_v31, 2  ;;  %v3156_v55 = vrot.slane %v3144_v7, 2  ;;  %v3188_v48 = vor.u32 %v3187_v33, %v3186_v1  ;;  %v8908_v30 = vld [vmem:[#allocation8 + $0x350] ss:$8 sps:$4 sm:$0xff]  }
 0x44b   :  { %4260 = vmatmul.mubr.bf16.vlgmr.msra.gmra.mxu1 %v3218_v27  ;;  %v3205_v20 = vsel %vm183_vm3, %v3203_v35, %v3204_v61  ;;  %v3179_v39 = vsel %vm163_vm2, %v3150_v59, %v3178_v32  ;;  %v3201_v60 = vrot.slane %v3178_v32, 2  ;;  %v3214_v17 = vrot.slane %v3191_v24, 2  ;;  %v8902_v24 = vld [vmem:[#allocation8 + $0x360] ss:$8 sps:$4 sm:$0xff]   ;;  %v8916_v31 = vld [vmem:[#allocation8 + $0x344] ss:$8 sps:$4 sm:$0xff]  }
 0x44c   :  { %4314 = vmatpush1.bf16.msra.mxu1 %v8887_v40  ;;  %v3237_v38 = vsel %vm3216_vm10, %v3151_v25, %v3205_v20  ;;  %v3169_v46 = vsel %vm141_vm0, %v3147_v28, %v3168_v50  ;;  %v3175_v49 = vor.u32 %v3173_v2, %v3168_v50  ;;  %v3196_v57 = vsel %vm183_vm3, %v3194_v51, %v3195_v29  ;;  %v8919_v1 = vld [vmem:[#allocation8 + $0x224] ss:$8 sps:$4 sm:$0xff]   ;;  %v8914_v33 = vld [vmem:[#allocation8 + $0x340] ss:$8 sps:$4 sm:$0xff]   ;;  %v8922_v40 = vld [vmem:[#allocation8 + $0x334] ss:$8 sps:$4 sm:$0xff]  }
 0x44d   :  { %4345 = vmatprep.mubr.bf16.mxu1 %v3237_v38  ;;  %4315 = vmatprep.subr.bf16.mxu1 %v8895_v53  ;;  %v3197_v36 = vrot.slane %v3169_v46, 2  ;;  %v3225_v12 = vsel %vm3216_vm10, %v3140_v54, %v3196_v57  ;;  %v3157_v37 = vor.u32 %v3156_v55, %v10288_v26  ;;  %v3189_v5 = vsel %vm171_vm1, %v10288_v26, %v3188_v48  ;;  %v8917_v62 = vld [vmem:[#allocation8 + $0x220] ss:$8 sps:$4 sm:$0xff]   ;;  %v8925_v34 = vld [vmem:[#allocation8 + $0x214] ss:$8 sps:$4 sm:$0xff]  }
 0x44e   :  { %v3198_v0 = vrot.slane %v3175_v49, 2  ;;  %v3209_v41 = vrot.slane %v3189_v5, 2  ;;  %v3210_v25 = vrot.slane %v3188_v48, 2  ;;  %v3200_v7 = vrot.slane %v3179_v39, 2  ;;  %v8920_v29 = vld [vmem:[#allocation8 + $0x330] ss:$8 sps:$4 sm:$0xff]  }
 0x44f   :  { %v10316_v22 = vsel %vm3216_vm10, %v3159_v52, %v3214_v17  ;;  %v3153_v10 = vrot.slane %v3137_v4, 2  ;;  %v3184_v11 = vor.u32 %v3183_v16, %v3182_v23  ;;  %v3212_v32 = vrot.slane %v3190_v13, 2  ;;  %v8904_v52 = vld [vmem:[#allocation8 + $0x364] ss:$8 sps:$4 sm:$0xff]   ;;  %v8923_v18 = vld [vmem:[#allocation8 + $0x210] ss:$8 sps:$4 sm:$0xff]  }
 0x450   :  { %4316 = vmatpush1.bf16.msra.mxu1 %v8893_v45  ;;  %v3199_v47 = vsel %vm183_vm3, %v3197_v36, %v3198_v0  ;;  %v3211_v54 = vsel %vm183_vm3, %v3209_v41, %v3210_v25  ;;  %v3202_v26 = vsel %vm183_vm3, %v3200_v7, %v3201_v60  ;;  %v8907_v23 = vld [vmem:[#allocation8 + $0x244] ss:$8 sps:$4 sm:$0xff]   ;;  %v8926_v53 = vld [vmem:[#allocation8 + $0x320] ss:$8 sps:$4 sm:$0xff]   ;;  %v8934_v51 = vld [vmem:[#allocation8 + $0x314] ss:$8 sps:$4 sm:$0xff]  }
 0x451   :  { %v3229_v15 = vsel %vm3216_vm10, %v3147_v28, %v3199_v47  ;;  %4317 = vmatprep.subr.bf16.mxu1 %v8901_v56  ;;  %v3245_v6 = vsel %vm3216_vm10, %v3157_v37, %v3211_v54  ;;  %v10328_v4 = vsel %vm3216_vm10, %v3150_v59, %v3202_v26  ;;  %v3154_v13 = vor.u32 %v3153_v10, %v10282_v8  ;;  %v8905_v59 = vld [vmem:[#allocation8 + $0x240] ss:$8 sps:$4 sm:$0xff]   ;;  %v8913_v28 = vld [vmem:[#allocation8 + $0x234] ss:$8 sps:$4 sm:$0xff]   ;;  %v8928_v35 = vld [vmem:[#allocation8 + $0x324] ss:$8 sps:$4 sm:$0xff]  }
 0x452   :  { %4302 = vmatprep.mubr.bf16.mxu0 %v3229_v15  ;;  %v3185_v16 = vsel %vm171_vm1, %v10282_v8, %v3184_v11  ;;  %v3207_v63 = vrot.slane %v3184_v11, 2  ;;  %v10336_v2 = vsel %vm3216_vm10, %v3158_v44, %v3212_v32  ;;  %v8911_v44 = vld [vmem:[#allocation8 + $0x230] ss:$8 sps:$4 sm:$0xff]   ;;  %v8931_v61 = vld [vmem:[#allocation8 + $0x204] ss:$8 sps:$4 sm:$0xff]  }
 0x453   :  { %4303 = vmatmul.mubr.bf16.vlgmr.msra.gmra.mxu0 %v3225_v12  ;;  %v3206_v21 = vrot.slane %v3185_v16, 2  ;;  %v8929_v50 = vld [vmem:[#allocation8 + $0x200] ss:$8 sps:$4 sm:$0xff]   ;;  %v8937_v55 = vld [vmem:[#allocation8 + $0x2f4] ss:$8 sps:$4 sm:$0xff]  }
 0x454   :  { %4357 = vmatpush1.bf16.msra.mxu0 %v8896_v14  ;;  %4388 = vmatprep.mubr.bf16.mxu0 %v3245_v6  ;;  %v8932_v48 = vld [vmem:[#allocation8 + $0x310] ss:$8 sps:$4 sm:$0xff]   ;;  %v8940_v39 = vld [vmem:[#allocation8 + $0x304] ss:$8 sps:$4 sm:$0xff]   ;;  %v8938_v17 = vld [vmem:[#allocation8 + $0x300] ss:$8 sps:$4 sm:$0xff]  }
 0x455   :  { %4318 = vmatpush1.bf16.msra.mxu1 %v8899_v19  ;;  %4358 = vmatprep.subr.bf16.mxu0 %v8904_v52  ;;  %v3208_v27 = vsel %vm183_vm3, %v3206_v21, %v3207_v63  ;;  %v8935_v20 = vld [vmem:[#allocation8 + $0x2f0] ss:$8 sps:$4 sm:$0xff]   ;;  %v8943_v60 = vld [vmem:[#allocation8 + $0x2e4] ss:$8 sps:$4 sm:$0xff]   ;;  %v8941_v38 = vld [vmem:[#allocation8 + $0x2e0] ss:$8 sps:$4 sm:$0xff]  }
 0x456   :  { %4319 = vmatprep.subr.bf16.mxu1 %v8907_v23  ;;  %v10340_v8 = vsel %vm3216_vm10, %v3154_v13, %v3208_v27  ;;  %v8946_v45 = vld [vmem:[#allocation8 + $0x3f4] ss:$8 sps:$4 sm:$0xff]   ;;  %v8944_v49 = vld [vmem:[#allocation8 + $0x3f0] ss:$8 sps:$4 sm:$0xff]   ;;  %v8952_v36 = vld [vmem:[#allocation8 + $0x3e4] ss:$8 sps:$4 sm:$0xff]  }
 0x457   :  { %v8949_v46 = vld [vmem:[#allocation8 + $0x2d4] ss:$8 sps:$4 sm:$0xff]   ;;  %v8947_v57 = vld [vmem:[#allocation8 + $0x2d0] ss:$8 sps:$4 sm:$0xff]   ;;  %v8955_v12 = vld [vmem:[#allocation8 + $0x2c4] ss:$8 sps:$4 sm:$0xff]  }
 0x458   :  { %4359 = vmatpush1.bf16.msra.mxu0 %v8902_v24  ;;  %v8950_v56 = vld [vmem:[#allocation8 + $0x3e0] ss:$8 sps:$4 sm:$0xff]   ;;  %v8958_v5 = vld [vmem:[#allocation8 + $0x3d4] ss:$8 sps:$4 sm:$0xff]   ;;  %v8956_v41 = vld [vmem:[#allocation8 + $0x3d0] ss:$8 sps:$4 sm:$0xff]  }
 0x459   :  { %4320 = vmatpush1.bf16.msra.mxu1 %v8905_v59  ;;  %4360 = vmatprep.subr.bf16.mxu0 %v8910_v58  ;;  %v8953_v37 = vld [vmem:[#allocation8 + $0x2c0] ss:$8 sps:$4 sm:$0xff]   ;;  %v8961_v0 = vld [vmem:[#allocation8 + $0x2b4] ss:$8 sps:$4 sm:$0xff]   ;;  %v8959_v25 = vld [vmem:[#allocation8 + $0x2b0] ss:$8 sps:$4 sm:$0xff]  }
 0x45a   :  { %4321 = vmatprep.subr.bf16.mxu1 %v8913_v28  ;;  %v8964_v7 = vld [vmem:[#allocation8 + $0x3c4] ss:$8 sps:$4 sm:$0xff]   ;;  %v8962_v11 = vld [vmem:[#allocation8 + $0x3c0] ss:$8 sps:$4 sm:$0xff]   ;;  %v8970_v47 = vld [vmem:[#allocation8 + $0x3b4] ss:$8 sps:$4 sm:$0xff]  }
 0x45b   :  { %v8967_v10 = vld [vmem:[#allocation8 + $0x2a4] ss:$8 sps:$4 sm:$0xff]   ;;  %v8965_v32 = vld [vmem:[#allocation8 + $0x2a0] ss:$8 sps:$4 sm:$0xff]   ;;  %v8973_v14 = vld [vmem:[#allocation8 + $0x294] ss:$8 sps:$4 sm:$0xff]  }
 0x45c   :  { %4361 = vmatpush1.bf16.msra.mxu0 %v8908_v30  ;;  %v8968_v54 = vld [vmem:[#allocation8 + $0x3b0] ss:$8 sps:$4 sm:$0xff]   ;;  %v8976_v15 = vld [vmem:[#allocation8 + $0x3a4] ss:$8 sps:$4 sm:$0xff]   ;;  %v8974_v6 = vld [vmem:[#allocation8 + $0x3a0] ss:$8 sps:$4 sm:$0xff]  }
 0x45d   :  { %4322 = vmatpush1.bf16.msra.mxu1 %v8911_v44  ;;  %4362 = vmatprep.subr.bf16.mxu0 %v8916_v31  ;;  %v8971_v26 = vld [vmem:[#allocation8 + $0x290] ss:$8 sps:$4 sm:$0xff]   ;;  %v8979_v19 = vld [vmem:[#allocation8 + $0x284] ss:$8 sps:$4 sm:$0xff]   ;;  %v8977_v52 = vld [vmem:[#allocation8 + $0x280] ss:$8 sps:$4 sm:$0xff]  }
 0x45e   :  { %4323 = vmatprep.subr.bf16.mxu1 %v8919_v1  ;;  %v8982_v13 = vld [vmem:[#allocation8 + $0x394] ss:$8 sps:$4 sm:$0xff]   ;;  %v8980_v16 = vld [vmem:[#allocation8 + $0x390] ss:$8 sps:$4 sm:$0xff]   ;;  %v8988_v21 = vld [vmem:[#allocation8 + $0x384] ss:$8 sps:$4 sm:$0xff]  }
 0x45f   :  { %v8985_v23 = vld [vmem:[#allocation8 + $0x474] ss:$8 sps:$4 sm:$0xff]   ;;  %v8983_v63 = vld [vmem:[#allocation8 + $0x470] ss:$8 sps:$4 sm:$0xff]   ;;  %v8991_v24 = vld [vmem:[#allocation8 + $0x464] ss:$8 sps:$4 sm:$0xff]  }
 0x460   :  { %4363 = vmatpush1.bf16.msra.mxu0 %v8914_v33  ;;  %v8986_v59 = vld [vmem:[#allocation8 + $0x380] ss:$8 sps:$4 sm:$0xff]   ;;  %v8994_v27 = vld [vmem:[#allocation8 + $0x454] ss:$8 sps:$4 sm:$0xff]   ;;  %v8992_v28 = vld [vmem:[#allocation8 + $0x450] ss:$8 sps:$4 sm:$0xff]  }
 0x461   :  { %4324 = vmatpush1.bf16.msra.mxu1 %v8917_v62  ;;  %4364 = vmatprep.subr.bf16.mxu0 %v8922_v40  ;;  %v8989_v58 = vld [vmem:[#allocation8 + $0x460] ss:$8 sps:$4 sm:$0xff]   ;;  %v8997_v30 = vld [vmem:[#allocation8 + $0x444] ss:$8 sps:$4 sm:$0xff]   ;;  %v9000_v31 = vld [vmem:[#allocation8 + $0x434] ss:$8 sps:$4 sm:$0xff]  }
 0x462   :  { %4325 = vmatprep.subr.bf16.mxu1 %v8925_v34  ;;  %v8995_v44 = vld [vmem:[#allocation8 + $0x440] ss:$8 sps:$4 sm:$0xff]   ;;  %v9003_v1 = vld [vmem:[#allocation8 + $0x424] ss:$8 sps:$4 sm:$0xff]   ;;  %v9006_v33 = vld [vmem:[#allocation8 + $0x414] ss:$8 sps:$4 sm:$0xff]  }
 0x463   :  { %v9004_v62 = vld [vmem:[#allocation8 + $0x410] ss:$8 sps:$4 sm:$0xff]   ;;  %v9009_v40 = vld [vmem:[#allocation8 + $0x404] ss:$8 sps:$4 sm:$0xff]   ;;  %v9007_v34 = vld [vmem:[#allocation8 + $0x400] ss:$8 sps:$4 sm:$0xff]  }
 0x464   :  { %4365 = vmatpush1.bf16.msra.mxu0 %v8920_v29  ;;  %v9010_v29 = vld [vmem:[#allocation8 + $0x4f0] ss:$8 sps:$4 sm:$0xff]  }
 0x465   :  { %4326 = vmatpush1.bf16.msra.mxu1 %v8923_v18  ;;  %4366 = vmatprep.subr.bf16.mxu0 %v8928_v35  ;;  %v9015_v18 = vld [vmem:[#allocation8 + $0x4e4] ss:$8 sps:$4 sm:$0xff]   ;;  %v9013_v35 = vld [vmem:[#allocation8 + $0x4e0] ss:$8 sps:$4 sm:$0xff]  }
 0x466   :  { %4327 = vmatprep.subr.bf16.mxu1 %v8931_v61  ;;  %v9018_v61 = vld [vmem:[#allocation8 + $0x4d4] ss:$8 sps:$4 sm:$0xff]  }
 0x468   :  { %4367 = vmatpush1.bf16.msra.mxu0 %v8926_v53  ;;  %v9016_v53 = vld [vmem:[#allocation8 + $0x4d0] ss:$8 sps:$4 sm:$0xff]  }
 0x469   :  { %4328 = vmatpush1.bf16.msra.mxu1 %v8929_v50  ;;  %4368 = vmatprep.subr.bf16.mxu0 %v8934_v51  ;;  %v9021_v50 = vld [vmem:[#allocation8 + $0x4c4] ss:$8 sps:$4 sm:$0xff]   ;;  %v9019_v51 = vld [vmem:[#allocation8 + $0x4c0] ss:$8 sps:$4 sm:$0xff]  }
 0x46a   :  { %4329 = vmatprep.subr.bf16.mxu1 %v8937_v55  ;;  %v9024_v55 = vld [vmem:[#allocation8 + $0x4b4] ss:$8 sps:$4 sm:$0xff]  }
 0x46c   :  { %4369 = vmatpush1.bf16.msra.mxu0 %v8932_v48  ;;  %v9022_v48 = vld [vmem:[#allocation8 + $0x4b0] ss:$8 sps:$4 sm:$0xff]  }
 0x46d   :  { %4330 = vmatpush2.bf16.msra.mxu1 %v8935_v20  ;;  %4370 = vmatprep.subr.bf16.mxu0 %v8940_v39  ;;  %v9027_v20 = vld [vmem:[#allocation8 + $0x4a4] ss:$8 sps:$4 sm:$0xff]   ;;  %v9025_v39 = vld [vmem:[#allocation8 + $0x4a0] ss:$8 sps:$4 sm:$0xff]  }
 0x46e   :  { %4331 = vmatprep.subr.bf16.mxu1 %v8943_v60  ;;  %v9030_v60 = vld [vmem:[#allocation8 + $0x494] ss:$8 sps:$4 sm:$0xff]  }
 0x470   :  { %4371 = vmatpush1.bf16.msra.mxu0 %v8938_v17  ;;  %v9028_v17 = vld [vmem:[#allocation8 + $0x490] ss:$8 sps:$4 sm:$0xff]  }
 0x471   :  { %4332 = vmatpush2.bf16.msra.mxu1 %v8941_v38  ;;  %4372 = vmatprep.subr.bf16.mxu0 %v8946_v45  ;;  %v9033_v38 = vld [vmem:[#allocation8 + $0x484] ss:$8 sps:$4 sm:$0xff]   ;;  %v9031_v45 = vld [vmem:[#allocation8 + $0x480] ss:$8 sps:$4 sm:$0xff]  }
 0x472   :  { %4333 = vmatprep.subr.bf16.mxu1 %v8949_v46  ;;  %v9034_v46 = vld [vmem:[#allocation9 + $0xe0] ss:$16 sps:$4 sm:$0xff]  }
 0x474   :  { %4373 = vmatpush2.bf16.msra.mxu0 %v8944_v49  ;;  %v9036_v49 = vld [vmem:[#allocation9 + $0xe4] ss:$16 sps:$4 sm:$0xff]  }
 0x475   :  { %4334 = vmatpush2.bf16.msra.mxu1 %v8947_v57  ;;  %4374 = vmatprep.subr.bf16.mxu0 %v8952_v36  ;;  %v9037_v57 = vld [vmem:[#allocation9 + $0xe8] ss:$16 sps:$4 sm:$0xff]   ;;  %v9039_v36 = vld [vmem:[#allocation9 + $0xec] ss:$16 sps:$4 sm:$0xff]  }
 0x476   :  { %4335 = vmatprep.subr.bf16.mxu1 %v8955_v12  ;;  %v9042_v12 = vld [vmem:[#allocation9 + $0xc4] ss:$16 sps:$4 sm:$0xff]  }
 0x478   :  { %4375 = vmatpush2.bf16.msra.mxu0 %v8950_v56  ;;  %v9045_v56 = vld [vmem:[#allocation9 + $0xcc] ss:$16 sps:$4 sm:$0xff]  }
 0x479   :  { %4336 = vmatpush2.bf16.msra.mxu1 %v8953_v37  ;;  %4376 = vmatprep.subr.bf16.mxu0 %v8958_v5  ;;  %v9040_v37 = vld [vmem:[#allocation9 + $0xc0] ss:$16 sps:$4 sm:$0xff]   ;;  %v9043_v5 = vld [vmem:[#allocation9 + $0xc8] ss:$16 sps:$4 sm:$0xff]  }
 0x47a   :  { %4337 = vmatprep.subr.bf16.mxu1 %v8961_v0  ;;  %v9048_v0 = vld [vmem:[#allocation9 + $0xa4] ss:$16 sps:$4 sm:$0xff]  }
 0x47c   :  { %4377 = vmatpush2.bf16.msra.mxu0 %v8956_v41  ;;  %v9051_v41 = vld [vmem:[#allocation9 + $0xac] ss:$16 sps:$4 sm:$0xff]  }
 0x47d   :  { %4338 = vmatpush2.bf16.msra.mxu1 %v8959_v25  ;;  %4378 = vmatprep.subr.bf16.mxu0 %v8964_v7  ;;  %v9046_v25 = vld [vmem:[#allocation9 + $0xa0] ss:$16 sps:$4 sm:$0xff]   ;;  %v9054_v7 = vld [vmem:[#allocation9 + $0x84] ss:$16 sps:$4 sm:$0xff]  }
 0x47e   :  { %4339 = vmatprep.subr.bf16.mxu1 %v8967_v10  ;;  %v9057_v10 = vld [vmem:[#allocation9 + $0x8c] ss:$16 sps:$4 sm:$0xff]  }
 0x480   :  { %4379 = vmatpush2.bf16.msra.mxu0 %v8962_v11  ;;  %v9052_v11 = vld [vmem:[#allocation9 + $0x80] ss:$16 sps:$4 sm:$0xff]  }
 0x481   :  { %4340 = vmatpush2.bf16.msra.mxu1 %v8965_v32  ;;  %4380 = vmatprep.subr.bf16.mxu0 %v8970_v47  ;;  %v9055_v32 = vld [vmem:[#allocation9 + $0x88] ss:$16 sps:$4 sm:$0xff]   ;;  %v9060_v47 = vld [vmem:[#allocation9 + $0x64] ss:$16 sps:$4 sm:$0xff]  }
 0x482   :  { %4341 = vmatprep.subr.bf16.mxu1 %v8973_v14  ;;  %v9063_v14 = vld [vmem:[#allocation9 + $0x6c] ss:$16 sps:$4 sm:$0xff]  }
 0x484   :  { %4381 = vmatpush2.bf16.msra.mxu0 %v8968_v54  ;;  %v9058_v54 = vld [vmem:[#allocation9 + $0x60] ss:$16 sps:$4 sm:$0xff]  }
 0x485   :  { %4342 = vmatpush2.bf16.msra.mxu1 %v8971_v26  ;;  %4382 = vmatprep.subr.bf16.mxu0 %v8976_v15  ;;  %v9061_v26 = vld [vmem:[#allocation9 + $0x68] ss:$16 sps:$4 sm:$0xff]   ;;  %v9066_v15 = vld [vmem:[#allocation9 + $0x44] ss:$16 sps:$4 sm:$0xff]  }
 0x486   :  { %4343 = vmatprep.subr.bf16.mxu1 %v8979_v19  ;;  %v9069_v19 = vld [vmem:[#allocation9 + $0x4c] ss:$16 sps:$4 sm:$0xff]  }
 0x488   :  { %4383 = vmatpush2.bf16.msra.mxu0 %v8974_v6  ;;  %v9064_v6 = vld [vmem:[#allocation9 + $0x40] ss:$16 sps:$4 sm:$0xff]  }
 0x489   :  { %4344 = vmatpush2.bf16.msra.mxu1 %v8977_v52  ;;  %4384 = vmatprep.subr.bf16.mxu0 %v8982_v13  ;;  %v9067_v52 = vld [vmem:[#allocation9 + $0x48] ss:$16 sps:$4 sm:$0xff]   ;;  %v9072_v13 = vld [vmem:[#allocation9 + $0x24] ss:$16 sps:$4 sm:$0xff]  }
 0x48a   :  { %4399 = vmatprep.subr.bf16.mxu1 %v8985_v23  ;;  %v9075_v23 = vld [vmem:[#allocation9 + $0x2c] ss:$16 sps:$4 sm:$0xff]  }
 0x48c   :  { %4385 = vmatpush2.bf16.msra.mxu0 %v8980_v16  ;;  %4346 = vmatmul.mubr.bf16.vlgmr.msra.gmra.mxu1 %v10328_v4  ;;  %v8998_v4 = vld [vmem:[#allocation8 + $0x430] ss:$8 sps:$4 sm:$0xff]  }
 0x48d   :  { %4400 = vmatpush1.bf16.msra.mxu1 %v8983_v63  ;;  %4431 = vmatprep.mubr.bf16.mxu1 %v10316_v22  ;;  %v9001_v22 = vld [vmem:[#allocation8 + $0x420] ss:$8 sps:$4 sm:$0xff]  }
 0x48e   :  { %4386 = vmatprep.subr.bf16.mxu0 %v8988_v21  ;;  %4401 = vmatprep.subr.bf16.mxu1 %v8991_v24  ;;  %v9070_v16 = vld [vmem:[#allocation9 + $0x20] ss:$16 sps:$4 sm:$0xff]   ;;  %v9073_v63 = vld [vmem:[#allocation9 + $0x28] ss:$16 sps:$4 sm:$0xff]   ;;  %v9078_v21 = vld [vmem:[#allocation9 + $0x4] ss:$16 sps:$4 sm:$0xff]  }
 0x48f   :  { %v9081_v24 = vld [vmem:[#allocation9 + $0xc] ss:$16 sps:$4 sm:$0xff]  }
 0x490   :  { %4387 = vmatpush2.bf16.msra.mxu0 %v8986_v59  ;;  %v9076_v59 = vld [vmem:[#allocation9] ss:$16 sps:$4 sm:$0xff]  }
 0x491   :  { %4402 = vmatpush1.bf16.msra.mxu1 %v8989_v58  ;;  %4854 = vmatprep.subr.bf16.mxu0 %v9036_v49  ;;  %v9079_v58 = vld [vmem:[#allocation9 + $0x8] ss:$16 sps:$4 sm:$0xff]   ;;  %v9126_v49 = vld [vmem:[#allocation9 + $0x104] ss:$16 sps:$4 sm:$0xff]  }
 0x492   :  { %4403 = vmatprep.subr.bf16.mxu1 %v8994_v27  ;;  %v9084_v27 = vld [vmem:[#allocation9 + $0x1e4] ss:$16 sps:$4 sm:$0xff]  }
 0x493   :  { %4389 = vmatmul.mubr.bf16.vlgmr.msra.gmra.mxu0 %v10340_v8  ;;  %v9012_v8 = vld [vmem:[#allocation8 + $0x4f4] ss:$8 sps:$4 sm:$0xff]  }
 0x494   :  { %4855 = vmatpush1.bf16.msra.mxu0 %v9034_v46  ;;  %v9124_v46 = vld [vmem:[#allocation9 + $0x100] ss:$16 sps:$4 sm:$0xff]  }
 0x495   :  { %4404 = vmatpush1.bf16.msra.mxu1 %v8992_v28  ;;  %4856 = vmatprep.subr.bf16.mxu0 %v9042_v12  ;;  %v9087_v28 = vld [vmem:[#allocation9 + $0x1ec] ss:$16 sps:$4 sm:$0xff]   ;;  %v9127_v12 = vld [vmem:[#allocation9 + $0x108] ss:$16 sps:$4 sm:$0xff]  }
 0x496   :  { %4405 = vmatprep.subr.bf16.mxu1 %v8997_v30  ;;  %v9082_v30 = vld [vmem:[#allocation9 + $0x1e0] ss:$16 sps:$4 sm:$0xff]  }
 0x498   :  { %4857 = vmatpush1.bf16.msra.mxu0 %v9040_v37 }
 0x499   :  { %4406 = vmatpush1.bf16.msra.mxu1 %v8995_v44  ;;  %4858 = vmatprep.subr.bf16.mxu0 %v9048_v0  ;;  %v9085_v44 = vld [vmem:[#allocation9 + $0x1e8] ss:$16 sps:$4 sm:$0xff]  }
 0x49a   :  { %4407 = vmatprep.subr.bf16.mxu1 %v9000_v31  ;;  %v9090_v31 = vld [vmem:[#allocation9 + $0x1c4] ss:$16 sps:$4 sm:$0xff]  }
 0x49c   :  { %4859 = vmatpush1.bf16.msra.mxu0 %v9046_v25 }
 0x49d   :  { %4408 = vmatpush1.bf16.msra.mxu1 %v8998_v4  ;;  %4860 = vmatprep.subr.bf16.mxu0 %v9054_v7  ;;  %v9093_v4 = vld [vmem:[#allocation9 + $0x1cc] ss:$16 sps:$4 sm:$0xff]  }
 0x49e   :  { %4409 = vmatprep.subr.bf16.mxu1 %v9003_v1  ;;  %v9088_v1 = vld [vmem:[#allocation9 + $0x1c0] ss:$16 sps:$4 sm:$0xff]  }
 0x4a0   :  { %4861 = vmatpush1.bf16.msra.mxu0 %v9052_v11 }
 0x4a1   :  { %4410 = vmatpush1.bf16.msra.mxu1 %v9001_v22  ;;  %4862 = vmatprep.subr.bf16.mxu0 %v9060_v47  ;;  %v9091_v22 = vld [vmem:[#allocation9 + $0x1c8] ss:$16 sps:$4 sm:$0xff]   ;;  %v3415_v47 = vld [vmem:[%s11929_s8] sm:$0x3] }
 0x4a2   :  { %4411 = vmatprep.subr.bf16.mxu1 %v9006_v33  ;;  %v9096_v33 = vld [vmem:[#allocation9 + $0x1a4] ss:$16 sps:$4 sm:$0xff]  }
 0x4a4   :  { %4863 = vmatpush1.bf16.msra.mxu0 %v9058_v54  ;;  %v3420_v54 = vrot.slane %v3415_v47, %v10047_v43 }
 0x4a5   :  { %4412 = vmatpush1.bf16.msra.mxu1 %v9004_v62  ;;  %4864 = vmatprep.subr.bf16.mxu0 %v9066_v15  ;;  %v9099_v62 = vld [vmem:[#allocation9 + $0x1ac] ss:$16 sps:$4 sm:$0xff]  }
 0x4a6   :  { %4413 = vmatprep.subr.bf16.mxu1 %v9009_v40  ;;  %v9094_v40 = vld [vmem:[#allocation9 + $0x1a0] ss:$16 sps:$4 sm:$0xff]  }
 0x4a8   :  { %4865 = vmatpush1.bf16.msra.mxu0 %v9064_v6 }
 0x4a9   :  { %4414 = vmatpush1.bf16.msra.mxu1 %v9007_v34  ;;  %4866 = vmatprep.subr.bf16.mxu0 %v9072_v13  ;;  %v9097_v34 = vld [vmem:[#allocation9 + $0x1a8] ss:$16 sps:$4 sm:$0xff]  }
 0x4aa   :  { %4415 = vmatprep.subr.bf16.mxu1 %v9012_v8  ;;  %v9102_v8 = vld [vmem:[#allocation9 + $0x184] ss:$16 sps:$4 sm:$0xff]  }
 0x4ac   :  { %4867 = vmatpush1.bf16.msra.mxu0 %v9070_v16 }
 0x4ad   :  { %4416 = vmatpush2.bf16.msra.mxu1 %v9010_v29  ;;  %4868 = vmatprep.subr.bf16.mxu0 %v9078_v21  ;;  %v9105_v29 = vld [vmem:[#allocation9 + $0x18c] ss:$16 sps:$4 sm:$0xff]  }
 0x4ae   :  { %4417 = vmatprep.subr.bf16.mxu1 %v9015_v18  ;;  %v9100_v18 = vld [vmem:[#allocation9 + $0x180] ss:$16 sps:$4 sm:$0xff]  }
 0x4b0   :  { %4869 = vmatpush1.bf16.msra.mxu0 %v9076_v59 }
 0x4b1   :  { %4418 = vmatpush2.bf16.msra.mxu1 %v9013_v35  ;;  %4870 = vmatprep.subr.bf16.mxu0 %v9084_v27  ;;  %v9103_v35 = vld [vmem:[#allocation9 + $0x188] ss:$16 sps:$4 sm:$0xff]  }
 0x4b2   :  { %4419 = vmatprep.subr.bf16.mxu1 %v9018_v61  ;;  %v9108_v61 = vld [vmem:[#allocation9 + $0x164] ss:$16 sps:$4 sm:$0xff]  }
 0x4b4   :  { %4871 = vmatpush2.bf16.msra.mxu0 %v9082_v30 }
 0x4b5   :  { %4420 = vmatpush2.bf16.msra.mxu1 %v9016_v53  ;;  %4872 = vmatprep.subr.bf16.mxu0 %v9090_v31  ;;  %v9111_v53 = vld [vmem:[#allocation9 + $0x16c] ss:$16 sps:$4 sm:$0xff]  }
 0x4b6   :  { %4421 = vmatprep.subr.bf16.mxu1 %v9021_v50  ;;  %v9106_v50 = vld [vmem:[#allocation9 + $0x160] ss:$16 sps:$4 sm:$0xff]  }
 0x4b8   :  { %4873 = vmatpush2.bf16.msra.mxu0 %v9088_v1 }
 0x4b9   :  { %4422 = vmatpush2.bf16.msra.mxu1 %v9019_v51  ;;  %4874 = vmatprep.subr.bf16.mxu0 %v9096_v33  ;;  %v9109_v51 = vld [vmem:[#allocation9 + $0x168] ss:$16 sps:$4 sm:$0xff]  }
 0x4ba   :  { %4423 = vmatprep.subr.bf16.mxu1 %v9024_v55  ;;  %v9112_v55 = vld [vmem:[#allocation9 + $0x140] ss:$16 sps:$4 sm:$0xff]  }
 0x4bc   :  { %4875 = vmatpush2.bf16.msra.mxu0 %v9094_v40 }
 0x4bd   :  { %4424 = vmatpush2.bf16.msra.mxu1 %v9022_v48  ;;  %4876 = vmatprep.subr.bf16.mxu0 %v9102_v8  ;;  %v9114_v48 = vld [vmem:[#allocation9 + $0x144] ss:$16 sps:$4 sm:$0xff]  }
 0x4be   :  { %4425 = vmatprep.subr.bf16.mxu1 %v9027_v20  ;;  %v9115_v20 = vld [vmem:[#allocation9 + $0x148] ss:$16 sps:$4 sm:$0xff]  }
 0x4c0   :  { %4877 = vmatpush2.bf16.msra.mxu0 %v9100_v18 }
 0x4c1   :  { %4426 = vmatpush2.bf16.msra.mxu1 %v9025_v39  ;;  %4878 = vmatprep.subr.bf16.mxu0 %v9108_v61  ;;  %v9117_v39 = vld [vmem:[#allocation9 + $0x14c] ss:$16 sps:$4 sm:$0xff]  }
 0x4c2   :  { %4427 = vmatprep.subr.bf16.mxu1 %v9030_v60  ;;  %v9118_v60 = vld [vmem:[#allocation9 + $0x120] ss:$16 sps:$4 sm:$0xff]  }
 0x4c4   :  { %4879 = vmatpush2.bf16.msra.mxu0 %v9106_v50 }
 0x4c5   :  { %4428 = vmatpush2.bf16.msra.mxu1 %v9028_v17  ;;  %4880 = vmatprep.subr.bf16.mxu0 %v9114_v48  ;;  %v9120_v17 = vld [vmem:[#allocation9 + $0x124] ss:$16 sps:$4 sm:$0xff]   ;;  %v10354_v48 = vld [vmem:[#allocation11 + $0xe0] ss:$16 sps:$4 sm:$0xff]  }
 0x4c6   :  { %4429 = vmatprep.subr.bf16.mxu1 %v9033_v38  ;;  %v9121_v38 = vld [vmem:[#allocation9 + $0x128] ss:$16 sps:$4 sm:$0xff]  }
 0x4c8   :  { %4881 = vmatpush2.bf16.msra.mxu0 %v9112_v55 }
 0x4c9   :  { %4430 = vmatpush2.bf16.msra.mxu1 %v9031_v45  ;;  %4882 = vmatprep.subr.bf16.mxu0 %v9120_v17  ;;  %v9123_v45 = vld [vmem:[#allocation9 + $0x12c] ss:$16 sps:$4 sm:$0xff]   ;;  %v10363_v17 = vld [vmem:[#allocation11 + $0xa4] ss:$16 sps:$4 sm:$0xff]  }
 0x4ca   :  { %4897 = vmatprep.subr.bf16.mxu1 %v9039_v36  ;;  %v10346_v36 = vld [vmem:[#allocation11 + $0xe4] ss:$16 sps:$4 sm:$0xff]  }
 0x4cc   :  { %4432 = vmatmul.mubr.bf16.vlgmr.msra.gmra.mxu1 %v10336_v2  ;;  %v9049_v2 = vld [vmem:[#allocation9 + $0xa8] ss:$16 sps:$4 sm:$0xff]   ;;  %4883 = vmatpush2.bf16.msra.mxu0 %v9118_v60  ;;  %v10359_v60 = vld [vmem:[#allocation11 + $0xc0] ss:$16 sps:$4 sm:$0xff]  }
 0x4cd   :  { %4898 = vmatpush1.bf16.msra.mxu1 %v9037_v57  ;;  %v9129_v57 = vld [vmem:[#allocation9 + $0x10c] ss:$16 sps:$4 sm:$0xff]   ;;  %4884 = vmatprep.subr.bf16.mxu0 %v9126_v49  ;;  %v10375_v49 = vld [vmem:[#allocation11 + $0x64] ss:$16 sps:$4 sm:$0xff]  }
 0x4ce   :  { %4899 = vmatprep.subr.bf16.mxu1 %v9045_v56 }
 0x4d0   :  { %4885 = vmatpush2.bf16.msra.mxu0 %v9124_v46  ;;  %v10372_v46 = vld [vmem:[#allocation11 + $0x80] ss:$16 sps:$4 sm:$0xff]  }
 0x4d1   :  { %4900 = vmatpush1.bf16.msra.mxu1 %v9043_v5  ;;  %5387 = vmatprep.subr.bf16.mxu0 %v10346_v36 }
 0x4d2   :  { %4901 = vmatprep.subr.bf16.mxu1 %v9051_v41 }
 0x4d5   :  { %4902 = vmatpush1.bf16.msra.mxu1 %v9049_v2 }
 0x4d6   :  { %4903 = vmatprep.subr.bf16.mxu1 %v9057_v10 }
 0x4d9   :  { %4904 = vmatpush1.bf16.msra.mxu1 %v9055_v32 }
 0x4da   :  { %4905 = vmatprep.subr.bf16.mxu1 %v9063_v14  ;;  %v3424_v14 = vrot.slane %v3415_v47, %v10044_v3  ;;  %v10419_v47 = vld [vmem:[#allocation11 + $0x8c] ss:$16 sps:$4 sm:$0xff]  }
 0x4dd   :  { %4906 = vmatpush1.bf16.msra.mxu1 %v9061_v26 }
 0x4de   :  { %4907 = vmatprep.subr.bf16.mxu1 %v9069_v19 }
 0x4e1   :  { %4908 = vmatpush1.bf16.msra.mxu1 %v9067_v52 }
 0x4e2   :  { %4909 = vmatprep.subr.bf16.mxu1 %v9075_v23 }
 0x4e5   :  { %4910 = vmatpush1.bf16.msra.mxu1 %v9073_v63 }
 0x4e6   :  { %4911 = vmatprep.subr.bf16.mxu1 %v9081_v24 }
 0x4e9   :  { %4912 = vmatpush1.bf16.msra.mxu1 %v9079_v58 }
 0x4ea   :  { %4913 = vmatprep.subr.bf16.mxu1 %v9087_v28 }
 0x4ed   :  { %4914 = vmatpush2.bf16.msra.mxu1 %v9085_v44 }
 0x4ee   :  { %4915 = vmatprep.subr.bf16.mxu1 %v9093_v4 }
 0x4f1   :  { %4916 = vmatpush2.bf16.msra.mxu1 %v9091_v22 }
 0x4f2   :  { %4917 = vmatprep.subr.bf16.mxu1 %v9099_v62 }
 0x4f5   :  { %4918 = vmatpush2.bf16.msra.mxu1 %v9097_v34 }
 0x4f6   :  { %4919 = vmatprep.subr.bf16.mxu1 %v9105_v29 }
 0x4f9   :  { %4920 = vmatpush2.bf16.msra.mxu1 %v9103_v35 }
 0x4fa   :  { %4921 = vmatprep.subr.bf16.mxu1 %v9111_v53 }
 0x4fd   :  { %4922 = vmatpush2.bf16.msra.mxu1 %v9109_v51 }
 0x4fe   :  { %4923 = vmatprep.subr.bf16.mxu1 %v9117_v39  ;;  %v10356_v39 = vld [vmem:[#allocation11 + $0xc4] ss:$16 sps:$4 sm:$0xff]  }
 0x501   :  { %4924 = vmatpush2.bf16.msra.mxu1 %v9115_v20 }
 0x502   :  { %4925 = vmatprep.subr.bf16.mxu1 %v9123_v45  ;;  %v10369_v45 = vld [vmem:[#allocation11 + $0x84] ss:$16 sps:$4 sm:$0xff]  }
 0x505   :  { %4926 = vmatpush2.bf16.msra.mxu1 %v9121_v38  ;;  %v10366_v38 = vld [vmem:[#allocation11 + $0xa0] ss:$16 sps:$4 sm:$0xff]  }
 0x506   :  { %4927 = vmatprep.subr.bf16.mxu1 %v9129_v57  ;;  %v10378_v57 = vld [vmem:[#allocation11 + $0x60] ss:$16 sps:$4 sm:$0xff]  }
 0x509   :  { %4928 = vmatpush2.bf16.msra.mxu1 %v9127_v12  ;;  %v10381_v12 = vld [vmem:[#allocation11 + $0x44] ss:$16 sps:$4 sm:$0xff]  }
 0x50b   :  { %v4261_v56 = vpop.f32.mrf.mxu1 }
 0x50c   :  { %v4262_v52 = vadd.f32 %v4261_v56, %v3420_v54  ;;  %v10384_v56 = vld [vmem:[#allocation11 + $0x40] ss:$16 sps:$4 sm:$0xff]  }
 0x50d   :  { %v4263_v37 = vpop.f32.mrf.mxu1 }
 0x50e   :  { %v4264_v19 = vadd.f32 %v4263_v37, %v3424_v14  ;;  %v10387_v37 = vld [vmem:[#allocation11 + $0x24] ss:$16 sps:$4 sm:$0xff]  }
 0x50f   :  { %v4265_v0 = vpop.f32.mrf.mxu1 }
 0x510   :  { %v4266_v6 = vadd.f32 %v4265_v0, %v3420_v54  ;;  %v10393_v0 = vld [vmem:[#allocation11 + $0x4] ss:$16 sps:$4 sm:$0xff]   ;;  %v10425_v54 = vld [vmem:[#allocation11 + $0x6c] ss:$16 sps:$4 sm:$0xff]  }
 0x511   :  { %v4267_v25 = vpop.f32.mrf.mxu1 }
 0x512   :  { %v4268_v16 = vadd.f32 %v4267_v25, %v3424_v14  ;;  %v10399_v25 = vld [vmem:[#allocation11 + $0xec] ss:$16 sps:$4 sm:$0xff]   ;;  %v10422_v14 = vld [vmem:[#allocation11 + $0x88] ss:$16 sps:$4 sm:$0xff]  }
 0x513   :  { %v4304_v5 = vpop.f32.mrf.mxu0 }
 0x514   :  { %v4305_v24 = vadd.f32 %v4304_v5, %v4262_v52  ;;  %v10390_v5 = vld [vmem:[#allocation11 + $0x20] ss:$16 sps:$4 sm:$0xff]   ;;  %v10440_v52 = vld [vmem:[#allocation11 + $0x28] ss:$16 sps:$4 sm:$0xff]  }
 0x515   :  { %v4306_v41 = vpop.f32.mrf.mxu0 }
 0x516   :  { %v4307_v63 = vadd.f32 %v4306_v41, %v4264_v19  ;;  %v10396_v41 = vld [vmem:[#allocation11] ss:$16 sps:$4 sm:$0xff]   ;;  %v10434_v19 = vld [vmem:[#allocation11 + $0x48] ss:$16 sps:$4 sm:$0xff]  }
 0x517   :  { %v4308_v2 = vpop.f32.mrf.mxu0 }
 0x518   :  { %v4309_v21 = vadd.f32 %v4308_v2, %v4266_v6  ;;  %v10402_v2 = vld [vmem:[#allocation11 + $0xe8] ss:$16 sps:$4 sm:$0xff]   ;;  %v10437_v6 = vld [vmem:[#allocation11 + $0x2c] ss:$16 sps:$4 sm:$0xff]  }
 0x519   :  { %v4310_v10 = vpop.f32.mrf.mxu0 }
 0x51a   :  { %v4311_v58 = vadd.f32 %v4310_v10, %v4268_v16  ;;  %v10409_v10 = vld [vmem:[#allocation11 + $0xc8] ss:$16 sps:$4 sm:$0xff]   ;;  %v10451_v16 = vld [vmem:[#allocation12 + $0xe4] ss:$16 sps:$4 sm:$0xff]  }
 0x51b   :  { %12267 = vst [vmem:[#allocation22_spill] sm:$0xff] %v10451_v16  ;;  %5834 = vmatprep.subr.bf16.mxu1 %v10451_v16 }
 0x54c   :  { %v4347_v7 = vpop.f32.mrf.mxu1 }
 0x54d   :  { %v4348_v30 = vadd.f32 %v4347_v7, %v4305_v24  ;;  %v10405_v7 = vld [vmem:[#allocation11 + $0xcc] ss:$16 sps:$4 sm:$0xff]   ;;  %v10457_v24 = vld [vmem:[#allocation12 + $0xe8] ss:$16 sps:$4 sm:$0xff]  }
 0x54e   :  { %v4349_v11 = vpop.f32.mrf.mxu1  ;;  %12270 = vst [vmem:[#allocation25_spill] sm:$0xff] %v10457_v24 }
 0x54f   :  { %v4350_v27 = vadd.f32 %v4349_v11, %v4307_v63  ;;  %v10413_v11 = vld [vmem:[#allocation11 + $0xac] ss:$16 sps:$4 sm:$0xff]  }
 0x550   :  { %v4351_v26 = vpop.f32.mrf.mxu1  ;;  %v10453_v63 = vld [vmem:[#allocation12 + $0xec] ss:$16 sps:$4 sm:$0xff]  }
 0x551   :  { %v4352_v28 = vadd.f32 %v4351_v26, %v4309_v21  ;;  %v10428_v26 = vld [vmem:[#allocation11 + $0x68] ss:$16 sps:$4 sm:$0xff]   ;;  %12268 = vst [vmem:[#allocation23_spill] sm:$0xff] %v10453_v63  ;;  %v10455_v21 = vld [vmem:[#allocation12 + $0xe0] ss:$16 sps:$4 sm:$0xff]  }
 0x552   :  { %v4353_v13 = vpop.f32.mrf.mxu1  ;;  %12269 = vst [vmem:[#allocation24_spill] sm:$0xff] %v10455_v21 }
 0x553   :  { %v4390_v32 = vpop.f32.mrf.mxu0  ;;  %v4354_v4 = vadd.f32 %v4353_v13, %v4311_v58  ;;  %v10443_v13 = vld [vmem:[#allocation11 + $0xc] ss:$16 sps:$4 sm:$0xff]  }
 0x554   :  { %v4391_v33 = vadd.f32 %v4390_v32, %v4348_v30  ;;  %v10416_v32 = vld [vmem:[#allocation11 + $0xa8] ss:$16 sps:$4 sm:$0xff]   ;;  %v10465_v58 = vld [vmem:[#allocation12 + $0xcc] ss:$16 sps:$4 sm:$0xff]   ;;  %v10475_v30 = vld [vmem:[#allocation12 + $0xa4] ss:$16 sps:$4 sm:$0xff]  }
 0x555   :  { %v4392_v15 = vpop.f32.mrf.mxu0  ;;  %12272 = vst [vmem:[#allocation27_spill] sm:$0xff] %v10465_v58  ;;  %12275 = vst [vmem:[#allocation30_spill] sm:$0xff] %v10475_v30 }
 0x556   :  { %v4393_v1 = vadd.f32 %v4392_v15, %v4350_v27  ;;  %v10431_v15 = vld [vmem:[#allocation11 + $0x4c] ss:$16 sps:$4 sm:$0xff]   ;;  %v10467_v27 = vld [vmem:[#allocation12 + $0xc0] ss:$16 sps:$4 sm:$0xff]  }
 0x557   :  { %v4394_v23 = vpop.f32.mrf.mxu0  ;;  %12273 = vst [vmem:[#allocation28_spill] sm:$0xff] %v10467_v27 }
 0x558   :  { %v4395_v22 = vadd.f32 %v4394_v23, %v4352_v28  ;;  %v10446_v23 = vld [vmem:[#allocation11 + $0x8] ss:$16 sps:$4 sm:$0xff]  }
 0x559   :  { %v4396_v44 = vpop.f32.mrf.mxu0  ;;  %v10469_v28 = vld [vmem:[#allocation12 + $0xc8] ss:$16 sps:$4 sm:$0xff]  }
 0x55a   :  { %v4397_v40 = vadd.f32 %v4396_v44, %v4354_v4  ;;  %12274 = vst [vmem:[#allocation29_spill] sm:$0xff] %v10469_v28  ;;  %v10477_v44 = vld [vmem:[#allocation12 + $0xac] ss:$16 sps:$4 sm:$0xff]   ;;  %v10481_v4 = vld [vmem:[#allocation12 + $0xa8] ss:$16 sps:$4 sm:$0xff]  }
 0x55b   :  { %12276 = vst [vmem:[#allocation31_spill] sm:$0xff] %v10477_v44  ;;  %12278 = vst [vmem:[#allocation33_spill] sm:$0xff] %v10481_v4 }
 0x58c   :  { %v4433_v59 = vpop.f32.mrf.mxu1 }
 0x58d   :  { %v4434_v29 = vadd.f32 %v4433_v59, %v4391_v33  ;;  %v10463_v59 = vld [vmem:[#allocation12 + $0xc4] ss:$16 sps:$4 sm:$0xff]   ;;  %v10491_v33 = vld [vmem:[#allocation12 + $0x80] ss:$16 sps:$4 sm:$0xff]  }
 0x58e   :  { %v4435_v31 = vpop.f32.mrf.mxu1  ;;  %12271 = vst [vmem:[#allocation26_spill] sm:$0xff] %v10463_v59  ;;  %12281 = vst [vmem:[#allocation36_spill] sm:$0xff] %v10491_v33 }
 0x58f   :  { %v4436_v34 = vadd.f32 %v4435_v31, %v4393_v1  ;;  %v4442_v51 = vmax.f32 %v4434_v29, 0.0  ;;  %v10479_v31 = vld [vmem:[#allocation12 + $0xa0] ss:$16 sps:$4 sm:$0xff]   ;;  %v10487_v1 = vld [vmem:[#allocation12 + $0x84] ss:$16 sps:$4 sm:$0xff]  }
 0x590   :  { %v4437_v62 = vpop.f32.mrf.mxu1  ;;  %12277 = vst [vmem:[#allocation32_spill] sm:$0xff] %v10479_v31  ;;  %12279 = vst [vmem:[#allocation34_spill] sm:$0xff] %v10487_v1  ;;  %v10505_v29 = vld [vmem:[#allocation12 + $0x68] ss:$16 sps:$4 sm:$0xff]  }
 0x591   :  { %v4438_v8 = vadd.f32 %v4437_v62, %v4395_v22  ;;  %v4443_v53 = vmax.f32 %v4436_v34, 0.0  ;;  %v10489_v22 = vld [vmem:[#allocation12 + $0x8c] ss:$16 sps:$4 sm:$0xff]   ;;  %v10493_v62 = vld [vmem:[#allocation12 + $0x88] ss:$16 sps:$4 sm:$0xff]   ;;  %12286 = vst [vmem:[#allocation41_spill] sm:$0xff] %v10505_v29 }
 0x592   :  { %v4439_v18 = vpop.f32.mrf.mxu1  ;;  %12280 = vst [vmem:[#allocation35_spill] sm:$0xff] %v10489_v22  ;;  %12282 = vst [vmem:[#allocation37_spill] sm:$0xff] %v10493_v62  ;;  %v10501_v34 = vld [vmem:[#allocation12 + $0x6c] ss:$16 sps:$4 sm:$0xff]  }
 0x593   :  { %v4440_v35 = vadd.f32 %v4439_v18, %v4397_v40  ;;  %v4444_v61 = vmax.f32 %v4438_v8, 0.0  ;;  %v10499_v40 = vld [vmem:[#allocation12 + $0x64] ss:$16 sps:$4 sm:$0xff]   ;;  %12284 = vst [vmem:[#allocation39_spill] sm:$0xff] %v10501_v34  ;;  %v10503_v8 = vld [vmem:[#allocation12 + $0x60] ss:$16 sps:$4 sm:$0xff]  }
 0x594   :  { %12283 = vst [vmem:[#allocation38_spill] sm:$0xff] %v10499_v40  ;;  %12285 = vst [vmem:[#allocation40_spill] sm:$0xff] %v10503_v8  ;;  %v10511_v18 = vld [vmem:[#allocation12 + $0x44] ss:$16 sps:$4 sm:$0xff]  }
 0x595   :  { %v4445_v50 = vmax.f32 %v4440_v35, 0.0  ;;  %v4446_v20 = vpack.c.bf16 %v4444_v61, %v4442_v51  ;;  %12287 = vst [vmem:[#allocation42_spill] sm:$0xff] %v10511_v18  ;;  %v10513_v35 = vld [vmem:[#allocation12 + $0x4c] ss:$16 sps:$4 sm:$0xff]   ;;  %v10515_v61 = vld [vmem:[#allocation12 + $0x40] ss:$16 sps:$4 sm:$0xff]  }
 0x596   :  { %12288 = vst [vmem:[#allocation43_spill] sm:$0xff] %v10513_v35  ;;  %12289 = vst [vmem:[#allocation44_spill] sm:$0xff] %v10515_v61  ;;  %v10525_v51 = vld [vmem:[#allocation12 + $0x2c] ss:$16 sps:$4 sm:$0xff]  }
 0x597   :  { %v4447_v55 = vpack.c.bf16 %v4445_v50, %v4443_v53  ;;  %v10517_v53 = vld [vmem:[#allocation12 + $0x48] ss:$16 sps:$4 sm:$0xff]   ;;  %v10523_v50 = vld [vmem:[#allocation12 + $0x24] ss:$16 sps:$4 sm:$0xff]   ;;  %12292 = vst [vmem:[#allocation47_spill] sm:$0xff] %v10525_v51 }
 0x598   :  { %12290 = vst [vmem:[#allocation45_spill] sm:$0xff] %v10517_v53  ;;  %12291 = vst [vmem:[#allocation46_spill] sm:$0xff] %v10523_v50 }
 0x599   :  { %4886 = vmatprep.mubr.bf16.mxu0 %v4447_v55  ;;  %4929 = vmatprep.mubr.bf16.mxu1 %v4447_v55  ;;  %v10527_v55 = vld [vmem:[#allocation12 + $0x20] ss:$16 sps:$4 sm:$0xff]  }
 0x59a   :  { %4887 = vmatmul.mubr.bf16.vlgmr.msra.gmra.mxu0 %v4446_v20  ;;  %4930 = vmatmul.mubr.bf16.vlgmr.msra.gmra.mxu1 %v4446_v20  ;;  %12293 = vst [vmem:[#allocation48_spill] sm:$0xff] %v10527_v55  ;;  %v10529_v20 = vld [vmem:[#allocation12 + $0x28] ss:$16 sps:$4 sm:$0xff]  }
 0x59b   :  { %5388 = vmatpush1.bf16.msra.mxu0 %v10354_v48  ;;  %5419 = vmatprep.mubr.bf16.mxu0 %v11936_v9  ;;  %12294 = vst [vmem:[#allocation49_spill] sm:$0xff] %v10529_v20 }
 0x59c   :  { %5389 = vmatprep.subr.bf16.mxu0 %v10356_v39  ;;  %5835 = vmatpush1.bf16.msra.mxu1 %v10455_v21 }
 0x59d   :  { %5836 = vmatprep.subr.bf16.mxu1 %v10463_v59 }
 0x59f   :  { %5390 = vmatpush1.bf16.msra.mxu0 %v10359_v60 }
 0x5a0   :  { %5391 = vmatprep.subr.bf16.mxu0 %v10363_v17  ;;  %5837 = vmatpush1.bf16.msra.mxu1 %v10467_v27 }
 0x5a1   :  { %5838 = vmatprep.subr.bf16.mxu1 %v10475_v30 }
 0x5a3   :  { %5392 = vmatpush1.bf16.msra.mxu0 %v10366_v38 }
 0x5a4   :  { %5393 = vmatprep.subr.bf16.mxu0 %v10369_v45  ;;  %5839 = vmatpush1.bf16.msra.mxu1 %v10479_v31 }
 0x5a5   :  { %5840 = vmatprep.subr.bf16.mxu1 %v10487_v1 }
 0x5a7   :  { %5394 = vmatpush1.bf16.msra.mxu0 %v10372_v46 }
 0x5a8   :  { %5395 = vmatprep.subr.bf16.mxu0 %v10375_v49  ;;  %5841 = vmatpush1.bf16.msra.mxu1 %v10491_v33 }
 0x5a9   :  { %5842 = vmatprep.subr.bf16.mxu1 %v10499_v40  ;;  %v10623_v40 = vld [vmem:[#allocation12 + $0x124] ss:$16 sps:$4 sm:$0xff]  }
 0x5aa   :  { %12323 = vst [vmem:[#allocation78_spill] sm:$0xff] %v10623_v40 }
 0x5ab   :  { %5396 = vmatpush1.bf16.msra.mxu0 %v10378_v57 }
 0x5ac   :  { %5397 = vmatprep.subr.bf16.mxu0 %v10381_v12  ;;  %5843 = vmatpush1.bf16.msra.mxu1 %v10503_v8 }
 0x5ad   :  { %5844 = vmatprep.subr.bf16.mxu1 %v10511_v18  ;;  %v10555_v18 = vld [vmem:[#allocation12 + $0x1c4] ss:$16 sps:$4 sm:$0xff]  }
 0x5ae   :  { %12303 = vst [vmem:[#allocation58_spill] sm:$0xff] %v10555_v18 }
 0x5af   :  { %5398 = vmatpush1.bf16.msra.mxu0 %v10384_v56 }
 0x5b0   :  { %5399 = vmatprep.subr.bf16.mxu0 %v10387_v37  ;;  %5845 = vmatpush1.bf16.msra.mxu1 %v10515_v61  ;;  %v10537_v61 = vld [vmem:[#allocation12 + $0xc] ss:$16 sps:$4 sm:$0xff]  }
 0x5b1   :  { %5846 = vmatprep.subr.bf16.mxu1 %v10523_v50  ;;  %12296 = vst [vmem:[#allocation51_spill] sm:$0xff] %v10537_v61  ;;  %v10553_v50 = vld [vmem:[#allocation12 + $0x1e8] ss:$16 sps:$4 sm:$0xff]  }
 0x5b2   :  { %12302 = vst [vmem:[#allocation57_spill] sm:$0xff] %v10553_v50 }
 0x5b3   :  { %5400 = vmatpush1.bf16.msra.mxu0 %v10390_v5 }
 0x5b4   :  { %5401 = vmatprep.subr.bf16.mxu0 %v10393_v0  ;;  %5847 = vmatpush1.bf16.msra.mxu1 %v10527_v55  ;;  %v10549_v55 = vld [vmem:[#allocation12 + $0x1ec] ss:$16 sps:$4 sm:$0xff]  }
 0x5b5   :  { %12300 = vst [vmem:[#allocation55_spill] sm:$0xff] %v10549_v55 }
 0x5b7   :  { %5402 = vmatpush1.bf16.msra.mxu0 %v10396_v41 }
 0x5b8   :  { %5428 = vmatprep.subr.bf16.mxu0 %v10399_v25 }
 0x5ba   :  { %5420 = vmatmul.mubr.bf16.vlgmr.msra.gmra.mxu0 %v11936_v9 }
 0x5bb   :  { %5429 = vmatpush1.bf16.msra.mxu0 %v10402_v2  ;;  %5460 = vmatprep.mubr.bf16.mxu0 %v11936_v9 }
 0x5bc   :  { %5430 = vmatprep.subr.bf16.mxu0 %v10405_v7 }
 0x5bf   :  { %5431 = vmatpush1.bf16.msra.mxu0 %v10409_v10 }
 0x5c0   :  { %5432 = vmatprep.subr.bf16.mxu0 %v10413_v11 }
 0x5c3   :  { %5433 = vmatpush1.bf16.msra.mxu0 %v10416_v32 }
 0x5c4   :  { %5434 = vmatprep.subr.bf16.mxu0 %v10419_v47 }
 0x5c7   :  { %5435 = vmatpush1.bf16.msra.mxu0 %v10422_v14 }
 0x5c8   :  { %5436 = vmatprep.subr.bf16.mxu0 %v10425_v54 }
 0x5cb   :  { %5437 = vmatpush1.bf16.msra.mxu0 %v10428_v26 }
 0x5cc   :  { %5438 = vmatprep.subr.bf16.mxu0 %v10431_v15 }
 0x5cf   :  { %5439 = vmatpush1.bf16.msra.mxu0 %v10434_v19 }
 0x5d0   :  { %5440 = vmatprep.subr.bf16.mxu0 %v10437_v6 }
 0x5d3   :  { %5441 = vmatpush1.bf16.msra.mxu0 %v10440_v52 }
 0x5d4   :  { %5442 = vmatprep.subr.bf16.mxu0 %v10443_v13 }
 0x5d7   :  { %5443 = vmatpush1.bf16.msra.mxu0 %v10446_v23 }
 0x5d8   :  { %5875 = vmatprep.subr.bf16.mxu0 %v10453_v63 }
 0x5da   :  { %5461 = vmatmul.mubr.bf16.vlgmr.msra.gmra.mxu0 %v11936_v9  ;;  %v10535_v9 = vld [vmem:[#allocation12 + $0x4] ss:$16 sps:$4 sm:$0xff]  }
 0x5db   :  { %5876 = vmatpush1.bf16.msra.mxu0 %v10457_v24  ;;  %12295 = vst [vmem:[#allocation50_spill] sm:$0xff] %v10535_v9  ;;  %5848 = vmatprep.subr.bf16.mxu1 %v10535_v9  ;;  %v10559_v9 = vld [vmem:[#allocation12 + $0x1cc] ss:$16 sps:$4 sm:$0xff]  }
 0x5dc   :  { %5877 = vmatprep.subr.bf16.mxu0 %v10465_v58  ;;  %12304 = vst [vmem:[#allocation59_spill] sm:$0xff] %v10559_v9 }
 0x5df   :  { %5878 = vmatpush1.bf16.msra.mxu0 %v10469_v28 }
 0x5e0   :  { %5879 = vmatprep.subr.bf16.mxu0 %v10477_v44 }
 0x5e3   :  { %5880 = vmatpush1.bf16.msra.mxu0 %v10481_v4  ;;  %v9823_v4 = vmov 1934713408  }
 0x5e4   :  { %5881 = vmatprep.subr.bf16.mxu0 %v10489_v22  ;;  %v5031_v31 = vunpack.c.l.s4 %v9823_v4  ;;  %v10645_v4 = vld [vmem:[#allocation12 + $0x100] ss:$16 sps:$4 sm:$0xff]  }
 0x5e5   :  { %12331 = vst [vmem:[#allocation84_spill] sm:$0xff] %v10645_v4 }
 0x5e7   :  { %5882 = vmatpush1.bf16.msra.mxu0 %v10493_v62  ;;  %v12326_v62 = vsub.s32 3, %v10041_v42 }
 0x5e8   :  { %5883 = vmatprep.subr.bf16.mxu0 %v10501_v34 }
 0x5eb   :  { %5884 = vmatpush1.bf16.msra.mxu0 %v10505_v29  ;;  %v10571_v29 = vld [vmem:[#allocation12 + $0x1ac] ss:$16 sps:$4 sm:$0xff]  }
 0x5ec   :  { %5885 = vmatprep.subr.bf16.mxu0 %v10513_v35  ;;  %v10541_v35 = vld [vmem:[#allocation12 + $0x8] ss:$16 sps:$4 sm:$0xff]   ;;  %12308 = vst [vmem:[#allocation63_spill] sm:$0xff] %v10571_v29 }
 0x5ed   :  { %12298 = vst [vmem:[#allocation53_spill] sm:$0xff] %v10541_v35 }
 0x5ef   :  { %5886 = vmatpush1.bf16.msra.mxu0 %v10517_v53  ;;  %v10539_v53 = vld [vmem:[#allocation12] ss:$16 sps:$4 sm:$0xff]  }
 0x5f0   :  { %5887 = vmatprep.subr.bf16.mxu0 %v10525_v51  ;;  %12297 = vst [vmem:[#allocation52_spill] sm:$0xff] %v10539_v53  ;;  %5849 = vmatpush1.bf16.msra.mxu1 %v10539_v53  ;;  %v10547_v51 = vld [vmem:[#allocation12 + $0x1e4] ss:$16 sps:$4 sm:$0xff]   ;;  %v10565_v53 = vld [vmem:[#allocation12 + $0x1c8] ss:$16 sps:$4 sm:$0xff]  }
 0x5f1   :  { %12299 = vst [vmem:[#allocation54_spill] sm:$0xff] %v10547_v51  ;;  %5850 = vmatprep.subr.bf16.mxu1 %v10547_v51  ;;  %12306 = vst [vmem:[#allocation61_spill] sm:$0xff] %v10565_v53  ;;  %v10616_v51 = vld [vmem:[#allocation12 + $0x140] ss:$16 sps:$4 sm:$0xff]  }
 0x5f2   :  { %12321 = vst [vmem:[#allocation76_spill] sm:$0xff] %v10616_v51 }
 0x5f3   :  { %5888 = vmatpush1.bf16.msra.mxu0 %v10529_v20  ;;  %v10551_v20 = vld [vmem:[#allocation12 + $0x1e0] ss:$16 sps:$4 sm:$0xff]  }
 0x5f4   :  { %5889 = vmatprep.subr.bf16.mxu0 %v10537_v61  ;;  %12301 = vst [vmem:[#allocation56_spill] sm:$0xff] %v10551_v20  ;;  %5851 = vmatpush2.bf16.msra.mxu1 %v10551_v20  ;;  %v10569_v61 = vld [vmem:[#allocation12 + $0x1a4] ss:$16 sps:$4 sm:$0xff]   ;;  %v10577_v20 = vld [vmem:[#allocation12 + $0x1a8] ss:$16 sps:$4 sm:$0xff]  }
 0x5f5   :  { %5852 = vmatprep.subr.bf16.mxu1 %v10555_v18  ;;  %12307 = vst [vmem:[#allocation62_spill] sm:$0xff] %v10569_v61  ;;  %12310 = vst [vmem:[#allocation65_spill] sm:$0xff] %v10577_v20  ;;  %v10583_v18 = vld [vmem:[#allocation12 + $0x18c] ss:$16 sps:$4 sm:$0xff]  }
 0x5f6   :  { %12312 = vst [vmem:[#allocation67_spill] sm:$0xff] %v10583_v18 }
 0x5f7   :  { %5890 = vmatpush1.bf16.msra.mxu0 %v10541_v35  ;;  %v10563_v35 = vld [vmem:[#allocation12 + $0x1c0] ss:$16 sps:$4 sm:$0xff]  }
 0x5f8   :  { %5891 = vmatprep.subr.bf16.mxu0 %v10549_v55  ;;  %12305 = vst [vmem:[#allocation60_spill] sm:$0xff] %v10563_v35  ;;  %5853 = vmatpush2.bf16.msra.mxu1 %v10563_v35  ;;  %v10575_v55 = vld [vmem:[#allocation12 + $0x1a0] ss:$16 sps:$4 sm:$0xff]   ;;  %v10589_v35 = vld [vmem:[#allocation12 + $0x188] ss:$16 sps:$4 sm:$0xff]  }
 0x5f9   :  { %12309 = vst [vmem:[#allocation64_spill] sm:$0xff] %v10575_v55  ;;  %5854 = vmatprep.subr.bf16.mxu1 %v10569_v61  ;;  %12314 = vst [vmem:[#allocation69_spill] sm:$0xff] %v10589_v35  ;;  %v10595_v61 = vld [vmem:[#allocation12 + $0x16c] ss:$16 sps:$4 sm:$0xff]  }
 0x5fa   :  { %12316 = vst [vmem:[#allocation71_spill] sm:$0xff] %v10595_v61 }
 0x5fb   :  { %5892 = vmatpush2.bf16.msra.mxu0 %v10553_v50  ;;  %v10581_v50 = vld [vmem:[#allocation12 + $0x184] ss:$16 sps:$4 sm:$0xff]  }
 0x5fc   :  { %5893 = vmatprep.subr.bf16.mxu0 %v10559_v9  ;;  %12311 = vst [vmem:[#allocation66_spill] sm:$0xff] %v10581_v50  ;;  %5855 = vmatpush2.bf16.msra.mxu1 %v10575_v55  ;;  %v10587_v9 = vld [vmem:[#allocation12 + $0x180] ss:$16 sps:$4 sm:$0xff]   ;;  %v10601_v55 = vld [vmem:[#allocation12 + $0x168] ss:$16 sps:$4 sm:$0xff]  }
 0x5fd   :  { %12313 = vst [vmem:[#allocation68_spill] sm:$0xff] %v10587_v9  ;;  %5856 = vmatprep.subr.bf16.mxu1 %v10581_v50  ;;  %12318 = vst [vmem:[#allocation73_spill] sm:$0xff] %v10601_v55  ;;  %v10607_v50 = vld [vmem:[#allocation12 + $0x14c] ss:$16 sps:$4 sm:$0xff]  }
 0x5fe   :  { %12320 = vst [vmem:[#allocation75_spill] sm:$0xff] %v10607_v50 }
 0x5ff   :  { %5894 = vmatpush2.bf16.msra.mxu0 %v10565_v53  ;;  %v10593_v53 = vld [vmem:[#allocation12 + $0x164] ss:$16 sps:$4 sm:$0xff]  }
 0x600   :  { %5895 = vmatprep.subr.bf16.mxu0 %v10571_v29  ;;  %12315 = vst [vmem:[#allocation70_spill] sm:$0xff] %v10593_v53  ;;  %v9821_v29 = vmov 0.0|0.0   ;;  %5857 = vmatpush2.bf16.msra.mxu1 %v10587_v9  ;;  %v10625_v9 = vld [vmem:[#allocation12 + $0x12c] ss:$16 sps:$4 sm:$0xff]  }
 0x601   :  { %5866 = vmatprep.mubr.bf16.mxu1 %v9821_v29  ;;  %5907 = vmatprep.mubr.bf16.mxu0 %v9821_v29  ;;  %v4512_v29 = vld [vmem:[%s11932_s11] sm:$0xf]  ;;  %12324 = vst [vmem:[#allocation79_spill] sm:$0xff] %v10625_v9 }
 0x602   :  { %5858 = vmatprep.subr.bf16.mxu1 %v10593_v53  ;;  %v10618_v53 = vld [vmem:[#allocation12 + $0x148] ss:$16 sps:$4 sm:$0xff]   ;;  %v4517_v34 = vrot.slane %v4512_v29, %v10047_v43  ;;  %v4529_v33 = vrot.slane %v4512_v29, %v12326_v62  ;;  %v10634_v43 = vld [vmem:[#allocation12 + $0x120] ss:$16 sps:$4 sm:$0xff]   ;;  %v10640_v62 = vld [vmem:[#allocation12 + $0x104] ss:$16 sps:$4 sm:$0xff]  }
 0x603   :  { %5896 = vmatpush2.bf16.msra.mxu0 %v10577_v20  ;;  %v10599_v20 = vld [vmem:[#allocation12 + $0x160] ss:$16 sps:$4 sm:$0xff]   ;;  %12322 = vst [vmem:[#allocation77_spill] sm:$0xff] %v10618_v53  ;;  %12327 = vst [vmem:[#allocation80_spill] sm:$0xff] %v10634_v43 }
 0x604   :  { %5897 = vmatprep.subr.bf16.mxu0 %v10583_v18  ;;  %12317 = vst [vmem:[#allocation72_spill] sm:$0xff] %v10599_v20  ;;  %v10605_v18 = vld [vmem:[#allocation12 + $0x144] ss:$16 sps:$4 sm:$0xff]   ;;  %5859 = vmatpush2.bf16.msra.mxu1 %v10599_v20  ;;  %12329 = vst [vmem:[#allocation82_spill] sm:$0xff] %v10640_v62 }
 0x605   :  { %12319 = vst [vmem:[#allocation74_spill] sm:$0xff] %v10605_v18  ;;  %5860 = vmatprep.subr.bf16.mxu1 %v10605_v18 }
 0x607   :  { %5898 = vmatpush2.bf16.msra.mxu0 %v10589_v35  ;;  %v12325_v35 = vsub.s32 2, %v10041_v42 }
 0x608   :  { %5899 = vmatprep.subr.bf16.mxu0 %v10595_v61  ;;  %v9822_v61 = vmov 1983009808   ;;  %5861 = vmatpush2.bf16.msra.mxu1 %v10616_v51 }
 0x609   :  { %v4953_v8 = vunpack.c.l.s4 %v9822_v61  ;;  %v4525_v20 = vrot.slane %v4512_v29, %v12325_v35  ;;  %5862 = vmatprep.subr.bf16.mxu1 %v10623_v40  ;;  %v10638_v35 = vld [vmem:[#allocation12 + $0x128] ss:$16 sps:$4 sm:$0xff]  }
 0x60a   :  { %12328 = vst [vmem:[#allocation81_spill] sm:$0xff] %v10638_v35 }
 0x60b   :  { %5900 = vmatpush2.bf16.msra.mxu0 %v10601_v55  ;;  %v4521_v55 = vrot.slane %v4512_v29, %v10044_v3 }
 0x60c   :  { %5901 = vmatprep.subr.bf16.mxu0 %v10607_v50  ;;  %v4954_v50 = vunpack.c.0.s8 %v4953_v8  ;;  %5863 = vmatpush2.bf16.msra.mxu1 %v10634_v43 }
 0x60d   :  { %5864 = vmatprep.subr.bf16.mxu1 %v10640_v62 }
 0x60f   :  { %5902 = vmatpush2.bf16.msra.mxu0 %v10618_v53  ;;  %v10642_v53 = vld [vmem:[#allocation12 + $0x10c] ss:$16 sps:$4 sm:$0xff]  }
 0x610   :  { %5903 = vmatprep.subr.bf16.mxu0 %v10625_v9  ;;  %12330 = vst [vmem:[#allocation83_spill] sm:$0xff] %v10642_v53  ;;  %5865 = vmatpush2.bf16.msra.mxu1 %v10645_v4 }
 0x611   :  { %5942 = vmatprep.subr.bf16.mxu1 %v10346_v36 }
 0x613   :  { %5904 = vmatpush2.bf16.msra.mxu0 %v10638_v35 }
 0x614   :  { %5905 = vmatprep.subr.bf16.mxu0 %v10642_v53 }
 0x65a   :  { %v4888_v22 = vpop.f32.mrf.mxu0  ;;  %v4931_v61 = vpop.f32.mrf.mxu1 }
 0x65b   :  { %v4889_v29 = vadd.f32 %v4888_v22, %v4517_v34  ;;  %v4932_v3 = vadd.f32 %v4931_v61, %v4525_v20  ;;  %v10649_v22 = vld [vmem:[#allocation12 + $0x108] ss:$16 sps:$4 sm:$0xff]   ;;  %v5032_v61 = vunpack.c.0.s8 %v5031_v31 }
 0x65c   :  { %v4890_v18 = vpop.f32.mrf.mxu0  ;;  %v4933_v1 = vpop.f32.mrf.mxu1  ;;  %12332 = vst [vmem:[#allocation85_spill] sm:$0xff] %v10649_v22  ;;  %5906 = vmatpush2.bf16.msra.mxu0 %v10649_v22 }
 0x65d   :  { %v4891_v51 = vadd.f32 %v4890_v18, %v4521_v55  ;;  %v4934_v44 = vadd.f32 %v4933_v1, %v4529_v33  ;;  %v10652_v1 = vsub.s32 %v4954_v50, %v10041_v42  ;;  %v5035_v31 = vsub.s32 %v5032_v61, %v10041_v42  ;;  %5983 = vmatprep.subr.bf16.mxu0 %v10399_v25  ;;  %v12355_v61 = vld [vmem:[#allocation37_spill] sm:$0xff] }
 0x65e   :  { %v4892_v30 = vpop.f32.mrf.mxu0  ;;  %v4935_v8 = vpop.f32.mrf.mxu1 }
 0x65f   :  { %v4949_v28 = vcombine.high %v4889_v29, %v4891_v51  ;;  %v4951_v27 = vcombine.high %v4932_v3, %v4934_v44  ;;  %v4948_v18 = vcombine.low %v4889_v29, %v4891_v51  ;;  %v4893_v58 = vadd.f32 %v4892_v30, %v4517_v34 }
 0x660   :  { %v4894_v40 = vpop.f32.mrf.mxu0  ;;  %v4937_v9 = vpop.f32.mrf.mxu1  ;;  %v4936_v59 = vadd.f32 %v4935_v8, %v4525_v20  ;;  %v4950_v21 = vcombine.low %v4932_v3, %v4934_v44 }
 0x661   :  { %v4895_v43 = vadd.f32 %v4894_v40, %v4521_v55  ;;  %v4938_v24 = vadd.f32 %v4937_v9, %v4529_v33  ;;  %v4958_v50 = vrot.slane %v4948_v18, %v10652_v1  ;;  %v4965_v51 = vrot.slane %v4949_v28, %v10652_v1  ;;  %v12356_v18 = vld [vmem:[#allocation38_spill] sm:$0xff] }
 0x663   :  { %v4984_v63 = vcombine.low %v4893_v58, %v4895_v43  ;;  %v4985_v35 = vcombine.high %v4893_v58, %v4895_v43  ;;  %v4986_v16 = vcombine.low %v4936_v59, %v4938_v24  ;;  %v4987_v62 = vcombine.high %v4936_v59, %v4938_v24 }
 0x664   :  { %v4972_v59 = vrot.slane %v4950_v21, %v10652_v1  ;;  %v4979_v58 = vrot.slane %v4951_v27, %v10652_v1 }
 0x665   :  { %v4994_v9 = vrot.slane %v4984_v63, %v10652_v1  ;;  %v5001_v3 = vrot.slane %v4985_v35, %v10652_v1  ;;  %v5008_v43 = vrot.slane %v4986_v16, %v10652_v1  ;;  %v5015_v24 = vrot.slane %v4987_v62, %v10652_v1 }
 0x667   :  { %v8156_v30 = vcombine.low %v4958_v50, %v4994_v9  ;;  %v8158_v28 = vcombine.high %v4958_v50, %v4994_v9  ;;  %v8160_v44 = vcombine.low %v4965_v51, %v5001_v3  ;;  %v8162_v33 = vcombine.high %v4965_v51, %v5001_v3 }
 0x668   :  { %v8157_v40 = vcombine.low %v4972_v59, %v5008_v43  ;;  %v8159_v34 = vcombine.high %v4972_v59, %v5008_v43  ;;  %v8161_v55 = vcombine.low %v4979_v58, %v5015_v24  ;;  %v8163_v20 = vcombine.high %v4979_v58, %v5015_v24 }
 0x669   :  { %v10668_v29 = vrot.slane %v8156_v30, %v5035_v31  ;;  %v10670_v63 = vrot.slane %v8158_v28, %v5035_v31  ;;  %v10672_v35 = vrot.slane %v8160_v44, %v5035_v31  ;;  %v10674_v16 = vrot.slane %v8162_v33, %v5035_v31 }
 0x66a   :  { %v10676_v62 = vrot.slane %v8157_v40, %v5035_v31  ;;  %v10678_v21 = vrot.slane %v8159_v34, %v5035_v31  ;;  %v10680_v27 = vrot.slane %v8161_v55, %v5035_v31  ;;  %v10682_v8 = vrot.slane %v8163_v20, %v5035_v31 }
 0x66b   :  { %12333 = vst [vmem:[#allocation86_spill] sm:$0xff] %v10670_v63  ;;  %12334 = vst [vmem:[#allocation87_spill] sm:$0xff] %v10672_v35  ;;  %v12360_v35 = vld [vmem:[#allocation42_spill] sm:$0xff]  ;;  %v12362_v63 = vld [vmem:[#allocation44_spill] sm:$0xff] }
 0x66c   :  { %12335 = vst [vmem:[#allocation88_spill] sm:$0xff] %v10674_v16  ;;  %12336 = vst [vmem:[#allocation89_spill] sm:$0xff] %v10678_v21  ;;  %v5044_v3 = vcombine.low %v10668_v29, %v10676_v62  ;;  %v12358_v16 = vld [vmem:[#allocation40_spill] sm:$0xff]  ;;  %v12361_v21 = vld [vmem:[#allocation43_spill] sm:$0xff] }
 0x66d   :  { %12337 = vst [vmem:[#allocation90_spill] sm:$0xff] %v10680_v27  ;;  %12338 = vst [vmem:[#allocation91_spill] sm:$0xff] %v10682_v8  ;;  %v12357_v8 = vld [vmem:[#allocation39_spill] sm:$0xff]  ;;  %v12359_v27 = vld [vmem:[#allocation41_spill] sm:$0xff] }
 0x67a   :  { %v5421_v43 = vpop.f32.mrf.mxu0 }
 0x67c   :  { %v5423_v24 = vpop.f32.mrf.mxu0 }
 0x67d   :  { %v5473_v28 = vcombine.low %v5421_v43, %v5423_v24 }
 0x67e   :  { %v5425_v59 = vpop.f32.mrf.mxu0 }
 0x67f   :  { %v5481_v34 = vrot.slane %v5473_v28, %v10652_v1 }
 0x680   :  { %v5426_v58 = vpop.f32.mrf.mxu0 }
 0x69a   :  { %v5462_v30 = vpop.f32.mrf.mxu0 }
 0x69c   :  { %v5464_v44 = vpop.f32.mrf.mxu0 }
 0x69d   :  { %v5474_v33 = vcombine.low %v5462_v30, %v5464_v44 }
 0x69e   :  { %v5466_v40 = vpop.f32.mrf.mxu0 }
 0x69f   :  { %v5488_v55 = vrot.slane %v5474_v33, %v10652_v1 }
 0x6a0   :  { %v5467_v20 = vpop.f32.mrf.mxu0 }
 0x6a1   :  { %v5489_v9 = vcombine.low %v5481_v34, %v5488_v55  ;;  %v12343_v55 = vld [vmem:[#allocation25_spill] sm:$0xff] }
 0x6a3   :  { %v5491_v51 = vadd.f32 %v5489_v9, %v5044_v3  ;;  %v12341_v3 = vld [vmem:[#allocation23_spill] sm:$0xff] }
 0x6a5   :  { %v8196_v31 = vmul.f32 -1.442695, %v5491_v51  ;;  %v5499_v58 = vrot.slane %v5491_v51, 6  ;;  %v12340_v51 = vld [vmem:[#allocation22_spill] sm:$0xff] }
 0x6a7   :  { %9274 = vpow2.f32 %v8196_v31  ;;  %v12342_v31 = vld [vmem:[#allocation24_spill] sm:$0xff] }
 0x6b4   :  { %v9275_v50 = vpop.eup %9274 }
 0x6b5   :  { %v5495_v59 = vadd.f32 1.0, %v9275_v50  ;;  %v12339_v50 = vmov 0  }
 0x6b7   :  { %9276 = vrcp.f32 %v5495_v59  ;;  %v12344_v59 = vld [vmem:[#allocation26_spill] sm:$0xff] }
 0x6b8   :  { %9278 = vtanh.f32 %v5499_v58  ;;  %v12345_v58 = vld [vmem:[#allocation27_spill] sm:$0xff] }
 0x6c4   :  { %v9277_v43 = vpop.eup %9276 }
 0x6c5   :  { %v5503_v24 = vrot.slane %v9277_v43, 2  ;;  %v9279_v30 = vpop.eup %9278  ;;  %v5509_v33 = vrot.slane %v9277_v43, 4 }
 0x6c6   :  { %v5506_v44 = vmul.f32 %v9279_v30, %v9277_v43  ;;  %v12346_v43 = vld [vmem:[#allocation28_spill] sm:$0xff]  ;;  %v12348_v30 = vld [vmem:[#allocation30_spill] sm:$0xff] }
 0x6c7   :  { %v5505_v28 = vmul.f32 0.0, %v5503_v24  ;;  %v12347_v24 = vld [vmem:[#allocation29_spill] sm:$0xff] }
 0x6c9   :  { %v10702_v40 = vadd.f32 %v5506_v44, %v5505_v28  ;;  %v12349_v44 = vld [vmem:[#allocation31_spill] sm:$0xff]  ;;  %v12350_v28 = vld [vmem:[#allocation32_spill] sm:$0xff] }
 0x6cb   :  { %9280 = vtanh.f32 %v10702_v40 }
 0x6d8   :  { %v9281_v20 = vpop.eup %9280 }
 0x6d9   :  { %v5511_v34 = vmul.f32 %v9281_v20, %v5509_v33  ;;  %v12351_v33 = vld [vmem:[#allocation33_spill] sm:$0xff]  ;;  %v12352_v20 = vld [vmem:[#allocation34_spill] sm:$0xff] }
 0x6db   :  { %v5512_v9 = vpack.c.bf16 %v5511_v34, %v5511_v34  ;;  %v12353_v34 = vld [vmem:[#allocation35_spill] sm:$0xff] }
 0x6dd   :  { %5867 = vmatmul.mubr.bf16.vlgmr.msra.gmra.mxu1 %v5512_v9  ;;  %5908 = vmatmul.mubr.bf16.vlgmr.msra.gmra.mxu0 %v5512_v9 }
 0x6de   :  { %5943 = vmatpush1.bf16.msra.mxu1 %v10354_v48  ;;  %5984 = vmatpush1.bf16.msra.mxu0 %v10402_v2 }
 0x6df   :  { %5944 = vmatprep.subr.bf16.mxu1 %v10356_v39  ;;  %5985 = vmatprep.subr.bf16.mxu0 %v10405_v7 }
 0x6e0   :  { %5974 = vmatprep.mubr.bf16.mxu1 %v12339_v50  ;;  %6015 = vmatprep.mubr.bf16.mxu0 %v12339_v50 }
 0x6e2   :  { %5945 = vmatpush1.bf16.msra.mxu1 %v10359_v60  ;;  %5986 = vmatpush1.bf16.msra.mxu0 %v10409_v10 }
 0x6e3   :  { %5946 = vmatprep.subr.bf16.mxu1 %v10363_v17  ;;  %5987 = vmatprep.subr.bf16.mxu0 %v10413_v11 }
 0x6e6   :  { %5947 = vmatpush1.bf16.msra.mxu1 %v10366_v38  ;;  %5988 = vmatpush1.bf16.msra.mxu0 %v10416_v32 }
 0x6e7   :  { %5948 = vmatprep.subr.bf16.mxu1 %v10369_v45  ;;  %5989 = vmatprep.subr.bf16.mxu0 %v10419_v47 }
 0x6ea   :  { %5949 = vmatpush1.bf16.msra.mxu1 %v10372_v46  ;;  %5990 = vmatpush1.bf16.msra.mxu0 %v10422_v14 }
 0x6eb   :  { %5950 = vmatprep.subr.bf16.mxu1 %v10375_v49  ;;  %5991 = vmatprep.subr.bf16.mxu0 %v10425_v54 }
 0x6ee   :  { %5951 = vmatpush1.bf16.msra.mxu1 %v10378_v57  ;;  %5992 = vmatpush1.bf16.msra.mxu0 %v10428_v26 }
 0x6ef   :  { %5952 = vmatprep.subr.bf16.mxu1 %v10381_v12  ;;  %5993 = vmatprep.subr.bf16.mxu0 %v10431_v15 }
 0x6f2   :  { %5953 = vmatpush1.bf16.msra.mxu1 %v10384_v56  ;;  %5994 = vmatpush1.bf16.msra.mxu0 %v10434_v19 }
 0x6f3   :  { %5954 = vmatprep.subr.bf16.mxu1 %v10387_v37  ;;  %5995 = vmatprep.subr.bf16.mxu0 %v10437_v6 }
 0x6f6   :  { %5955 = vmatpush1.bf16.msra.mxu1 %v10390_v5  ;;  %5996 = vmatpush1.bf16.msra.mxu0 %v10440_v52 }
 0x6f7   :  { %5956 = vmatprep.subr.bf16.mxu1 %v10393_v0  ;;  %5997 = vmatprep.subr.bf16.mxu0 %v10443_v13 }
 0x6fa   :  { %5957 = vmatpush1.bf16.msra.mxu1 %v10396_v41  ;;  %5998 = vmatpush1.bf16.msra.mxu0 %v10446_v23 }
 0x6fb   :  { %6069 = vmatprep.subr.bf16.mxu1 %v12340_v51  ;;  %6110 = vmatprep.subr.bf16.mxu0 %v12341_v3 }
 0x6fd   :  { %5975 = vmatmul.mubr.bf16.vlgmr.msra.gmra.mxu1 %v5512_v9  ;;  %6016 = vmatmul.mubr.bf16.vlgmr.msra.gmra.mxu0 %v5512_v9  ;;  %v12354_v9 = vld [vmem:[#allocation36_spill] sm:$0xff] }
 0x6fe   :  { %6070 = vmatpush1.bf16.msra.mxu1 %v12342_v31  ;;  %6111 = vmatpush1.bf16.msra.mxu0 %v12343_v55 }
 0x6ff   :  { %6071 = vmatprep.subr.bf16.mxu1 %v12344_v59  ;;  %6112 = vmatprep.subr.bf16.mxu0 %v12345_v58 }
 0x702   :  { %6072 = vmatpush1.bf16.msra.mxu1 %v12346_v43  ;;  %6113 = vmatpush1.bf16.msra.mxu0 %v12347_v24 }
 0x703   :  { %6073 = vmatprep.subr.bf16.mxu1 %v12348_v30  ;;  %6114 = vmatprep.subr.bf16.mxu0 %v12349_v44 }
 0x706   :  { %6074 = vmatpush1.bf16.msra.mxu1 %v12350_v28  ;;  %6115 = vmatpush1.bf16.msra.mxu0 %v12351_v33 }
 0x707   :  { %6075 = vmatprep.subr.bf16.mxu1 %v12352_v20  ;;  %6116 = vmatprep.subr.bf16.mxu0 %v12353_v34  ;;  %v12363_v20 = vld [vmem:[#allocation45_spill] sm:$0xff]  ;;  %v12364_v34 = vld [vmem:[#allocation46_spill] sm:$0xff] }
 0x70a   :  { %6076 = vmatpush1.bf16.msra.mxu1 %v12354_v9  ;;  %6117 = vmatpush1.bf16.msra.mxu0 %v12355_v61  ;;  %v12365_v9 = vld [vmem:[#allocation47_spill] sm:$0xff]  ;;  %v12366_v61 = vld [vmem:[#allocation48_spill] sm:$0xff] }
 0x70b   :  { %6077 = vmatprep.subr.bf16.mxu1 %v12356_v18  ;;  %6118 = vmatprep.subr.bf16.mxu0 %v12357_v8  ;;  %v12367_v18 = vld [vmem:[#allocation49_spill] sm:$0xff]  ;;  %v12368_v8 = vld [vmem:[#allocation50_spill] sm:$0xff] }
 0x70e   :  { %6078 = vmatpush1.bf16.msra.mxu1 %v12358_v16  ;;  %6119 = vmatpush1.bf16.msra.mxu0 %v12359_v27  ;;  %v12369_v16 = vld [vmem:[#allocation51_spill] sm:$0xff]  ;;  %v12370_v27 = vld [vmem:[#allocation52_spill] sm:$0xff] }
 0x70f   :  { %6079 = vmatprep.subr.bf16.mxu1 %v12360_v35  ;;  %6120 = vmatprep.subr.bf16.mxu0 %v12361_v21  ;;  %v12371_v35 = vld [vmem:[#allocation53_spill] sm:$0xff]  ;;  %v12372_v21 = vld [vmem:[#allocation54_spill] sm:$0xff] }
 0x712   :  { %6080 = vmatpush1.bf16.msra.mxu1 %v12362_v63  ;;  %6121 = vmatpush1.bf16.msra.mxu0 %v12363_v20  ;;  %v12373_v63 = vld [vmem:[#allocation55_spill] sm:$0xff]  ;;  %v12374_v20 = vld [vmem:[#allocation56_spill] sm:$0xff] }
 0x713   :  { %6081 = vmatprep.subr.bf16.mxu1 %v12364_v34  ;;  %6122 = vmatprep.subr.bf16.mxu0 %v12365_v9  ;;  %v12375_v34 = vld [vmem:[#allocation57_spill] sm:$0xff]  ;;  %v12376_v9 = vld [vmem:[#allocation58_spill] sm:$0xff] }
 0x716   :  { %6082 = vmatpush1.bf16.msra.mxu1 %v12366_v61  ;;  %6123 = vmatpush1.bf16.msra.mxu0 %v12367_v18  ;;  %v12377_v61 = vld [vmem:[#allocation59_spill] sm:$0xff]  ;;  %v12378_v18 = vld [vmem:[#allocation60_spill] sm:$0xff] }
 0x717   :  { %6083 = vmatprep.subr.bf16.mxu1 %v12368_v8  ;;  %6124 = vmatprep.subr.bf16.mxu0 %v12369_v16  ;;  %v12379_v8 = vld [vmem:[#allocation61_spill] sm:$0xff]  ;;  %v12380_v16 = vld [vmem:[#allocation62_spill] sm:$0xff] }
 0x71a   :  { %6084 = vmatpush1.bf16.msra.mxu1 %v12370_v27  ;;  %6125 = vmatpush1.bf16.msra.mxu0 %v12371_v35  ;;  %v12381_v27 = vld [vmem:[#allocation63_spill] sm:$0xff]  ;;  %v12382_v35 = vld [vmem:[#allocation64_spill] sm:$0xff] }
 0x71b   :  { %6085 = vmatprep.subr.bf16.mxu1 %v12372_v21  ;;  %6126 = vmatprep.subr.bf16.mxu0 %v12373_v63  ;;  %v12383_v21 = vld [vmem:[#allocation65_spill] sm:$0xff]  ;;  %v12384_v63 = vld [vmem:[#allocation66_spill] sm:$0xff] }
 0x71e   :  { %6086 = vmatpush2.bf16.msra.mxu1 %v12374_v20  ;;  %6127 = vmatpush2.bf16.msra.mxu0 %v12375_v34  ;;  %v12385_v20 = vld [vmem:[#allocation67_spill] sm:$0xff]  ;;  %v12386_v34 = vld [vmem:[#allocation68_spill] sm:$0xff] }
 0x71f   :  { %6087 = vmatprep.subr.bf16.mxu1 %v12376_v9  ;;  %6128 = vmatprep.subr.bf16.mxu0 %v12377_v61  ;;  %v12387_v9 = vld [vmem:[#allocation69_spill] sm:$0xff]  ;;  %v12388_v61 = vld [vmem:[#allocation70_spill] sm:$0xff] }
 0x722   :  { %6088 = vmatpush2.bf16.msra.mxu1 %v12378_v18  ;;  %6129 = vmatpush2.bf16.msra.mxu0 %v12379_v8  ;;  %v12389_v18 = vld [vmem:[#allocation71_spill] sm:$0xff]  ;;  %v12390_v8 = vld [vmem:[#allocation72_spill] sm:$0xff] }
 0x723   :  { %6089 = vmatprep.subr.bf16.mxu1 %v12380_v16  ;;  %6130 = vmatprep.subr.bf16.mxu0 %v12381_v27  ;;  %v12391_v16 = vld [vmem:[#allocation73_spill] sm:$0xff]  ;;  %v12392_v27 = vld [vmem:[#allocation74_spill] sm:$0xff] }
 0x726   :  { %6090 = vmatpush2.bf16.msra.mxu1 %v12382_v35  ;;  %6131 = vmatpush2.bf16.msra.mxu0 %v12383_v21  ;;  %v12393_v35 = vld [vmem:[#allocation75_spill] sm:$0xff]  ;;  %v12394_v21 = vld [vmem:[#allocation76_spill] sm:$0xff] }
 0x727   :  { %6091 = vmatprep.subr.bf16.mxu1 %v12384_v63  ;;  %6132 = vmatprep.subr.bf16.mxu0 %v12385_v20  ;;  %v12395_v63 = vld [vmem:[#allocation77_spill] sm:$0xff]  ;;  %v12396_v20 = vld [vmem:[#allocation78_spill] sm:$0xff] }
 0x72a   :  { %6092 = vmatpush2.bf16.msra.mxu1 %v12386_v34  ;;  %6133 = vmatpush2.bf16.msra.mxu0 %v12387_v9  ;;  %v12397_v34 = vld [vmem:[#allocation79_spill] sm:$0xff]  ;;  %v12398_v9 = vld [vmem:[#allocation80_spill] sm:$0xff] }
 0x72b   :  { %6093 = vmatprep.subr.bf16.mxu1 %v12388_v61  ;;  %6134 = vmatprep.subr.bf16.mxu0 %v12389_v18  ;;  %v12399_v61 = vld [vmem:[#allocation81_spill] sm:$0xff]  ;;  %v12400_v18 = vld [vmem:[#allocation82_spill] sm:$0xff] }
 0x72e   :  { %6094 = vmatpush2.bf16.msra.mxu1 %v12390_v8  ;;  %6135 = vmatpush2.bf16.msra.mxu0 %v12391_v16 }
 0x72f   :  { %6095 = vmatprep.subr.bf16.mxu1 %v12392_v27  ;;  %6136 = vmatprep.subr.bf16.mxu0 %v12393_v35 }
 0x732   :  { %6096 = vmatpush2.bf16.msra.mxu1 %v12394_v21  ;;  %6137 = vmatpush2.bf16.msra.mxu0 %v12395_v63 }
 0x733   :  { %6097 = vmatprep.subr.bf16.mxu1 %v12396_v20  ;;  %6138 = vmatprep.subr.bf16.mxu0 %v12397_v34  ;;  %v5204_v34 = vld [vmem:[%s11934_s13] sm:$0xf]  ;;  %v12401_v20 = vld [vmem:[#allocation21_spill] sm:$0xff]  ;;  %s9824_s13 = smov [#allocation14]  }
 0x734   :  { %s7592_s15 = sshll.u32 %s9824_s13, 4  ;;  %s7593_s15 = int_to_ptr.vmem [resolvable:$true] %s7592_s15 }
 0x735   :  { %s9778_s17 = scalar_lea.vmem %s7593_s15, 32  ;;  %p9783_p3 = scmp.lt.s32.totalorder %s7593_s15, %s7593_s15 }
 0x736   :  { %6098 = vmatpush2.bf16.msra.mxu1 %v12398_v9  ;;  %6139 = vmatpush2.bf16.msra.mxu0 %v12399_v61  ;;  %v10807_v9 = vrot.slane %v5204_v34, %v12401_v20  ;;  %v12403_v61 = vld [vmem:[#allocation20_spill] sm:$0xff]  ;;  %v12405_v20 = vsub.s32 2, %v10041_v42  ;;  %p9779_p2 = scmp.ne.s32.totalorder %s7593_s15, %s9778_s17  ;;  %p9784_p4 = scmp.lt.s32.totalorder %s9778_s17, %s9778_s17 }
 0x737   :  { %6099 = vmatprep.subr.bf16.mxu1 %v12400_v18  ;;  %6140 = vmatprep.subr.bf16.mxu0 %v10642_v53  ;;  %v10810_v63 = vrot.slane %v5204_v34, %v12403_v61 }
 0x738   :  { %12402 = vst [vmem:[#allocation22_spill] sm:$0xff] %v10807_v9  ;;  %v10816_v61 = vrot.slane %v5204_v34, %v12405_v20  ;;  %p9785_p5 = por %p9784_p4, %p9783_p3 }
 0x739   :  { %12404 = vst [vmem:[#allocation23_spill] sm:$0xff] %v10810_v63 }
 0x73a   :  { %6100 = vmatpush2.bf16.msra.mxu1 %v10645_v4  ;;  %6141 = vmatpush2.bf16.msra.mxu0 %v10649_v22  ;;  %12406 = vst [vmem:[#allocation24_spill] sm:$0xff] %v10816_v61  ;;  %p9786_p6 = pnand %p9785_p5, %p9779_p2 }
 0x73b   :  { %6177 = vmatprep.subr.bf16.mxu1 %v10346_v36  ;;  %6218 = vmatprep.subr.bf16.mxu0 %v10399_v25 }
 0x79d   :  { %v5868_v18 = vpop.f32.mrf.mxu1  ;;  %v5909_v53 = vpop.f32.mrf.mxu0 }
 0x79e   :  { %v5869_v4 = vadd.f32 %v5868_v18, %v10807_v9  ;;  %v5910_v28 = vadd.f32 %v5909_v53, %v10816_v61  ;;  %v12407_v18 = vsub.s32 3, %v10041_v42 }
 0x79f   :  { %v5870_v21 = vpop.f32.mrf.mxu1  ;;  %v5911_v22 = vpop.f32.mrf.mxu0 }
 0x7a0   :  { %v8261_v35 = vmul.f32 -1.442695, %v5869_v4  ;;  %v5871_v36 = vadd.f32 %v5870_v21, %v10810_v63  ;;  %v10821_v9 = vrot.slane %v5204_v34, %v12407_v18  ;;  %v8263_v4 = vmul.f32 -1.442695, %v5910_v28 }
 0x7a1   :  { %v5872_v25 = vpop.f32.mrf.mxu1  ;;  %v5913_v27 = vpop.f32.mrf.mxu0 }
 0x7a2   :  { %9282 = vpow2.f32 %v8261_v35  ;;  %v8262_v16 = vmul.f32 -1.442695, %v5871_v36  ;;  %12408 = vst [vmem:[#allocation25_spill] sm:$0xff] %v10821_v9  ;;  %v5912_v21 = vadd.f32 %v5911_v22, %v10821_v9 }
 0x7a3   :  { %v5873_v8 = vpop.f32.mrf.mxu1  ;;  %v5914_v33 = vpop.f32.mrf.mxu0 }
 0x7a4   :  { %9284 = vpow2.f32 %v8262_v16 }
 0x7a5   :  { %9286 = vpow2.f32 %v8263_v4 }
 0x7af   :  { %v9283_v44 = vpop.eup %9282 }
 0x7b0   :  { %v5925_v27 = vadd.f32 1.0, %v9283_v44 }
 0x7b1   :  { %v9285_v35 = vpop.eup %9284 }
 0x7b2   :  { %9288 = vrcp.f32 %v5925_v27  ;;  %v5926_v8 = vadd.f32 1.0, %v9285_v35  ;;  %v9287_v36 = vpop.eup %9286 }
 0x7b3   :  { %9290 = vtanh.f32 %v5912_v21  ;;  %v5927_v61 = vadd.f32 1.0, %v9287_v36 }
 0x7b4   :  { %9292 = vrcp.f32 %v5926_v8 }
 0x7b5   :  { %9294 = vrcp.f32 %v5927_v61 }
 0x7bd   :  { %v5976_v16 = vpop.f32.mrf.mxu1  ;;  %v6017_v33 = vpop.f32.mrf.mxu0 }
 0x7bf   :  { %v9289_v25 = vpop.eup %9288  ;;  %v5978_v53 = vpop.f32.mrf.mxu1 }
 0x7c0   :  { %v6019_v20 = vpop.f32.mrf.mxu0  ;;  %v9291_v42 = vpop.eup %9290  ;;  %v6028_v34 = vcombine.low %v5976_v16, %v5978_v53  ;;  %v12409_v16 = vcombine.high %v10668_v29, %v10676_v62 }
 0x7c1   :  { %v6029_v18 = vcombine.low %v6017_v33, %v6019_v20  ;;  %v9293_v28 = vpop.eup %9292  ;;  %v5980_v63 = vpop.f32.mrf.mxu1  ;;  %v5936_v9 = vmul.f32 %v9291_v42, %v9289_v25 }
 0x7c2   :  { %v6021_v22 = vpop.f32.mrf.mxu0  ;;  %v5935_v44 = vmul.f32 0.0, %v9293_v28  ;;  %v6036_v4 = vrot.slane %v6028_v34, %v10652_v1  ;;  %v9295_v36 = vpop.eup %9294 }
 0x7c3   :  { %v6043_v21 = vrot.slane %v6029_v18, %v10652_v1  ;;  %v5981_v27 = vpop.f32.mrf.mxu1 }
 0x7c4   :  { %v6022_v35 = vpop.f32.mrf.mxu0  ;;  %v10826_v8 = vadd.f32 %v5936_v9, %v5935_v44  ;;  %v12449_v27 = vld [vmem:[#allocation69_spill] sm:$0xff] }
 0x7c5   :  { %v6044_v30 = vcombine.low %v6036_v4, %v6043_v21  ;;  %v12450_v35 = vld [vmem:[#allocation70_spill] sm:$0xff] }
 0x7c6   :  { %9296 = vtanh.f32 %v10826_v8 }
 0x7c7   :  { %v6046_v33 = vadd.f32 %v6044_v30, %v12409_v16  ;;  %v12451_v16 = vld [vmem:[#allocation71_spill] sm:$0xff] }
 0x7c9   :  { %v8264_v63 = vmul.f32 -1.442695, %v6046_v33  ;;  %v6054_v18 = vrot.slane %v6046_v33, 6  ;;  %v12452_v33 = vld [vmem:[#allocation72_spill] sm:$0xff] }
 0x7cb   :  { %9298 = vpow2.f32 %v8264_v63  ;;  %v12453_v63 = vld [vmem:[#allocation73_spill] sm:$0xff] }
 0x7d3   :  { %v9297_v25 = vpop.eup %9296 }
 0x7d4   :  { %v5939_v53 = vmul.f32 %v9297_v25, %v9295_v36  ;;  %v12454_v36 = vld [vmem:[#allocation74_spill] sm:$0xff]  ;;  %v12455_v25 = vld [vmem:[#allocation75_spill] sm:$0xff] }
 0x7d6   :  { %v6068_v20 = vpack.c.bf16 %v5939_v53, %v5939_v53  ;;  %v12456_v53 = vld [vmem:[#allocation76_spill] sm:$0xff] }
 0x7d8   :  { %v9299_v42 = vpop.eup %9298  ;;  %6101 = vmatprep.mubr.bf16.mxu1 %v6068_v20  ;;  %6142 = vmatprep.mubr.bf16.mxu0 %v6068_v20  ;;  %v12457_v20 = vld [vmem:[#allocation77_spill] sm:$0xff] }
 0x7d9   :  { %v6050_v34 = vadd.f32 1.0, %v9299_v42  ;;  %v12458_v42 = vld [vmem:[#allocation78_spill] sm:$0xff] }
 0x7db   :  { %9300 = vrcp.f32 %v6050_v34  ;;  %v12459_v34 = vld [vmem:[#allocation79_spill] sm:$0xff] }
 0x7dc   :  { %9302 = vtanh.f32 %v6054_v18  ;;  %v12460_v18 = vld [vmem:[#allocation80_spill] sm:$0xff] }
 0x7e8   :  { %v9301_v9 = vpop.eup %9300 }
 0x7e9   :  { %v6058_v61 = vrot.slane %v9301_v9, 2  ;;  %v9303_v28 = vpop.eup %9302  ;;  %v6064_v22 = vrot.slane %v9301_v9, 4 }
 0x7ea   :  { %v6061_v29 = vmul.f32 %v9303_v28, %v9301_v9  ;;  %v12461_v9 = vld [vmem:[#allocation81_spill] sm:$0xff]  ;;  %v12463_v28 = vld [vmem:[#allocation83_spill] sm:$0xff] }
 0x7eb   :  { %v6060_v62 = vmul.f32 %v6058_v61, %v10702_v40  ;;  %v12440_v40 = vld [vmem:[#allocation60_spill] sm:$0xff]  ;;  %v12462_v61 = vld [vmem:[#allocation82_spill] sm:$0xff] }
 0x7ed   :  { %v10833_v30 = vadd.f32 %v6061_v29, %v6060_v62  ;;  %v12464_v29 = vld [vmem:[#allocation84_spill] sm:$0xff]  ;;  %v12465_v62 = vld [vmem:[#allocation85_spill] sm:$0xff] }
 0x7ef   :  { %9304 = vtanh.f32 %v10833_v30 }
 0x7fc   :  { %v9305_v44 = vpop.eup %9304 }
 0x7fd   :  { %v6066_v4 = vmul.f32 %v9305_v44, %v6064_v22  ;;  %v10932_v22 = vld [vmem:[#allocation11 + $0xe4] ss:$16 sps:$4 sm:$0xff]   ;;  %v10935_v44 = vld [vmem:[#allocation11 + $0xec] ss:$16 sps:$4 sm:$0xff]  }
 0x7fe   :  { %12466 = vst [vmem:[#allocation26_spill] sm:$0xff] %v10932_v22  ;;  %12467 = vst [vmem:[#allocation27_spill] sm:$0xff] %v10935_v44 }
 0x7ff   :  { %v6067_v21 = vpack.c.bf16 %v6066_v4, %v6066_v4 }
 0x801   :  { %6102 = vmatmul.mubr.bf16.vlgmr.msra.gmra.mxu1 %v6067_v21  ;;  %6143 = vmatmul.mubr.bf16.vlgmr.msra.gmra.mxu0 %v6067_v21 }
 0x802   :  { %6178 = vmatpush1.bf16.msra.mxu1 %v10354_v48  ;;  %6219 = vmatpush1.bf16.msra.mxu0 %v10402_v2  ;;  %v12410_v48 = vld [vmem:[#allocation30_spill] sm:$0xff]  ;;  %v12425_v2 = vld [vmem:[#allocation45_spill] sm:$0xff] }
 0x803   :  { %6179 = vmatprep.subr.bf16.mxu1 %v10356_v39  ;;  %6220 = vmatprep.subr.bf16.mxu0 %v10405_v7  ;;  %v12411_v39 = vld [vmem:[#allocation31_spill] sm:$0xff]  ;;  %v12426_v7 = vld [vmem:[#allocation46_spill] sm:$0xff] }
 0x804   :  { %6209 = vmatprep.mubr.bf16.mxu1 %v12339_v50  ;;  %6250 = vmatprep.mubr.bf16.mxu0 %v12339_v50 }
 0x806   :  { %6180 = vmatpush1.bf16.msra.mxu1 %v10359_v60  ;;  %6221 = vmatpush1.bf16.msra.mxu0 %v10409_v10  ;;  %v12412_v60 = vld [vmem:[#allocation32_spill] sm:$0xff]  ;;  %v12427_v10 = vld [vmem:[#allocation47_spill] sm:$0xff] }
 0x807   :  { %6181 = vmatprep.subr.bf16.mxu1 %v10363_v17  ;;  %6222 = vmatprep.subr.bf16.mxu0 %v10413_v11  ;;  %v12413_v17 = vld [vmem:[#allocation33_spill] sm:$0xff]  ;;  %v12428_v11 = vld [vmem:[#allocation48_spill] sm:$0xff] }
 0x80a   :  { %6182 = vmatpush1.bf16.msra.mxu1 %v10366_v38  ;;  %6223 = vmatpush1.bf16.msra.mxu0 %v10416_v32  ;;  %v12414_v38 = vld [vmem:[#allocation34_spill] sm:$0xff]  ;;  %v12429_v32 = vld [vmem:[#allocation49_spill] sm:$0xff] }
 0x80b   :  { %6183 = vmatprep.subr.bf16.mxu1 %v10369_v45  ;;  %6224 = vmatprep.subr.bf16.mxu0 %v10419_v47  ;;  %v12415_v45 = vld [vmem:[#allocation35_spill] sm:$0xff]  ;;  %v12430_v47 = vld [vmem:[#allocation50_spill] sm:$0xff] }
 0x80e   :  { %6184 = vmatpush1.bf16.msra.mxu1 %v10372_v46  ;;  %6225 = vmatpush1.bf16.msra.mxu0 %v10422_v14  ;;  %v12416_v46 = vld [vmem:[#allocation36_spill] sm:$0xff]  ;;  %v12431_v14 = vld [vmem:[#allocation51_spill] sm:$0xff] }
 0x80f   :  { %6185 = vmatprep.subr.bf16.mxu1 %v10375_v49  ;;  %6226 = vmatprep.subr.bf16.mxu0 %v10425_v54  ;;  %v12417_v49 = vld [vmem:[#allocation37_spill] sm:$0xff]  ;;  %v12432_v54 = vld [vmem:[#allocation52_spill] sm:$0xff] }
 0x812   :  { %6186 = vmatpush1.bf16.msra.mxu1 %v10378_v57  ;;  %6227 = vmatpush1.bf16.msra.mxu0 %v10428_v26  ;;  %v12418_v57 = vld [vmem:[#allocation38_spill] sm:$0xff]  ;;  %v12433_v26 = vld [vmem:[#allocation53_spill] sm:$0xff] }
 0x813   :  { %6187 = vmatprep.subr.bf16.mxu1 %v10381_v12  ;;  %6228 = vmatprep.subr.bf16.mxu0 %v10431_v15  ;;  %v12419_v12 = vld [vmem:[#allocation39_spill] sm:$0xff]  ;;  %v12434_v15 = vld [vmem:[#allocation54_spill] sm:$0xff] }
 0x816   :  { %6188 = vmatpush1.bf16.msra.mxu1 %v10384_v56  ;;  %6229 = vmatpush1.bf16.msra.mxu0 %v10434_v19  ;;  %v12420_v56 = vld [vmem:[#allocation40_spill] sm:$0xff]  ;;  %v12435_v19 = vld [vmem:[#allocation55_spill] sm:$0xff] }
 0x817   :  { %6189 = vmatprep.subr.bf16.mxu1 %v10387_v37  ;;  %6230 = vmatprep.subr.bf16.mxu0 %v10437_v6  ;;  %v12421_v37 = vld [vmem:[#allocation41_spill] sm:$0xff]  ;;  %v12436_v6 = vld [vmem:[#allocation56_spill] sm:$0xff] }
 0x81a   :  { %6190 = vmatpush1.bf16.msra.mxu1 %v10390_v5  ;;  %6231 = vmatpush1.bf16.msra.mxu0 %v10440_v52  ;;  %v12422_v5 = vld [vmem:[#allocation42_spill] sm:$0xff]  ;;  %v12437_v52 = vld [vmem:[#allocation57_spill] sm:$0xff] }
 0x81b   :  { %6191 = vmatprep.subr.bf16.mxu1 %v10393_v0  ;;  %6232 = vmatprep.subr.bf16.mxu0 %v10443_v13  ;;  %v12423_v0 = vld [vmem:[#allocation43_spill] sm:$0xff]  ;;  %v12438_v13 = vld [vmem:[#allocation58_spill] sm:$0xff] }
 0x81e   :  { %6192 = vmatpush1.bf16.msra.mxu1 %v10396_v41  ;;  %6233 = vmatpush1.bf16.msra.mxu0 %v10446_v23  ;;  %v12424_v41 = vld [vmem:[#allocation44_spill] sm:$0xff]  ;;  %v12439_v23 = vld [vmem:[#allocation59_spill] sm:$0xff] }
 0x81f   :  { %6304 = vmatprep.subr.bf16.mxu1 %v12340_v51  ;;  %6345 = vmatprep.subr.bf16.mxu0 %v12341_v3  ;;  %v12441_v51 = vld [vmem:[#allocation61_spill] sm:$0xff]  ;;  %v12442_v3 = vld [vmem:[#allocation62_spill] sm:$0xff] }
 0x821   :  { %6210 = vmatmul.mubr.bf16.vlgmr.msra.gmra.mxu1 %v6067_v21  ;;  %6251 = vmatmul.mubr.bf16.vlgmr.msra.gmra.mxu0 %v6067_v21 }
 0x822   :  { %6305 = vmatpush1.bf16.msra.mxu1 %v12342_v31  ;;  %6346 = vmatpush1.bf16.msra.mxu0 %v12343_v55  ;;  %v12443_v31 = vld [vmem:[#allocation63_spill] sm:$0xff]  ;;  %v12444_v55 = vld [vmem:[#allocation64_spill] sm:$0xff] }
 0x823   :  { %6306 = vmatprep.subr.bf16.mxu1 %v12344_v59  ;;  %6347 = vmatprep.subr.bf16.mxu0 %v12345_v58  ;;  %v12445_v59 = vld [vmem:[#allocation65_spill] sm:$0xff]  ;;  %v12446_v58 = vld [vmem:[#allocation66_spill] sm:$0xff] }
 0x826   :  { %6307 = vmatpush1.bf16.msra.mxu1 %v12346_v43  ;;  %6348 = vmatpush1.bf16.msra.mxu0 %v12347_v24  ;;  %v12447_v43 = vld [vmem:[#allocation67_spill] sm:$0xff]  ;;  %v12448_v24 = vld [vmem:[#allocation68_spill] sm:$0xff] }
 0x827   :  { %6308 = vmatprep.subr.bf16.mxu1 %v12410_v48  ;;  %6349 = vmatprep.subr.bf16.mxu0 %v12411_v39  ;;  %v12468_v48 = vld [vmem:[#allocation22_spill] sm:$0xff] }
 0x82a   :  { %6309 = vmatpush1.bf16.msra.mxu1 %v12412_v60  ;;  %6350 = vmatpush1.bf16.msra.mxu0 %v12413_v17 }
 0x82b   :  { %6310 = vmatprep.subr.bf16.mxu1 %v12414_v38  ;;  %6351 = vmatprep.subr.bf16.mxu0 %v12415_v45  ;;  %v12469_v45 = vld [vmem:[#allocation23_spill] sm:$0xff] }
 0x82e   :  { %6311 = vmatpush1.bf16.msra.mxu1 %v12416_v46  ;;  %6352 = vmatpush1.bf16.msra.mxu0 %v12417_v49 }
 0x82f   :  { %6312 = vmatprep.subr.bf16.mxu1 %v12418_v57  ;;  %6353 = vmatprep.subr.bf16.mxu0 %v12419_v12 }
 0x832   :  { %6313 = vmatpush1.bf16.msra.mxu1 %v12420_v56  ;;  %6354 = vmatpush1.bf16.msra.mxu0 %v12421_v37 }
 0x833   :  { %6314 = vmatprep.subr.bf16.mxu1 %v12422_v5  ;;  %6355 = vmatprep.subr.bf16.mxu0 %v12423_v0  ;;  %v12470_v5 = vld [vmem:[#allocation24_spill] sm:$0xff] }
 0x836   :  { %6315 = vmatpush1.bf16.msra.mxu1 %v12424_v41  ;;  %6356 = vmatpush1.bf16.msra.mxu0 %v12425_v2 }
 0x837   :  { %6316 = vmatprep.subr.bf16.mxu1 %v12426_v7  ;;  %6357 = vmatprep.subr.bf16.mxu0 %v12427_v10  ;;  %v12471_v7 = vld [vmem:[#allocation25_spill] sm:$0xff] }
 0x83a   :  { %6317 = vmatpush1.bf16.msra.mxu1 %v12428_v11  ;;  %6358 = vmatpush1.bf16.msra.mxu0 %v12429_v32 }
 0x83b   :  { %6318 = vmatprep.subr.bf16.mxu1 %v12430_v47  ;;  %6359 = vmatprep.subr.bf16.mxu0 %v12431_v14 }
 0x83e   :  { %6319 = vmatpush1.bf16.msra.mxu1 %v12432_v54  ;;  %6360 = vmatpush1.bf16.msra.mxu0 %v12433_v26 }
 0x83f   :  { %6320 = vmatprep.subr.bf16.mxu1 %v12434_v15  ;;  %6361 = vmatprep.subr.bf16.mxu0 %v12435_v19 }
 0x842   :  { %6321 = vmatpush2.bf16.msra.mxu1 %v12436_v6  ;;  %6362 = vmatpush2.bf16.msra.mxu0 %v12437_v52 }
 0x843   :  { %6322 = vmatprep.subr.bf16.mxu1 %v12438_v13  ;;  %6363 = vmatprep.subr.bf16.mxu0 %v12439_v23 }
 0x846   :  { %6323 = vmatpush2.bf16.msra.mxu1 %v12440_v40  ;;  %6364 = vmatpush2.bf16.msra.mxu0 %v12441_v51 }
 0x847   :  { %6324 = vmatprep.subr.bf16.mxu1 %v12442_v3  ;;  %6365 = vmatprep.subr.bf16.mxu0 %v12443_v31 }
 0x84a   :  { %6325 = vmatpush2.bf16.msra.mxu1 %v12444_v55  ;;  %6366 = vmatpush2.bf16.msra.mxu0 %v12445_v59 }
 0x84b   :  { %6326 = vmatprep.subr.bf16.mxu1 %v12446_v58  ;;  %6367 = vmatprep.subr.bf16.mxu0 %v12447_v43 }
 0x84e   :  { %6327 = vmatpush2.bf16.msra.mxu1 %v12448_v24  ;;  %6368 = vmatpush2.bf16.msra.mxu0 %v12449_v27 }
 0x84f   :  { %6328 = vmatprep.subr.bf16.mxu1 %v12450_v35  ;;  %6369 = vmatprep.subr.bf16.mxu0 %v12451_v16 }
 0x852   :  { %6329 = vmatpush2.bf16.msra.mxu1 %v12452_v33  ;;  %6370 = vmatpush2.bf16.msra.mxu0 %v12453_v63  ;;  %v12472_v33 = vld [vmem:[#allocation86_spill] sm:$0xff]  ;;  %v12473_v63 = vld [vmem:[#allocation89_spill] sm:$0xff] }
 0x853   :  { %6330 = vmatprep.subr.bf16.mxu1 %v12454_v36  ;;  %6371 = vmatprep.subr.bf16.mxu0 %v12455_v25  ;;  %v12474_v36 = vcombine.low %v12472_v33, %v12473_v63 }
 0x856   :  { %6331 = vmatpush2.bf16.msra.mxu1 %v12456_v53  ;;  %6372 = vmatpush2.bf16.msra.mxu0 %v12457_v20 }
 0x857   :  { %6332 = vmatprep.subr.bf16.mxu1 %v12458_v42  ;;  %6373 = vmatprep.subr.bf16.mxu0 %v12459_v34 }
 0x85a   :  { %6333 = vmatpush2.bf16.msra.mxu1 %v12460_v18  ;;  %6374 = vmatpush2.bf16.msra.mxu0 %v12461_v9 }
 0x85b   :  { %6334 = vmatprep.subr.bf16.mxu1 %v12462_v61  ;;  %6375 = vmatprep.subr.bf16.mxu0 %v12463_v28 }
 0x85e   :  { %6335 = vmatpush2.bf16.msra.mxu1 %v12464_v29  ;;  %6376 = vmatpush2.bf16.msra.mxu0 %v12465_v62 }
 0x85f   :  { %6412 = vmatprep.subr.bf16.mxu1 %v10932_v22  ;;  %6453 = vmatprep.subr.bf16.mxu0 %v10935_v44 }
 0x8c1   :  { %v6103_v4 = vpop.f32.mrf.mxu1  ;;  %v6144_v21 = vpop.f32.mrf.mxu0 }
 0x8c2   :  { %v6104_v39 = vadd.f32 %v6103_v4, %v12468_v48  ;;  %v6145_v0 = vadd.f32 %v6144_v21, %v12470_v5 }
 0x8c3   :  { %v6105_v60 = vpop.f32.mrf.mxu1  ;;  %v6146_v17 = vpop.f32.mrf.mxu0 }
 0x8c4   :  { %v8265_v38 = vmul.f32 -1.442695, %v6104_v39  ;;  %v6106_v46 = vadd.f32 %v6105_v60, %v12469_v45  ;;  %v8267_v41 = vmul.f32 -1.442695, %v6145_v0  ;;  %v6147_v10 = vadd.f32 %v6146_v17, %v12471_v7  ;;  %v10979_v0 = vld [vmem:[#allocation11 + $0xa4] ss:$16 sps:$4 sm:$0xff]  }
 0x8c5   :  { %v6107_v49 = vpop.f32.mrf.mxu1  ;;  %v6148_v57 = vpop.f32.mrf.mxu0 }
 0x8c6   :  { %9306 = vpow2.f32 %v8265_v38  ;;  %v8266_v12 = vmul.f32 -1.442695, %v6106_v46  ;;  %v10959_v49 = vld [vmem:[#allocation11 + $0xe0] ss:$16 sps:$4 sm:$0xff]   ;;  %v10962_v57 = vld [vmem:[#allocation11 + $0xe8] ss:$16 sps:$4 sm:$0xff]  }
 0x8c7   :  { %v6108_v56 = vpop.f32.mrf.mxu1  ;;  %v6149_v37 = vpop.f32.mrf.mxu0 }
 0x8c8   :  { %9308 = vpow2.f32 %v8266_v12  ;;  %v10968_v12 = vld [vmem:[#allocation11 + $0xcc] ss:$16 sps:$4 sm:$0xff]   ;;  %v10973_v56 = vld [vmem:[#allocation11 + $0xc0] ss:$16 sps:$4 sm:$0xff]   ;;  %v10976_v37 = vld [vmem:[#allocation11 + $0xc8] ss:$16 sps:$4 sm:$0xff]  }
 0x8c9   :  { %9310 = vpow2.f32 %v8267_v41  ;;  %v10982_v41 = vld [vmem:[#allocation11 + $0xac] ss:$16 sps:$4 sm:$0xff]  }
 0x8d3   :  { %v9307_v2 = vpop.eup %9306 }
 0x8d4   :  { %v6160_v11 = vadd.f32 1.0, %v9307_v2  ;;  %v10985_v2 = vld [vmem:[#allocation11 + $0xa0] ss:$16 sps:$4 sm:$0xff]  }
 0x8d5   :  { %v9309_v32 = vpop.eup %9308 }
 0x8d6   :  { %9312 = vrcp.f32 %v6160_v11  ;;  %v6161_v47 = vadd.f32 1.0, %v9309_v32  ;;  %v9311_v26 = vpop.eup %9310  ;;  %v10991_v11 = vld [vmem:[#allocation11 + $0x84] ss:$16 sps:$4 sm:$0xff]   ;;  %v10994_v32 = vld [vmem:[#allocation11 + $0x8c] ss:$16 sps:$4 sm:$0xff]  }
 0x8d7   :  { %9314 = vtanh.f32 %v6147_v10  ;;  %v6162_v51 = vadd.f32 1.0, %v9311_v26  ;;  %v10988_v10 = vld [vmem:[#allocation11 + $0xa8] ss:$16 sps:$4 sm:$0xff]   ;;  %v11006_v26 = vld [vmem:[#allocation11 + $0x6c] ss:$16 sps:$4 sm:$0xff]  }
 0x8d8   :  { %9316 = vrcp.f32 %v6161_v47  ;;  %v10997_v47 = vld [vmem:[#allocation11 + $0x80] ss:$16 sps:$4 sm:$0xff]  }
 0x8d9   :  { %9318 = vrcp.f32 %v6162_v51  ;;  %v11030_v51 = vld [vmem:[#allocation11 + $0x2c] ss:$16 sps:$4 sm:$0xff]  }
 0x8e1   :  { %v6211_v14 = vpop.f32.mrf.mxu1  ;;  %v6252_v54 = vpop.f32.mrf.mxu0 }
 0x8e3   :  { %v9313_v15 = vpop.eup %9312  ;;  %v6213_v19 = vpop.f32.mrf.mxu1 }
 0x8e4   :  { %v6254_v6 = vpop.f32.mrf.mxu0  ;;  %v9315_v52 = vpop.eup %9314  ;;  %v6263_v13 = vcombine.low %v6211_v14, %v6213_v19  ;;  %v11000_v14 = vld [vmem:[#allocation11 + $0x88] ss:$16 sps:$4 sm:$0xff]  }
 0x8e5   :  { %v6264_v23 = vcombine.low %v6252_v54, %v6254_v6  ;;  %v9317_v40 = vpop.eup %9316  ;;  %v6215_v3 = vpop.f32.mrf.mxu1  ;;  %v6171_v59 = vmul.f32 %v9315_v52, %v9313_v15  ;;  %v11003_v54 = vld [vmem:[#allocation11 + $0x64] ss:$16 sps:$4 sm:$0xff]   ;;  %v11009_v15 = vld [vmem:[#allocation11 + $0x60] ss:$16 sps:$4 sm:$0xff]   ;;  %v11012_v19 = vld [vmem:[#allocation11 + $0x68] ss:$16 sps:$4 sm:$0xff]  }
 0x8e6   :  { %v6256_v31 = vpop.f32.mrf.mxu0  ;;  %v6170_v55 = vmul.f32 %v9317_v40, %v10826_v8  ;;  %v6271_v58 = vrot.slane %v6263_v13, %v10652_v1  ;;  %v9319_v8 = vpop.eup %9318  ;;  %v11015_v6 = vld [vmem:[#allocation11 + $0x44] ss:$16 sps:$4 sm:$0xff]   ;;  %v11018_v52 = vld [vmem:[#allocation11 + $0x4c] ss:$16 sps:$4 sm:$0xff]   ;;  %v11021_v13 = vld [vmem:[#allocation11 + $0x40] ss:$16 sps:$4 sm:$0xff]  }
 0x8e7   :  { %v6278_v43 = vrot.slane %v6264_v23, %v10652_v1  ;;  %v6216_v24 = vpop.f32.mrf.mxu1  ;;  %v11024_v23 = vld [vmem:[#allocation11 + $0x48] ss:$16 sps:$4 sm:$0xff]   ;;  %v11027_v40 = vld [vmem:[#allocation11 + $0x24] ss:$16 sps:$4 sm:$0xff]   ;;  %v11033_v3 = vld [vmem:[#allocation11 + $0x20] ss:$16 sps:$4 sm:$0xff]  }
 0x8e8   :  { %v6257_v27 = vpop.f32.mrf.mxu0  ;;  %v10945_v35 = vadd.f32 %v6171_v59, %v6170_v55  ;;  %v11036_v31 = vld [vmem:[#allocation11 + $0x28] ss:$16 sps:$4 sm:$0xff]   ;;  %v11039_v55 = vld [vmem:[#allocation11 + $0x4] ss:$16 sps:$4 sm:$0xff]   ;;  %v11042_v59 = vld [vmem:[#allocation11 + $0xc] ss:$16 sps:$4 sm:$0xff]  }
 0x8e9   :  { %v6279_v16 = vcombine.low %v6271_v58, %v6278_v43  ;;  %v11045_v58 = vld [vmem:[#allocation11] ss:$16 sps:$4 sm:$0xff]   ;;  %v11048_v43 = vld [vmem:[#allocation11 + $0x8] ss:$16 sps:$4 sm:$0xff]   ;;  %v11051_v24 = vld [vmem:[#allocation12 + $0xe4] ss:$16 sps:$4 sm:$0xff]  }
 0x8ea   :  { %9320 = vtanh.f32 %v10945_v35  ;;  %v11054_v27 = vld [vmem:[#allocation12 + $0xec] ss:$16 sps:$4 sm:$0xff]  }
 0x8eb   :  { %v6281_v25 = vadd.f32 %v6279_v16, %v12474_v36  ;;  %v11059_v16 = vld [vmem:[#allocation12 + $0xe0] ss:$16 sps:$4 sm:$0xff]   ;;  %v11062_v36 = vld [vmem:[#allocation12 + $0xe8] ss:$16 sps:$4 sm:$0xff]  }
 0x8ed   :  { %v8268_v53 = vmul.f32 -1.442695, %v6281_v25  ;;  %v6289_v61 = vrot.slane %v6281_v25, 6  ;;  %v11065_v25 = vld [vmem:[#allocation12 + $0xc4] ss:$16 sps:$4 sm:$0xff]  }
 0x8ef   :  { %9322 = vpow2.f32 %v8268_v53  ;;  %v11068_v53 = vld [vmem:[#allocation12 + $0xcc] ss:$16 sps:$4 sm:$0xff]  }
 0x8f7   :  { %v9321_v20 = vpop.eup %9320 }
 0x8f8   :  { %v6174_v42 = vmul.f32 %v9321_v20, %v9319_v8  ;;  %v11071_v8 = vld [vmem:[#allocation12 + $0xc0] ss:$16 sps:$4 sm:$0xff]   ;;  %v11074_v20 = vld [vmem:[#allocation12 + $0xc8] ss:$16 sps:$4 sm:$0xff]  }
 0x8f9   :  { %12475 = vst [vmem:[#allocation28_spill] sm:$0xff] %v11074_v20 }
 0x8fa   :  { %v6303_v34 = vpack.c.bf16 %v6174_v42, %v6174_v42  ;;  %v11077_v42 = vld [vmem:[#allocation12 + $0xa4] ss:$16 sps:$4 sm:$0xff]  }
 0x8fb   :  { %12476 = vst [vmem:[#allocation29_spill] sm:$0xff] %v11077_v42 }
 0x8fc   :  { %v9323_v18 = vpop.eup %9322  ;;  %6336 = vmatprep.mubr.bf16.mxu1 %v6303_v34  ;;  %6377 = vmatprep.mubr.bf16.mxu0 %v6303_v34  ;;  %v11080_v34 = vld [vmem:[#allocation12 + $0xac] ss:$16 sps:$4 sm:$0xff]  }
 0x8fd   :  { %v6285_v9 = vadd.f32 1.0, %v9323_v18  ;;  %12477 = vst [vmem:[#allocation21_spill] sm:$0xff] %v11080_v34  ;;  %v11083_v18 = vld [vmem:[#allocation12 + $0xa0] ss:$16 sps:$4 sm:$0xff]  }
 0x8fe   :  { %12478 = vst [vmem:[#allocation20_spill] sm:$0xff] %v11083_v18 }
 0x8ff   :  { %9324 = vrcp.f32 %v6285_v9  ;;  %v11086_v9 = vld [vmem:[#allocation12 + $0xa8] ss:$16 sps:$4 sm:$0xff]  }
 0x900   :  { %9326 = vtanh.f32 %v6289_v61  ;;  %12479 = vst [vmem:[#allocation30_spill] sm:$0xff] %v11086_v9  ;;  %v11089_v61 = vld [vmem:[#allocation12 + $0x84] ss:$16 sps:$4 sm:$0xff]  }
 0x901   :  { %12480 = vst [vmem:[#allocation31_spill] sm:$0xff] %v11089_v61 }
 0x90c   :  { %v9325_v28 = vpop.eup %9324 }
 0x90d   :  { %v6293_v29 = vrot.slane %v9325_v28, 2  ;;  %v9327_v62 = vpop.eup %9326  ;;  %v6299_v60 = vrot.slane %v9325_v28, 4 }
 0x90e   :  { %v6296_v4 = vmul.f32 %v9327_v62, %v9325_v28  ;;  %v11092_v28 = vld [vmem:[#allocation12 + $0x8c] ss:$16 sps:$4 sm:$0xff]   ;;  %v11098_v62 = vld [vmem:[#allocation12 + $0x88] ss:$16 sps:$4 sm:$0xff]  }
 0x90f   :  { %v6295_v21 = vmul.f32 %v6293_v29, %v10833_v30  ;;  %v10965_v30 = vld [vmem:[#allocation11 + $0xc4] ss:$16 sps:$4 sm:$0xff]   ;;  %12481 = vst [vmem:[#allocation32_spill] sm:$0xff] %v11092_v28  ;;  %v11095_v29 = vld [vmem:[#allocation12 + $0x80] ss:$16 sps:$4 sm:$0xff]   ;;  %12483 = vst [vmem:[#allocation34_spill] sm:$0xff] %v11098_v62 }
 0x910   :  { %12482 = vst [vmem:[#allocation33_spill] sm:$0xff] %v11095_v29 }
 0x911   :  { %v10952_v39 = vadd.f32 %v6296_v4, %v6295_v21  ;;  %v11101_v4 = vld [vmem:[#allocation12 + $0x64] ss:$16 sps:$4 sm:$0xff]   ;;  %v11104_v21 = vld [vmem:[#allocation12 + $0x6c] ss:$16 sps:$4 sm:$0xff]  }
 0x912   :  { %12484 = vst [vmem:[#allocation35_spill] sm:$0xff] %v11101_v4  ;;  %12485 = vst [vmem:[#allocation36_spill] sm:$0xff] %v11104_v21 }
 0x913   :  { %9328 = vtanh.f32 %v10952_v39 }
 0x920   :  { %v9329_v17 = vpop.eup %9328 }
 0x921   :  { %v6301_v38 = vmul.f32 %v9329_v17, %v6299_v60  ;;  %v11107_v60 = vld [vmem:[#allocation12 + $0x60] ss:$16 sps:$4 sm:$0xff]   ;;  %v11110_v17 = vld [vmem:[#allocation12 + $0x68] ss:$16 sps:$4 sm:$0xff]  }
 0x922   :  { %12486 = vst [vmem:[#allocation37_spill] sm:$0xff] %v11107_v60  ;;  %12487 = vst [vmem:[#allocation38_spill] sm:$0xff] %v11110_v17 }
 0x923   :  { %v10955_v46 = vpack.c.bf16 %v6301_v38, %v6301_v38  ;;  %v11113_v38 = vld [vmem:[#allocation12 + $0x44] ss:$16 sps:$4 sm:$0xff]  }
 0x924   :  { %12488 = vst [vmem:[#allocation39_spill] sm:$0xff] %v11113_v38 }
 0x925   :  { %6337 = vmatmul.mubr.bf16.vlgmr.msra.gmra.mxu1 %v10955_v46  ;;  %6378 = vmatmul.mubr.bf16.vlgmr.msra.gmra.mxu0 %v10955_v46 }
 0x926   :  { %6413 = vmatpush1.bf16.msra.mxu1 %v10959_v49  ;;  %6454 = vmatpush1.bf16.msra.mxu0 %v10962_v57 }
 0x927   :  { %6414 = vmatprep.subr.bf16.mxu1 %v10965_v30  ;;  %6455 = vmatprep.subr.bf16.mxu0 %v10968_v12 }
 0x928   :  { %6444 = vmatprep.mubr.bf16.mxu1 %v12339_v50  ;;  %6485 = vmatprep.mubr.bf16.mxu0 %v12339_v50 }
 0x92a   :  { %6415 = vmatpush1.bf16.msra.mxu1 %v10973_v56  ;;  %6456 = vmatpush1.bf16.msra.mxu0 %v10976_v37 }
 0x92b   :  { %6416 = vmatprep.subr.bf16.mxu1 %v10979_v0  ;;  %6457 = vmatprep.subr.bf16.mxu0 %v10982_v41 }
 0x92e   :  { %6417 = vmatpush1.bf16.msra.mxu1 %v10985_v2  ;;  %6458 = vmatpush1.bf16.msra.mxu0 %v10988_v10 }
 0x92f   :  { %6418 = vmatprep.subr.bf16.mxu1 %v10991_v11  ;;  %6459 = vmatprep.subr.bf16.mxu0 %v10994_v32 }
 0x932   :  { %6419 = vmatpush1.bf16.msra.mxu1 %v10997_v47  ;;  %6460 = vmatpush1.bf16.msra.mxu0 %v11000_v14 }
 0x933   :  { %6420 = vmatprep.subr.bf16.mxu1 %v11003_v54  ;;  %6461 = vmatprep.subr.bf16.mxu0 %v11006_v26 }
 0x936   :  { %6421 = vmatpush1.bf16.msra.mxu1 %v11009_v15  ;;  %6462 = vmatpush1.bf16.msra.mxu0 %v11012_v19 }
 0x937   :  { %6422 = vmatprep.subr.bf16.mxu1 %v11015_v6  ;;  %6463 = vmatprep.subr.bf16.mxu0 %v11018_v52 }
 0x93a   :  { %6423 = vmatpush1.bf16.msra.mxu1 %v11021_v13  ;;  %6464 = vmatpush1.bf16.msra.mxu0 %v11024_v23 }
 0x93b   :  { %6424 = vmatprep.subr.bf16.mxu1 %v11027_v40  ;;  %6465 = vmatprep.subr.bf16.mxu0 %v11030_v51 }
 0x93e   :  { %6425 = vmatpush1.bf16.msra.mxu1 %v11033_v3  ;;  %6466 = vmatpush1.bf16.msra.mxu0 %v11036_v31 }
 0x93f   :  { %6426 = vmatprep.subr.bf16.mxu1 %v11039_v55  ;;  %6467 = vmatprep.subr.bf16.mxu0 %v11042_v59 }
 0x942   :  { %6427 = vmatpush1.bf16.msra.mxu1 %v11045_v58  ;;  %6468 = vmatpush1.bf16.msra.mxu0 %v11048_v43 }
 0x943   :  { %6539 = vmatprep.subr.bf16.mxu1 %v11051_v24  ;;  %6580 = vmatprep.subr.bf16.mxu0 %v11054_v27 }
 0x945   :  { %6445 = vmatmul.mubr.bf16.vlgmr.msra.gmra.mxu1 %v10955_v46  ;;  %6486 = vmatmul.mubr.bf16.vlgmr.msra.gmra.mxu0 %v10955_v46  ;;  %v11116_v46 = vld [vmem:[#allocation12 + $0x4c] ss:$16 sps:$4 sm:$0xff]  }
 0x946   :  { %6540 = vmatpush1.bf16.msra.mxu1 %v11059_v16  ;;  %6581 = vmatpush1.bf16.msra.mxu0 %v11062_v36  ;;  %12489 = vst [vmem:[#allocation40_spill] sm:$0xff] %v11116_v46 }
 0x947   :  { %6541 = vmatprep.subr.bf16.mxu1 %v11065_v25  ;;  %6582 = vmatprep.subr.bf16.mxu0 %v11068_v53 }
 0x94a   :  { %6542 = vmatpush1.bf16.msra.mxu1 %v11071_v8  ;;  %6583 = vmatpush1.bf16.msra.mxu0 %v11074_v20 }
 0x94b   :  { %6543 = vmatprep.subr.bf16.mxu1 %v11077_v42  ;;  %6584 = vmatprep.subr.bf16.mxu0 %v11080_v34 }
 0x94e   :  { %6544 = vmatpush1.bf16.msra.mxu1 %v11083_v18  ;;  %6585 = vmatpush1.bf16.msra.mxu0 %v11086_v9 }
 0x94f   :  { %6545 = vmatprep.subr.bf16.mxu1 %v11089_v61  ;;  %6586 = vmatprep.subr.bf16.mxu0 %v11092_v28 }
 0x952   :  { %6546 = vmatpush1.bf16.msra.mxu1 %v11095_v29  ;;  %6587 = vmatpush1.bf16.msra.mxu0 %v11098_v62 }
 0x953   :  { %6547 = vmatprep.subr.bf16.mxu1 %v11101_v4  ;;  %6588 = vmatprep.subr.bf16.mxu0 %v11104_v21  ;;  %v11119_v4 = vld [vmem:[#allocation12 + $0x40] ss:$16 sps:$4 sm:$0xff]   ;;  %v11122_v21 = vld [vmem:[#allocation12 + $0x48] ss:$16 sps:$4 sm:$0xff]  }
 0x954   :  { %12490 = vst [vmem:[#allocation41_spill] sm:$0xff] %v11119_v4  ;;  %12491 = vst [vmem:[#allocation42_spill] sm:$0xff] %v11122_v21 }
 0x956   :  { %6548 = vmatpush1.bf16.msra.mxu1 %v11107_v60  ;;  %6589 = vmatpush1.bf16.msra.mxu0 %v11110_v17  ;;  %v11125_v60 = vld [vmem:[#allocation12 + $0x24] ss:$16 sps:$4 sm:$0xff]   ;;  %v11128_v17 = vld [vmem:[#allocation12 + $0x2c] ss:$16 sps:$4 sm:$0xff]  }
 0x957   :  { %6549 = vmatprep.subr.bf16.mxu1 %v11113_v38  ;;  %6590 = vmatprep.subr.bf16.mxu0 %v11116_v46  ;;  %12492 = vst [vmem:[#allocation43_spill] sm:$0xff] %v11125_v60  ;;  %12493 = vst [vmem:[#allocation44_spill] sm:$0xff] %v11128_v17  ;;  %v11131_v38 = vld [vmem:[#allocation12 + $0x20] ss:$16 sps:$4 sm:$0xff]   ;;  %v11134_v46 = vld [vmem:[#allocation12 + $0x28] ss:$16 sps:$4 sm:$0xff]  }
 0x958   :  { %12494 = vst [vmem:[#allocation45_spill] sm:$0xff] %v11131_v38  ;;  %12495 = vst [vmem:[#allocation46_spill] sm:$0xff] %v11134_v46 }
 0x95a   :  { %6550 = vmatpush1.bf16.msra.mxu1 %v11119_v4  ;;  %6591 = vmatpush1.bf16.msra.mxu0 %v11122_v21  ;;  %v11137_v4 = vld [vmem:[#allocation12 + $0x4] ss:$16 sps:$4 sm:$0xff]   ;;  %v11140_v21 = vld [vmem:[#allocation12 + $0xc] ss:$16 sps:$4 sm:$0xff]  }
 0x95b   :  { %6551 = vmatprep.subr.bf16.mxu1 %v11125_v60  ;;  %6592 = vmatprep.subr.bf16.mxu0 %v11128_v17  ;;  %12496 = vst [vmem:[#allocation47_spill] sm:$0xff] %v11137_v4  ;;  %12497 = vst [vmem:[#allocation48_spill] sm:$0xff] %v11140_v21  ;;  %v11143_v60 = vld [vmem:[#allocation12] ss:$16 sps:$4 sm:$0xff]   ;;  %v11146_v17 = vld [vmem:[#allocation12 + $0x8] ss:$16 sps:$4 sm:$0xff]  }
 0x95c   :  { %12498 = vst [vmem:[#allocation49_spill] sm:$0xff] %v11143_v60  ;;  %12499 = vst [vmem:[#allocation50_spill] sm:$0xff] %v11146_v17 }
 0x95e   :  { %6552 = vmatpush1.bf16.msra.mxu1 %v11131_v38  ;;  %6593 = vmatpush1.bf16.msra.mxu0 %v11134_v46  ;;  %v11149_v38 = vld [vmem:[#allocation12 + $0x1e4] ss:$16 sps:$4 sm:$0xff]   ;;  %v11152_v46 = vld [vmem:[#allocation12 + $0x1ec] ss:$16 sps:$4 sm:$0xff]  }
 0x95f   :  { %6553 = vmatprep.subr.bf16.mxu1 %v11137_v4  ;;  %6594 = vmatprep.subr.bf16.mxu0 %v11140_v21  ;;  %12500 = vst [vmem:[#allocation51_spill] sm:$0xff] %v11149_v38  ;;  %12501 = vst [vmem:[#allocation52_spill] sm:$0xff] %v11152_v46  ;;  %v11155_v4 = vld [vmem:[#allocation12 + $0x1e0] ss:$16 sps:$4 sm:$0xff]   ;;  %v11158_v21 = vld [vmem:[#allocation12 + $0x1e8] ss:$16 sps:$4 sm:$0xff]  }
 0x960   :  { %12502 = vst [vmem:[#allocation53_spill] sm:$0xff] %v11155_v4  ;;  %12503 = vst [vmem:[#allocation54_spill] sm:$0xff] %v11158_v21 }
 0x962   :  { %6554 = vmatpush1.bf16.msra.mxu1 %v11143_v60  ;;  %6595 = vmatpush1.bf16.msra.mxu0 %v11146_v17  ;;  %v11161_v60 = vld [vmem:[#allocation12 + $0x1c4] ss:$16 sps:$4 sm:$0xff]   ;;  %v11164_v17 = vld [vmem:[#allocation12 + $0x1cc] ss:$16 sps:$4 sm:$0xff]  }
 0x963   :  { %6555 = vmatprep.subr.bf16.mxu1 %v11149_v38  ;;  %6596 = vmatprep.subr.bf16.mxu0 %v11152_v46  ;;  %12504 = vst [vmem:[#allocation55_spill] sm:$0xff] %v11161_v60  ;;  %12505 = vst [vmem:[#allocation56_spill] sm:$0xff] %v11164_v17  ;;  %v11167_v38 = vld [vmem:[#allocation12 + $0x1c0] ss:$16 sps:$4 sm:$0xff]   ;;  %v11170_v46 = vld [vmem:[#allocation12 + $0x1c8] ss:$16 sps:$4 sm:$0xff]  }
 0x964   :  { %12506 = vst [vmem:[#allocation57_spill] sm:$0xff] %v11167_v38  ;;  %12507 = vst [vmem:[#allocation58_spill] sm:$0xff] %v11170_v46 }
 0x966   :  { %6556 = vmatpush2.bf16.msra.mxu1 %v11155_v4  ;;  %6597 = vmatpush2.bf16.msra.mxu0 %v11158_v21  ;;  %v11173_v4 = vld [vmem:[#allocation12 + $0x1a4] ss:$16 sps:$4 sm:$0xff]   ;;  %v11176_v21 = vld [vmem:[#allocation12 + $0x1ac] ss:$16 sps:$4 sm:$0xff]  }
 0x967   :  { %6557 = vmatprep.subr.bf16.mxu1 %v11161_v60  ;;  %6598 = vmatprep.subr.bf16.mxu0 %v11164_v17  ;;  %12508 = vst [vmem:[#allocation59_spill] sm:$0xff] %v11173_v4  ;;  %12509 = vst [vmem:[#allocation60_spill] sm:$0xff] %v11176_v21  ;;  %v11179_v60 = vld [vmem:[#allocation12 + $0x1a0] ss:$16 sps:$4 sm:$0xff]   ;;  %v11182_v17 = vld [vmem:[#allocation12 + $0x1a8] ss:$16 sps:$4 sm:$0xff]  }
 0x968   :  { %12510 = vst [vmem:[#allocation61_spill] sm:$0xff] %v11179_v60  ;;  %12511 = vst [vmem:[#allocation62_spill] sm:$0xff] %v11182_v17 }
 0x96a   :  { %6558 = vmatpush2.bf16.msra.mxu1 %v11167_v38  ;;  %6599 = vmatpush2.bf16.msra.mxu0 %v11170_v46  ;;  %v11185_v38 = vld [vmem:[#allocation12 + $0x184] ss:$16 sps:$4 sm:$0xff]   ;;  %v11188_v46 = vld [vmem:[#allocation12 + $0x18c] ss:$16 sps:$4 sm:$0xff]  }
 0x96b   :  { %6559 = vmatprep.subr.bf16.mxu1 %v11173_v4  ;;  %6600 = vmatprep.subr.bf16.mxu0 %v11176_v21  ;;  %12512 = vst [vmem:[#allocation63_spill] sm:$0xff] %v11185_v38  ;;  %12513 = vst [vmem:[#allocation64_spill] sm:$0xff] %v11188_v46  ;;  %v11191_v4 = vld [vmem:[#allocation12 + $0x180] ss:$16 sps:$4 sm:$0xff]   ;;  %v11194_v21 = vld [vmem:[#allocation12 + $0x188] ss:$16 sps:$4 sm:$0xff]  }
 0x96c   :  { %12514 = vst [vmem:[#allocation65_spill] sm:$0xff] %v11191_v4  ;;  %12515 = vst [vmem:[#allocation66_spill] sm:$0xff] %v11194_v21 }
 0x96e   :  { %6560 = vmatpush2.bf16.msra.mxu1 %v11179_v60  ;;  %6601 = vmatpush2.bf16.msra.mxu0 %v11182_v17  ;;  %v11197_v60 = vld [vmem:[#allocation12 + $0x164] ss:$16 sps:$4 sm:$0xff]   ;;  %v11200_v17 = vld [vmem:[#allocation12 + $0x16c] ss:$16 sps:$4 sm:$0xff]  }
 0x96f   :  { %6561 = vmatprep.subr.bf16.mxu1 %v11185_v38  ;;  %6602 = vmatprep.subr.bf16.mxu0 %v11188_v46  ;;  %12516 = vst [vmem:[#allocation67_spill] sm:$0xff] %v11197_v60  ;;  %12517 = vst [vmem:[#allocation68_spill] sm:$0xff] %v11200_v17  ;;  %v11203_v38 = vld [vmem:[#allocation12 + $0x160] ss:$16 sps:$4 sm:$0xff]   ;;  %v11206_v46 = vld [vmem:[#allocation12 + $0x168] ss:$16 sps:$4 sm:$0xff]  }
 0x970   :  { %12518 = vst [vmem:[#allocation69_spill] sm:$0xff] %v11203_v38  ;;  %12519 = vst [vmem:[#allocation70_spill] sm:$0xff] %v11206_v46 }
 0x972   :  { %6562 = vmatpush2.bf16.msra.mxu1 %v11191_v4  ;;  %6603 = vmatpush2.bf16.msra.mxu0 %v11194_v21  ;;  %v11209_v4 = vld [vmem:[#allocation12 + $0x144] ss:$16 sps:$4 sm:$0xff]   ;;  %v11212_v21 = vld [vmem:[#allocation12 + $0x14c] ss:$16 sps:$4 sm:$0xff]  }
 0x973   :  { %6563 = vmatprep.subr.bf16.mxu1 %v11197_v60  ;;  %6604 = vmatprep.subr.bf16.mxu0 %v11200_v17  ;;  %12520 = vst [vmem:[#allocation71_spill] sm:$0xff] %v11209_v4  ;;  %12521 = vst [vmem:[#allocation72_spill] sm:$0xff] %v11212_v21  ;;  %v11215_v60 = vld [vmem:[#allocation12 + $0x140] ss:$16 sps:$4 sm:$0xff]   ;;  %v11218_v17 = vld [vmem:[#allocation12 + $0x148] ss:$16 sps:$4 sm:$0xff]  }
 0x974   :  { %12522 = vst [vmem:[#allocation73_spill] sm:$0xff] %v11215_v60  ;;  %12523 = vst [vmem:[#allocation74_spill] sm:$0xff] %v11218_v17 }
 0x976   :  { %6564 = vmatpush2.bf16.msra.mxu1 %v11203_v38  ;;  %6605 = vmatpush2.bf16.msra.mxu0 %v11206_v46  ;;  %v11221_v38 = vld [vmem:[#allocation12 + $0x124] ss:$16 sps:$4 sm:$0xff]   ;;  %v11224_v46 = vld [vmem:[#allocation12 + $0x12c] ss:$16 sps:$4 sm:$0xff]  }
 0x977   :  { %6565 = vmatprep.subr.bf16.mxu1 %v11209_v4  ;;  %6606 = vmatprep.subr.bf16.mxu0 %v11212_v21  ;;  %12524 = vst [vmem:[#allocation75_spill] sm:$0xff] %v11221_v38  ;;  %12525 = vst [vmem:[#allocation76_spill] sm:$0xff] %v11224_v46  ;;  %v11227_v4 = vld [vmem:[#allocation12 + $0x120] ss:$16 sps:$4 sm:$0xff]   ;;  %v11230_v21 = vld [vmem:[#allocation12 + $0x128] ss:$16 sps:$4 sm:$0xff]  }
 0x978   :  { %12526 = vst [vmem:[#allocation77_spill] sm:$0xff] %v11227_v4  ;;  %12527 = vst [vmem:[#allocation78_spill] sm:$0xff] %v11230_v21 }
 0x97a   :  { %6566 = vmatpush2.bf16.msra.mxu1 %v11215_v60  ;;  %6607 = vmatpush2.bf16.msra.mxu0 %v11218_v17  ;;  %v11233_v60 = vld [vmem:[#allocation12 + $0x104] ss:$16 sps:$4 sm:$0xff]   ;;  %v11236_v17 = vld [vmem:[#allocation12 + $0x10c] ss:$16 sps:$4 sm:$0xff]  }
 0x97b   :  { %6567 = vmatprep.subr.bf16.mxu1 %v11221_v38  ;;  %6608 = vmatprep.subr.bf16.mxu0 %v11224_v46  ;;  %12528 = vst [vmem:[#allocation79_spill] sm:$0xff] %v11233_v60  ;;  %12529 = vst [vmem:[#allocation80_spill] sm:$0xff] %v11236_v17  ;;  %v11239_v38 = vld [vmem:[#allocation12 + $0x100] ss:$16 sps:$4 sm:$0xff]   ;;  %v11242_v46 = vld [vmem:[#allocation12 + $0x108] ss:$16 sps:$4 sm:$0xff]  }
 0x97c   :  { %12530 = vst [vmem:[#allocation81_spill] sm:$0xff] %v11239_v38  ;;  %12531 = vst [vmem:[#allocation82_spill] sm:$0xff] %v11242_v46 }
 0x97e   :  { %6568 = vmatpush2.bf16.msra.mxu1 %v11227_v4  ;;  %6609 = vmatpush2.bf16.msra.mxu0 %v11230_v21 }
 0x97f   :  { %6569 = vmatprep.subr.bf16.mxu1 %v11233_v60  ;;  %6610 = vmatprep.subr.bf16.mxu0 %v11236_v17 }
 0x982   :  { %6570 = vmatpush2.bf16.msra.mxu1 %v11239_v38  ;;  %6611 = vmatpush2.bf16.msra.mxu0 %v11242_v46 }
 0x983   :  { %6647 = vmatprep.subr.bf16.mxu1 %v10932_v22  ;;  %6688 = vmatprep.subr.bf16.mxu0 %v10935_v44 }
 0x9e5   :  { %v6338_v21 = vpop.f32.mrf.mxu1  ;;  %v6379_v4 = vpop.f32.mrf.mxu0 }
 0x9e6   :  { %v6339_v60 = vadd.f32 %v6338_v21, %v12468_v48  ;;  %v6380_v22 = vadd.f32 %v6379_v4, %v12470_v5 }
 0x9e7   :  { %v6340_v62 = vpop.f32.mrf.mxu1  ;;  %v6381_v29 = vpop.f32.mrf.mxu0 }
 0x9e8   :  { %v8269_v28 = vmul.f32 -1.442695, %v6339_v60  ;;  %v6341_v17 = vadd.f32 %v6340_v62, %v12469_v45  ;;  %v8271_v46 = vmul.f32 -1.442695, %v6380_v22  ;;  %v6382_v42 = vadd.f32 %v6381_v29, %v12471_v7 }
 0x9e9   :  { %v6342_v61 = vpop.f32.mrf.mxu1  ;;  %v6383_v9 = vpop.f32.mrf.mxu0 }
 0x9ea   :  { %9330 = vpow2.f32 %v8269_v28  ;;  %v8270_v38 = vmul.f32 -1.442695, %v6341_v17 }
 0x9eb   :  { %v6343_v18 = vpop.f32.mrf.mxu1  ;;  %v6384_v34 = vpop.f32.mrf.mxu0 }
 0x9ec   :  { %9332 = vpow2.f32 %v8270_v38 }
 0x9ed   :  { %9334 = vpow2.f32 %v8271_v46 }
 0x9f7   :  { %v9331_v44 = vpop.eup %9330 }
 0x9f8   :  { %v6395_v20 = vadd.f32 1.0, %v9331_v44 }
 0x9f9   :  { %v9333_v21 = vpop.eup %9332 }
 0x9fa   :  { %9336 = vrcp.f32 %v6395_v20  ;;  %v6396_v60 = vadd.f32 1.0, %v9333_v21  ;;  %v9335_v28 = vpop.eup %9334 }
 0x9fb   :  { %9338 = vtanh.f32 %v6382_v42  ;;  %v6397_v5 = vadd.f32 1.0, %v9335_v28 }
 0x9fc   :  { %9340 = vrcp.f32 %v6396_v60 }
 0x9fd   :  { %9342 = vrcp.f32 %v6397_v5 }
 0xa05   :  { %v6446_v61 = vpop.f32.mrf.mxu1  ;;  %v6487_v9 = vpop.f32.mrf.mxu0 }
 0xa07   :  { %v9337_v62 = vpop.eup %9336  ;;  %v6448_v18 = vpop.f32.mrf.mxu1 }
 0xa08   :  { %v6489_v34 = vpop.f32.mrf.mxu0  ;;  %v9339_v17 = vpop.eup %9338  ;;  %v6498_v38 = vcombine.low %v6446_v61, %v6448_v18  ;;  %v12532_v61 = vcombine.high %v12472_v33, %v12473_v63 }
 0xa09   :  { %v6499_v4 = vcombine.low %v6487_v9, %v6489_v34  ;;  %v9341_v22 = vpop.eup %9340  ;;  %v6450_v45 = vpop.f32.mrf.mxu1  ;;  %v6406_v46 = vmul.f32 %v9339_v17, %v9337_v62 }
 0xa0a   :  { %v6491_v29 = vpop.f32.mrf.mxu0  ;;  %v6405_v44 = vmul.f32 %v9341_v22, %v10945_v35  ;;  %v6506_v20 = vrot.slane %v6498_v38, %v10652_v1  ;;  %v9343_v35 = vpop.eup %9342 }
 0xa0b   :  { %v6513_v42 = vrot.slane %v6499_v4, %v10652_v1  ;;  %v6451_v21 = vpop.f32.mrf.mxu1 }
 0xa0c   :  { %v6492_v60 = vpop.f32.mrf.mxu0  ;;  %v11254_v7 = vadd.f32 %v6406_v46, %v6405_v44  ;;  %v12535_v21 = vld [vmem:[#allocation21_spill] sm:$0xff] }
 0xa0d   :  { %v6514_v48 = vcombine.low %v6506_v20, %v6513_v42  ;;  %v12534_v42 = vld [vmem:[#allocation29_spill] sm:$0xff]  ;;  %v12536_v60 = vld [vmem:[#allocation20_spill] sm:$0xff] }
 0xa0e   :  { %9344 = vtanh.f32 %v11254_v7 }
 0xa0f   :  { %v6516_v9 = vadd.f32 %v6514_v48, %v12532_v61  ;;  %v12537_v61 = vld [vmem:[#allocation30_spill] sm:$0xff] }
 0xa11   :  { %v8272_v45 = vmul.f32 -1.442695, %v6516_v9  ;;  %v6524_v38 = vrot.slane %v6516_v9, 6  ;;  %v12538_v9 = vld [vmem:[#allocation31_spill] sm:$0xff] }
 0xa13   :  { %9346 = vpow2.f32 %v8272_v45  ;;  %v12539_v45 = vld [vmem:[#allocation32_spill] sm:$0xff] }
 0xa1b   :  { %v9345_v28 = vpop.eup %9344 }
 0xa1c   :  { %v6409_v62 = vmul.f32 %v9345_v28, %v9343_v35  ;;  %v12540_v35 = vld [vmem:[#allocation33_spill] sm:$0xff]  ;;  %v12541_v28 = vld [vmem:[#allocation34_spill] sm:$0xff] }
 0xa1e   :  { %v6538_v18 = vpack.c.bf16 %v6409_v62, %v6409_v62  ;;  %v12542_v62 = vld [vmem:[#allocation35_spill] sm:$0xff] }
 0xa20   :  { %v9347_v34 = vpop.eup %9346  ;;  %6571 = vmatprep.mubr.bf16.mxu1 %v6538_v18  ;;  %6612 = vmatprep.mubr.bf16.mxu0 %v6538_v18  ;;  %v12543_v18 = vld [vmem:[#allocation36_spill] sm:$0xff] }
 0xa21   :  { %v6520_v17 = vadd.f32 1.0, %v9347_v34  ;;  %v12544_v34 = vld [vmem:[#allocation37_spill] sm:$0xff] }
 0xa23   :  { %9348 = vrcp.f32 %v6520_v17  ;;  %v12545_v17 = vld [vmem:[#allocation38_spill] sm:$0xff] }
 0xa24   :  { %9350 = vtanh.f32 %v6524_v38  ;;  %v12546_v38 = vld [vmem:[#allocation39_spill] sm:$0xff] }
 0xa30   :  { %v9349_v5 = vpop.eup %9348 }
 0xa31   :  { %v6528_v4 = vrot.slane %v9349_v5, 2  ;;  %v9351_v22 = vpop.eup %9350  ;;  %v6534_v29 = vrot.slane %v9349_v5, 4 }
 0xa32   :  { %v6531_v33 = vmul.f32 %v9351_v22, %v9349_v5  ;;  %v12547_v5 = vld [vmem:[#allocation40_spill] sm:$0xff]  ;;  %v12549_v22 = vld [vmem:[#allocation42_spill] sm:$0xff] }
 0xa33   :  { %v6530_v48 = vmul.f32 %v6528_v4, %v10952_v39  ;;  %v12533_v39 = vld [vmem:[#allocation28_spill] sm:$0xff]  ;;  %v12548_v4 = vld [vmem:[#allocation41_spill] sm:$0xff] }
 0xa35   :  { %v11261_v63 = vadd.f32 %v6531_v33, %v6530_v48  ;;  %v12550_v33 = vld [vmem:[#allocation43_spill] sm:$0xff]  ;;  %v12551_v48 = vld [vmem:[#allocation44_spill] sm:$0xff] }
 0xa37   :  { %9352 = vtanh.f32 %v11261_v63 }
 0xa44   :  { %v9353_v44 = vpop.eup %9352 }
 0xa45   :  { %v6536_v46 = vmul.f32 %v9353_v44, %v6534_v29  ;;  %v12552_v29 = vld [vmem:[#allocation45_spill] sm:$0xff]  ;;  %v12553_v44 = vld [vmem:[#allocation46_spill] sm:$0xff] }
 0xa47   :  { %v6537_v20 = vpack.c.bf16 %v6536_v46, %v6536_v46  ;;  %v12554_v46 = vld [vmem:[#allocation47_spill] sm:$0xff] }
 0xa49   :  { %6572 = vmatmul.mubr.bf16.vlgmr.msra.gmra.mxu1 %v6537_v20  ;;  %6613 = vmatmul.mubr.bf16.vlgmr.msra.gmra.mxu0 %v6537_v20 }
 0xa4a   :  { %6648 = vmatpush1.bf16.msra.mxu1 %v10959_v49  ;;  %6689 = vmatpush1.bf16.msra.mxu0 %v10962_v57 }
 0xa4b   :  { %6649 = vmatprep.subr.bf16.mxu1 %v10965_v30  ;;  %6690 = vmatprep.subr.bf16.mxu0 %v10968_v12 }
 0xa4c   :  { %6679 = vmatprep.mubr.bf16.mxu1 %v12339_v50  ;;  %6720 = vmatprep.mubr.bf16.mxu0 %v12339_v50 }
 0xa4e   :  { %6650 = vmatpush1.bf16.msra.mxu1 %v10973_v56  ;;  %6691 = vmatpush1.bf16.msra.mxu0 %v10976_v37 }
 0xa4f   :  { %6651 = vmatprep.subr.bf16.mxu1 %v10979_v0  ;;  %6692 = vmatprep.subr.bf16.mxu0 %v10982_v41 }
 0xa52   :  { %6652 = vmatpush1.bf16.msra.mxu1 %v10985_v2  ;;  %6693 = vmatpush1.bf16.msra.mxu0 %v10988_v10 }
 0xa53   :  { %6653 = vmatprep.subr.bf16.mxu1 %v10991_v11  ;;  %6694 = vmatprep.subr.bf16.mxu0 %v10994_v32 }
 0xa56   :  { %6654 = vmatpush1.bf16.msra.mxu1 %v10997_v47  ;;  %6695 = vmatpush1.bf16.msra.mxu0 %v11000_v14 }
 0xa57   :  { %6655 = vmatprep.subr.bf16.mxu1 %v11003_v54  ;;  %6696 = vmatprep.subr.bf16.mxu0 %v11006_v26 }
 0xa5a   :  { %6656 = vmatpush1.bf16.msra.mxu1 %v11009_v15  ;;  %6697 = vmatpush1.bf16.msra.mxu0 %v11012_v19 }
 0xa5b   :  { %6657 = vmatprep.subr.bf16.mxu1 %v11015_v6  ;;  %6698 = vmatprep.subr.bf16.mxu0 %v11018_v52 }
 0xa5e   :  { %6658 = vmatpush1.bf16.msra.mxu1 %v11021_v13  ;;  %6699 = vmatpush1.bf16.msra.mxu0 %v11024_v23 }
 0xa5f   :  { %6659 = vmatprep.subr.bf16.mxu1 %v11027_v40  ;;  %6700 = vmatprep.subr.bf16.mxu0 %v11030_v51 }
 0xa62   :  { %6660 = vmatpush1.bf16.msra.mxu1 %v11033_v3  ;;  %6701 = vmatpush1.bf16.msra.mxu0 %v11036_v31 }
 0xa63   :  { %6661 = vmatprep.subr.bf16.mxu1 %v11039_v55  ;;  %6702 = vmatprep.subr.bf16.mxu0 %v11042_v59 }
 0xa66   :  { %6662 = vmatpush1.bf16.msra.mxu1 %v11045_v58  ;;  %6703 = vmatpush1.bf16.msra.mxu0 %v11048_v43 }
 0xa67   :  { %6774 = vmatprep.subr.bf16.mxu1 %v11051_v24  ;;  %6815 = vmatprep.subr.bf16.mxu0 %v11054_v27 }
 0xa69   :  { %6680 = vmatmul.mubr.bf16.vlgmr.msra.gmra.mxu1 %v6537_v20  ;;  %6721 = vmatmul.mubr.bf16.vlgmr.msra.gmra.mxu0 %v6537_v20  ;;  %v12555_v20 = vld [vmem:[#allocation48_spill] sm:$0xff] }
 0xa6a   :  { %6775 = vmatpush1.bf16.msra.mxu1 %v11059_v16  ;;  %6816 = vmatpush1.bf16.msra.mxu0 %v11062_v36 }
 0xa6b   :  { %6776 = vmatprep.subr.bf16.mxu1 %v11065_v25  ;;  %6817 = vmatprep.subr.bf16.mxu0 %v11068_v53 }
 0xa6e   :  { %6777 = vmatpush1.bf16.msra.mxu1 %v11071_v8  ;;  %6818 = vmatpush1.bf16.msra.mxu0 %v12533_v39 }
 0xa6f   :  { %6778 = vmatprep.subr.bf16.mxu1 %v12534_v42  ;;  %6819 = vmatprep.subr.bf16.mxu0 %v12535_v21  ;;  %v12596_v42 = vld [vmem:[#allocation87_spill] sm:$0xff] }
 0xa72   :  { %6779 = vmatpush1.bf16.msra.mxu1 %v12536_v60  ;;  %6820 = vmatpush1.bf16.msra.mxu0 %v12537_v61  ;;  %v12595_v61 = vld [vmem:[#allocation25_spill] sm:$0xff] }
 0xa73   :  { %6780 = vmatprep.subr.bf16.mxu1 %v12538_v9  ;;  %6821 = vmatprep.subr.bf16.mxu0 %v12539_v45 }
 0xa76   :  { %6781 = vmatpush1.bf16.msra.mxu1 %v12540_v35  ;;  %6822 = vmatpush1.bf16.msra.mxu0 %v12541_v28 }
 0xa77   :  { %6782 = vmatprep.subr.bf16.mxu1 %v12542_v62  ;;  %6823 = vmatprep.subr.bf16.mxu0 %v12543_v18 }
 0xa7a   :  { %6783 = vmatpush1.bf16.msra.mxu1 %v12544_v34  ;;  %6824 = vmatpush1.bf16.msra.mxu0 %v12545_v17  ;;  %v12556_v17 = vld [vmem:[#allocation49_spill] sm:$0xff]  ;;  %v12592_v34 = vld [vmem:[#allocation22_spill] sm:$0xff] }
 0xa7b   :  { %6784 = vmatprep.subr.bf16.mxu1 %v12546_v38  ;;  %6825 = vmatprep.subr.bf16.mxu0 %v12547_v5  ;;  %v12557_v38 = vld [vmem:[#allocation50_spill] sm:$0xff]  ;;  %v12558_v5 = vld [vmem:[#allocation51_spill] sm:$0xff] }
 0xa7e   :  { %6785 = vmatpush1.bf16.msra.mxu1 %v12548_v4  ;;  %6826 = vmatpush1.bf16.msra.mxu0 %v12549_v22  ;;  %v12559_v4 = vld [vmem:[#allocation52_spill] sm:$0xff]  ;;  %v12560_v22 = vld [vmem:[#allocation53_spill] sm:$0xff] }
 0xa7f   :  { %6786 = vmatprep.subr.bf16.mxu1 %v12550_v33  ;;  %6827 = vmatprep.subr.bf16.mxu0 %v12551_v48  ;;  %v12561_v33 = vld [vmem:[#allocation54_spill] sm:$0xff]  ;;  %v12562_v48 = vld [vmem:[#allocation55_spill] sm:$0xff] }
 0xa82   :  { %6787 = vmatpush1.bf16.msra.mxu1 %v12552_v29  ;;  %6828 = vmatpush1.bf16.msra.mxu0 %v12553_v44  ;;  %v12563_v29 = vld [vmem:[#allocation56_spill] sm:$0xff]  ;;  %v12564_v44 = vld [vmem:[#allocation57_spill] sm:$0xff] }
 0xa83   :  { %6788 = vmatprep.subr.bf16.mxu1 %v12554_v46  ;;  %6829 = vmatprep.subr.bf16.mxu0 %v12555_v20  ;;  %v12565_v46 = vld [vmem:[#allocation58_spill] sm:$0xff]  ;;  %v12566_v20 = vld [vmem:[#allocation59_spill] sm:$0xff] }
 0xa86   :  { %6789 = vmatpush1.bf16.msra.mxu1 %v12556_v17  ;;  %6830 = vmatpush1.bf16.msra.mxu0 %v12557_v38  ;;  %v12567_v17 = vld [vmem:[#allocation60_spill] sm:$0xff]  ;;  %v12568_v38 = vld [vmem:[#allocation61_spill] sm:$0xff] }
 0xa87   :  { %6790 = vmatprep.subr.bf16.mxu1 %v12558_v5  ;;  %6831 = vmatprep.subr.bf16.mxu0 %v12559_v4  ;;  %v12569_v5 = vld [vmem:[#allocation62_spill] sm:$0xff]  ;;  %v12570_v4 = vld [vmem:[#allocation63_spill] sm:$0xff] }
 0xa8a   :  { %6791 = vmatpush2.bf16.msra.mxu1 %v12560_v22  ;;  %6832 = vmatpush2.bf16.msra.mxu0 %v12561_v33  ;;  %v12571_v22 = vld [vmem:[#allocation64_spill] sm:$0xff]  ;;  %v12572_v33 = vld [vmem:[#allocation65_spill] sm:$0xff] }
 0xa8b   :  { %6792 = vmatprep.subr.bf16.mxu1 %v12562_v48  ;;  %6833 = vmatprep.subr.bf16.mxu0 %v12563_v29  ;;  %v12573_v48 = vld [vmem:[#allocation66_spill] sm:$0xff]  ;;  %v12574_v29 = vld [vmem:[#allocation67_spill] sm:$0xff] }
 0xa8e   :  { %6793 = vmatpush2.bf16.msra.mxu1 %v12564_v44  ;;  %6834 = vmatpush2.bf16.msra.mxu0 %v12565_v46  ;;  %v12575_v44 = vld [vmem:[#allocation68_spill] sm:$0xff]  ;;  %v12576_v46 = vld [vmem:[#allocation69_spill] sm:$0xff] }
 0xa8f   :  { %6794 = vmatprep.subr.bf16.mxu1 %v12566_v20  ;;  %6835 = vmatprep.subr.bf16.mxu0 %v12567_v17  ;;  %v12577_v20 = vld [vmem:[#allocation70_spill] sm:$0xff]  ;;  %v12578_v17 = vld [vmem:[#allocation71_spill] sm:$0xff] }
 0xa92   :  { %6795 = vmatpush2.bf16.msra.mxu1 %v12568_v38  ;;  %6836 = vmatpush2.bf16.msra.mxu0 %v12569_v5  ;;  %v12579_v38 = vld [vmem:[#allocation72_spill] sm:$0xff]  ;;  %v12580_v5 = vld [vmem:[#allocation73_spill] sm:$0xff] }
 0xa93   :  { %6796 = vmatprep.subr.bf16.mxu1 %v12570_v4  ;;  %6837 = vmatprep.subr.bf16.mxu0 %v12571_v22  ;;  %v12581_v4 = vld [vmem:[#allocation74_spill] sm:$0xff]  ;;  %v12582_v22 = vld [vmem:[#allocation75_spill] sm:$0xff] }
 0xa96   :  { %6797 = vmatpush2.bf16.msra.mxu1 %v12572_v33  ;;  %6838 = vmatpush2.bf16.msra.mxu0 %v12573_v48  ;;  %v12583_v33 = vld [vmem:[#allocation76_spill] sm:$0xff]  ;;  %v12584_v48 = vld [vmem:[#allocation77_spill] sm:$0xff] }
 0xa97   :  { %6798 = vmatprep.subr.bf16.mxu1 %v12574_v29  ;;  %6839 = vmatprep.subr.bf16.mxu0 %v12575_v44  ;;  %v12585_v29 = vld [vmem:[#allocation78_spill] sm:$0xff]  ;;  %v12586_v44 = vld [vmem:[#allocation79_spill] sm:$0xff] }
 0xa9a   :  { %6799 = vmatpush2.bf16.msra.mxu1 %v12576_v46  ;;  %6840 = vmatpush2.bf16.msra.mxu0 %v12577_v20  ;;  %v12587_v46 = vld [vmem:[#allocation80_spill] sm:$0xff]  ;;  %v12588_v20 = vld [vmem:[#allocation81_spill] sm:$0xff] }
 0xa9b   :  { %6800 = vmatprep.subr.bf16.mxu1 %v12578_v17  ;;  %6841 = vmatprep.subr.bf16.mxu0 %v12579_v38  ;;  %v12589_v17 = vld [vmem:[#allocation82_spill] sm:$0xff] }
 0xa9c   :  { %v12590_v38 = vld [vmem:[#allocation26_spill] sm:$0xff] }
 0xa9e   :  { %6801 = vmatpush2.bf16.msra.mxu1 %v12580_v5  ;;  %6842 = vmatpush2.bf16.msra.mxu0 %v12581_v4  ;;  %v12591_v5 = vld [vmem:[#allocation27_spill] sm:$0xff] }
 0xa9f   :  { %6802 = vmatprep.subr.bf16.mxu1 %v12582_v22  ;;  %6843 = vmatprep.subr.bf16.mxu0 %v12583_v33 }
 0xaa2   :  { %6803 = vmatpush2.bf16.msra.mxu1 %v12584_v48  ;;  %6844 = vmatpush2.bf16.msra.mxu0 %v12585_v29  ;;  %v12593_v29 = vld [vmem:[#allocation23_spill] sm:$0xff] }
 0xaa3   :  { %6804 = vmatprep.subr.bf16.mxu1 %v12586_v44  ;;  %6845 = vmatprep.subr.bf16.mxu0 %v12587_v46 }
 0xaa6   :  { %6805 = vmatpush2.bf16.msra.mxu1 %v12588_v20  ;;  %6846 = vmatpush2.bf16.msra.mxu0 %v12589_v17  ;;  %v12594_v17 = vld [vmem:[#allocation24_spill] sm:$0xff] }
 0xaa7   :  { %6882 = vmatprep.subr.bf16.mxu1 %v12590_v38  ;;  %6923 = vmatprep.subr.bf16.mxu0 %v12591_v5 }
 0xb09   :  { %v6573_v4 = vpop.f32.mrf.mxu1  ;;  %v6614_v22 = vpop.f32.mrf.mxu0 }
 0xb0a   :  { %v6574_v33 = vadd.f32 %v6573_v4, %v12592_v34  ;;  %v6615_v38 = vadd.f32 %v6614_v22, %v12594_v17 }
 0xb0b   :  { %v6575_v18 = vpop.f32.mrf.mxu1  ;;  %v6616_v48 = vpop.f32.mrf.mxu0 }
 0xb0c   :  { %v8273_v62 = vmul.f32 -1.442695, %v6574_v33  ;;  %v6576_v28 = vadd.f32 %v6575_v18, %v12593_v29  ;;  %v8275_v9 = vmul.f32 -1.442695, %v6615_v38  ;;  %v6617_v60 = vadd.f32 %v6616_v48, %v12595_v61 }
 0xb0d   :  { %v6577_v44 = vpop.f32.mrf.mxu1  ;;  %v6618_v35 = vpop.f32.mrf.mxu0 }
 0xb0e   :  { %9354 = vpow2.f32 %v8273_v62  ;;  %v8274_v46 = vmul.f32 -1.442695, %v6576_v28 }
 0xb0f   :  { %v6578_v20 = vpop.f32.mrf.mxu1  ;;  %v6619_v45 = vpop.f32.mrf.mxu0 }
 0xb10   :  { %9356 = vpow2.f32 %v8274_v46 }
 0xb11   :  { %9358 = vpow2.f32 %v8275_v9 }
 0xb1b   :  { %v9355_v5 = vpop.eup %9354 }
 0xb1c   :  { %v6630_v21 = vadd.f32 1.0, %v9355_v5 }
 0xb1d   :  { %v9357_v4 = vpop.eup %9356 }
 0xb1e   :  { %9360 = vrcp.f32 %v6630_v21  ;;  %v6631_v33 = vadd.f32 1.0, %v9357_v4  ;;  %v9359_v62 = vpop.eup %9358 }
 0xb1f   :  { %9362 = vtanh.f32 %v6617_v60  ;;  %v6632_v17 = vadd.f32 1.0, %v9359_v62 }
 0xb20   :  { %9364 = vrcp.f32 %v6631_v33 }
 0xb21   :  { %9366 = vrcp.f32 %v6632_v17 }
 0xb29   :  { %v6681_v18 = vpop.f32.mrf.mxu1  ;;  %v6722_v35 = vpop.f32.mrf.mxu0 }
 0xb2b   :  { %v9361_v28 = vpop.eup %9360  ;;  %v6683_v44 = vpop.f32.mrf.mxu1 }
 0xb2c   :  { %v6724_v45 = vpop.f32.mrf.mxu0  ;;  %v9363_v46 = vpop.eup %9362  ;;  %v6733_v20 = vcombine.low %v6681_v18, %v6683_v44  ;;  %v12597_v18 = vld [vmem:[#allocation90_spill] sm:$0xff] }
 0xb2d   :  { %v6734_v22 = vcombine.low %v6722_v35, %v6724_v45  ;;  %v9365_v38 = vpop.eup %9364  ;;  %v6685_v29 = vpop.f32.mrf.mxu1  ;;  %v6641_v9 = vmul.f32 %v9363_v46, %v9361_v28  ;;  %v12598_v35 = vcombine.low %v12596_v42, %v12597_v18 }
 0xb2e   :  { %v6726_v48 = vpop.f32.mrf.mxu0  ;;  %v6640_v5 = vmul.f32 %v9365_v38, %v11254_v7  ;;  %v6741_v21 = vrot.slane %v6733_v20, %v10652_v1  ;;  %v9367_v7 = vpop.eup %9366 }
 0xb2f   :  { %v6748_v60 = vrot.slane %v6734_v22, %v10652_v1  ;;  %v6686_v4 = vpop.f32.mrf.mxu1 }
 0xb30   :  { %v6727_v33 = vpop.f32.mrf.mxu0  ;;  %v11369_v61 = vadd.f32 %v6641_v9, %v6640_v5 }
 0xb31   :  { %v6749_v34 = vcombine.low %v6741_v21, %v6748_v60 }
 0xb32   :  { %9368 = vtanh.f32 %v11369_v61 }
 0xb33   :  { %v6751_v44 = vadd.f32 %v6749_v34, %v12598_v35  ;;  %v12638_v35 = vld [vmem:[#allocation66_spill] sm:$0xff] }
 0xb35   :  { %v8276_v29 = vmul.f32 -1.442695, %v6751_v44  ;;  %v6759_v22 = vrot.slane %v6751_v44, 6  ;;  %v12639_v44 = vld [vmem:[#allocation67_spill] sm:$0xff] }
 0xb37   :  { %9370 = vpow2.f32 %v8276_v29  ;;  %v12640_v29 = vld [vmem:[#allocation68_spill] sm:$0xff] }
 0xb3f   :  { %v9369_v62 = vpop.eup %9368 }
 0xb40   :  { %v6644_v28 = vmul.f32 %v9369_v62, %v9367_v7  ;;  %v12641_v7 = vld [vmem:[#allocation69_spill] sm:$0xff]  ;;  %v12642_v62 = vld [vmem:[#allocation70_spill] sm:$0xff] }
 0xb42   :  { %v6773_v45 = vpack.c.bf16 %v6644_v28, %v6644_v28  ;;  %v12643_v28 = vld [vmem:[#allocation71_spill] sm:$0xff] }
 0xb44   :  { %v9371_v46 = vpop.eup %9370  ;;  %6806 = vmatprep.mubr.bf16.mxu1 %v6773_v45  ;;  %6847 = vmatprep.mubr.bf16.mxu0 %v6773_v45  ;;  %v12644_v45 = vld [vmem:[#allocation72_spill] sm:$0xff] }
 0xb45   :  { %v6755_v20 = vadd.f32 1.0, %v9371_v46  ;;  %v12645_v46 = vld [vmem:[#allocation73_spill] sm:$0xff] }
 0xb47   :  { %9372 = vrcp.f32 %v6755_v20  ;;  %v12646_v20 = vld [vmem:[#allocation74_spill] sm:$0xff] }
 0xb48   :  { %9374 = vtanh.f32 %v6759_v22  ;;  %v12647_v22 = vld [vmem:[#allocation75_spill] sm:$0xff] }
 0xb54   :  { %v9373_v17 = vpop.eup %9372 }
 0xb55   :  { %v6763_v38 = vrot.slane %v9373_v17, 2  ;;  %v9375_v48 = vpop.eup %9374  ;;  %v6769_v21 = vrot.slane %v9373_v17, 4 }
 0xb56   :  { %v6766_v5 = vmul.f32 %v9375_v48, %v9373_v17  ;;  %v12648_v17 = vld [vmem:[#allocation76_spill] sm:$0xff]  ;;  %v12650_v48 = vld [vmem:[#allocation78_spill] sm:$0xff] }
 0xb57   :  { %v6765_v34 = vmul.f32 %v6763_v38, %v11261_v63  ;;  %v12636_v63 = vld [vmem:[#allocation64_spill] sm:$0xff]  ;;  %v12649_v38 = vld [vmem:[#allocation77_spill] sm:$0xff] }
 0xb59   :  { %v11376_v9 = vadd.f32 %v6766_v5, %v6765_v34  ;;  %v12651_v5 = vld [vmem:[#allocation79_spill] sm:$0xff]  ;;  %v12652_v34 = vld [vmem:[#allocation80_spill] sm:$0xff] }
 0xb5b   :  { %9376 = vtanh.f32 %v11376_v9 }
 0xb68   :  { %v9377_v60 = vpop.eup %9376 }
 0xb69   :  { %v6771_v4 = vmul.f32 %v9377_v60, %v6769_v21  ;;  %v12653_v21 = vld [vmem:[#allocation81_spill] sm:$0xff]  ;;  %v12654_v60 = vld [vmem:[#allocation82_spill] sm:$0xff] }
 0xb6b   :  { %v6772_v33 = vpack.c.bf16 %v6771_v4, %v6771_v4  ;;  %v11475_v4 = vld [vmem:[#allocation11 + $0xe4] ss:$16 sps:$4 sm:$0xff]  }
 0xb6d   :  { %6807 = vmatmul.mubr.bf16.vlgmr.msra.gmra.mxu1 %v6772_v33  ;;  %6848 = vmatmul.mubr.bf16.vlgmr.msra.gmra.mxu0 %v6772_v33 }
 0xb6e   :  { %6883 = vmatpush1.bf16.msra.mxu1 %v10959_v49  ;;  %6924 = vmatpush1.bf16.msra.mxu0 %v10962_v57  ;;  %v12599_v49 = vld [vmem:[#allocation29_spill] sm:$0xff] }
 0xb6f   :  { %6884 = vmatprep.subr.bf16.mxu1 %v10965_v30  ;;  %6925 = vmatprep.subr.bf16.mxu0 %v10968_v12  ;;  %v12600_v57 = vld [vmem:[#allocation21_spill] sm:$0xff]  ;;  %v12601_v30 = vld [vmem:[#allocation20_spill] sm:$0xff]  ;;  %v12602_v12 = vld [vmem:[#allocation30_spill] sm:$0xff] }
 0xb70   :  { %6914 = vmatprep.mubr.bf16.mxu1 %v12339_v50  ;;  %6955 = vmatprep.mubr.bf16.mxu0 %v12339_v50 }
 0xb72   :  { %6885 = vmatpush1.bf16.msra.mxu1 %v10973_v56  ;;  %6926 = vmatpush1.bf16.msra.mxu0 %v10976_v37  ;;  %v12603_v56 = vld [vmem:[#allocation31_spill] sm:$0xff]  ;;  %v12604_v37 = vld [vmem:[#allocation32_spill] sm:$0xff] }
 0xb73   :  { %6886 = vmatprep.subr.bf16.mxu1 %v10979_v0  ;;  %6927 = vmatprep.subr.bf16.mxu0 %v10982_v41  ;;  %v12605_v0 = vld [vmem:[#allocation33_spill] sm:$0xff]  ;;  %v12606_v41 = vld [vmem:[#allocation34_spill] sm:$0xff] }
 0xb76   :  { %6887 = vmatpush1.bf16.msra.mxu1 %v10985_v2  ;;  %6928 = vmatpush1.bf16.msra.mxu0 %v10988_v10  ;;  %v12607_v2 = vld [vmem:[#allocation35_spill] sm:$0xff]  ;;  %v12608_v10 = vld [vmem:[#allocation36_spill] sm:$0xff] }
 0xb77   :  { %6888 = vmatprep.subr.bf16.mxu1 %v10991_v11  ;;  %6929 = vmatprep.subr.bf16.mxu0 %v10994_v32  ;;  %v12609_v11 = vld [vmem:[#allocation37_spill] sm:$0xff]  ;;  %v12610_v32 = vld [vmem:[#allocation38_spill] sm:$0xff] }
 0xb7a   :  { %6889 = vmatpush1.bf16.msra.mxu1 %v10997_v47  ;;  %6930 = vmatpush1.bf16.msra.mxu0 %v11000_v14  ;;  %v12611_v47 = vld [vmem:[#allocation39_spill] sm:$0xff]  ;;  %v12612_v14 = vld [vmem:[#allocation40_spill] sm:$0xff] }
 0xb7b   :  { %6890 = vmatprep.subr.bf16.mxu1 %v11003_v54  ;;  %6931 = vmatprep.subr.bf16.mxu0 %v11006_v26  ;;  %v12613_v54 = vld [vmem:[#allocation41_spill] sm:$0xff]  ;;  %v12614_v26 = vld [vmem:[#allocation42_spill] sm:$0xff] }
 0xb7e   :  { %6891 = vmatpush1.bf16.msra.mxu1 %v11009_v15  ;;  %6932 = vmatpush1.bf16.msra.mxu0 %v11012_v19  ;;  %v12615_v15 = vld [vmem:[#allocation43_spill] sm:$0xff]  ;;  %v12616_v19 = vld [vmem:[#allocation44_spill] sm:$0xff] }
 0xb7f   :  { %6892 = vmatprep.subr.bf16.mxu1 %v11015_v6  ;;  %6933 = vmatprep.subr.bf16.mxu0 %v11018_v52  ;;  %v12617_v6 = vld [vmem:[#allocation45_spill] sm:$0xff]  ;;  %v12618_v52 = vld [vmem:[#allocation46_spill] sm:$0xff] }
 0xb82   :  { %6893 = vmatpush1.bf16.msra.mxu1 %v11021_v13  ;;  %6934 = vmatpush1.bf16.msra.mxu0 %v11024_v23  ;;  %v12619_v13 = vld [vmem:[#allocation47_spill] sm:$0xff]  ;;  %v12620_v23 = vld [vmem:[#allocation48_spill] sm:$0xff] }
 0xb83   :  { %6894 = vmatprep.subr.bf16.mxu1 %v11027_v40  ;;  %6935 = vmatprep.subr.bf16.mxu0 %v11030_v51  ;;  %v12621_v40 = vld [vmem:[#allocation49_spill] sm:$0xff]  ;;  %v12622_v51 = vld [vmem:[#allocation50_spill] sm:$0xff] }
 0xb86   :  { %6895 = vmatpush1.bf16.msra.mxu1 %v11033_v3  ;;  %6936 = vmatpush1.bf16.msra.mxu0 %v11036_v31  ;;  %v12623_v3 = vld [vmem:[#allocation51_spill] sm:$0xff]  ;;  %v12624_v31 = vld [vmem:[#allocation52_spill] sm:$0xff] }
 0xb87   :  { %6896 = vmatprep.subr.bf16.mxu1 %v11039_v55  ;;  %6937 = vmatprep.subr.bf16.mxu0 %v11042_v59  ;;  %v12625_v55 = vld [vmem:[#allocation53_spill] sm:$0xff]  ;;  %v12626_v59 = vld [vmem:[#allocation54_spill] sm:$0xff] }
 0xb8a   :  { %6897 = vmatpush1.bf16.msra.mxu1 %v11045_v58  ;;  %6938 = vmatpush1.bf16.msra.mxu0 %v11048_v43  ;;  %v12627_v58 = vld [vmem:[#allocation55_spill] sm:$0xff]  ;;  %v12628_v43 = vld [vmem:[#allocation56_spill] sm:$0xff] }
 0xb8b   :  { %7009 = vmatprep.subr.bf16.mxu1 %v11051_v24  ;;  %7050 = vmatprep.subr.bf16.mxu0 %v11054_v27  ;;  %v12629_v24 = vld [vmem:[#allocation57_spill] sm:$0xff]  ;;  %v12630_v27 = vld [vmem:[#allocation58_spill] sm:$0xff] }
 0xb8d   :  { %6915 = vmatmul.mubr.bf16.vlgmr.msra.gmra.mxu1 %v6772_v33  ;;  %6956 = vmatmul.mubr.bf16.vlgmr.msra.gmra.mxu0 %v6772_v33  ;;  %v11478_v33 = vld [vmem:[#allocation11 + $0xec] ss:$16 sps:$4 sm:$0xff]  }
 0xb8e   :  { %7010 = vmatpush1.bf16.msra.mxu1 %v11059_v16  ;;  %7051 = vmatpush1.bf16.msra.mxu0 %v11062_v36  ;;  %v12631_v16 = vld [vmem:[#allocation59_spill] sm:$0xff]  ;;  %v12632_v36 = vld [vmem:[#allocation60_spill] sm:$0xff] }
 0xb8f   :  { %7011 = vmatprep.subr.bf16.mxu1 %v11065_v25  ;;  %7052 = vmatprep.subr.bf16.mxu0 %v11068_v53  ;;  %v12633_v25 = vld [vmem:[#allocation61_spill] sm:$0xff]  ;;  %v12634_v53 = vld [vmem:[#allocation62_spill] sm:$0xff] }
 0xb92   :  { %7012 = vmatpush1.bf16.msra.mxu1 %v11071_v8  ;;  %7053 = vmatpush1.bf16.msra.mxu0 %v12533_v39  ;;  %v12635_v8 = vld [vmem:[#allocation63_spill] sm:$0xff]  ;;  %v12637_v39 = vld [vmem:[#allocation65_spill] sm:$0xff] }
 0xb93   :  { %7013 = vmatprep.subr.bf16.mxu1 %v12599_v49  ;;  %7054 = vmatprep.subr.bf16.mxu0 %v12600_v57 }
 0xb96   :  { %7014 = vmatpush1.bf16.msra.mxu1 %v12601_v30  ;;  %7055 = vmatpush1.bf16.msra.mxu0 %v12602_v12  ;;  %v12655_v30 = vld [vmem:[#allocation22_spill] sm:$0xff] }
 0xb97   :  { %7015 = vmatprep.subr.bf16.mxu1 %v12603_v56  ;;  %7056 = vmatprep.subr.bf16.mxu0 %v12604_v37 }
 0xb9a   :  { %7016 = vmatpush1.bf16.msra.mxu1 %v12605_v0  ;;  %7057 = vmatpush1.bf16.msra.mxu0 %v12606_v41  ;;  %v12656_v41 = vld [vmem:[#allocation23_spill] sm:$0xff] }
 0xb9b   :  { %7017 = vmatprep.subr.bf16.mxu1 %v12607_v2  ;;  %7058 = vmatprep.subr.bf16.mxu0 %v12608_v10 }
 0xb9e   :  { %7018 = vmatpush1.bf16.msra.mxu1 %v12609_v11  ;;  %7059 = vmatpush1.bf16.msra.mxu0 %v12610_v32 }
 0xb9f   :  { %7019 = vmatprep.subr.bf16.mxu1 %v12611_v47  ;;  %7060 = vmatprep.subr.bf16.mxu0 %v12612_v14 }
 0xba2   :  { %7020 = vmatpush1.bf16.msra.mxu1 %v12613_v54  ;;  %7061 = vmatpush1.bf16.msra.mxu0 %v12614_v26  ;;  %v12657_v54 = vld [vmem:[#allocation24_spill] sm:$0xff] }
 0xba3   :  { %7021 = vmatprep.subr.bf16.mxu1 %v12615_v15  ;;  %7062 = vmatprep.subr.bf16.mxu0 %v12616_v19 }
 0xba6   :  { %7022 = vmatpush1.bf16.msra.mxu1 %v12617_v6  ;;  %7063 = vmatpush1.bf16.msra.mxu0 %v12618_v52  ;;  %v12658_v6 = vld [vmem:[#allocation25_spill] sm:$0xff] }
 0xba7   :  { %7023 = vmatprep.subr.bf16.mxu1 %v12619_v13  ;;  %7064 = vmatprep.subr.bf16.mxu0 %v12620_v23 }
 0xbaa   :  { %7024 = vmatpush1.bf16.msra.mxu1 %v12621_v40  ;;  %7065 = vmatpush1.bf16.msra.mxu0 %v12622_v51 }
 0xbab   :  { %7025 = vmatprep.subr.bf16.mxu1 %v12623_v3  ;;  %7066 = vmatprep.subr.bf16.mxu0 %v12624_v31 }
 0xbae   :  { %7026 = vmatpush2.bf16.msra.mxu1 %v12625_v55  ;;  %7067 = vmatpush2.bf16.msra.mxu0 %v12626_v59 }
 0xbaf   :  { %7027 = vmatprep.subr.bf16.mxu1 %v12627_v58  ;;  %7068 = vmatprep.subr.bf16.mxu0 %v12628_v43 }
 0xbb2   :  { %7028 = vmatpush2.bf16.msra.mxu1 %v12629_v24  ;;  %7069 = vmatpush2.bf16.msra.mxu0 %v12630_v27 }
 0xbb3   :  { %7029 = vmatprep.subr.bf16.mxu1 %v12631_v16  ;;  %7070 = vmatprep.subr.bf16.mxu0 %v12632_v36 }
 0xbb6   :  { %7030 = vmatpush2.bf16.msra.mxu1 %v12633_v25  ;;  %7071 = vmatpush2.bf16.msra.mxu0 %v12634_v53 }
 0xbb7   :  { %7031 = vmatprep.subr.bf16.mxu1 %v12635_v8  ;;  %7072 = vmatprep.subr.bf16.mxu0 %v12636_v63 }
 0xbba   :  { %7032 = vmatpush2.bf16.msra.mxu1 %v12637_v39  ;;  %7073 = vmatpush2.bf16.msra.mxu0 %v12638_v35 }
 0xbbb   :  { %7033 = vmatprep.subr.bf16.mxu1 %v12639_v44  ;;  %7074 = vmatprep.subr.bf16.mxu0 %v12640_v29 }
 0xbbe   :  { %7034 = vmatpush2.bf16.msra.mxu1 %v12641_v7  ;;  %7075 = vmatpush2.bf16.msra.mxu0 %v12642_v62 }
 0xbbf   :  { %7035 = vmatprep.subr.bf16.mxu1 %v12643_v28  ;;  %7076 = vmatprep.subr.bf16.mxu0 %v12644_v45  ;;  %v12659_v28 = vcombine.high %v12596_v42, %v12597_v18 }
 0xbc2   :  { %7036 = vmatpush2.bf16.msra.mxu1 %v12645_v46  ;;  %7077 = vmatpush2.bf16.msra.mxu0 %v12646_v20 }
 0xbc3   :  { %7037 = vmatprep.subr.bf16.mxu1 %v12647_v22  ;;  %7078 = vmatprep.subr.bf16.mxu0 %v12648_v17 }
 0xbc6   :  { %7038 = vmatpush2.bf16.msra.mxu1 %v12649_v38  ;;  %7079 = vmatpush2.bf16.msra.mxu0 %v12650_v48 }
 0xbc7   :  { %7039 = vmatprep.subr.bf16.mxu1 %v12651_v5  ;;  %7080 = vmatprep.subr.bf16.mxu0 %v12652_v34 }
 0xbca   :  { %7040 = vmatpush2.bf16.msra.mxu1 %v12653_v21  ;;  %7081 = vmatpush2.bf16.msra.mxu0 %v12654_v60 }
 0xbcb   :  { %7117 = vmatprep.subr.bf16.mxu1 %v11475_v4  ;;  %7158 = vmatprep.subr.bf16.mxu0 %v11478_v33 }
 0xc2d   :  { %v6808_v49 = vpop.f32.mrf.mxu1  ;;  %v6849_v57 = vpop.f32.mrf.mxu0 }
 0xc2e   :  { %v6809_v12 = vadd.f32 %v6808_v49, %v12655_v30  ;;  %v6850_v26 = vadd.f32 %v6849_v57, %v12657_v54 }
 0xc2f   :  { %v6810_v56 = vpop.f32.mrf.mxu1  ;;  %v6851_v37 = vpop.f32.mrf.mxu0 }
 0xc30   :  { %v8277_v0 = vmul.f32 -1.442695, %v6809_v12  ;;  %v6811_v2 = vadd.f32 %v6810_v56, %v12656_v41  ;;  %v8279_v15 = vmul.f32 -1.442695, %v6850_v26  ;;  %v6852_v52 = vadd.f32 %v6851_v37, %v12658_v6  ;;  %v11528_v26 = vld [vmem:[#allocation11 + $0xa0] ss:$16 sps:$4 sm:$0xff]  }
 0xc31   :  { %v6812_v10 = vpop.f32.mrf.mxu1  ;;  %v6853_v11 = vpop.f32.mrf.mxu0 }
 0xc32   :  { %9378 = vpow2.f32 %v8277_v0  ;;  %v8278_v32 = vmul.f32 -1.442695, %v6811_v2  ;;  %v11502_v0 = vld [vmem:[#allocation11 + $0xe0] ss:$16 sps:$4 sm:$0xff]   ;;  %v11505_v2 = vld [vmem:[#allocation11 + $0xe8] ss:$16 sps:$4 sm:$0xff]  }
 0xc33   :  { %v6813_v47 = vpop.f32.mrf.mxu1  ;;  %v6854_v14 = vpop.f32.mrf.mxu0  ;;  %v11511_v10 = vld [vmem:[#allocation11 + $0xcc] ss:$16 sps:$4 sm:$0xff]   ;;  %v11516_v11 = vld [vmem:[#allocation11 + $0xc0] ss:$16 sps:$4 sm:$0xff]  }
 0xc34   :  { %9380 = vpow2.f32 %v8278_v32  ;;  %v11519_v32 = vld [vmem:[#allocation11 + $0xc8] ss:$16 sps:$4 sm:$0xff]   ;;  %v11522_v47 = vld [vmem:[#allocation11 + $0xa4] ss:$16 sps:$4 sm:$0xff]   ;;  %v11525_v14 = vld [vmem:[#allocation11 + $0xac] ss:$16 sps:$4 sm:$0xff]  }
 0xc35   :  { %9382 = vpow2.f32 %v8279_v15  ;;  %v11531_v15 = vld [vmem:[#allocation11 + $0xa8] ss:$16 sps:$4 sm:$0xff]  }
 0xc3f   :  { %v9379_v19 = vpop.eup %9378 }
 0xc40   :  { %v6865_v13 = vadd.f32 1.0, %v9379_v19  ;;  %v11534_v19 = vld [vmem:[#allocation11 + $0x84] ss:$16 sps:$4 sm:$0xff]  }
 0xc41   :  { %v9381_v23 = vpop.eup %9380 }
 0xc42   :  { %9384 = vrcp.f32 %v6865_v13  ;;  %v6866_v40 = vadd.f32 1.0, %v9381_v23  ;;  %v9383_v31 = vpop.eup %9382  ;;  %v11540_v13 = vld [vmem:[#allocation11 + $0x80] ss:$16 sps:$4 sm:$0xff]   ;;  %v11543_v23 = vld [vmem:[#allocation11 + $0x88] ss:$16 sps:$4 sm:$0xff]  }
 0xc43   :  { %9386 = vtanh.f32 %v6852_v52  ;;  %v6867_v36 = vadd.f32 1.0, %v9383_v31  ;;  %v11537_v52 = vld [vmem:[#allocation11 + $0x8c] ss:$16 sps:$4 sm:$0xff]   ;;  %v11555_v31 = vld [vmem:[#allocation11 + $0x68] ss:$16 sps:$4 sm:$0xff]  }
 0xc44   :  { %9388 = vrcp.f32 %v6866_v40  ;;  %v11546_v40 = vld [vmem:[#allocation11 + $0x64] ss:$16 sps:$4 sm:$0xff]  }
 0xc45   :  { %9390 = vrcp.f32 %v6867_v36  ;;  %v11579_v36 = vld [vmem:[#allocation11 + $0x28] ss:$16 sps:$4 sm:$0xff]  }
 0xc4d   :  { %v6916_v51 = vpop.f32.mrf.mxu1  ;;  %v6957_v3 = vpop.f32.mrf.mxu0 }
 0xc4f   :  { %v9385_v55 = vpop.eup %9384  ;;  %v6918_v59 = vpop.f32.mrf.mxu1 }
 0xc50   :  { %v6959_v58 = vpop.f32.mrf.mxu0  ;;  %v9387_v43 = vpop.eup %9386  ;;  %v6968_v24 = vcombine.low %v6916_v51, %v6918_v59  ;;  %v11549_v51 = vld [vmem:[#allocation11 + $0x6c] ss:$16 sps:$4 sm:$0xff]  }
 0xc51   :  { %v6969_v27 = vcombine.low %v6957_v3, %v6959_v58  ;;  %v9389_v16 = vpop.eup %9388  ;;  %v6920_v25 = vpop.f32.mrf.mxu1  ;;  %v6876_v63 = vmul.f32 %v9387_v43, %v9385_v55  ;;  %v11552_v3 = vld [vmem:[#allocation11 + $0x60] ss:$16 sps:$4 sm:$0xff]   ;;  %v11558_v55 = vld [vmem:[#allocation11 + $0x44] ss:$16 sps:$4 sm:$0xff]   ;;  %v11561_v59 = vld [vmem:[#allocation11 + $0x4c] ss:$16 sps:$4 sm:$0xff]  }
 0xc52   :  { %v6961_v53 = vpop.f32.mrf.mxu0  ;;  %v6875_v8 = vmul.f32 %v9389_v16, %v11369_v61  ;;  %v6976_v39 = vrot.slane %v6968_v24, %v10652_v1  ;;  %v9391_v61 = vpop.eup %9390  ;;  %v11564_v58 = vld [vmem:[#allocation11 + $0x40] ss:$16 sps:$4 sm:$0xff]   ;;  %v11567_v43 = vld [vmem:[#allocation11 + $0x48] ss:$16 sps:$4 sm:$0xff]   ;;  %v11570_v24 = vld [vmem:[#allocation11 + $0x24] ss:$16 sps:$4 sm:$0xff]  }
 0xc53   :  { %v6983_v35 = vrot.slane %v6969_v27, %v10652_v1  ;;  %v6921_v44 = vpop.f32.mrf.mxu1  ;;  %v11573_v27 = vld [vmem:[#allocation11 + $0x2c] ss:$16 sps:$4 sm:$0xff]   ;;  %v11576_v16 = vld [vmem:[#allocation11 + $0x20] ss:$16 sps:$4 sm:$0xff]   ;;  %v11582_v25 = vld [vmem:[#allocation11 + $0x4] ss:$16 sps:$4 sm:$0xff]  }
 0xc54   :  { %v6962_v29 = vpop.f32.mrf.mxu0  ;;  %v11488_v7 = vadd.f32 %v6876_v63, %v6875_v8  ;;  %v11585_v53 = vld [vmem:[#allocation11 + $0xc] ss:$16 sps:$4 sm:$0xff]   ;;  %v11588_v8 = vld [vmem:[#allocation11] ss:$16 sps:$4 sm:$0xff]   ;;  %v11591_v63 = vld [vmem:[#allocation11 + $0x8] ss:$16 sps:$4 sm:$0xff]  }
 0xc55   :  { %v6984_v62 = vcombine.low %v6976_v39, %v6983_v35  ;;  %v11594_v39 = vld [vmem:[#allocation12 + $0xe4] ss:$16 sps:$4 sm:$0xff]   ;;  %v11597_v35 = vld [vmem:[#allocation12 + $0xec] ss:$16 sps:$4 sm:$0xff]   ;;  %v11602_v44 = vld [vmem:[#allocation12 + $0xe0] ss:$16 sps:$4 sm:$0xff]  }
 0xc56   :  { %9392 = vtanh.f32 %v11488_v7  ;;  %v11605_v29 = vld [vmem:[#allocation12 + $0xe8] ss:$16 sps:$4 sm:$0xff]  }
 0xc57   :  { %v6986_v45 = vadd.f32 %v6984_v62, %v12659_v28  ;;  %v11608_v62 = vld [vmem:[#allocation12 + $0xc4] ss:$16 sps:$4 sm:$0xff]   ;;  %v11611_v28 = vld [vmem:[#allocation12 + $0xcc] ss:$16 sps:$4 sm:$0xff]  }
 0xc59   :  { %v8280_v46 = vmul.f32 -1.442695, %v6986_v45  ;;  %v6994_v5 = vrot.slane %v6986_v45, 6  ;;  %v11614_v45 = vld [vmem:[#allocation12 + $0xc0] ss:$16 sps:$4 sm:$0xff]  }
 0xc5b   :  { %9394 = vpow2.f32 %v8280_v46  ;;  %v11617_v46 = vld [vmem:[#allocation12 + $0xc8] ss:$16 sps:$4 sm:$0xff]  }
 0xc63   :  { %v9393_v20 = vpop.eup %9392 }
 0xc64   :  { %v6879_v22 = vmul.f32 %v9393_v20, %v9391_v61  ;;  %v11620_v61 = vld [vmem:[#allocation12 + $0xa4] ss:$16 sps:$4 sm:$0xff]   ;;  %v11623_v20 = vld [vmem:[#allocation12 + $0xac] ss:$16 sps:$4 sm:$0xff]  }
 0xc65   :  { %12660 = vst [vmem:[#allocation83_spill] sm:$0xff] %v11620_v61  ;;  %12661 = vst [vmem:[#allocation84_spill] sm:$0xff] %v11623_v20 }
 0xc66   :  { %v7008_v17 = vpack.c.bf16 %v6879_v22, %v6879_v22  ;;  %v11626_v22 = vld [vmem:[#allocation12 + $0xa0] ss:$16 sps:$4 sm:$0xff]  }
 0xc67   :  { %12662 = vst [vmem:[#allocation85_spill] sm:$0xff] %v11626_v22 }
 0xc68   :  { %v9395_v38 = vpop.eup %9394  ;;  %7041 = vmatprep.mubr.bf16.mxu1 %v7008_v17  ;;  %7082 = vmatprep.mubr.bf16.mxu0 %v7008_v17  ;;  %v11629_v17 = vld [vmem:[#allocation12 + $0xa8] ss:$16 sps:$4 sm:$0xff]  }
 0xc69   :  { %v6990_v48 = vadd.f32 1.0, %v9395_v38  ;;  %12663 = vst [vmem:[#allocation86_spill] sm:$0xff] %v11629_v17  ;;  %v11632_v38 = vld [vmem:[#allocation12 + $0x84] ss:$16 sps:$4 sm:$0xff]  }
 0xc6a   :  { %12664 = vst [vmem:[#allocation89_spill] sm:$0xff] %v11632_v38 }
 0xc6b   :  { %9396 = vrcp.f32 %v6990_v48  ;;  %v11635_v48 = vld [vmem:[#allocation12 + $0x8c] ss:$16 sps:$4 sm:$0xff]  }
 0xc6c   :  { %9398 = vtanh.f32 %v6994_v5  ;;  %12665 = vst [vmem:[#allocation28_spill] sm:$0xff] %v11635_v48  ;;  %v11638_v5 = vld [vmem:[#allocation12 + $0x80] ss:$16 sps:$4 sm:$0xff]  }
 0xc6d   :  { %12666 = vst [vmem:[#allocation26_spill] sm:$0xff] %v11638_v5 }
 0xc78   :  { %v9397_v34 = vpop.eup %9396 }
 0xc79   :  { %v6998_v21 = vrot.slane %v9397_v34, 2  ;;  %v9399_v60 = vpop.eup %9398  ;;  %v7004_v57 = vrot.slane %v9397_v34, 4 }
 0xc7a   :  { %v7001_v42 = vmul.f32 %v9399_v60, %v9397_v34  ;;  %v11641_v34 = vld [vmem:[#allocation12 + $0x88] ss:$16 sps:$4 sm:$0xff]   ;;  %v11647_v60 = vld [vmem:[#allocation12 + $0x6c] ss:$16 sps:$4 sm:$0xff]  }
 0xc7b   :  { %v7000_v18 = vmul.f32 %v6998_v21, %v11376_v9  ;;  %v11508_v9 = vld [vmem:[#allocation11 + $0xc4] ss:$16 sps:$4 sm:$0xff]   ;;  %12667 = vst [vmem:[#allocation27_spill] sm:$0xff] %v11641_v34  ;;  %12669 = vst [vmem:[#allocation90_spill] sm:$0xff] %v11647_v60 }
 0xc7c   :  { %v11644_v21 = vld [vmem:[#allocation12 + $0x64] ss:$16 sps:$4 sm:$0xff]  }
 0xc7d   :  { %v11495_v49 = vadd.f32 %v7001_v42, %v7000_v18  ;;  %12668 = vst [vmem:[#allocation87_spill] sm:$0xff] %v11644_v21  ;;  %v11650_v42 = vld [vmem:[#allocation12 + $0x60] ss:$16 sps:$4 sm:$0xff]   ;;  %v11653_v18 = vld [vmem:[#allocation12 + $0x68] ss:$16 sps:$4 sm:$0xff]  }
 0xc7e   :  { %12670 = vst [vmem:[#allocation29_spill] sm:$0xff] %v11650_v42  ;;  %12671 = vst [vmem:[#allocation21_spill] sm:$0xff] %v11653_v18 }
 0xc7f   :  { %9400 = vtanh.f32 %v11495_v49 }
 0xc8c   :  { %v9401_v12 = vpop.eup %9400 }
 0xc8d   :  { %v7006_v56 = vmul.f32 %v9401_v12, %v7004_v57  ;;  %v11656_v57 = vld [vmem:[#allocation12 + $0x44] ss:$16 sps:$4 sm:$0xff]   ;;  %v11659_v12 = vld [vmem:[#allocation12 + $0x4c] ss:$16 sps:$4 sm:$0xff]  }
 0xc8e   :  { %12672 = vst [vmem:[#allocation20_spill] sm:$0xff] %v11656_v57  ;;  %12673 = vst [vmem:[#allocation30_spill] sm:$0xff] %v11659_v12 }
 0xc8f   :  { %v11498_v37 = vpack.c.bf16 %v7006_v56, %v7006_v56  ;;  %v11662_v56 = vld [vmem:[#allocation12 + $0x40] ss:$16 sps:$4 sm:$0xff]  }
 0xc90   :  { %12674 = vst [vmem:[#allocation31_spill] sm:$0xff] %v11662_v56 }
 0xc91   :  { %7042 = vmatmul.mubr.bf16.vlgmr.msra.gmra.mxu1 %v11498_v37  ;;  %7083 = vmatmul.mubr.bf16.vlgmr.msra.gmra.mxu0 %v11498_v37 }
 0xc92   :  { %7118 = vmatpush1.bf16.msra.mxu1 %v11502_v0  ;;  %7159 = vmatpush1.bf16.msra.mxu0 %v11505_v2 }
 0xc93   :  { %7119 = vmatprep.subr.bf16.mxu1 %v11508_v9  ;;  %7160 = vmatprep.subr.bf16.mxu0 %v11511_v10 }
 0xc94   :  { %7149 = vmatprep.mubr.bf16.mxu1 %v12339_v50  ;;  %7190 = vmatprep.mubr.bf16.mxu0 %v12339_v50 }
 0xc96   :  { %7120 = vmatpush1.bf16.msra.mxu1 %v11516_v11  ;;  %7161 = vmatpush1.bf16.msra.mxu0 %v11519_v32 }
 0xc97   :  { %7121 = vmatprep.subr.bf16.mxu1 %v11522_v47  ;;  %7162 = vmatprep.subr.bf16.mxu0 %v11525_v14 }
 0xc9a   :  { %7122 = vmatpush1.bf16.msra.mxu1 %v11528_v26  ;;  %7163 = vmatpush1.bf16.msra.mxu0 %v11531_v15 }
 0xc9b   :  { %7123 = vmatprep.subr.bf16.mxu1 %v11534_v19  ;;  %7164 = vmatprep.subr.bf16.mxu0 %v11537_v52 }
 0xc9e   :  { %7124 = vmatpush1.bf16.msra.mxu1 %v11540_v13  ;;  %7165 = vmatpush1.bf16.msra.mxu0 %v11543_v23 }
 0xc9f   :  { %7125 = vmatprep.subr.bf16.mxu1 %v11546_v40  ;;  %7166 = vmatprep.subr.bf16.mxu0 %v11549_v51 }
 0xca2   :  { %7126 = vmatpush1.bf16.msra.mxu1 %v11552_v3  ;;  %7167 = vmatpush1.bf16.msra.mxu0 %v11555_v31 }
 0xca3   :  { %7127 = vmatprep.subr.bf16.mxu1 %v11558_v55  ;;  %7168 = vmatprep.subr.bf16.mxu0 %v11561_v59 }
 0xca6   :  { %7128 = vmatpush1.bf16.msra.mxu1 %v11564_v58  ;;  %7169 = vmatpush1.bf16.msra.mxu0 %v11567_v43 }
 0xca7   :  { %7129 = vmatprep.subr.bf16.mxu1 %v11570_v24  ;;  %7170 = vmatprep.subr.bf16.mxu0 %v11573_v27 }
 0xcaa   :  { %7130 = vmatpush1.bf16.msra.mxu1 %v11576_v16  ;;  %7171 = vmatpush1.bf16.msra.mxu0 %v11579_v36 }
 0xcab   :  { %7131 = vmatprep.subr.bf16.mxu1 %v11582_v25  ;;  %7172 = vmatprep.subr.bf16.mxu0 %v11585_v53 }
 0xcae   :  { %7132 = vmatpush1.bf16.msra.mxu1 %v11588_v8  ;;  %7173 = vmatpush1.bf16.msra.mxu0 %v11591_v63 }
 0xcaf   :  { %7244 = vmatprep.subr.bf16.mxu1 %v11594_v39  ;;  %7285 = vmatprep.subr.bf16.mxu0 %v11597_v35 }
 0xcb1   :  { %7150 = vmatmul.mubr.bf16.vlgmr.msra.gmra.mxu1 %v11498_v37  ;;  %7191 = vmatmul.mubr.bf16.vlgmr.msra.gmra.mxu0 %v11498_v37  ;;  %v11665_v37 = vld [vmem:[#allocation12 + $0x48] ss:$16 sps:$4 sm:$0xff]  }
 0xcb2   :  { %7245 = vmatpush1.bf16.msra.mxu1 %v11602_v44  ;;  %7286 = vmatpush1.bf16.msra.mxu0 %v11605_v29  ;;  %12675 = vst [vmem:[#allocation32_spill] sm:$0xff] %v11665_v37 }
 0xcb3   :  { %7246 = vmatprep.subr.bf16.mxu1 %v11608_v62  ;;  %7287 = vmatprep.subr.bf16.mxu0 %v11611_v28 }
 0xcb6   :  { %7247 = vmatpush1.bf16.msra.mxu1 %v11614_v45  ;;  %7288 = vmatpush1.bf16.msra.mxu0 %v11617_v46 }
 0xcb7   :  { %7248 = vmatprep.subr.bf16.mxu1 %v11620_v61  ;;  %7289 = vmatprep.subr.bf16.mxu0 %v11623_v20  ;;  %v12716_v61 = vld [vmem:[#allocation88_spill] sm:$0xff] }
 0xcba   :  { %7249 = vmatpush1.bf16.msra.mxu1 %v11626_v22  ;;  %7290 = vmatpush1.bf16.msra.mxu0 %v11629_v17 }
 0xcbb   :  { %7250 = vmatprep.subr.bf16.mxu1 %v11632_v38  ;;  %7291 = vmatprep.subr.bf16.mxu0 %v11635_v48 }
 0xcbe   :  { %7251 = vmatpush1.bf16.msra.mxu1 %v11638_v5  ;;  %7292 = vmatpush1.bf16.msra.mxu0 %v11641_v34 }
 0xcbf   :  { %7252 = vmatprep.subr.bf16.mxu1 %v11644_v21  ;;  %7293 = vmatprep.subr.bf16.mxu0 %v11647_v60 }
 0xcc2   :  { %7253 = vmatpush1.bf16.msra.mxu1 %v11650_v42  ;;  %7294 = vmatpush1.bf16.msra.mxu0 %v11653_v18  ;;  %v11668_v42 = vld [vmem:[#allocation12 + $0x24] ss:$16 sps:$4 sm:$0xff]   ;;  %v11671_v18 = vld [vmem:[#allocation12 + $0x2c] ss:$16 sps:$4 sm:$0xff]  }
 0xcc3   :  { %7254 = vmatprep.subr.bf16.mxu1 %v11656_v57  ;;  %7295 = vmatprep.subr.bf16.mxu0 %v11659_v12  ;;  %12676 = vst [vmem:[#allocation33_spill] sm:$0xff] %v11668_v42  ;;  %12677 = vst [vmem:[#allocation34_spill] sm:$0xff] %v11671_v18  ;;  %v11674_v57 = vld [vmem:[#allocation12 + $0x20] ss:$16 sps:$4 sm:$0xff]   ;;  %v11677_v12 = vld [vmem:[#allocation12 + $0x28] ss:$16 sps:$4 sm:$0xff]  }
 0xcc4   :  { %12678 = vst [vmem:[#allocation35_spill] sm:$0xff] %v11674_v57  ;;  %12679 = vst [vmem:[#allocation36_spill] sm:$0xff] %v11677_v12 }
 0xcc6   :  { %7255 = vmatpush1.bf16.msra.mxu1 %v11662_v56  ;;  %7296 = vmatpush1.bf16.msra.mxu0 %v11665_v37  ;;  %v11680_v56 = vld [vmem:[#allocation12 + $0x4] ss:$16 sps:$4 sm:$0xff]   ;;  %v11683_v37 = vld [vmem:[#allocation12 + $0xc] ss:$16 sps:$4 sm:$0xff]  }
 0xcc7   :  { %7256 = vmatprep.subr.bf16.mxu1 %v11668_v42  ;;  %7297 = vmatprep.subr.bf16.mxu0 %v11671_v18  ;;  %12680 = vst [vmem:[#allocation37_spill] sm:$0xff] %v11680_v56  ;;  %12681 = vst [vmem:[#allocation38_spill] sm:$0xff] %v11683_v37  ;;  %v11686_v42 = vld [vmem:[#allocation12] ss:$16 sps:$4 sm:$0xff]   ;;  %v11689_v18 = vld [vmem:[#allocation12 + $0x8] ss:$16 sps:$4 sm:$0xff]  }
 0xcc8   :  { %12682 = vst [vmem:[#allocation39_spill] sm:$0xff] %v11686_v42  ;;  %12683 = vst [vmem:[#allocation40_spill] sm:$0xff] %v11689_v18 }
 0xcca   :  { %7257 = vmatpush1.bf16.msra.mxu1 %v11674_v57  ;;  %7298 = vmatpush1.bf16.msra.mxu0 %v11677_v12  ;;  %v11692_v57 = vld [vmem:[#allocation12 + $0x1e4] ss:$16 sps:$4 sm:$0xff]   ;;  %v11695_v12 = vld [vmem:[#allocation12 + $0x1ec] ss:$16 sps:$4 sm:$0xff]  }
 0xccb   :  { %7258 = vmatprep.subr.bf16.mxu1 %v11680_v56  ;;  %7299 = vmatprep.subr.bf16.mxu0 %v11683_v37  ;;  %12684 = vst [vmem:[#allocation41_spill] sm:$0xff] %v11692_v57  ;;  %12685 = vst [vmem:[#allocation42_spill] sm:$0xff] %v11695_v12  ;;  %v11698_v56 = vld [vmem:[#allocation12 + $0x1e0] ss:$16 sps:$4 sm:$0xff]   ;;  %v11701_v37 = vld [vmem:[#allocation12 + $0x1e8] ss:$16 sps:$4 sm:$0xff]  }
 0xccc   :  { %12686 = vst [vmem:[#allocation43_spill] sm:$0xff] %v11698_v56  ;;  %12687 = vst [vmem:[#allocation44_spill] sm:$0xff] %v11701_v37 }
 0xcce   :  { %7259 = vmatpush1.bf16.msra.mxu1 %v11686_v42  ;;  %7300 = vmatpush1.bf16.msra.mxu0 %v11689_v18  ;;  %v11704_v42 = vld [vmem:[#allocation12 + $0x1c4] ss:$16 sps:$4 sm:$0xff]   ;;  %v11707_v18 = vld [vmem:[#allocation12 + $0x1cc] ss:$16 sps:$4 sm:$0xff]  }
 0xccf   :  { %7260 = vmatprep.subr.bf16.mxu1 %v11692_v57  ;;  %7301 = vmatprep.subr.bf16.mxu0 %v11695_v12  ;;  %12688 = vst [vmem:[#allocation45_spill] sm:$0xff] %v11704_v42  ;;  %12689 = vst [vmem:[#allocation46_spill] sm:$0xff] %v11707_v18  ;;  %v11710_v57 = vld [vmem:[#allocation12 + $0x1c0] ss:$16 sps:$4 sm:$0xff]   ;;  %v11713_v12 = vld [vmem:[#allocation12 + $0x1c8] ss:$16 sps:$4 sm:$0xff]  }
 0xcd0   :  { %12690 = vst [vmem:[#allocation47_spill] sm:$0xff] %v11710_v57  ;;  %12691 = vst [vmem:[#allocation48_spill] sm:$0xff] %v11713_v12 }
 0xcd2   :  { %7261 = vmatpush2.bf16.msra.mxu1 %v11698_v56  ;;  %7302 = vmatpush2.bf16.msra.mxu0 %v11701_v37  ;;  %v11716_v56 = vld [vmem:[#allocation12 + $0x1a4] ss:$16 sps:$4 sm:$0xff]   ;;  %v11719_v37 = vld [vmem:[#allocation12 + $0x1ac] ss:$16 sps:$4 sm:$0xff]  }
 0xcd3   :  { %7262 = vmatprep.subr.bf16.mxu1 %v11704_v42  ;;  %7303 = vmatprep.subr.bf16.mxu0 %v11707_v18  ;;  %12692 = vst [vmem:[#allocation49_spill] sm:$0xff] %v11716_v56  ;;  %12693 = vst [vmem:[#allocation50_spill] sm:$0xff] %v11719_v37  ;;  %v11722_v42 = vld [vmem:[#allocation12 + $0x1a0] ss:$16 sps:$4 sm:$0xff]   ;;  %v11725_v18 = vld [vmem:[#allocation12 + $0x1a8] ss:$16 sps:$4 sm:$0xff]  }
 0xcd4   :  { %12694 = vst [vmem:[#allocation51_spill] sm:$0xff] %v11722_v42  ;;  %12695 = vst [vmem:[#allocation52_spill] sm:$0xff] %v11725_v18 }
 0xcd6   :  { %7263 = vmatpush2.bf16.msra.mxu1 %v11710_v57  ;;  %7304 = vmatpush2.bf16.msra.mxu0 %v11713_v12  ;;  %v11728_v57 = vld [vmem:[#allocation12 + $0x184] ss:$16 sps:$4 sm:$0xff]   ;;  %v11731_v12 = vld [vmem:[#allocation12 + $0x18c] ss:$16 sps:$4 sm:$0xff]  }
 0xcd7   :  { %7264 = vmatprep.subr.bf16.mxu1 %v11716_v56  ;;  %7305 = vmatprep.subr.bf16.mxu0 %v11719_v37  ;;  %12696 = vst [vmem:[#allocation53_spill] sm:$0xff] %v11728_v57  ;;  %12697 = vst [vmem:[#allocation54_spill] sm:$0xff] %v11731_v12  ;;  %v11734_v56 = vld [vmem:[#allocation12 + $0x180] ss:$16 sps:$4 sm:$0xff]   ;;  %v11737_v37 = vld [vmem:[#allocation12 + $0x188] ss:$16 sps:$4 sm:$0xff]  }
 0xcd8   :  { %12698 = vst [vmem:[#allocation55_spill] sm:$0xff] %v11734_v56  ;;  %12699 = vst [vmem:[#allocation56_spill] sm:$0xff] %v11737_v37 }
 0xcda   :  { %7265 = vmatpush2.bf16.msra.mxu1 %v11722_v42  ;;  %7306 = vmatpush2.bf16.msra.mxu0 %v11725_v18  ;;  %v11740_v42 = vld [vmem:[#allocation12 + $0x164] ss:$16 sps:$4 sm:$0xff]   ;;  %v11743_v18 = vld [vmem:[#allocation12 + $0x16c] ss:$16 sps:$4 sm:$0xff]  }
 0xcdb   :  { %7266 = vmatprep.subr.bf16.mxu1 %v11728_v57  ;;  %7307 = vmatprep.subr.bf16.mxu0 %v11731_v12  ;;  %12700 = vst [vmem:[#allocation57_spill] sm:$0xff] %v11740_v42  ;;  %12701 = vst [vmem:[#allocation58_spill] sm:$0xff] %v11743_v18  ;;  %v11746_v57 = vld [vmem:[#allocation12 + $0x160] ss:$16 sps:$4 sm:$0xff]   ;;  %v11749_v12 = vld [vmem:[#allocation12 + $0x168] ss:$16 sps:$4 sm:$0xff]  }
 0xcdc   :  { %12702 = vst [vmem:[#allocation59_spill] sm:$0xff] %v11746_v57  ;;  %12703 = vst [vmem:[#allocation60_spill] sm:$0xff] %v11749_v12 }
 0xcde   :  { %7267 = vmatpush2.bf16.msra.mxu1 %v11734_v56  ;;  %7308 = vmatpush2.bf16.msra.mxu0 %v11737_v37  ;;  %v11752_v56 = vld [vmem:[#allocation12 + $0x144] ss:$16 sps:$4 sm:$0xff]   ;;  %v11755_v37 = vld [vmem:[#allocation12 + $0x14c] ss:$16 sps:$4 sm:$0xff]  }
 0xcdf   :  { %7268 = vmatprep.subr.bf16.mxu1 %v11740_v42  ;;  %7309 = vmatprep.subr.bf16.mxu0 %v11743_v18  ;;  %12704 = vst [vmem:[#allocation61_spill] sm:$0xff] %v11752_v56  ;;  %12705 = vst [vmem:[#allocation62_spill] sm:$0xff] %v11755_v37  ;;  %v11758_v42 = vld [vmem:[#allocation12 + $0x140] ss:$16 sps:$4 sm:$0xff]   ;;  %v11761_v18 = vld [vmem:[#allocation12 + $0x148] ss:$16 sps:$4 sm:$0xff]  }
 0xce0   :  { %12706 = vst [vmem:[#allocation63_spill] sm:$0xff] %v11758_v42  ;;  %12707 = vst [vmem:[#allocation64_spill] sm:$0xff] %v11761_v18 }
 0xce2   :  { %7269 = vmatpush2.bf16.msra.mxu1 %v11746_v57  ;;  %7310 = vmatpush2.bf16.msra.mxu0 %v11749_v12  ;;  %v11764_v57 = vld [vmem:[#allocation12 + $0x124] ss:$16 sps:$4 sm:$0xff]   ;;  %v11767_v12 = vld [vmem:[#allocation12 + $0x12c] ss:$16 sps:$4 sm:$0xff]  }
 0xce3   :  { %7270 = vmatprep.subr.bf16.mxu1 %v11752_v56  ;;  %7311 = vmatprep.subr.bf16.mxu0 %v11755_v37  ;;  %12708 = vst [vmem:[#allocation65_spill] sm:$0xff] %v11764_v57  ;;  %12709 = vst [vmem:[#allocation66_spill] sm:$0xff] %v11767_v12  ;;  %v11770_v56 = vld [vmem:[#allocation12 + $0x120] ss:$16 sps:$4 sm:$0xff]   ;;  %v11773_v37 = vld [vmem:[#allocation12 + $0x128] ss:$16 sps:$4 sm:$0xff]  }
 0xce4   :  { %12710 = vst [vmem:[#allocation67_spill] sm:$0xff] %v11770_v56  ;;  %12711 = vst [vmem:[#allocation68_spill] sm:$0xff] %v11773_v37 }
 0xce6   :  { %7271 = vmatpush2.bf16.msra.mxu1 %v11758_v42  ;;  %7312 = vmatpush2.bf16.msra.mxu0 %v11761_v18  ;;  %v11776_v42 = vld [vmem:[#allocation12 + $0x104] ss:$16 sps:$4 sm:$0xff]   ;;  %v11779_v18 = vld [vmem:[#allocation12 + $0x10c] ss:$16 sps:$4 sm:$0xff]  }
 0xce7   :  { %7272 = vmatprep.subr.bf16.mxu1 %v11764_v57  ;;  %7313 = vmatprep.subr.bf16.mxu0 %v11767_v12  ;;  %12712 = vst [vmem:[#allocation69_spill] sm:$0xff] %v11776_v42  ;;  %12713 = vst [vmem:[#allocation70_spill] sm:$0xff] %v11779_v18  ;;  %v11782_v57 = vld [vmem:[#allocation12 + $0x100] ss:$16 sps:$4 sm:$0xff]   ;;  %v11785_v12 = vld [vmem:[#allocation12 + $0x108] ss:$16 sps:$4 sm:$0xff]  }
 0xce8   :  { %12714 = vst [vmem:[#allocation71_spill] sm:$0xff] %v11782_v57  ;;  %12715 = vst [vmem:[#allocation72_spill] sm:$0xff] %v11785_v12 }
 0xcea   :  { %7273 = vmatpush2.bf16.msra.mxu1 %v11770_v56  ;;  %7314 = vmatpush2.bf16.msra.mxu0 %v11773_v37 }
 0xceb   :  { %7274 = vmatprep.subr.bf16.mxu1 %v11776_v42  ;;  %7315 = vmatprep.subr.bf16.mxu0 %v11779_v18 }
 0xcee   :  { %7275 = vmatpush2.bf16.msra.mxu1 %v11782_v57  ;;  %7316 = vmatpush2.bf16.msra.mxu0 %v11785_v12 }
 0xcef   :  { %7352 = vmatprep.subr.bf16.mxu1 %v11475_v4  ;;  %7393 = vmatprep.subr.bf16.mxu0 %v11478_v33 }
 0xd51   :  { %v7043_v37 = vpop.f32.mrf.mxu1  ;;  %v7084_v56 = vpop.f32.mrf.mxu0 }
 0xd52   :  { %v7044_v42 = vadd.f32 %v7043_v37, %v12655_v30  ;;  %v7085_v4 = vadd.f32 %v7084_v56, %v12657_v54 }
 0xd53   :  { %v7045_v60 = vpop.f32.mrf.mxu1  ;;  %v7086_v21 = vpop.f32.mrf.mxu0 }
 0xd54   :  { %v8281_v34 = vmul.f32 -1.442695, %v7044_v42  ;;  %v7046_v18 = vadd.f32 %v7045_v60, %v12656_v41  ;;  %v8283_v12 = vmul.f32 -1.442695, %v7085_v4  ;;  %v7087_v22 = vadd.f32 %v7086_v21, %v12658_v6 }
 0xd55   :  { %v7047_v5 = vpop.f32.mrf.mxu1  ;;  %v7088_v48 = vpop.f32.mrf.mxu0 }
 0xd56   :  { %9402 = vpow2.f32 %v8281_v34  ;;  %v8282_v57 = vmul.f32 -1.442695, %v7046_v18 }
 0xd57   :  { %v7048_v38 = vpop.f32.mrf.mxu1  ;;  %v7089_v17 = vpop.f32.mrf.mxu0 }
 0xd58   :  { %9404 = vpow2.f32 %v8282_v57 }
 0xd59   :  { %9406 = vpow2.f32 %v8283_v12 }
 0xd63   :  { %v9403_v33 = vpop.eup %9402 }
 0xd64   :  { %v7100_v20 = vadd.f32 1.0, %v9403_v33 }
 0xd65   :  { %v9405_v37 = vpop.eup %9404 }
 0xd66   :  { %9408 = vrcp.f32 %v7100_v20  ;;  %v7101_v42 = vadd.f32 1.0, %v9405_v37  ;;  %v9407_v34 = vpop.eup %9406 }
 0xd67   :  { %9410 = vtanh.f32 %v7087_v22  ;;  %v7102_v54 = vadd.f32 1.0, %v9407_v34 }
 0xd68   :  { %9412 = vrcp.f32 %v7101_v42 }
 0xd69   :  { %9414 = vrcp.f32 %v7102_v54 }
 0xd71   :  { %v7151_v5 = vpop.f32.mrf.mxu1  ;;  %v7192_v48 = vpop.f32.mrf.mxu0 }
 0xd73   :  { %v9409_v60 = vpop.eup %9408  ;;  %v7153_v38 = vpop.f32.mrf.mxu1 }
 0xd74   :  { %v7194_v17 = vpop.f32.mrf.mxu0  ;;  %v9411_v18 = vpop.eup %9410  ;;  %v7203_v57 = vcombine.low %v7151_v5, %v7153_v38  ;;  %v12717_v5 = vld [vmem:[#allocation91_spill] sm:$0xff] }
 0xd75   :  { %v7204_v56 = vcombine.low %v7192_v48, %v7194_v17  ;;  %v9413_v4 = vpop.eup %9412  ;;  %v7155_v41 = vpop.f32.mrf.mxu1  ;;  %v7111_v12 = vmul.f32 %v9411_v18, %v9409_v60  ;;  %v12718_v48 = vcombine.low %v12716_v61, %v12717_v5 }
 0xd76   :  { %v7196_v21 = vpop.f32.mrf.mxu0  ;;  %v7110_v33 = vmul.f32 %v9413_v4, %v11488_v7  ;;  %v7211_v20 = vrot.slane %v7203_v57, %v10652_v1  ;;  %v9415_v7 = vpop.eup %9414 }
 0xd77   :  { %v7218_v22 = vrot.slane %v7204_v56, %v10652_v1  ;;  %v7156_v37 = vpop.f32.mrf.mxu1 }
 0xd78   :  { %v7197_v42 = vpop.f32.mrf.mxu0  ;;  %v11797_v6 = vadd.f32 %v7111_v12, %v7110_v33 }
 0xd79   :  { %v7219_v30 = vcombine.low %v7211_v20, %v7218_v22 }
 0xd7a   :  { %9416 = vtanh.f32 %v11797_v6 }
 0xd7b   :  { %v7221_v38 = vadd.f32 %v7219_v30, %v12718_v48  ;;  %v12759_v48 = vld [vmem:[#allocation57_spill] sm:$0xff] }
 0xd7d   :  { %v8284_v41 = vmul.f32 -1.442695, %v7221_v38  ;;  %v7229_v56 = vrot.slane %v7221_v38, 6  ;;  %v12760_v38 = vld [vmem:[#allocation58_spill] sm:$0xff] }
 0xd7f   :  { %9418 = vpow2.f32 %v8284_v41  ;;  %v12761_v41 = vld [vmem:[#allocation59_spill] sm:$0xff] }
 0xd87   :  { %v9417_v34 = vpop.eup %9416 }
 0xd88   :  { %v7114_v60 = vmul.f32 %v9417_v34, %v9415_v7  ;;  %v12762_v7 = vld [vmem:[#allocation60_spill] sm:$0xff]  ;;  %v12763_v34 = vld [vmem:[#allocation61_spill] sm:$0xff] }
 0xd8a   :  { %v7243_v17 = vpack.c.bf16 %v7114_v60, %v7114_v60  ;;  %v12764_v60 = vld [vmem:[#allocation62_spill] sm:$0xff] }
 0xd8c   :  { %v9419_v18 = vpop.eup %9418  ;;  %7276 = vmatprep.mubr.bf16.mxu1 %v7243_v17  ;;  %7317 = vmatprep.mubr.bf16.mxu0 %v7243_v17  ;;  %v12765_v17 = vld [vmem:[#allocation63_spill] sm:$0xff] }
 0xd8d   :  { %v7225_v57 = vadd.f32 1.0, %v9419_v18  ;;  %v12766_v18 = vld [vmem:[#allocation64_spill] sm:$0xff] }
 0xd8f   :  { %9420 = vrcp.f32 %v7225_v57  ;;  %v12767_v57 = vld [vmem:[#allocation65_spill] sm:$0xff] }
 0xd90   :  { %9422 = vtanh.f32 %v7229_v56  ;;  %v12768_v56 = vld [vmem:[#allocation66_spill] sm:$0xff] }
 0xd9c   :  { %v9421_v54 = vpop.eup %9420 }
 0xd9d   :  { %v7233_v4 = vrot.slane %v9421_v54, 2  ;;  %v9423_v21 = vpop.eup %9422  ;;  %v7239_v20 = vrot.slane %v9421_v54, 4 }
 0xd9e   :  { %v7236_v33 = vmul.f32 %v9423_v21, %v9421_v54  ;;  %v12769_v54 = vld [vmem:[#allocation67_spill] sm:$0xff]  ;;  %v12771_v21 = vld [vmem:[#allocation69_spill] sm:$0xff] }
 0xd9f   :  { %v7235_v30 = vmul.f32 %v7233_v4, %v11495_v49  ;;  %v12720_v49 = vld [vmem:[#allocation84_spill] sm:$0xff] }
 0xda0   :  { %v12770_v4 = vld [vmem:[#allocation68_spill] sm:$0xff] }
 0xda1   :  { %v11804_v12 = vadd.f32 %v7236_v33, %v7235_v30  ;;  %v12772_v33 = vld [vmem:[#allocation70_spill] sm:$0xff]  ;;  %v12773_v30 = vld [vmem:[#allocation71_spill] sm:$0xff] }
 0xda3   :  { %9424 = vtanh.f32 %v11804_v12 }
 0xdb0   :  { %v9425_v22 = vpop.eup %9424 }
 0xdb1   :  { %v7241_v37 = vmul.f32 %v9425_v22, %v7239_v20  ;;  %v12774_v20 = vld [vmem:[#allocation72_spill] sm:$0xff] }
 0xdb3   :  { %v7242_v42 = vpack.c.bf16 %v7241_v37, %v7241_v37 }
 0xdb5   :  { %7277 = vmatmul.mubr.bf16.vlgmr.msra.gmra.mxu1 %v7242_v42  ;;  %7318 = vmatmul.mubr.bf16.vlgmr.msra.gmra.mxu0 %v7242_v42 }
 0xdb6   :  { %7353 = vmatpush1.bf16.msra.mxu1 %v11502_v0  ;;  %7394 = vmatpush1.bf16.msra.mxu0 %v11505_v2  ;;  %v12721_v0 = vld [vmem:[#allocation85_spill] sm:$0xff]  ;;  %v12722_v2 = vld [vmem:[#allocation86_spill] sm:$0xff] }
 0xdb7   :  { %7354 = vmatprep.subr.bf16.mxu1 %v11508_v9  ;;  %7395 = vmatprep.subr.bf16.mxu0 %v11511_v10  ;;  %v12723_v9 = vld [vmem:[#allocation89_spill] sm:$0xff]  ;;  %v12724_v10 = vld [vmem:[#allocation28_spill] sm:$0xff] }
 0xdb8   :  { %7384 = vmatprep.mubr.bf16.mxu1 %v12339_v50  ;;  %7425 = vmatprep.mubr.bf16.mxu0 %v12339_v50  ;;  %v12719_v50 = vld [vmem:[#allocation83_spill] sm:$0xff] }
 0xdba   :  { %7355 = vmatpush1.bf16.msra.mxu1 %v11516_v11  ;;  %7396 = vmatpush1.bf16.msra.mxu0 %v11519_v32  ;;  %v12725_v11 = vld [vmem:[#allocation26_spill] sm:$0xff]  ;;  %v12726_v32 = vld [vmem:[#allocation27_spill] sm:$0xff] }
 0xdbb   :  { %7356 = vmatprep.subr.bf16.mxu1 %v11522_v47  ;;  %7397 = vmatprep.subr.bf16.mxu0 %v11525_v14  ;;  %v12727_v47 = vld [vmem:[#allocation87_spill] sm:$0xff]  ;;  %v12728_v14 = vld [vmem:[#allocation90_spill] sm:$0xff] }
 0xdbe   :  { %7357 = vmatpush1.bf16.msra.mxu1 %v11528_v26  ;;  %7398 = vmatpush1.bf16.msra.mxu0 %v11531_v15  ;;  %v12729_v26 = vld [vmem:[#allocation29_spill] sm:$0xff] }
 0xdbf   :  { %7358 = vmatprep.subr.bf16.mxu1 %v11534_v19  ;;  %7399 = vmatprep.subr.bf16.mxu0 %v11537_v52  ;;  %v12730_v15 = vld [vmem:[#allocation21_spill] sm:$0xff]  ;;  %v12731_v19 = vld [vmem:[#allocation20_spill] sm:$0xff]  ;;  %v12732_v52 = vld [vmem:[#allocation30_spill] sm:$0xff] }
 0xdc2   :  { %7359 = vmatpush1.bf16.msra.mxu1 %v11540_v13  ;;  %7400 = vmatpush1.bf16.msra.mxu0 %v11543_v23  ;;  %v12733_v13 = vld [vmem:[#allocation31_spill] sm:$0xff]  ;;  %v12734_v23 = vld [vmem:[#allocation32_spill] sm:$0xff] }
 0xdc3   :  { %7360 = vmatprep.subr.bf16.mxu1 %v11546_v40  ;;  %7401 = vmatprep.subr.bf16.mxu0 %v11549_v51  ;;  %v12735_v40 = vld [vmem:[#allocation33_spill] sm:$0xff]  ;;  %v12736_v51 = vld [vmem:[#allocation34_spill] sm:$0xff] }
 0xdc6   :  { %7361 = vmatpush1.bf16.msra.mxu1 %v11552_v3  ;;  %7402 = vmatpush1.bf16.msra.mxu0 %v11555_v31  ;;  %v12737_v3 = vld [vmem:[#allocation35_spill] sm:$0xff]  ;;  %v12738_v31 = vld [vmem:[#allocation36_spill] sm:$0xff] }
 0xdc7   :  { %7362 = vmatprep.subr.bf16.mxu1 %v11558_v55  ;;  %7403 = vmatprep.subr.bf16.mxu0 %v11561_v59  ;;  %v12739_v55 = vld [vmem:[#allocation37_spill] sm:$0xff]  ;;  %v12740_v59 = vld [vmem:[#allocation38_spill] sm:$0xff] }
 0xdca   :  { %7363 = vmatpush1.bf16.msra.mxu1 %v11564_v58  ;;  %7404 = vmatpush1.bf16.msra.mxu0 %v11567_v43  ;;  %v12741_v58 = vld [vmem:[#allocation39_spill] sm:$0xff]  ;;  %v12742_v43 = vld [vmem:[#allocation40_spill] sm:$0xff] }
 0xdcb   :  { %7364 = vmatprep.subr.bf16.mxu1 %v11570_v24  ;;  %7405 = vmatprep.subr.bf16.mxu0 %v11573_v27  ;;  %v12743_v24 = vld [vmem:[#allocation41_spill] sm:$0xff]  ;;  %v12744_v27 = vld [vmem:[#allocation42_spill] sm:$0xff] }
 0xdce   :  { %7365 = vmatpush1.bf16.msra.mxu1 %v11576_v16  ;;  %7406 = vmatpush1.bf16.msra.mxu0 %v11579_v36  ;;  %v12745_v16 = vld [vmem:[#allocation43_spill] sm:$0xff]  ;;  %v12746_v36 = vld [vmem:[#allocation44_spill] sm:$0xff] }
 0xdcf   :  { %7366 = vmatprep.subr.bf16.mxu1 %v11582_v25  ;;  %7407 = vmatprep.subr.bf16.mxu0 %v11585_v53  ;;  %v12747_v25 = vld [vmem:[#allocation45_spill] sm:$0xff]  ;;  %v12748_v53 = vld [vmem:[#allocation46_spill] sm:$0xff] }
 0xdd2   :  { %7367 = vmatpush1.bf16.msra.mxu1 %v11588_v8  ;;  %7408 = vmatpush1.bf16.msra.mxu0 %v11591_v63  ;;  %v12749_v8 = vld [vmem:[#allocation47_spill] sm:$0xff]  ;;  %v12750_v63 = vld [vmem:[#allocation48_spill] sm:$0xff] }
 0xdd3   :  { %7479 = vmatprep.subr.bf16.mxu1 %v11594_v39  ;;  %7520 = vmatprep.subr.bf16.mxu0 %v11597_v35  ;;  %v12751_v39 = vld [vmem:[#allocation49_spill] sm:$0xff]  ;;  %v12752_v35 = vld [vmem:[#allocation50_spill] sm:$0xff] }
 0xdd5   :  { %7385 = vmatmul.mubr.bf16.vlgmr.msra.gmra.mxu1 %v7242_v42  ;;  %7426 = vmatmul.mubr.bf16.vlgmr.msra.gmra.mxu0 %v7242_v42  ;;  %v12775_v42 = vld [vmem:[#allocation22_spill] sm:$0xff] }
 0xdd6   :  { %7480 = vmatpush1.bf16.msra.mxu1 %v11602_v44  ;;  %7521 = vmatpush1.bf16.msra.mxu0 %v11605_v29  ;;  %v12753_v44 = vld [vmem:[#allocation51_spill] sm:$0xff]  ;;  %v12754_v29 = vld [vmem:[#allocation52_spill] sm:$0xff] }
 0xdd7   :  { %7481 = vmatprep.subr.bf16.mxu1 %v11608_v62  ;;  %7522 = vmatprep.subr.bf16.mxu0 %v11611_v28  ;;  %v12755_v62 = vld [vmem:[#allocation53_spill] sm:$0xff]  ;;  %v12756_v28 = vld [vmem:[#allocation54_spill] sm:$0xff] }
 0xdda   :  { %7482 = vmatpush1.bf16.msra.mxu1 %v11614_v45  ;;  %7523 = vmatpush1.bf16.msra.mxu0 %v11617_v46  ;;  %v12757_v45 = vld [vmem:[#allocation55_spill] sm:$0xff]  ;;  %v12758_v46 = vld [vmem:[#allocation56_spill] sm:$0xff] }
 0xddb   :  { %7483 = vmatprep.subr.bf16.mxu1 %v12719_v50  ;;  %7524 = vmatprep.subr.bf16.mxu0 %v12720_v49 }
 0xdde   :  { %7484 = vmatpush1.bf16.msra.mxu1 %v12721_v0  ;;  %7525 = vmatpush1.bf16.msra.mxu0 %v12722_v2 }
 0xddf   :  { %7485 = vmatprep.subr.bf16.mxu1 %v12723_v9  ;;  %7526 = vmatprep.subr.bf16.mxu0 %v12724_v10  ;;  %v12776_v9 = vld [vmem:[#allocation23_spill] sm:$0xff] }
 0xde2   :  { %7486 = vmatpush1.bf16.msra.mxu1 %v12725_v11  ;;  %7527 = vmatpush1.bf16.msra.mxu0 %v12726_v32 }
 0xde3   :  { %7487 = vmatprep.subr.bf16.mxu1 %v12727_v47  ;;  %7528 = vmatprep.subr.bf16.mxu0 %v12728_v14 }
 0xde6   :  { %7488 = vmatpush1.bf16.msra.mxu1 %v12729_v26  ;;  %7529 = vmatpush1.bf16.msra.mxu0 %v12730_v15  ;;  %v12777_v15 = vld [vmem:[#allocation24_spill] sm:$0xff] }
 0xde7   :  { %7489 = vmatprep.subr.bf16.mxu1 %v12731_v19  ;;  %7530 = vmatprep.subr.bf16.mxu0 %v12732_v52 }
 0xdea   :  { %7490 = vmatpush1.bf16.msra.mxu1 %v12733_v13  ;;  %7531 = vmatpush1.bf16.msra.mxu0 %v12734_v23  ;;  %v12778_v23 = vld [vmem:[#allocation25_spill] sm:$0xff] }
 0xdeb   :  { %7491 = vmatprep.subr.bf16.mxu1 %v12735_v40  ;;  %7532 = vmatprep.subr.bf16.mxu0 %v12736_v51 }
 0xdee   :  { %7492 = vmatpush1.bf16.msra.mxu1 %v12737_v3  ;;  %7533 = vmatpush1.bf16.msra.mxu0 %v12738_v31 }
 0xdef   :  { %7493 = vmatprep.subr.bf16.mxu1 %v12739_v55  ;;  %7534 = vmatprep.subr.bf16.mxu0 %v12740_v59 }
 0xdf2   :  { %7494 = vmatpush1.bf16.msra.mxu1 %v12741_v58  ;;  %7535 = vmatpush1.bf16.msra.mxu0 %v12742_v43 }
 0xdf3   :  { %7495 = vmatprep.subr.bf16.mxu1 %v12743_v24  ;;  %7536 = vmatprep.subr.bf16.mxu0 %v12744_v27 }
 0xdf6   :  { %7496 = vmatpush2.bf16.msra.mxu1 %v12745_v16  ;;  %7537 = vmatpush2.bf16.msra.mxu0 %v12746_v36 }
 0xdf7   :  { %7497 = vmatprep.subr.bf16.mxu1 %v12747_v25  ;;  %7538 = vmatprep.subr.bf16.mxu0 %v12748_v53 }
 0xdfa   :  { %7498 = vmatpush2.bf16.msra.mxu1 %v12749_v8  ;;  %7539 = vmatpush2.bf16.msra.mxu0 %v12750_v63 }
 0xdfb   :  { %7499 = vmatprep.subr.bf16.mxu1 %v12751_v39  ;;  %7540 = vmatprep.subr.bf16.mxu0 %v12752_v35 }
 0xdfe   :  { %7500 = vmatpush2.bf16.msra.mxu1 %v12753_v44  ;;  %7541 = vmatpush2.bf16.msra.mxu0 %v12754_v29 }
 0xdff   :  { %7501 = vmatprep.subr.bf16.mxu1 %v12755_v62  ;;  %7542 = vmatprep.subr.bf16.mxu0 %v12756_v28 }
 0xe02   :  { %7502 = vmatpush2.bf16.msra.mxu1 %v12757_v45  ;;  %7543 = vmatpush2.bf16.msra.mxu0 %v12758_v46 }
 0xe03   :  { %7503 = vmatprep.subr.bf16.mxu1 %v12759_v48  ;;  %7544 = vmatprep.subr.bf16.mxu0 %v12760_v38  ;;  %v12779_v38 = vcombine.high %v12716_v61, %v12717_v5 }
 0xe06   :  { %7504 = vmatpush2.bf16.msra.mxu1 %v12761_v41  ;;  %7545 = vmatpush2.bf16.msra.mxu0 %v12762_v7 }
 0xe07   :  { %7505 = vmatprep.subr.bf16.mxu1 %v12763_v34  ;;  %7546 = vmatprep.subr.bf16.mxu0 %v12764_v60 }
 0xe0a   :  { %7506 = vmatpush2.bf16.msra.mxu1 %v12765_v17  ;;  %7547 = vmatpush2.bf16.msra.mxu0 %v12766_v18 }
 0xe0b   :  { %7507 = vmatprep.subr.bf16.mxu1 %v12767_v57  ;;  %7548 = vmatprep.subr.bf16.mxu0 %v12768_v56 }
 0xe0e   :  { %7508 = vmatpush2.bf16.msra.mxu1 %v12769_v54  ;;  %7549 = vmatpush2.bf16.msra.mxu0 %v12770_v4 }
 0xe0f   :  { %7509 = vmatprep.subr.bf16.mxu1 %v12771_v21  ;;  %7550 = vmatprep.subr.bf16.mxu0 %v12772_v33 }
 0xe12   :  { %7510 = vmatpush2.bf16.msra.mxu1 %v12773_v30  ;;  %7551 = vmatpush2.bf16.msra.mxu0 %v12774_v20 }
 0xe75   :  { %v7278_v22 = vpop.f32.mrf.mxu1  ;;  %v7319_v37 = vpop.f32.mrf.mxu0 }
 0xe76   :  { %v7279_v50 = vadd.f32 %v7278_v22, %v12775_v42  ;;  %v7320_v19 = vadd.f32 %v7319_v37, %v12777_v15 }
 0xe77   :  { %v7280_v49 = vpop.f32.mrf.mxu1  ;;  %v7321_v0 = vpop.f32.mrf.mxu0 }
 0xe78   :  { %v8285_v2 = vmul.f32 -1.442695, %v7279_v50  ;;  %v7281_v10 = vadd.f32 %v7280_v49, %v12776_v9  ;;  %v8287_v52 = vmul.f32 -1.442695, %v7320_v19  ;;  %v7322_v40 = vadd.f32 %v7321_v0, %v12778_v23 }
 0xe79   :  { %v7282_v11 = vpop.f32.mrf.mxu1  ;;  %v7323_v32 = vpop.f32.mrf.mxu0 }
 0xe7a   :  { %9426 = vpow2.f32 %v8285_v2  ;;  %v8286_v47 = vmul.f32 -1.442695, %v7281_v10 }
 0xe7b   :  { %v7283_v14 = vpop.f32.mrf.mxu1  ;;  %v7324_v26 = vpop.f32.mrf.mxu0 }
 0xe7c   :  { %9428 = vpow2.f32 %v8286_v47 }
 0xe7d   :  { %9430 = vpow2.f32 %v8287_v52 }
 0xe87   :  { %v9427_v13 = vpop.eup %9426 }
 0xe88   :  { %v7335_v51 = vadd.f32 1.0, %v9427_v13 }
 0xe89   :  { %v9429_v3 = vpop.eup %9428 }
 0xe8a   :  { %9432 = vrcp.f32 %v7335_v51  ;;  %v7336_v31 = vadd.f32 1.0, %v9429_v3  ;;  %v9431_v58 = vpop.eup %9430 }
 0xe8b   :  { %9434 = vtanh.f32 %v7322_v40  ;;  %v7337_v8 = vadd.f32 1.0, %v9431_v58 }
 0xe8c   :  { %9436 = vrcp.f32 %v7336_v31 }
 0xe8d   :  { %9438 = vrcp.f32 %v7337_v8 }
 0xe95   :  { %v7386_v55 = vpop.f32.mrf.mxu1  ;;  %v7427_v59 = vpop.f32.mrf.mxu0 }
 0xe97   :  { %v9433_v43 = vpop.eup %9432  ;;  %v7388_v24 = vpop.f32.mrf.mxu1 }
 0xe98   :  { %v7429_v27 = vpop.f32.mrf.mxu0  ;;  %v9435_v16 = vpop.eup %9434  ;;  %v7438_v36 = vcombine.low %v7386_v55, %v7388_v24 }
 0xe99   :  { %v7439_v25 = vcombine.low %v7427_v59, %v7429_v27  ;;  %v9437_v53 = vpop.eup %9436  ;;  %v7390_v63 = vpop.f32.mrf.mxu1  ;;  %v7346_v44 = vmul.f32 %v9435_v16, %v9433_v43 }
 0xe9a   :  { %v7431_v39 = vpop.f32.mrf.mxu0  ;;  %v7345_v35 = vmul.f32 %v9437_v53, %v11797_v6  ;;  %v7446_v29 = vrot.slane %v7438_v36, %v10652_v1  ;;  %v9439_v34 = vpop.eup %9438 }
 0xe9b   :  { %v7453_v62 = vrot.slane %v7439_v25, %v10652_v1  ;;  %v7391_v28 = vpop.f32.mrf.mxu1 }
 0xe9c   :  { %v7432_v45 = vpop.f32.mrf.mxu0  ;;  %v7347_v46 = vadd.f32 %v7346_v44, %v7345_v35 }
 0xe9d   :  { %v7454_v48 = vcombine.low %v7446_v29, %v7453_v62 }
 0xe9e   :  { %9440 = vtanh.f32 %v7347_v46 }
 0xe9f   :  { %v7456_v41 = vadd.f32 %v7454_v48, %v12779_v38 }
 0xea1   :  { %v8288_v7 = vmul.f32 -1.442695, %v7456_v41  ;;  %v7464_v56 = vrot.slane %v7456_v41, 6 }
 0xea3   :  { %9442 = vpow2.f32 %v8288_v7 }
 0xeab   :  { %v9441_v60 = vpop.eup %9440 }
 0xeac   :  { %v7349_v6 = vmul.f32 %v9441_v60, %v9439_v34 }
 0xeae   :  { %v7478_v17 = vpack.c.bf16 %v7349_v6, %v7349_v6 }
 0xeb0   :  { %v9443_v18 = vpop.eup %9442  ;;  %7511 = vmatprep.mubr.bf16.mxu1 %v7478_v17  ;;  %7552 = vmatprep.mubr.bf16.mxu0 %v7478_v17 }
 0xeb1   :  { %v7460_v57 = vadd.f32 1.0, %v9443_v18 }
 0xeb3   :  { %9444 = vrcp.f32 %v7460_v57 }
 0xeb4   :  { %9446 = vtanh.f32 %v7464_v56 }
 0xec0   :  { %v9445_v1 = vpop.eup %9444 }
 0xec1   :  { %v7468_v54 = vrot.slane %v9445_v1, 2  ;;  %v9447_v4 = vpop.eup %9446  ;;  %v7474_v33 = vrot.slane %v9445_v1, 4 }
 0xec2   :  { %v7471_v5 = vmul.f32 %v9447_v4, %v9445_v1 }
 0xec3   :  { %v7470_v61 = vmul.f32 %v7468_v54, %v11804_v12 }
 0xec5   :  { %v7472_v21 = vadd.f32 %v7471_v5, %v7470_v61 }
 0xec7   :  { %9448 = vtanh.f32 %v7472_v21 }
 0xed4   :  { %v9449_v30 = vpop.eup %9448 }
 0xed5   :  { %v7476_v20 = vmul.f32 %v9449_v30, %v7474_v33 }
 0xed7   :  { %v7477_v22 = vpack.c.bf16 %v7476_v20, %v7476_v20 }
 0xed9   :  { %7512 = vmatmul.mubr.bf16.vlgmr.msra.gmra.mxu1 %v7477_v22  ;;  %7553 = vmatmul.mubr.bf16.vlgmr.msra.gmra.mxu0 %v7477_v22 }
 0xf99   :  { %v7513_v37 = vpop.f32.mrf.mxu1  ;;  %v7554_v50 = vpop.f32.mrf.mxu0 }
 0xf9a   :  { %v7514_v49 = vadd.f32 %v7513_v37, %v12775_v42  ;;  %v7555_v19 = vadd.f32 %v7554_v50, %v12777_v15 }
 0xf9b   :  { %v7515_v0 = vpop.f32.mrf.mxu1  ;;  %v7556_v2 = vpop.f32.mrf.mxu0 }
 0xf9c   :  { %v8289_v10 = vmul.f32 -1.442695, %v7514_v49  ;;  %v7516_v11 = vadd.f32 %v7515_v0, %v12776_v9  ;;  %v8291_v52 = vmul.f32 -1.442695, %v7555_v19  ;;  %v7557_v40 = vadd.f32 %v7556_v2, %v12778_v23 }
 0xf9d   :  { %v7517_v32 = vpop.f32.mrf.mxu1  ;;  %v7558_v12 = vpop.f32.mrf.mxu0 }
 0xf9e   :  { %9450 = vpow2.f32 %v8289_v10  ;;  %v8290_v47 = vmul.f32 -1.442695, %v7516_v11 }
 0xf9f   :  { %v7518_v14 = vpop.f32.mrf.mxu1  ;;  %v7559_v26 = vpop.f32.mrf.mxu0 }
 0xfa0   :  { %9452 = vpow2.f32 %v8290_v47 }
 0xfa1   :  { %9454 = vpow2.f32 %v8291_v52 }
 0xfab   :  { %v9451_v13 = vpop.eup %9450 }
 0xfac   :  { %v7570_v51 = vadd.f32 1.0, %v9451_v13 }
 0xfad   :  { %v9453_v42 = vpop.eup %9452 }
 0xfae   :  { %9456 = vrcp.f32 %v7570_v51  ;;  %v7571_v3 = vadd.f32 1.0, %v9453_v42  ;;  %v9455_v9 = vpop.eup %9454 }
 0xfaf   :  { %9458 = vtanh.f32 %v7557_v40  ;;  %v7572_v58 = vadd.f32 1.0, %v9455_v9 }
 0xfb0   :  { %9460 = vrcp.f32 %v7571_v3 }
 0xfb1   :  { %9462 = vrcp.f32 %v7572_v58 }
 0xfbb   :  { %v9457_v31 = vpop.eup %9456 }
 0xfbc   :  { %v9459_v55 = vpop.eup %9458 }
 0xfbd   :  { %v9461_v59 = vpop.eup %9460  ;;  %v7581_v24 = vmul.f32 %v9459_v55, %v9457_v31 }
 0xfbe   :  { %v7580_v43 = vmul.f32 %v9461_v59, %v7347_v46  ;;  %v9463_v15 = vpop.eup %9462 }
 0xfc0   :  { %v7582_v27 = vadd.f32 %v7581_v24, %v7580_v43 }
 0xfc2   :  { %9464 = vtanh.f32 %v7582_v27 }
 0xfcf   :  { %v9465_v23 = vpop.eup %9464 }
 0xfd0   :  { %v7584_v16 = vmul.f32 %v9465_v23, %v9463_v15 }
 0xfd2   :  { %7585 = vst [vmem:[#allocation14] sm:$0x3] %v7584_v16 }
 0xfd3   :  { %9789 = shalt.err (!%p9786_p6)
}
 0xfd4   :  { %7595 = dma.vmem_to_hbm [thread:$0]  %s7593_s15, 32, %s11935_s14, [#allocation5]  }
 0xfd5   :  { %9806 = dma.done.wait [#allocation5], 32  }
 0xfd6   :  { %9807 = vsyncadd [#allocation5], 4294967264 }
 0xfd7   :  { %7599 = vsyncpa [#allocation4], 1 }
 0xfd8   :  { %7600 = vsyncpa [#allocation7], 1 }
 0xfd9   :  { %7601 = vsyncpa [#allocation10], 1 }
 0xfda   :  { %7602 = vsyncpa [#allocation13], 1 }
 0xfdb   :  { %7603 = vsyncpa [#allocation5], 1 }

</bundles_post_ra>
